<compile_context>
chip_gen: v6e
topology: v6e:2x2x1
jax: 0.10.0
libtpu: 0.0.40
codegen_flags: <defaults>
</compile_context>

<pallas_src>
import functools

import jax
import jax.numpy as jnp
import numpy as np
from jax.experimental import pallas as pl
from jax.experimental.pallas import tpu as pltpu


_KT, _KH, _KW = 3, 5, 5      # shared (temporal, spatial) conv window
_SPAD = 2                    # spatial halo of the shared 5x5 window


def _round_up(x, m):
    return ((x + m - 1) // m) * m


# ----------------------------- fused Pallas kernel ---------------------------
def _avfeat_kernel(meta, Hp, Wp,
                   x_ref, w1_ref, b1_ref, w2_ref, b2_ref, w3_ref, b3_ref,
                   mask_ref, o_ref,
                   g1, p1, a1, g2, p2, a2, g3, p3):
    """One grid step = one batch element, all three stages fused.

    Activation layout everywhere: (channels, t * Hp*Wp) with the spatial grid
    stored zero-padded (+2 per side) and flattened onto the lane axis, so a
    spatial (dh, dw) conv tap is a pure static lane offset (no gathers,
    rolls or in-kernel reshapes needed).
    """
    hwp = Hp * Wp

    def build_g(g, m, read_frame):
        # G[(dt, ci), t_out*hwp + p] = padded input frame (t_out*stride+dt-pad);
        # frames outside [0, t_in) stay zero (temporal zero padding).
        g[...] = jnp.zeros_like(g)
        for t_out in range(m['t_used']):
            for dt in range(_KT):
                t_in = t_out * m['st'] + dt - m['pt']
                if 0 <= t_in < m['t_in']:
                    g[pl.ds(dt * m['cin'], m['cin']),
                      pl.ds(t_out * hwp, hwp)] = read_frame(t_in)

    def build_patches(g, p, r):
        # Shared-window im2col in VMEM:
        #   P[j*r:(j+1)*r, q] = G[:, q + s_j] for the 25 spatial taps j=(dh,dw).
        # Columns where q + s_j falls outside [0, n) are spatial-pad outputs
        # (re-zeroed by the epilogue mask anyway), so they are simply set to 0.
        n = g.shape[1]
        for dh in range(_KH):
            for dw in range(_KW):
                j = dh * _KW + dw
                s = (dh - _SPAD) * Wp + (dw - _SPAD)
                rows = pl.ds(j * r, r)
                if s == 0:
                    p[rows, :] = g[...].astype(p.dtype)
                elif s > 0:
                    p[rows, pl.ds(0, n - s)] = g[:, pl.ds(s, n - s)].astype(p.dtype)
                    p[rows, pl.ds(n - s, s)] = jnp.zeros((r, s), p.dtype)
                else:
                    p[rows, pl.ds(-s, n + s)] = g[:, pl.ds(0, n + s)].astype(p.dtype)
                    p[rows, pl.ds(0, -s)] = jnp.zeros((r, -s), p.dtype)

    def stage_matmul(p, w_ref, b_ref, cout, n):
        # One MXU matmul for all three branches (weights stacked on rows),
        # bf16 operands with f32 accumulation.
        # TODO(synk): M = 3*Cout is small; if profiling shows the MXU reloading
        # the small weight operand per column block, drive it explicitly with
        # pltpu.matmul_push_rhs so the weight stays resident.
        y = jnp.dot(w_ref[...], p[...], preferred_element_type=jnp.float32)
        y = jnp.maximum(y + b_ref[...], 0.0)          # per-branch BN bias + ReLU
        fused = (y[0:cout, :] + y[cout:2 * cout, :]
                 + y[2 * cout:3 * cout, :]) * (1.0 / 3.0)
        return fused * mask_ref[:, pl.ds(0, n)]       # re-zero spatial-pad cols

    m1, m2, m3 = meta

    # -------- stage 1 (Cin == 1; x_ref rows are the T padded input frames) ---
    build_g(g1, m1, lambda t: x_ref[pl.ds(t, 1), :])
    build_patches(g1, p1, m1['r'])
    a1[...] = stage_matmul(p1, w1_ref, b1_ref, m1['cout'], m1['n'])

    # -------- stage 2 (reads fused1 from VMEM) --------------------------------
    build_g(g2, m2, lambda t: a1[:, pl.ds(t * hwp, hwp)])
    build_patches(g2, p2, m2['r'])
    a2[...] = stage_matmul(p2, w2_ref, b2_ref, m2['cout'], m2['n'])

    # -------- stage 3 (reads fused2 from VMEM, writes the kernel output) ------
    build_g(g3, m3, lambda t: a2[:, pl.ds(t * hwp, hwp)])
    build_patches(g3, p3, m3['r'])
    o_ref[...] = stage_matmul(p3, w3_ref, b3_ref, m3['cout'], m3['n'])


# ------------------------------ parameters -----------------------------------
def _init_conv_bn(key, cin, cout, ksize):
    kt, kh, kw = ksize
    k_w, k_b = jax.random.split(key)
    w = 0.05 * jax.random.normal(k_w, (cout, cin, kt, kh, kw), jnp.float32)
    conv_b = 0.05 * jax.random.normal(k_b, (cout,), jnp.float32)
    # BatchNorm3d with eval-mode (default running) statistics, folded into a
    # per-channel scale/bias together with the conv bias.
    eps = 1e-5
    gamma = jnp.ones((cout,), jnp.float32)
    beta = jnp.zeros((cout,), jnp.float32)
    mean = jnp.zeros((cout,), jnp.float32)
    var = jnp.ones((cout,), jnp.float32)
    scale = gamma / jnp.sqrt(var + eps)
    bias = beta + (conv_b - mean) * scale
    return w, scale, bias


def init_avfeat_params(key, filter_size):
    """Raw per-branch params (also used by the pure-JAX reference)."""
    assert filter_size % 8 == 0, "filter_size must be a multiple of 8 (sublane)"
    stage_specs = [
        (1, filter_size, 5,
         [((3, 5, 5), (0, 2, 2)), ((3, 3, 3), (0, 1, 1)), ((3, 1, 1), (0, 0, 0))]),
        (filter_size, filter_size, 5,
         [((3, 5, 5), (0, 2, 2)), ((3, 3, 3), (0, 1, 1)), ((3, 1, 1), (0, 0, 0))]),
        (filter_size, filter_size, 2,
         [((3, 5, 5), (1, 2, 2)), ((3, 3, 3), (1, 1, 1)), ((3, 1, 1), (1, 0, 0))]),
    ]
    params = []
    for cin, cout, st, branch_specs in stage_specs:
        branches = []
        for ksize, pad in branch_specs:
            key, sub = jax.random.split(key)
            w, scale, bias = _init_conv_bn(sub, cin, cout, ksize)
            branches.append(dict(w=w, scale=scale, bias=bias,
                                 ksize=ksize, pad=pad, stride_t=st))
        params.append(branches)
    return params


def _embed_spatial_to_5x5(w):
    """Zero-embed a (Cout, Cin, 3, kh, kw) kernel into the 5x5 spatial taps."""
    kh, kw = w.shape[-2], w.shape[-1]
    ph, pw = (5 - kh) // 2, (5 - kw) // 2
    return jnp.pad(w, ((0, 0), (0, 0), (0, 0), (ph, ph), (pw, pw)))


def pack_stage_params(raw_params):
    """Packed per-stage weights for the kernel: K ordered (dh, dw, dt, ci),
    each tap's 3*Cin rows zero-padded to a multiple of 8 so every in-kernel
    patch store is sublane-aligned; BN scale folded; the 3 branches stacked."""
    packed = []
    for branches in raw_params:
        cout, cin = branches[0]['w'].shape[0], branches[0]['w'].shape[1]
        r = _round_up(_KT * cin, 8)
        k_pad = _KH * _KW * r
        w_rows, b_rows = [], []
        for br in branches:
            w = br['w'] * br['scale'].reshape(cout, 1, 1, 1, 1)   # fold BN scale
            w = _embed_spatial_to_5x5(w)                   # (cout, cin, 3, 5, 5)
            w = jnp.transpose(w, (0, 3, 4, 2, 1))          # (cout, 5, 5, 3, cin)
            w = w.reshape(cout, _KH * _KW, _KT * cin)
            w = jnp.pad(w, ((0, 0), (0, 0), (0, r - _KT * cin)))
            w_rows.append(w.reshape(cout, k_pad))
            b_rows.append(br['bias'])
        w_stk = jnp.concatenate(w_rows, axis=0).astype(jnp.bfloat16)  # (3*Cout, K)
        b_stk = jnp.concatenate(b_rows, axis=0).reshape(3 * cout, 1)
        packed.append(dict(w=w_stk, b=b_stk.astype(jnp.float32),
                           cin=cin, cout=cout, r=r, k_pad=k_pad,
                           stride_t=branches[0]['stride_t'],
                           pad_t=branches[0]['pad'][0]))
    return packed


# -------------------------------- forward ------------------------------------
def avfeat_forward(x, packed_params):
    """x: (B, 1, T, H, W) -> (B, filter_size, H, W) (temporal dim collapses)."""
    B, cin0, T0, H, W = x.shape
    assert cin0 == packed_params[0]['cin'] == 1
    Hp, Wp = H + 2 * _SPAD, W + 2 * _SPAD
    hwp = Hp * Wp
    cout = packed_params[-1]['cout']

    # --- static temporal bookkeeping (+ dead-frame elimination) --------------
    t_full, t = [], T0
    for st in packed_params:
        t = (t + 2 * st['pad_t'] - _KT) // st['stride_t'] + 1
        assert t >= 1, "input T too small for the AvFeat temporal strides"
        t_full.append(t)
    t_used = [0, 0, t_full[2]]
    for i in (1, 0):
        nxt = packed_params[i + 1]
        need = (t_used[i + 1] - 1) * nxt['stride_t'] + _KT - nxt['pad_t']
        t_used[i] = min(t_full[i], need)   # later stages never read the rest
    t_avail = [T0, t_used[0], t_used[1]]

    meta = []
    for i, st in enumerate(packed_params):
        meta.append(dict(cin=st['cin'], cout=st['cout'], st=st['stride_t'],
                         pt=st['pad_t'], r=st['r'], k_pad=st['k_pad'],
                         t_in=t_avail[i], t_used=t_used[i],
                         n=t_used[i] * hwp))
    n1, n2, n3 = (m['n'] for m in meta)
    n_max = max(n1, n2, n3)

    # --- host-side prep: symmetric spatial pad + flatten (tiny, ~80 KB) ------
    xp = jnp.pad(x, ((0, 0), (0, 0), (0, 0), (_SPAD, _SPAD), (_SPAD, _SPAD)))
    xp = xp.reshape(B, cin0 * T0, hwp)

    m2d = np.zeros((Hp, Wp), np.float32)
    m2d[_SPAD:_SPAD + H, _SPAD:_SPAD + W] = 1.0
    pad_mask = jnp.asarray(np.tile(m2d.reshape(1, -1), (1, n_max // hwp)))

    w1, b1 = packed_params[0]['w'], packed_params[0]['b']
    w2, b2 = packed_params[1]['w'], packed_params[1]['b']
    w3, b3 = packed_params[2]['w'], packed_params[2]['b']

    kernel = functools.partial(_avfeat_kernel, meta, Hp, Wp)

    # Per-step VMEM (patch buffers + activations + weights) is ~2 MiB, well
    # below the scoped-VMEM defaults on v5e/v6e/v7x: no vmem_limit override.
    out_flat = pl.pallas_call(
        kernel,
        out_shape=jax.ShapeDtypeStruct((B, cout, n3), jnp.float32),
        grid_spec=pltpu.PrefetchScalarGridSpec(
            num_scalar_prefetch=0,
            grid=(B,),                        # batch-parallel across cores
            in_specs=[
                pl.BlockSpec((None, cin0 * T0, hwp), lambda b: (b, 0, 0)),
                pl.BlockSpec(w1.shape, lambda b: (0, 0)),
                pl.BlockSpec(b1.shape, lambda b: (0, 0)),
                pl.BlockSpec(w2.shape, lambda b: (0, 0)),
                pl.BlockSpec(b2.shape, lambda b: (0, 0)),
                pl.BlockSpec(w3.shape, lambda b: (0, 0)),
                pl.BlockSpec(b3.shape, lambda b: (0, 0)),
                pl.BlockSpec(pad_mask.shape, lambda b: (0, 0)),
            ],
            out_specs=pl.BlockSpec((None, cout, n3), lambda b: (b, 0, 0)),
            scratch_shapes=[
                pltpu.VMEM((meta[0]['r'], n1), jnp.float32),        # g1
                pltpu.VMEM((meta[0]['k_pad'], n1), jnp.bfloat16),   # p1
                pltpu.VMEM((cout, n1), jnp.float32),                # fused1
                pltpu.VMEM((meta[1]['r'], n2), jnp.float32),        # g2
                pltpu.VMEM((meta[1]['k_pad'], n2), jnp.bfloat16),   # p2
                pltpu.VMEM((cout, n2), jnp.float32),                # fused2
                pltpu.VMEM((meta[2]['r'], n3), jnp.float32),        # g3
                pltpu.VMEM((meta[2]['k_pad'], n3), jnp.bfloat16),   # p3
            ],
        ),
        compiler_params=pltpu.CompilerParams(
            dimension_semantics=("parallel",)),
    )(xp, w1, b1, w2, b2, w3, b3, pad_mask)

    out = out_flat.reshape(B, cout, meta[2]['t_used'], Hp, Wp)
    out = out[:, :, :, _SPAD:_SPAD + H, _SPAD:_SPAD + W]
    # out = fused3.squeeze(dim=2)  (only drops the dim if it is size 1)
    if out.shape[2] == 1:
        out = jnp.squeeze(out, axis=2)
    return out


# ---------------------------- pure-JAX reference -----------------------------
def _conv_bn_relu_ref(x, br):
    pt, ph, pw = br['pad']
    y = jax.lax.conv_general_dilated(
        x, br['w'], window_strides=(br['stride_t'], 1, 1),
        padding=[(pt, pt), (ph, ph), (pw, pw)],
        dimension_numbers=('NCDHW', 'OIDHW', 'NCDHW'))
    y = y * br['scale'].reshape(1, -1, 1, 1, 1) + br['bias'].reshape(1, -1, 1, 1, 1)
    return jnp.maximum(y, 0.0)


def avfeat_forward_ref(x, raw_params):
    fused = x
    for branches in raw_params:
        # per-branch Conv3d -> BN -> ReLU, then the 3-way average (matches the
        # conv_block_3d branches + (x1+x2+x3)/3 ordering of the PyTorch module)
        fused = sum(_conv_bn_relu_ref(fused, br) for br in branches) / 3.0
    if fused.shape[2] == 1:
        return jnp.squeeze(fused, axis=2)
    return fused


if __name__ == "__main__":
    key = jax.random.PRNGKey(0)
    k_x, k_p = jax.random.split(key)

    B, Cin, T, H, W = 2, 1, 25, 16, 16      # T=25 -> T1=5 -> T2=1 -> T3=1
    filter_size = 8

    x = jax.random.normal(k_x, (B, Cin, T, H, W), jnp.float32)
    raw = init_avfeat_params(k_p, filter_size)
    packed = pack_stage_params(raw)

    fwd = jax.jit(functools.partial(avfeat_forward, packed_params=packed))
    out = jax.block_until_ready(fwd(x))

    assert out.shape == (B, filter_size, H, W), out.shape
    assert out.dtype == jnp.float32
    assert bool(jnp.all(jnp.isfinite(out)))

    # loose sanity check vs an XLA f32 reference (kernel feeds the MXU in bf16)
    ref = jax.block_until_ready(avfeat_forward_ref(x, raw))
    err = float(jnp.max(jnp.abs(out - ref)))
    scale = float(jnp.max(jnp.abs(ref))) + 1e-6
    assert err <= 0.1 * scale, (err, scale)

    print("KERNEL_OK")
</pallas_src>

<mosaic_0001>
module attributes {stable_mosaic.version = 11 : i64} {
  func.func @_avfeat_kernel(%arg0: i32, %arg1: memref<1x25x400xf32, #tpu.memory_space<vmem>>, %arg2: memref<24x200xbf16, #tpu.memory_space<vmem>>, %arg3: memref<24x1xf32, #tpu.memory_space<vmem>>, %arg4: memref<24x600xbf16, #tpu.memory_space<vmem>>, %arg5: memref<24x1xf32, #tpu.memory_space<vmem>>, %arg6: memref<24x600xbf16, #tpu.memory_space<vmem>>, %arg7: memref<24x1xf32, #tpu.memory_space<vmem>>, %arg8: memref<1x1200xf32, #tpu.memory_space<vmem>>, %arg9: memref<1x8x400xf32, #tpu.memory_space<vmem>>, %arg10: memref<8x1200xf32, #tpu.memory_space<vmem>>, %arg11: memref<200x1200xbf16, #tpu.memory_space<vmem>>, %arg12: memref<8x1200xf32, #tpu.memory_space<vmem>>, %arg13: memref<24x400xf32, #tpu.memory_space<vmem>>, %arg14: memref<600x400xbf16, #tpu.memory_space<vmem>>, %arg15: memref<8x400xf32, #tpu.memory_space<vmem>>, %arg16: memref<24x400xf32, #tpu.memory_space<vmem>>, %arg17: memref<600x400xbf16, #tpu.memory_space<vmem>>) attributes {dimension_semantics = [#tpu.dimension_semantics<parallel>], iteration_bounds = array<i64: 2>, scalar_prefetch = 0 : i64, scratch_operands = 8 : i64, tpu.core_type = #tpu.core_type<tc>, window_params = [{transform_indices = @transform_0, window_bounds = array<i64: 1, 25, 400>}, {pipeline_mode = #tpu.pipeline_mode<synchronous>, transform_indices = @transform_1, window_bounds = array<i64: 24, 200>}, {pipeline_mode = #tpu.pipeline_mode<synchronous>, transform_indices = @transform_2, window_bounds = array<i64: 24, 1>}, {pipeline_mode = #tpu.pipeline_mode<synchronous>, transform_indices = @transform_3, window_bounds = array<i64: 24, 600>}, {pipeline_mode = #tpu.pipeline_mode<synchronous>, transform_indices = @transform_4, window_bounds = array<i64: 24, 1>}, {pipeline_mode = #tpu.pipeline_mode<synchronous>, transform_indices = @transform_5, window_bounds = array<i64: 24, 600>}, {pipeline_mode = #tpu.pipeline_mode<synchronous>, transform_indices = @transform_6, window_bounds = array<i64: 24, 1>}, {pipeline_mode = #tpu.pipeline_mode<synchronous>, transform_indices = @transform_7, window_bounds = array<i64: 1, 1200>}, {transform_indices = @transform_8, window_bounds = array<i64: 1, 8, 400>}]} {
    %cst = arith.constant 0.000000e+00 : f32
    %0 = vector.broadcast %cst : f32 to vector<8x1200xf32>
    %c0 = arith.constant 0 : index
    %c0_0 = arith.constant 0 : index
    %1 = vector.load %arg10[%c0, %c0_0] : memref<8x1200xf32, #tpu.memory_space<vmem>>, vector<8x1200xf32>
    tpu.vector_store %arg10[%c0, %c0_0], %0 {strides = array<i32>} : memref<8x1200xf32, #tpu.memory_space<vmem>>, vector<8x1200xf32>,
    %c0_1 = arith.constant 0 : index
    %c0_2 = arith.constant 0 : index
    %c0_3 = arith.constant 0 : index
    %2 = vector.load %arg1[%c0_1, %c0_2, %c0_3] : memref<1x25x400xf32, #tpu.memory_space<vmem>>, vector<1x1x400xf32>
    %3 = vector.shape_cast %2 : vector<1x1x400xf32> to vector<1x400xf32>
    %c0_4 = arith.constant 0 : index
    %c0_5 = arith.constant 0 : index
    %4 = vector.load %arg10[%c0_4, %c0_5] : memref<8x1200xf32, #tpu.memory_space<vmem>>, vector<1x400xf32>
    tpu.vector_store %arg10[%c0_4, %c0_5], %3 {strides = array<i32>} : memref<8x1200xf32, #tpu.memory_space<vmem>>, vector<1x400xf32>,
    %c0_6 = arith.constant 0 : index
    %c1 = arith.constant 1 : index
    %c0_7 = arith.constant 0 : index
    %5 = vector.load %arg1[%c0_6, %c1, %c0_7] : memref<1x25x400xf32, #tpu.memory_space<vmem>>, vector<1x1x400xf32>
    %6 = vector.shape_cast %5 : vector<1x1x400xf32> to vector<1x400xf32>
    %c1_8 = arith.constant 1 : index
    %c0_9 = arith.constant 0 : index
    %7 = vector.load %arg10[%c1_8, %c0_9] : memref<8x1200xf32, #tpu.memory_space<vmem>>, vector<1x400xf32>
    tpu.vector_store %arg10[%c1_8, %c0_9], %6 {strides = array<i32>} : memref<8x1200xf32, #tpu.memory_space<vmem>>, vector<1x400xf32>,
    %c0_10 = arith.constant 0 : index
    %c2 = arith.constant 2 : index
    %c0_11 = arith.constant 0 : index
    %8 = vector.load %arg1[%c0_10, %c2, %c0_11] : memref<1x25x400xf32, #tpu.memory_space<vmem>>, vector<1x1x400xf32>
    %9 = vector.shape_cast %8 : vector<1x1x400xf32> to vector<1x400xf32>
    %c2_12 = arith.constant 2 : index
    %c0_13 = arith.constant 0 : index
    %10 = vector.load %arg10[%c2_12, %c0_13] : memref<8x1200xf32, #tpu.memory_space<vmem>>, vector<1x400xf32>
    tpu.vector_store %arg10[%c2_12, %c0_13], %9 {strides = array<i32>} : memref<8x1200xf32, #tpu.memory_space<vmem>>, vector<1x400xf32>,
    %c0_14 = arith.constant 0 : index
    %c5 = arith.constant 5 : index
    %c0_15 = arith.constant 0 : index
    %11 = vector.load %arg1[%c0_14, %c5, %c0_15] : memref<1x25x400xf32, #tpu.memory_space<vmem>>, vector<1x1x400xf32>
    %12 = vector.shape_cast %11 : vector<1x1x400xf32> to vector<1x400xf32>
    %c0_16 = arith.constant 0 : index
    %c400 = arith.constant 400 : index
    %13 = vector.load %arg10[%c0_16, %c400] : memref<8x1200xf32, #tpu.memory_space<vmem>>, vector<1x400xf32>
    tpu.vector_store %arg10[%c0_16, %c400], %12 {strides = array<i32>} : memref<8x1200xf32, #tpu.memory_space<vmem>>, vector<1x400xf32>,
    %c0_17 = arith.constant 0 : index
    %c6 = arith.constant 6 : index
    %c0_18 = arith.constant 0 : index
    %14 = vector.load %arg1[%c0_17, %c6, %c0_18] : memref<1x25x400xf32, #tpu.memory_space<vmem>>, vector<1x1x400xf32>
    %15 = vector.shape_cast %14 : vector<1x1x400xf32> to vector<1x400xf32>
    %c1_19 = arith.constant 1 : index
    %c400_20 = arith.constant 400 : index
    %16 = vector.load %arg10[%c1_19, %c400_20] : memref<8x1200xf32, #tpu.memory_space<vmem>>, vector<1x400xf32>
    tpu.vector_store %arg10[%c1_19, %c400_20], %15 {strides = array<i32>} : memref<8x1200xf32, #tpu.memory_space<vmem>>, vector<1x400xf32>,
    %c0_21 = arith.constant 0 : index
    %c7 = arith.constant 7 : index
    %c0_22 = arith.constant 0 : index
    %17 = vector.load %arg1[%c0_21, %c7, %c0_22] : memref<1x25x400xf32, #tpu.memory_space<vmem>>, vector<1x1x400xf32>
    %18 = vector.shape_cast %17 : vector<1x1x400xf32> to vector<1x400xf32>
    %c2_23 = arith.constant 2 : index
    %c400_24 = arith.constant 400 : index
    %19 = vector.load %arg10[%c2_23, %c400_24] : memref<8x1200xf32, #tpu.memory_space<vmem>>, vector<1x400xf32>
    tpu.vector_store %arg10[%c2_23, %c400_24], %18 {strides = array<i32>} : memref<8x1200xf32, #tpu.memory_space<vmem>>, vector<1x400xf32>,
    %c0_25 = arith.constant 0 : index
    %c10 = arith.constant 10 : index
    %c0_26 = arith.constant 0 : index
    %20 = vector.load %arg1[%c0_25, %c10, %c0_26] : memref<1x25x400xf32, #tpu.memory_space<vmem>>, vector<1x1x400xf32>
    %21 = vector.shape_cast %20 : vector<1x1x400xf32> to vector<1x400xf32>
    %c0_27 = arith.constant 0 : index
    %c800 = arith.constant 800 : index
    %22 = vector.load %arg10[%c0_27, %c800] : memref<8x1200xf32, #tpu.memory_space<vmem>>, vector<1x400xf32>
    tpu.vector_store %arg10[%c0_27, %c800], %21 {strides = array<i32>} : memref<8x1200xf32, #tpu.memory_space<vmem>>, vector<1x400xf32>,
    %c0_28 = arith.constant 0 : index
    %c11 = arith.constant 11 : index
    %c0_29 = arith.constant 0 : index
    %23 = vector.load %arg1[%c0_28, %c11, %c0_29] : memref<1x25x400xf32, #tpu.memory_space<vmem>>, vector<1x1x400xf32>
    %24 = vector.shape_cast %23 : vector<1x1x400xf32> to vector<1x400xf32>
    %c1_30 = arith.constant 1 : index
    %c800_31 = arith.constant 800 : index
    %25 = vector.load %arg10[%c1_30, %c800_31] : memref<8x1200xf32, #tpu.memory_space<vmem>>, vector<1x400xf32>
    tpu.vector_store %arg10[%c1_30, %c800_31], %24 {strides = array<i32>} : memref<8x1200xf32, #tpu.memory_space<vmem>>, vector<1x400xf32>,
    %c0_32 = arith.constant 0 : index
    %c12 = arith.constant 12 : index
    %c0_33 = arith.constant 0 : index
    %26 = vector.load %arg1[%c0_32, %c12, %c0_33] : memref<1x25x400xf32, #tpu.memory_space<vmem>>, vector<1x1x400xf32>
    %27 = vector.shape_cast %26 : vector<1x1x400xf32> to vector<1x400xf32>
    %c2_34 = arith.constant 2 : index
    %c800_35 = arith.constant 800 : index
    %28 = vector.load %arg10[%c2_34, %c800_35] : memref<8x1200xf32, #tpu.memory_space<vmem>>, vector<1x400xf32>
    tpu.vector_store %arg10[%c2_34, %c800_35], %27 {strides = array<i32>} : memref<8x1200xf32, #tpu.memory_space<vmem>>, vector<1x400xf32>,
    %c0_36 = arith.constant 0 : index
    %c0_37 = arith.constant 0 : index
    %29 = vector.load %arg10[%c0_36, %c0_37] : memref<8x1200xf32, #tpu.memory_space<vmem>>, vector<8x1158xf32>
    %30 = arith.truncf %29 : vector<8x1158xf32> to vector<8x1158xbf16>
    %c0_38 = arith.constant 0 : index
    %c42 = arith.constant 42 : index
    %31 = vector.load %arg11[%c0_38, %c42] : memref<200x1200xbf16, #tpu.memory_space<vmem>>, vector<8x1158xbf16>
    tpu.vector_store %arg11[%c0_38, %c42], %30 {strides = array<i32>} : memref<200x1200xbf16, #tpu.memory_space<vmem>>, vector<8x1158xbf16>,
    %cst_39 = arith.constant 0.000000e+00 : bf16
    %32 = vector.broadcast %cst_39 : bf16 to vector<8x42xbf16>
    %c0_40 = arith.constant 0 : index
    %c0_41 = arith.constant 0 : index
    %33 = vector.load %arg11[%c0_40, %c0_41] : memref<200x1200xbf16, #tpu.memory_space<vmem>>, vector<8x42xbf16>
    tpu.vector_store %arg11[%c0_40, %c0_41], %32 {strides = array<i32>} : memref<200x1200xbf16, #tpu.memory_space<vmem>>, vector<8x42xbf16>,
    %c0_42 = arith.constant 0 : index
    %c0_43 = arith.constant 0 : index
    %34 = vector.load %arg10[%c0_42, %c0_43] : memref<8x1200xf32, #tpu.memory_space<vmem>>, vector<8x1159xf32>
    %35 = arith.truncf %34 : vector<8x1159xf32> to vector<8x1159xbf16>
    %c8 = arith.constant 8 : index
    %c41 = arith.constant 41 : index
    %36 = vector.load %arg11[%c8, %c41] : memref<200x1200xbf16, #tpu.memory_space<vmem>>, vector<8x1159xbf16>
    tpu.vector_store %arg11[%c8, %c41], %35 {strides = array<i32>} : memref<200x1200xbf16, #tpu.memory_space<vmem>>, vector<8x1159xbf16>,
    %cst_44 = arith.constant 0.000000e+00 : bf16
    %37 = vector.broadcast %cst_44 : bf16 to vector<8x41xbf16>
    %c8_45 = arith.constant 8 : index
    %c0_46 = arith.constant 0 : index
    %38 = vector.load %arg11[%c8_45, %c0_46] : memref<200x1200xbf16, #tpu.memory_space<vmem>>, vector<8x41xbf16>
    tpu.vector_store %arg11[%c8_45, %c0_46], %37 {strides = array<i32>} : memref<200x1200xbf16, #tpu.memory_space<vmem>>, vector<8x41xbf16>,
    %c0_47 = arith.constant 0 : index
    %c0_48 = arith.constant 0 : index
    %39 = vector.load %arg10[%c0_47, %c0_48] : memref<8x1200xf32, #tpu.memory_space<vmem>>, vector<8x1160xf32>
    %40 = arith.truncf %39 : vector<8x1160xf32> to vector<8x1160xbf16>
    %c16 = arith.constant 16 : index
    %c40 = arith.constant 40 : index
    %41 = vector.load %arg11[%c16, %c40] : memref<200x1200xbf16, #tpu.memory_space<vmem>>, vector<8x1160xbf16>
    tpu.vector_store %arg11[%c16, %c40], %40 {strides = array<i32>} : memref<200x1200xbf16, #tpu.memory_space<vmem>>, vector<8x1160xbf16>,
    %cst_49 = arith.constant 0.000000e+00 : bf16
    %42 = vector.broadcast %cst_49 : bf16 to vector<8x40xbf16>
    %c16_50 = arith.constant 16 : index
    %c0_51 = arith.constant 0 : index
    %43 = vector.load %arg11[%c16_50, %c0_51] : memref<200x1200xbf16, #tpu.memory_space<vmem>>, vector<8x40xbf16>
    tpu.vector_store %arg11[%c16_50, %c0_51], %42 {strides = array<i32>} : memref<200x1200xbf16, #tpu.memory_space<vmem>>, vector<8x40xbf16>,
    %c0_52 = arith.constant 0 : index
    %c0_53 = arith.constant 0 : index
    %44 = vector.load %arg10[%c0_52, %c0_53] : memref<8x1200xf32, #tpu.memory_space<vmem>>, vector<8x1161xf32>
    %45 = arith.truncf %44 : vector<8x1161xf32> to vector<8x1161xbf16>
    %c24 = arith.constant 24 : index
    %c39 = arith.constant 39 : index
    %46 = vector.load %arg11[%c24, %c39] : memref<200x1200xbf16, #tpu.memory_space<vmem>>, vector<8x1161xbf16>
    tpu.vector_store %arg11[%c24, %c39], %45 {strides = array<i32>} : memref<200x1200xbf16, #tpu.memory_space<vmem>>, vector<8x1161xbf16>,
    %cst_54 = arith.constant 0.000000e+00 : bf16
    %47 = vector.broadcast %cst_54 : bf16 to vector<8x39xbf16>
    %c24_55 = arith.constant 24 : index
    %c0_56 = arith.constant 0 : index
    %48 = vector.load %arg11[%c24_55, %c0_56] : memref<200x1200xbf16, #tpu.memory_space<vmem>>, vector<8x39xbf16>
    tpu.vector_store %arg11[%c24_55, %c0_56], %47 {strides = array<i32>} : memref<200x1200xbf16, #tpu.memory_space<vmem>>, vector<8x39xbf16>,
    %c0_57 = arith.constant 0 : index
    %c0_58 = arith.constant 0 : index
    %49 = vector.load %arg10[%c0_57, %c0_58] : memref<8x1200xf32, #tpu.memory_space<vmem>>, vector<8x1162xf32>
    %50 = arith.truncf %49 : vector<8x1162xf32> to vector<8x1162xbf16>
    %c32 = arith.constant 32 : index
    %c38 = arith.constant 38 : index
    %51 = vector.load %arg11[%c32, %c38] : memref<200x1200xbf16, #tpu.memory_space<vmem>>, vector<8x1162xbf16>
    tpu.vector_store %arg11[%c32, %c38], %50 {strides = array<i32>} : memref<200x1200xbf16, #tpu.memory_space<vmem>>, vector<8x1162xbf16>,
    %cst_59 = arith.constant 0.000000e+00 : bf16
    %52 = vector.broadcast %cst_59 : bf16 to vector<8x38xbf16>
    %c32_60 = arith.constant 32 : index
    %c0_61 = arith.constant 0 : index
    %53 = vector.load %arg11[%c32_60, %c0_61] : memref<200x1200xbf16, #tpu.memory_space<vmem>>, vector<8x38xbf16>
    tpu.vector_store %arg11[%c32_60, %c0_61], %52 {strides = array<i32>} : memref<200x1200xbf16, #tpu.memory_space<vmem>>, vector<8x38xbf16>,
    %c0_62 = arith.constant 0 : index
    %c0_63 = arith.constant 0 : index
    %54 = vector.load %arg10[%c0_62, %c0_63] : memref<8x1200xf32, #tpu.memory_space<vmem>>, vector<8x1178xf32>
    %55 = arith.truncf %54 : vector<8x1178xf32> to vector<8x1178xbf16>
    %c40_64 = arith.constant 40 : index
    %c22 = arith.constant 22 : index
    %56 = vector.load %arg11[%c40_64, %c22] : memref<200x1200xbf16, #tpu.memory_space<vmem>>, vector<8x1178xbf16>
    tpu.vector_store %arg11[%c40_64, %c22], %55 {strides = array<i32>} : memref<200x1200xbf16, #tpu.memory_space<vmem>>, vector<8x1178xbf16>,
    %cst_65 = arith.constant 0.000000e+00 : bf16
    %57 = vector.broadcast %cst_65 : bf16 to vector<8x22xbf16>
    %c40_66 = arith.constant 40 : index
    %c0_67 = arith.constant 0 : index
    %58 = vector.load %arg11[%c40_66, %c0_67] : memref<200x1200xbf16, #tpu.memory_space<vmem>>, vector<8x22xbf16>
    tpu.vector_store %arg11[%c40_66, %c0_67], %57 {strides = array<i32>} : memref<200x1200xbf16, #tpu.memory_space<vmem>>, vector<8x22xbf16>,
    %c0_68 = arith.constant 0 : index
    %c0_69 = arith.constant 0 : index
    %59 = vector.load %arg10[%c0_68, %c0_69] : memref<8x1200xf32, #tpu.memory_space<vmem>>, vector<8x1179xf32>
    %60 = arith.truncf %59 : vector<8x1179xf32> to vector<8x1179xbf16>
    %c48 = arith.constant 48 : index
    %c21 = arith.constant 21 : index
    %61 = vector.load %arg11[%c48, %c21] : memref<200x1200xbf16, #tpu.memory_space<vmem>>, vector<8x1179xbf16>
    tpu.vector_store %arg11[%c48, %c21], %60 {strides = array<i32>} : memref<200x1200xbf16, #tpu.memory_space<vmem>>, vector<8x1179xbf16>,
    %cst_70 = arith.constant 0.000000e+00 : bf16
    %62 = vector.broadcast %cst_70 : bf16 to vector<8x21xbf16>
    %c48_71 = arith.constant 48 : index
    %c0_72 = arith.constant 0 : index
    %63 = vector.load %arg11[%c48_71, %c0_72] : memref<200x1200xbf16, #tpu.memory_space<vmem>>, vector<8x21xbf16>
    tpu.vector_store %arg11[%c48_71, %c0_72], %62 {strides = array<i32>} : memref<200x1200xbf16, #tpu.memory_space<vmem>>, vector<8x21xbf16>,
    %c0_73 = arith.constant 0 : index
    %c0_74 = arith.constant 0 : index
    %64 = vector.load %arg10[%c0_73, %c0_74] : memref<8x1200xf32, #tpu.memory_space<vmem>>, vector<8x1180xf32>
    %65 = arith.truncf %64 : vector<8x1180xf32> to vector<8x1180xbf16>
    %c56 = arith.constant 56 : index
    %c20 = arith.constant 20 : index
    %66 = vector.load %arg11[%c56, %c20] : memref<200x1200xbf16, #tpu.memory_space<vmem>>, vector<8x1180xbf16>
    tpu.vector_store %arg11[%c56, %c20], %65 {strides = array<i32>} : memref<200x1200xbf16, #tpu.memory_space<vmem>>, vector<8x1180xbf16>,
    %cst_75 = arith.constant 0.000000e+00 : bf16
    %67 = vector.broadcast %cst_75 : bf16 to vector<8x20xbf16>
    %c56_76 = arith.constant 56 : index
    %c0_77 = arith.constant 0 : index
    %68 = vector.load %arg11[%c56_76, %c0_77] : memref<200x1200xbf16, #tpu.memory_space<vmem>>, vector<8x20xbf16>
    tpu.vector_store %arg11[%c56_76, %c0_77], %67 {strides = array<i32>} : memref<200x1200xbf16, #tpu.memory_space<vmem>>, vector<8x20xbf16>,
    %c0_78 = arith.constant 0 : index
    %c0_79 = arith.constant 0 : index
    %69 = vector.load %arg10[%c0_78, %c0_79] : memref<8x1200xf32, #tpu.memory_space<vmem>>, vector<8x1181xf32>
    %70 = arith.truncf %69 : vector<8x1181xf32> to vector<8x1181xbf16>
    %c64 = arith.constant 64 : index
    %c19 = arith.constant 19 : index
    %71 = vector.load %arg11[%c64, %c19] : memref<200x1200xbf16, #tpu.memory_space<vmem>>, vector<8x1181xbf16>
    tpu.vector_store %arg11[%c64, %c19], %70 {strides = array<i32>} : memref<200x1200xbf16, #tpu.memory_space<vmem>>, vector<8x1181xbf16>,
    %cst_80 = arith.constant 0.000000e+00 : bf16
    %72 = vector.broadcast %cst_80 : bf16 to vector<8x19xbf16>
    %c64_81 = arith.constant 64 : index
    %c0_82 = arith.constant 0 : index
    %73 = vector.load %arg11[%c64_81, %c0_82] : memref<200x1200xbf16, #tpu.memory_space<vmem>>, vector<8x19xbf16>
    tpu.vector_store %arg11[%c64_81, %c0_82], %72 {strides = array<i32>} : memref<200x1200xbf16, #tpu.memory_space<vmem>>, vector<8x19xbf16>,
    %c0_83 = arith.constant 0 : index
    %c0_84 = arith.constant 0 : index
    %74 = vector.load %arg10[%c0_83, %c0_84] : memref<8x1200xf32, #tpu.memory_space<vmem>>, vector<8x1182xf32>
    %75 = arith.truncf %74 : vector<8x1182xf32> to vector<8x1182xbf16>
    %c72 = arith.constant 72 : index
    %c18 = arith.constant 18 : index
    %76 = vector.load %arg11[%c72, %c18] : memref<200x1200xbf16, #tpu.memory_space<vmem>>, vector<8x1182xbf16>
    tpu.vector_store %arg11[%c72, %c18], %75 {strides = array<i32>} : memref<200x1200xbf16, #tpu.memory_space<vmem>>, vector<8x1182xbf16>,
    %cst_85 = arith.constant 0.000000e+00 : bf16
    %77 = vector.broadcast %cst_85 : bf16 to vector<8x18xbf16>
    %c72_86 = arith.constant 72 : index
    %c0_87 = arith.constant 0 : index
    %78 = vector.load %arg11[%c72_86, %c0_87] : memref<200x1200xbf16, #tpu.memory_space<vmem>>, vector<8x18xbf16>
    tpu.vector_store %arg11[%c72_86, %c0_87], %77 {strides = array<i32>} : memref<200x1200xbf16, #tpu.memory_space<vmem>>, vector<8x18xbf16>,
    %c0_88 = arith.constant 0 : index
    %c0_89 = arith.constant 0 : index
    %79 = vector.load %arg10[%c0_88, %c0_89] : memref<8x1200xf32, #tpu.memory_space<vmem>>, vector<8x1198xf32>
    %80 = arith.truncf %79 : vector<8x1198xf32> to vector<8x1198xbf16>
    %c80 = arith.constant 80 : index
    %c2_90 = arith.constant 2 : index
    %81 = vector.load %arg11[%c80, %c2_90] : memref<200x1200xbf16, #tpu.memory_space<vmem>>, vector<8x1198xbf16>
    tpu.vector_store %arg11[%c80, %c2_90], %80 {strides = array<i32>} : memref<200x1200xbf16, #tpu.memory_space<vmem>>, vector<8x1198xbf16>,
    %cst_91 = arith.constant 0.000000e+00 : bf16
    %82 = vector.broadcast %cst_91 : bf16 to vector<8x2xbf16>
    %c80_92 = arith.constant 80 : index
    %c0_93 = arith.constant 0 : index
    %83 = vector.load %arg11[%c80_92, %c0_93] : memref<200x1200xbf16, #tpu.memory_space<vmem>>, vector<8x2xbf16>
    tpu.vector_store %arg11[%c80_92, %c0_93], %82 {strides = array<i32>} : memref<200x1200xbf16, #tpu.memory_space<vmem>>, vector<8x2xbf16>,
    %c0_94 = arith.constant 0 : index
    %c0_95 = arith.constant 0 : index
    %84 = vector.load %arg10[%c0_94, %c0_95] : memref<8x1200xf32, #tpu.memory_space<vmem>>, vector<8x1199xf32>
    %85 = arith.truncf %84 : vector<8x1199xf32> to vector<8x1199xbf16>
    %c88 = arith.constant 88 : index
    %c1_96 = arith.constant 1 : index
    %86 = vector.load %arg11[%c88, %c1_96] : memref<200x1200xbf16, #tpu.memory_space<vmem>>, vector<8x1199xbf16>
    tpu.vector_store %arg11[%c88, %c1_96], %85 {strides = array<i32>} : memref<200x1200xbf16, #tpu.memory_space<vmem>>, vector<8x1199xbf16>,
    %cst_97 = arith.constant 0.000000e+00 : bf16
    %87 = vector.broadcast %cst_97 : bf16 to vector<8x1xbf16>
    %c88_98 = arith.constant 88 : index
    %c0_99 = arith.constant 0 : index
    %88 = vector.load %arg11[%c88_98, %c0_99] : memref<200x1200xbf16, #tpu.memory_space<vmem>>, vector<8x1xbf16>
    tpu.vector_store %arg11[%c88_98, %c0_99], %87 {strides = array<i32>} : memref<200x1200xbf16, #tpu.memory_space<vmem>>, vector<8x1xbf16>,
    %c0_100 = arith.constant 0 : index
    %c0_101 = arith.constant 0 : index
    %89 = vector.load %arg10[%c0_100, %c0_101] : memref<8x1200xf32, #tpu.memory_space<vmem>>, vector<8x1200xf32>
    %90 = arith.truncf %89 : vector<8x1200xf32> to vector<8x1200xbf16>
    %c96 = arith.constant 96 : index
    %c0_102 = arith.constant 0 : index
    %91 = vector.load %arg11[%c96, %c0_102] : memref<200x1200xbf16, #tpu.memory_space<vmem>>, vector<8x1200xbf16>
    tpu.vector_store %arg11[%c96, %c0_102], %90 {strides = array<i32>} : memref<200x1200xbf16, #tpu.memory_space<vmem>>, vector<8x1200xbf16>,
    %c0_103 = arith.constant 0 : index
    %c1_104 = arith.constant 1 : index
    %92 = vector.load %arg10[%c0_103, %c1_104] : memref<8x1200xf32, #tpu.memory_space<vmem>>, vector<8x1199xf32>
    %93 = arith.truncf %92 : vector<8x1199xf32> to vector<8x1199xbf16>
    %c104 = arith.constant 104 : index
    %c0_105 = arith.constant 0 : index
    %94 = vector.load %arg11[%c104, %c0_105] : memref<200x1200xbf16, #tpu.memory_space<vmem>>, vector<8x1199xbf16>
    tpu.vector_store %arg11[%c104, %c0_105], %93 {strides = array<i32>} : memref<200x1200xbf16, #tpu.memory_space<vmem>>, vector<8x1199xbf16>,
    %cst_106 = arith.constant 0.000000e+00 : bf16
    %95 = vector.broadcast %cst_106 : bf16 to vector<8x1xbf16>
    %c104_107 = arith.constant 104 : index
    %c1199 = arith.constant 1199 : index
    %96 = vector.load %arg11[%c104_107, %c1199] : memref<200x1200xbf16, #tpu.memory_space<vmem>>, vector<8x1xbf16>
    tpu.vector_store %arg11[%c104_107, %c1199], %95 {strides = array<i32>} : memref<200x1200xbf16, #tpu.memory_space<vmem>>, vector<8x1xbf16>,
    %c0_108 = arith.constant 0 : index
    %c2_109 = arith.constant 2 : index
    %97 = vector.load %arg10[%c0_108, %c2_109] : memref<8x1200xf32, #tpu.memory_space<vmem>>, vector<8x1198xf32>
    %98 = arith.truncf %97 : vector<8x1198xf32> to vector<8x1198xbf16>
    %c112 = arith.constant 112 : index
    %c0_110 = arith.constant 0 : index
    %99 = vector.load %arg11[%c112, %c0_110] : memref<200x1200xbf16, #tpu.memory_space<vmem>>, vector<8x1198xbf16>
    tpu.vector_store %arg11[%c112, %c0_110], %98 {strides = array<i32>} : memref<200x1200xbf16, #tpu.memory_space<vmem>>, vector<8x1198xbf16>,
    %cst_111 = arith.constant 0.000000e+00 : bf16
    %100 = vector.broadcast %cst_111 : bf16 to vector<8x2xbf16>
    %c112_112 = arith.constant 112 : index
    %c1198 = arith.constant 1198 : index
    %101 = vector.load %arg11[%c112_112, %c1198] : memref<200x1200xbf16, #tpu.memory_space<vmem>>, vector<8x2xbf16>
    tpu.vector_store %arg11[%c112_112, %c1198], %100 {strides = array<i32>} : memref<200x1200xbf16, #tpu.memory_space<vmem>>, vector<8x2xbf16>,
    %c0_113 = arith.constant 0 : index
    %c18_114 = arith.constant 18 : index
    %102 = vector.load %arg10[%c0_113, %c18_114] : memref<8x1200xf32, #tpu.memory_space<vmem>>, vector<8x1182xf32>
    %103 = arith.truncf %102 : vector<8x1182xf32> to vector<8x1182xbf16>
    %c120 = arith.constant 120 : index
    %c0_115 = arith.constant 0 : index
    %104 = vector.load %arg11[%c120, %c0_115] : memref<200x1200xbf16, #tpu.memory_space<vmem>>, vector<8x1182xbf16>
    tpu.vector_store %arg11[%c120, %c0_115], %103 {strides = array<i32>} : memref<200x1200xbf16, #tpu.memory_space<vmem>>, vector<8x1182xbf16>,
    %cst_116 = arith.constant 0.000000e+00 : bf16
    %105 = vector.broadcast %cst_116 : bf16 to vector<8x18xbf16>
    %c120_117 = arith.constant 120 : index
    %c1182 = arith.constant 1182 : index
    %106 = vector.load %arg11[%c120_117, %c1182] : memref<200x1200xbf16, #tpu.memory_space<vmem>>, vector<8x18xbf16>
    tpu.vector_store %arg11[%c120_117, %c1182], %105 {strides = array<i32>} : memref<200x1200xbf16, #tpu.memory_space<vmem>>, vector<8x18xbf16>,
    %c0_118 = arith.constant 0 : index
    %c19_119 = arith.constant 19 : index
    %107 = vector.load %arg10[%c0_118, %c19_119] : memref<8x1200xf32, #tpu.memory_space<vmem>>, vector<8x1181xf32>
    %108 = arith.truncf %107 : vector<8x1181xf32> to vector<8x1181xbf16>
    %c128 = arith.constant 128 : index
    %c0_120 = arith.constant 0 : index
    %109 = vector.load %arg11[%c128, %c0_120] : memref<200x1200xbf16, #tpu.memory_space<vmem>>, vector<8x1181xbf16>
    tpu.vector_store %arg11[%c128, %c0_120], %108 {strides = array<i32>} : memref<200x1200xbf16, #tpu.memory_space<vmem>>, vector<8x1181xbf16>,
    %cst_121 = arith.constant 0.000000e+00 : bf16
    %110 = vector.broadcast %cst_121 : bf16 to vector<8x19xbf16>
    %c128_122 = arith.constant 128 : index
    %c1181 = arith.constant 1181 : index
    %111 = vector.load %arg11[%c128_122, %c1181] : memref<200x1200xbf16, #tpu.memory_space<vmem>>, vector<8x19xbf16>
    tpu.vector_store %arg11[%c128_122, %c1181], %110 {strides = array<i32>} : memref<200x1200xbf16, #tpu.memory_space<vmem>>, vector<8x19xbf16>,
    %c0_123 = arith.constant 0 : index
    %c20_124 = arith.constant 20 : index
    %112 = vector.load %arg10[%c0_123, %c20_124] : memref<8x1200xf32, #tpu.memory_space<vmem>>, vector<8x1180xf32>
    %113 = arith.truncf %112 : vector<8x1180xf32> to vector<8x1180xbf16>
    %c136 = arith.constant 136 : index
    %c0_125 = arith.constant 0 : index
    %114 = vector.load %arg11[%c136, %c0_125] : memref<200x1200xbf16, #tpu.memory_space<vmem>>, vector<8x1180xbf16>
    tpu.vector_store %arg11[%c136, %c0_125], %113 {strides = array<i32>} : memref<200x1200xbf16, #tpu.memory_space<vmem>>, vector<8x1180xbf16>,
    %cst_126 = arith.constant 0.000000e+00 : bf16
    %115 = vector.broadcast %cst_126 : bf16 to vector<8x20xbf16>
    %c136_127 = arith.constant 136 : index
    %c1180 = arith.constant 1180 : index
    %116 = vector.load %arg11[%c136_127, %c1180] : memref<200x1200xbf16, #tpu.memory_space<vmem>>, vector<8x20xbf16>
    tpu.vector_store %arg11[%c136_127, %c1180], %115 {strides = array<i32>} : memref<200x1200xbf16, #tpu.memory_space<vmem>>, vector<8x20xbf16>,
    %c0_128 = arith.constant 0 : index
    %c21_129 = arith.constant 21 : index
    %117 = vector.load %arg10[%c0_128, %c21_129] : memref<8x1200xf32, #tpu.memory_space<vmem>>, vector<8x1179xf32>
    %118 = arith.truncf %117 : vector<8x1179xf32> to vector<8x1179xbf16>
    %c144 = arith.constant 144 : index
    %c0_130 = arith.constant 0 : index
    %119 = vector.load %arg11[%c144, %c0_130] : memref<200x1200xbf16, #tpu.memory_space<vmem>>, vector<8x1179xbf16>
    tpu.vector_store %arg11[%c144, %c0_130], %118 {strides = array<i32>} : memref<200x1200xbf16, #tpu.memory_space<vmem>>, vector<8x1179xbf16>,
    %cst_131 = arith.constant 0.000000e+00 : bf16
    %120 = vector.broadcast %cst_131 : bf16 to vector<8x21xbf16>
    %c144_132 = arith.constant 144 : index
    %c1179 = arith.constant 1179 : index
    %121 = vector.load %arg11[%c144_132, %c1179] : memref<200x1200xbf16, #tpu.memory_space<vmem>>, vector<8x21xbf16>
    tpu.vector_store %arg11[%c144_132, %c1179], %120 {strides = array<i32>} : memref<200x1200xbf16, #tpu.memory_space<vmem>>, vector<8x21xbf16>,
    %c0_133 = arith.constant 0 : index
    %c22_134 = arith.constant 22 : index
    %122 = vector.load %arg10[%c0_133, %c22_134] : memref<8x1200xf32, #tpu.memory_space<vmem>>, vector<8x1178xf32>
    %123 = arith.truncf %122 : vector<8x1178xf32> to vector<8x1178xbf16>
    %c152 = arith.constant 152 : index
    %c0_135 = arith.constant 0 : index
    %124 = vector.load %arg11[%c152, %c0_135] : memref<200x1200xbf16, #tpu.memory_space<vmem>>, vector<8x1178xbf16>
    tpu.vector_store %arg11[%c152, %c0_135], %123 {strides = array<i32>} : memref<200x1200xbf16, #tpu.memory_space<vmem>>, vector<8x1178xbf16>,
    %cst_136 = arith.constant 0.000000e+00 : bf16
    %125 = vector.broadcast %cst_136 : bf16 to vector<8x22xbf16>
    %c152_137 = arith.constant 152 : index
    %c1178 = arith.constant 1178 : index
    %126 = vector.load %arg11[%c152_137, %c1178] : memref<200x1200xbf16, #tpu.memory_space<vmem>>, vector<8x22xbf16>
    tpu.vector_store %arg11[%c152_137, %c1178], %125 {strides = array<i32>} : memref<200x1200xbf16, #tpu.memory_space<vmem>>, vector<8x22xbf16>,
    %c0_138 = arith.constant 0 : index
    %c38_139 = arith.constant 38 : index
    %127 = vector.load %arg10[%c0_138, %c38_139] : memref<8x1200xf32, #tpu.memory_space<vmem>>, vector<8x1162xf32>
    %128 = arith.truncf %127 : vector<8x1162xf32> to vector<8x1162xbf16>
    %c160 = arith.constant 160 : index
    %c0_140 = arith.constant 0 : index
    %129 = vector.load %arg11[%c160, %c0_140] : memref<200x1200xbf16, #tpu.memory_space<vmem>>, vector<8x1162xbf16>
    tpu.vector_store %arg11[%c160, %c0_140], %128 {strides = array<i32>} : memref<200x1200xbf16, #tpu.memory_space<vmem>>, vector<8x1162xbf16>,
    %cst_141 = arith.constant 0.000000e+00 : bf16
    %130 = vector.broadcast %cst_141 : bf16 to vector<8x38xbf16>
    %c160_142 = arith.constant 160 : index
    %c1162 = arith.constant 1162 : index
    %131 = vector.load %arg11[%c160_142, %c1162] : memref<200x1200xbf16, #tpu.memory_space<vmem>>, vector<8x38xbf16>
    tpu.vector_store %arg11[%c160_142, %c1162], %130 {strides = array<i32>} : memref<200x1200xbf16, #tpu.memory_space<vmem>>, vector<8x38xbf16>,
    %c0_143 = arith.constant 0 : index
    %c39_144 = arith.constant 39 : index
    %132 = vector.load %arg10[%c0_143, %c39_144] : memref<8x1200xf32, #tpu.memory_space<vmem>>, vector<8x1161xf32>
    %133 = arith.truncf %132 : vector<8x1161xf32> to vector<8x1161xbf16>
    %c168 = arith.constant 168 : index
    %c0_145 = arith.constant 0 : index
    %134 = vector.load %arg11[%c168, %c0_145] : memref<200x1200xbf16, #tpu.memory_space<vmem>>, vector<8x1161xbf16>
    tpu.vector_store %arg11[%c168, %c0_145], %133 {strides = array<i32>} : memref<200x1200xbf16, #tpu.memory_space<vmem>>, vector<8x1161xbf16>,
    %cst_146 = arith.constant 0.000000e+00 : bf16
    %135 = vector.broadcast %cst_146 : bf16 to vector<8x39xbf16>
    %c168_147 = arith.constant 168 : index
    %c1161 = arith.constant 1161 : index
    %136 = vector.load %arg11[%c168_147, %c1161] : memref<200x1200xbf16, #tpu.memory_space<vmem>>, vector<8x39xbf16>
    tpu.vector_store %arg11[%c168_147, %c1161], %135 {strides = array<i32>} : memref<200x1200xbf16, #tpu.memory_space<vmem>>, vector<8x39xbf16>,
    %c0_148 = arith.constant 0 : index
    %c40_149 = arith.constant 40 : index
    %137 = vector.load %arg10[%c0_148, %c40_149] : memref<8x1200xf32, #tpu.memory_space<vmem>>, vector<8x1160xf32>
    %138 = arith.truncf %137 : vector<8x1160xf32> to vector<8x1160xbf16>
    %c176 = arith.constant 176 : index
    %c0_150 = arith.constant 0 : index
    %139 = vector.load %arg11[%c176, %c0_150] : memref<200x1200xbf16, #tpu.memory_space<vmem>>, vector<8x1160xbf16>
    tpu.vector_store %arg11[%c176, %c0_150], %138 {strides = array<i32>} : memref<200x1200xbf16, #tpu.memory_space<vmem>>, vector<8x1160xbf16>,
    %cst_151 = arith.constant 0.000000e+00 : bf16
    %140 = vector.broadcast %cst_151 : bf16 to vector<8x40xbf16>
    %c176_152 = arith.constant 176 : index
    %c1160 = arith.constant 1160 : index
    %141 = vector.load %arg11[%c176_152, %c1160] : memref<200x1200xbf16, #tpu.memory_space<vmem>>, vector<8x40xbf16>
    tpu.vector_store %arg11[%c176_152, %c1160], %140 {strides = array<i32>} : memref<200x1200xbf16, #tpu.memory_space<vmem>>, vector<8x40xbf16>,
    %c0_153 = arith.constant 0 : index
    %c41_154 = arith.constant 41 : index
    %142 = vector.load %arg10[%c0_153, %c41_154] : memref<8x1200xf32, #tpu.memory_space<vmem>>, vector<8x1159xf32>
    %143 = arith.truncf %142 : vector<8x1159xf32> to vector<8x1159xbf16>
    %c184 = arith.constant 184 : index
    %c0_155 = arith.constant 0 : index
    %144 = vector.load %arg11[%c184, %c0_155] : memref<200x1200xbf16, #tpu.memory_space<vmem>>, vector<8x1159xbf16>
    tpu.vector_store %arg11[%c184, %c0_155], %143 {strides = array<i32>} : memref<200x1200xbf16, #tpu.memory_space<vmem>>, vector<8x1159xbf16>,
    %cst_156 = arith.constant 0.000000e+00 : bf16
    %145 = vector.broadcast %cst_156 : bf16 to vector<8x41xbf16>
    %c184_157 = arith.constant 184 : index
    %c1159 = arith.constant 1159 : index
    %146 = vector.load %arg11[%c184_157, %c1159] : memref<200x1200xbf16, #tpu.memory_space<vmem>>, vector<8x41xbf16>
    tpu.vector_store %arg11[%c184_157, %c1159], %145 {strides = array<i32>} : memref<200x1200xbf16, #tpu.memory_space<vmem>>, vector<8x41xbf16>,
    %c0_158 = arith.constant 0 : index
    %c42_159 = arith.constant 42 : index
    %147 = vector.load %arg10[%c0_158, %c42_159] : memref<8x1200xf32, #tpu.memory_space<vmem>>, vector<8x1158xf32>
    %148 = arith.truncf %147 : vector<8x1158xf32> to vector<8x1158xbf16>
    %c192 = arith.constant 192 : index
    %c0_160 = arith.constant 0 : index
    %149 = vector.load %arg11[%c192, %c0_160] : memref<200x1200xbf16, #tpu.memory_space<vmem>>, vector<8x1158xbf16>
    tpu.vector_store %arg11[%c192, %c0_160], %148 {strides = array<i32>} : memref<200x1200xbf16, #tpu.memory_space<vmem>>, vector<8x1158xbf16>,
    %cst_161 = arith.constant 0.000000e+00 : bf16
    %150 = vector.broadcast %cst_161 : bf16 to vector<8x42xbf16>
    %c192_162 = arith.constant 192 : index
    %c1158 = arith.constant 1158 : index
    %151 = vector.load %arg11[%c192_162, %c1158] : memref<200x1200xbf16, #tpu.memory_space<vmem>>, vector<8x42xbf16>
    tpu.vector_store %arg11[%c192_162, %c1158], %150 {strides = array<i32>} : memref<200x1200xbf16, #tpu.memory_space<vmem>>, vector<8x42xbf16>,
    %c0_163 = arith.constant 0 : index
    %c0_164 = arith.constant 0 : index
    %152 = vector.load %arg2[%c0_163, %c0_164] : memref<24x200xbf16, #tpu.memory_space<vmem>>, vector<24x200xbf16>
    %c0_165 = arith.constant 0 : index
    %c0_166 = arith.constant 0 : index
    %153 = vector.load %arg11[%c0_165, %c0_166] : memref<200x1200xbf16, #tpu.memory_space<vmem>>, vector<200x1200xbf16>
    %cst_167 = arith.constant dense<0.000000e+00> : vector<24x1200xf32>
    %154 = tpu.matmul %152, %153, %cst_167 {dimension_numbers = #tpu.dot_dimension_numbers<[1], [0], [0], [1], [0, 0, 1, 1], [], []>} : vector<24x200xbf16>, vector<200x1200xbf16>, vector<24x1200xf32> -> vector<24x1200xf32>
    %c0_168 = arith.constant 0 : index
    %c0_169 = arith.constant 0 : index
    %155 = vector.load %arg3[%c0_168, %c0_169] : memref<24x1xf32, #tpu.memory_space<vmem>>, vector<24x1xf32>
    %156 = vector.broadcast %155 : vector<24x1xf32> to vector<24x1200xf32>
    %157 = arith.addf %154, %156 : vector<24x1200xf32>
    %cst_170 = arith.constant 0.000000e+00 : f32
    %158 = vector.broadcast %cst_170 : f32 to vector<24x1200xf32>
    %159 = arith.maximumf %157, %158 : vector<24x1200xf32>
    %160 = vector.extract_strided_slice %159 {offsets = [0, 0], sizes = [8, 1200], strides = [1, 1]} : vector<24x1200xf32> to vector<8x1200xf32>
    %161 = vector.extract_strided_slice %159 {offsets = [8, 0], sizes = [8, 1200], strides = [1, 1]} : vector<24x1200xf32> to vector<8x1200xf32>
    %162 = arith.addf %160, %161 : vector<8x1200xf32>
    %163 = vector.extract_strided_slice %159 {offsets = [16, 0], sizes = [8, 1200], strides = [1, 1]} : vector<24x1200xf32> to vector<8x1200xf32>
    %164 = arith.addf %162, %163 : vector<8x1200xf32>
    %cst_171 = arith.constant 0.333333343 : f32
    %165 = vector.broadcast %cst_171 : f32 to vector<8x1200xf32>
    %166 = arith.mulf %164, %165 : vector<8x1200xf32>
    %c0_172 = arith.constant 0 : index
    %c0_173 = arith.constant 0 : index
    %167 = vector.load %arg8[%c0_172, %c0_173] : memref<1x1200xf32, #tpu.memory_space<vmem>>, vector<1x1200xf32>
    %168 = vector.broadcast %167 : vector<1x1200xf32> to vector<8x1200xf32>
    %169 = arith.mulf %166, %168 : vector<8x1200xf32>
    %c0_174 = arith.constant 0 : index
    %c0_175 = arith.constant 0 : index
    %170 = vector.load %arg12[%c0_174, %c0_175] : memref<8x1200xf32, #tpu.memory_space<vmem>>, vector<8x1200xf32>
    tpu.vector_store %arg12[%c0_174, %c0_175], %169 {strides = array<i32>} : memref<8x1200xf32, #tpu.memory_space<vmem>>, vector<8x1200xf32>,
    %cst_176 = arith.constant 0.000000e+00 : f32
    %171 = vector.broadcast %cst_176 : f32 to vector<24x400xf32>
    %c0_177 = arith.constant 0 : index
    %c0_178 = arith.constant 0 : index
    %172 = vector.load %arg13[%c0_177, %c0_178] : memref<24x400xf32, #tpu.memory_space<vmem>>, vector<24x400xf32>
    tpu.vector_store %arg13[%c0_177, %c0_178], %171 {strides = array<i32>} : memref<24x400xf32, #tpu.memory_space<vmem>>, vector<24x400xf32>,
    %c0_179 = arith.constant 0 : index
    %c0_180 = arith.constant 0 : index
    %173 = vector.load %arg12[%c0_179, %c0_180] : memref<8x1200xf32, #tpu.memory_space<vmem>>, vector<8x400xf32>
    %c0_181 = arith.constant 0 : index
    %c0_182 = arith.constant 0 : index
    %174 = vector.load %arg13[%c0_181, %c0_182] : memref<24x400xf32, #tpu.memory_space<vmem>>, vector<8x400xf32>
    tpu.vector_store %arg13[%c0_181, %c0_182], %173 {strides = array<i32>} : memref<24x400xf32, #tpu.memory_space<vmem>>, vector<8x400xf32>,
    %c0_183 = arith.constant 0 : index
    %c400_184 = arith.constant 400 : index
    %175 = vector.load %arg12[%c0_183, %c400_184] : memref<8x1200xf32, #tpu.memory_space<vmem>>, vector<8x400xf32>
    %c8_185 = arith.constant 8 : index
    %c0_186 = arith.constant 0 : index
    %176 = vector.load %arg13[%c8_185, %c0_186] : memref<24x400xf32, #tpu.memory_space<vmem>>, vector<8x400xf32>
    tpu.vector_store %arg13[%c8_185, %c0_186], %175 {strides = array<i32>} : memref<24x400xf32, #tpu.memory_space<vmem>>, vector<8x400xf32>,
    %c0_187 = arith.constant 0 : index
    %c800_188 = arith.constant 800 : index
    %177 = vector.load %arg12[%c0_187, %c800_188] : memref<8x1200xf32, #tpu.memory_space<vmem>>, vector<8x400xf32>
    %c16_189 = arith.constant 16 : index
    %c0_190 = arith.constant 0 : index
    %178 = vector.load %arg13[%c16_189, %c0_190] : memref<24x400xf32, #tpu.memory_space<vmem>>, vector<8x400xf32>
    tpu.vector_store %arg13[%c16_189, %c0_190], %177 {strides = array<i32>} : memref<24x400xf32, #tpu.memory_space<vmem>>, vector<8x400xf32>,
    %c0_191 = arith.constant 0 : index
    %c0_192 = arith.constant 0 : index
    %179 = vector.load %arg13[%c0_191, %c0_192] : memref<24x400xf32, #tpu.memory_space<vmem>>, vector<24x358xf32>
    %180 = arith.truncf %179 : vector<24x358xf32> to vector<24x358xbf16>
    %c0_193 = arith.constant 0 : index
    %c42_194 = arith.constant 42 : index
    %181 = vector.load %arg14[%c0_193, %c42_194] : memref<600x400xbf16, #tpu.memory_space<vmem>>, vector<24x358xbf16>
    tpu.vector_store %arg14[%c0_193, %c42_194], %180 {strides = array<i32>} : memref<600x400xbf16, #tpu.memory_space<vmem>>, vector<24x358xbf16>,
    %cst_195 = arith.constant 0.000000e+00 : bf16
    %182 = vector.broadcast %cst_195 : bf16 to vector<24x42xbf16>
    %c0_196 = arith.constant 0 : index
    %c0_197 = arith.constant 0 : index
    %183 = vector.load %arg14[%c0_196, %c0_197] : memref<600x400xbf16, #tpu.memory_space<vmem>>, vector<24x42xbf16>
    tpu.vector_store %arg14[%c0_196, %c0_197], %182 {strides = array<i32>} : memref<600x400xbf16, #tpu.memory_space<vmem>>, vector<24x42xbf16>,
    %c0_198 = arith.constant 0 : index
    %c0_199 = arith.constant 0 : index
    %184 = vector.load %arg13[%c0_198, %c0_199] : memref<24x400xf32, #tpu.memory_space<vmem>>, vector<24x359xf32>
    %185 = arith.truncf %184 : vector<24x359xf32> to vector<24x359xbf16>
    %c24_200 = arith.constant 24 : index
    %c41_201 = arith.constant 41 : index
    %186 = vector.load %arg14[%c24_200, %c41_201] : memref<600x400xbf16, #tpu.memory_space<vmem>>, vector<24x359xbf16>
    tpu.vector_store %arg14[%c24_200, %c41_201], %185 {strides = array<i32>} : memref<600x400xbf16, #tpu.memory_space<vmem>>, vector<24x359xbf16>,
    %cst_202 = arith.constant 0.000000e+00 : bf16
    %187 = vector.broadcast %cst_202 : bf16 to vector<24x41xbf16>
    %c24_203 = arith.constant 24 : index
    %c0_204 = arith.constant 0 : index
    %188 = vector.load %arg14[%c24_203, %c0_204] : memref<600x400xbf16, #tpu.memory_space<vmem>>, vector<24x41xbf16>
    tpu.vector_store %arg14[%c24_203, %c0_204], %187 {strides = array<i32>} : memref<600x400xbf16, #tpu.memory_space<vmem>>, vector<24x41xbf16>,
    %c0_205 = arith.constant 0 : index
    %c0_206 = arith.constant 0 : index
    %189 = vector.load %arg13[%c0_205, %c0_206] : memref<24x400xf32, #tpu.memory_space<vmem>>, vector<24x360xf32>
    %190 = arith.truncf %189 : vector<24x360xf32> to vector<24x360xbf16>
    %c48_207 = arith.constant 48 : index
    %c40_208 = arith.constant 40 : index
    %191 = vector.load %arg14[%c48_207, %c40_208] : memref<600x400xbf16, #tpu.memory_space<vmem>>, vector<24x360xbf16>
    tpu.vector_store %arg14[%c48_207, %c40_208], %190 {strides = array<i32>} : memref<600x400xbf16, #tpu.memory_space<vmem>>, vector<24x360xbf16>,
    %cst_209 = arith.constant 0.000000e+00 : bf16
    %192 = vector.broadcast %cst_209 : bf16 to vector<24x40xbf16>
    %c48_210 = arith.constant 48 : index
    %c0_211 = arith.constant 0 : index
    %193 = vector.load %arg14[%c48_210, %c0_211] : memref<600x400xbf16, #tpu.memory_space<vmem>>, vector<24x40xbf16>
    tpu.vector_store %arg14[%c48_210, %c0_211], %192 {strides = array<i32>} : memref<600x400xbf16, #tpu.memory_space<vmem>>, vector<24x40xbf16>,
    %c0_212 = arith.constant 0 : index
    %c0_213 = arith.constant 0 : index
    %194 = vector.load %arg13[%c0_212, %c0_213] : memref<24x400xf32, #tpu.memory_space<vmem>>, vector<24x361xf32>
    %195 = arith.truncf %194 : vector<24x361xf32> to vector<24x361xbf16>
    %c72_214 = arith.constant 72 : index
    %c39_215 = arith.constant 39 : index
    %196 = vector.load %arg14[%c72_214, %c39_215] : memref<600x400xbf16, #tpu.memory_space<vmem>>, vector<24x361xbf16>
    tpu.vector_store %arg14[%c72_214, %c39_215], %195 {strides = array<i32>} : memref<600x400xbf16, #tpu.memory_space<vmem>>, vector<24x361xbf16>,
    %cst_216 = arith.constant 0.000000e+00 : bf16
    %197 = vector.broadcast %cst_216 : bf16 to vector<24x39xbf16>
    %c72_217 = arith.constant 72 : index
    %c0_218 = arith.constant 0 : index
    %198 = vector.load %arg14[%c72_217, %c0_218] : memref<600x400xbf16, #tpu.memory_space<vmem>>, vector<24x39xbf16>
    tpu.vector_store %arg14[%c72_217, %c0_218], %197 {strides = array<i32>} : memref<600x400xbf16, #tpu.memory_space<vmem>>, vector<24x39xbf16>,
    %c0_219 = arith.constant 0 : index
    %c0_220 = arith.constant 0 : index
    %199 = vector.load %arg13[%c0_219, %c0_220] : memref<24x400xf32, #tpu.memory_space<vmem>>, vector<24x362xf32>
    %200 = arith.truncf %199 : vector<24x362xf32> to vector<24x362xbf16>
    %c96_221 = arith.constant 96 : index
    %c38_222 = arith.constant 38 : index
    %201 = vector.load %arg14[%c96_221, %c38_222] : memref<600x400xbf16, #tpu.memory_space<vmem>>, vector<24x362xbf16>
    tpu.vector_store %arg14[%c96_221, %c38_222], %200 {strides = array<i32>} : memref<600x400xbf16, #tpu.memory_space<vmem>>, vector<24x362xbf16>,
    %cst_223 = arith.constant 0.000000e+00 : bf16
    %202 = vector.broadcast %cst_223 : bf16 to vector<24x38xbf16>
    %c96_224 = arith.constant 96 : index
    %c0_225 = arith.constant 0 : index
    %203 = vector.load %arg14[%c96_224, %c0_225] : memref<600x400xbf16, #tpu.memory_space<vmem>>, vector<24x38xbf16>
    tpu.vector_store %arg14[%c96_224, %c0_225], %202 {strides = array<i32>} : memref<600x400xbf16, #tpu.memory_space<vmem>>, vector<24x38xbf16>,
    %c0_226 = arith.constant 0 : index
    %c0_227 = arith.constant 0 : index
    %204 = vector.load %arg13[%c0_226, %c0_227] : memref<24x400xf32, #tpu.memory_space<vmem>>, vector<24x378xf32>
    %205 = arith.truncf %204 : vector<24x378xf32> to vector<24x378xbf16>
    %c120_228 = arith.constant 120 : index
    %c22_229 = arith.constant 22 : index
    %206 = vector.load %arg14[%c120_228, %c22_229] : memref<600x400xbf16, #tpu.memory_space<vmem>>, vector<24x378xbf16>
    tpu.vector_store %arg14[%c120_228, %c22_229], %205 {strides = array<i32>} : memref<600x400xbf16, #tpu.memory_space<vmem>>, vector<24x378xbf16>,
    %cst_230 = arith.constant 0.000000e+00 : bf16
    %207 = vector.broadcast %cst_230 : bf16 to vector<24x22xbf16>
    %c120_231 = arith.constant 120 : index
    %c0_232 = arith.constant 0 : index
    %208 = vector.load %arg14[%c120_231, %c0_232] : memref<600x400xbf16, #tpu.memory_space<vmem>>, vector<24x22xbf16>
    tpu.vector_store %arg14[%c120_231, %c0_232], %207 {strides = array<i32>} : memref<600x400xbf16, #tpu.memory_space<vmem>>, vector<24x22xbf16>,
    %c0_233 = arith.constant 0 : index
    %c0_234 = arith.constant 0 : index
    %209 = vector.load %arg13[%c0_233, %c0_234] : memref<24x400xf32, #tpu.memory_space<vmem>>, vector<24x379xf32>
    %210 = arith.truncf %209 : vector<24x379xf32> to vector<24x379xbf16>
    %c144_235 = arith.constant 144 : index
    %c21_236 = arith.constant 21 : index
    %211 = vector.load %arg14[%c144_235, %c21_236] : memref<600x400xbf16, #tpu.memory_space<vmem>>, vector<24x379xbf16>
    tpu.vector_store %arg14[%c144_235, %c21_236], %210 {strides = array<i32>} : memref<600x400xbf16, #tpu.memory_space<vmem>>, vector<24x379xbf16>,
    %cst_237 = arith.constant 0.000000e+00 : bf16
    %212 = vector.broadcast %cst_237 : bf16 to vector<24x21xbf16>
    %c144_238 = arith.constant 144 : index
    %c0_239 = arith.constant 0 : index
    %213 = vector.load %arg14[%c144_238, %c0_239] : memref<600x400xbf16, #tpu.memory_space<vmem>>, vector<24x21xbf16>
    tpu.vector_store %arg14[%c144_238, %c0_239], %212 {strides = array<i32>} : memref<600x400xbf16, #tpu.memory_space<vmem>>, vector<24x21xbf16>,
    %c0_240 = arith.constant 0 : index
    %c0_241 = arith.constant 0 : index
    %214 = vector.load %arg13[%c0_240, %c0_241] : memref<24x400xf32, #tpu.memory_space<vmem>>, vector<24x380xf32>
    %215 = arith.truncf %214 : vector<24x380xf32> to vector<24x380xbf16>
    %c168_242 = arith.constant 168 : index
    %c20_243 = arith.constant 20 : index
    %216 = vector.load %arg14[%c168_242, %c20_243] : memref<600x400xbf16, #tpu.memory_space<vmem>>, vector<24x380xbf16>
    tpu.vector_store %arg14[%c168_242, %c20_243], %215 {strides = array<i32>} : memref<600x400xbf16, #tpu.memory_space<vmem>>, vector<24x380xbf16>,
    %cst_244 = arith.constant 0.000000e+00 : bf16
    %217 = vector.broadcast %cst_244 : bf16 to vector<24x20xbf16>
    %c168_245 = arith.constant 168 : index
    %c0_246 = arith.constant 0 : index
    %218 = vector.load %arg14[%c168_245, %c0_246] : memref<600x400xbf16, #tpu.memory_space<vmem>>, vector<24x20xbf16>
    tpu.vector_store %arg14[%c168_245, %c0_246], %217 {strides = array<i32>} : memref<600x400xbf16, #tpu.memory_space<vmem>>, vector<24x20xbf16>,
    %c0_247 = arith.constant 0 : index
    %c0_248 = arith.constant 0 : index
    %219 = vector.load %arg13[%c0_247, %c0_248] : memref<24x400xf32, #tpu.memory_space<vmem>>, vector<24x381xf32>
    %220 = arith.truncf %219 : vector<24x381xf32> to vector<24x381xbf16>
    %c192_249 = arith.constant 192 : index
    %c19_250 = arith.constant 19 : index
    %221 = vector.load %arg14[%c192_249, %c19_250] : memref<600x400xbf16, #tpu.memory_space<vmem>>, vector<24x381xbf16>
    tpu.vector_store %arg14[%c192_249, %c19_250], %220 {strides = array<i32>} : memref<600x400xbf16, #tpu.memory_space<vmem>>, vector<24x381xbf16>,
    %cst_251 = arith.constant 0.000000e+00 : bf16
    %222 = vector.broadcast %cst_251 : bf16 to vector<24x19xbf16>
    %c192_252 = arith.constant 192 : index
    %c0_253 = arith.constant 0 : index
    %223 = vector.load %arg14[%c192_252, %c0_253] : memref<600x400xbf16, #tpu.memory_space<vmem>>, vector<24x19xbf16>
    tpu.vector_store %arg14[%c192_252, %c0_253], %222 {strides = array<i32>} : memref<600x400xbf16, #tpu.memory_space<vmem>>, vector<24x19xbf16>,
    %c0_254 = arith.constant 0 : index
    %c0_255 = arith.constant 0 : index
    %224 = vector.load %arg13[%c0_254, %c0_255] : memref<24x400xf32, #tpu.memory_space<vmem>>, vector<24x382xf32>
    %225 = arith.truncf %224 : vector<24x382xf32> to vector<24x382xbf16>
    %c216 = arith.constant 216 : index
    %c18_256 = arith.constant 18 : index
    %226 = vector.load %arg14[%c216, %c18_256] : memref<600x400xbf16, #tpu.memory_space<vmem>>, vector<24x382xbf16>
    tpu.vector_store %arg14[%c216, %c18_256], %225 {strides = array<i32>} : memref<600x400xbf16, #tpu.memory_space<vmem>>, vector<24x382xbf16>,
    %cst_257 = arith.constant 0.000000e+00 : bf16
    %227 = vector.broadcast %cst_257 : bf16 to vector<24x18xbf16>
    %c216_258 = arith.constant 216 : index
    %c0_259 = arith.constant 0 : index
    %228 = vector.load %arg14[%c216_258, %c0_259] : memref<600x400xbf16, #tpu.memory_space<vmem>>, vector<24x18xbf16>
    tpu.vector_store %arg14[%c216_258, %c0_259], %227 {strides = array<i32>} : memref<600x400xbf16, #tpu.memory_space<vmem>>, vector<24x18xbf16>,
    %c0_260 = arith.constant 0 : index
    %c0_261 = arith.constant 0 : index
    %229 = vector.load %arg13[%c0_260, %c0_261] : memref<24x400xf32, #tpu.memory_space<vmem>>, vector<24x398xf32>
    %230 = arith.truncf %229 : vector<24x398xf32> to vector<24x398xbf16>
    %c240 = arith.constant 240 : index
    %c2_262 = arith.constant 2 : index
    %231 = vector.load %arg14[%c240, %c2_262] : memref<600x400xbf16, #tpu.memory_space<vmem>>, vector<24x398xbf16>
    tpu.vector_store %arg14[%c240, %c2_262], %230 {strides = array<i32>} : memref<600x400xbf16, #tpu.memory_space<vmem>>, vector<24x398xbf16>,
    %cst_263 = arith.constant 0.000000e+00 : bf16
    %232 = vector.broadcast %cst_263 : bf16 to vector<24x2xbf16>
    %c240_264 = arith.constant 240 : index
    %c0_265 = arith.constant 0 : index
    %233 = vector.load %arg14[%c240_264, %c0_265] : memref<600x400xbf16, #tpu.memory_space<vmem>>, vector<24x2xbf16>
    tpu.vector_store %arg14[%c240_264, %c0_265], %232 {strides = array<i32>} : memref<600x400xbf16, #tpu.memory_space<vmem>>, vector<24x2xbf16>,
    %c0_266 = arith.constant 0 : index
    %c0_267 = arith.constant 0 : index
    %234 = vector.load %arg13[%c0_266, %c0_267] : memref<24x400xf32, #tpu.memory_space<vmem>>, vector<24x399xf32>
    %235 = arith.truncf %234 : vector<24x399xf32> to vector<24x399xbf16>
    %c264 = arith.constant 264 : index
    %c1_268 = arith.constant 1 : index
    %236 = vector.load %arg14[%c264, %c1_268] : memref<600x400xbf16, #tpu.memory_space<vmem>>, vector<24x399xbf16>
    tpu.vector_store %arg14[%c264, %c1_268], %235 {strides = array<i32>} : memref<600x400xbf16, #tpu.memory_space<vmem>>, vector<24x399xbf16>,
    %cst_269 = arith.constant 0.000000e+00 : bf16
    %237 = vector.broadcast %cst_269 : bf16 to vector<24x1xbf16>
    %c264_270 = arith.constant 264 : index
    %c0_271 = arith.constant 0 : index
    %238 = vector.load %arg14[%c264_270, %c0_271] : memref<600x400xbf16, #tpu.memory_space<vmem>>, vector<24x1xbf16>
    tpu.vector_store %arg14[%c264_270, %c0_271], %237 {strides = array<i32>} : memref<600x400xbf16, #tpu.memory_space<vmem>>, vector<24x1xbf16>,
    %c0_272 = arith.constant 0 : index
    %c0_273 = arith.constant 0 : index
    %239 = vector.load %arg13[%c0_272, %c0_273] : memref<24x400xf32, #tpu.memory_space<vmem>>, vector<24x400xf32>
    %240 = arith.truncf %239 : vector<24x400xf32> to vector<24x400xbf16>
    %c288 = arith.constant 288 : index
    %c0_274 = arith.constant 0 : index
    %241 = vector.load %arg14[%c288, %c0_274] : memref<600x400xbf16, #tpu.memory_space<vmem>>, vector<24x400xbf16>
    tpu.vector_store %arg14[%c288, %c0_274], %240 {strides = array<i32>} : memref<600x400xbf16, #tpu.memory_space<vmem>>, vector<24x400xbf16>,
    %c0_275 = arith.constant 0 : index
    %c1_276 = arith.constant 1 : index
    %242 = vector.load %arg13[%c0_275, %c1_276] : memref<24x400xf32, #tpu.memory_space<vmem>>, vector<24x399xf32>
    %243 = arith.truncf %242 : vector<24x399xf32> to vector<24x399xbf16>
    %c312 = arith.constant 312 : index
    %c0_277 = arith.constant 0 : index
    %244 = vector.load %arg14[%c312, %c0_277] : memref<600x400xbf16, #tpu.memory_space<vmem>>, vector<24x399xbf16>
    tpu.vector_store %arg14[%c312, %c0_277], %243 {strides = array<i32>} : memref<600x400xbf16, #tpu.memory_space<vmem>>, vector<24x399xbf16>,
    %cst_278 = arith.constant 0.000000e+00 : bf16
    %245 = vector.broadcast %cst_278 : bf16 to vector<24x1xbf16>
    %c312_279 = arith.constant 312 : index
    %c399 = arith.constant 399 : index
    %246 = vector.load %arg14[%c312_279, %c399] : memref<600x400xbf16, #tpu.memory_space<vmem>>, vector<24x1xbf16>
    tpu.vector_store %arg14[%c312_279, %c399], %245 {strides = array<i32>} : memref<600x400xbf16, #tpu.memory_space<vmem>>, vector<24x1xbf16>,
    %c0_280 = arith.constant 0 : index
    %c2_281 = arith.constant 2 : index
    %247 = vector.load %arg13[%c0_280, %c2_281] : memref<24x400xf32, #tpu.memory_space<vmem>>, vector<24x398xf32>
    %248 = arith.truncf %247 : vector<24x398xf32> to vector<24x398xbf16>
    %c336 = arith.constant 336 : index
    %c0_282 = arith.constant 0 : index
    %249 = vector.load %arg14[%c336, %c0_282] : memref<600x400xbf16, #tpu.memory_space<vmem>>, vector<24x398xbf16>
    tpu.vector_store %arg14[%c336, %c0_282], %248 {strides = array<i32>} : memref<600x400xbf16, #tpu.memory_space<vmem>>, vector<24x398xbf16>,
    %cst_283 = arith.constant 0.000000e+00 : bf16
    %250 = vector.broadcast %cst_283 : bf16 to vector<24x2xbf16>
    %c336_284 = arith.constant 336 : index
    %c398 = arith.constant 398 : index
    %251 = vector.load %arg14[%c336_284, %c398] : memref<600x400xbf16, #tpu.memory_space<vmem>>, vector<24x2xbf16>
    tpu.vector_store %arg14[%c336_284, %c398], %250 {strides = array<i32>} : memref<600x400xbf16, #tpu.memory_space<vmem>>, vector<24x2xbf16>,
    %c0_285 = arith.constant 0 : index
    %c18_286 = arith.constant 18 : index
    %252 = vector.load %arg13[%c0_285, %c18_286] : memref<24x400xf32, #tpu.memory_space<vmem>>, vector<24x382xf32>
    %253 = arith.truncf %252 : vector<24x382xf32> to vector<24x382xbf16>
    %c360 = arith.constant 360 : index
    %c0_287 = arith.constant 0 : index
    %254 = vector.load %arg14[%c360, %c0_287] : memref<600x400xbf16, #tpu.memory_space<vmem>>, vector<24x382xbf16>
    tpu.vector_store %arg14[%c360, %c0_287], %253 {strides = array<i32>} : memref<600x400xbf16, #tpu.memory_space<vmem>>, vector<24x382xbf16>,
    %cst_288 = arith.constant 0.000000e+00 : bf16
    %255 = vector.broadcast %cst_288 : bf16 to vector<24x18xbf16>
    %c360_289 = arith.constant 360 : index
    %c382 = arith.constant 382 : index
    %256 = vector.load %arg14[%c360_289, %c382] : memref<600x400xbf16, #tpu.memory_space<vmem>>, vector<24x18xbf16>
    tpu.vector_store %arg14[%c360_289, %c382], %255 {strides = array<i32>} : memref<600x400xbf16, #tpu.memory_space<vmem>>, vector<24x18xbf16>,
    %c0_290 = arith.constant 0 : index
    %c19_291 = arith.constant 19 : index
    %257 = vector.load %arg13[%c0_290, %c19_291] : memref<24x400xf32, #tpu.memory_space<vmem>>, vector<24x381xf32>
    %258 = arith.truncf %257 : vector<24x381xf32> to vector<24x381xbf16>
    %c384 = arith.constant 384 : index
    %c0_292 = arith.constant 0 : index
    %259 = vector.load %arg14[%c384, %c0_292] : memref<600x400xbf16, #tpu.memory_space<vmem>>, vector<24x381xbf16>
    tpu.vector_store %arg14[%c384, %c0_292], %258 {strides = array<i32>} : memref<600x400xbf16, #tpu.memory_space<vmem>>, vector<24x381xbf16>,
    %cst_293 = arith.constant 0.000000e+00 : bf16
    %260 = vector.broadcast %cst_293 : bf16 to vector<24x19xbf16>
    %c384_294 = arith.constant 384 : index
    %c381 = arith.constant 381 : index
    %261 = vector.load %arg14[%c384_294, %c381] : memref<600x400xbf16, #tpu.memory_space<vmem>>, vector<24x19xbf16>
    tpu.vector_store %arg14[%c384_294, %c381], %260 {strides = array<i32>} : memref<600x400xbf16, #tpu.memory_space<vmem>>, vector<24x19xbf16>,
    %c0_295 = arith.constant 0 : index
    %c20_296 = arith.constant 20 : index
    %262 = vector.load %arg13[%c0_295, %c20_296] : memref<24x400xf32, #tpu.memory_space<vmem>>, vector<24x380xf32>
    %263 = arith.truncf %262 : vector<24x380xf32> to vector<24x380xbf16>
    %c408 = arith.constant 408 : index
    %c0_297 = arith.constant 0 : index
    %264 = vector.load %arg14[%c408, %c0_297] : memref<600x400xbf16, #tpu.memory_space<vmem>>, vector<24x380xbf16>
    tpu.vector_store %arg14[%c408, %c0_297], %263 {strides = array<i32>} : memref<600x400xbf16, #tpu.memory_space<vmem>>, vector<24x380xbf16>,
    %cst_298 = arith.constant 0.000000e+00 : bf16
    %265 = vector.broadcast %cst_298 : bf16 to vector<24x20xbf16>
    %c408_299 = arith.constant 408 : index
    %c380 = arith.constant 380 : index
    %266 = vector.load %arg14[%c408_299, %c380] : memref<600x400xbf16, #tpu.memory_space<vmem>>, vector<24x20xbf16>
    tpu.vector_store %arg14[%c408_299, %c380], %265 {strides = array<i32>} : memref<600x400xbf16, #tpu.memory_space<vmem>>, vector<24x20xbf16>,
    %c0_300 = arith.constant 0 : index
    %c21_301 = arith.constant 21 : index
    %267 = vector.load %arg13[%c0_300, %c21_301] : memref<24x400xf32, #tpu.memory_space<vmem>>, vector<24x379xf32>
    %268 = arith.truncf %267 : vector<24x379xf32> to vector<24x379xbf16>
    %c432 = arith.constant 432 : index
    %c0_302 = arith.constant 0 : index
    %269 = vector.load %arg14[%c432, %c0_302] : memref<600x400xbf16, #tpu.memory_space<vmem>>, vector<24x379xbf16>
    tpu.vector_store %arg14[%c432, %c0_302], %268 {strides = array<i32>} : memref<600x400xbf16, #tpu.memory_space<vmem>>, vector<24x379xbf16>,
    %cst_303 = arith.constant 0.000000e+00 : bf16
    %270 = vector.broadcast %cst_303 : bf16 to vector<24x21xbf16>
    %c432_304 = arith.constant 432 : index
    %c379 = arith.constant 379 : index
    %271 = vector.load %arg14[%c432_304, %c379] : memref<600x400xbf16, #tpu.memory_space<vmem>>, vector<24x21xbf16>
    tpu.vector_store %arg14[%c432_304, %c379], %270 {strides = array<i32>} : memref<600x400xbf16, #tpu.memory_space<vmem>>, vector<24x21xbf16>,
    %c0_305 = arith.constant 0 : index
    %c22_306 = arith.constant 22 : index
    %272 = vector.load %arg13[%c0_305, %c22_306] : memref<24x400xf32, #tpu.memory_space<vmem>>, vector<24x378xf32>
    %273 = arith.truncf %272 : vector<24x378xf32> to vector<24x378xbf16>
    %c456 = arith.constant 456 : index
    %c0_307 = arith.constant 0 : index
    %274 = vector.load %arg14[%c456, %c0_307] : memref<600x400xbf16, #tpu.memory_space<vmem>>, vector<24x378xbf16>
    tpu.vector_store %arg14[%c456, %c0_307], %273 {strides = array<i32>} : memref<600x400xbf16, #tpu.memory_space<vmem>>, vector<24x378xbf16>,
    %cst_308 = arith.constant 0.000000e+00 : bf16
    %275 = vector.broadcast %cst_308 : bf16 to vector<24x22xbf16>
    %c456_309 = arith.constant 456 : index
    %c378 = arith.constant 378 : index
    %276 = vector.load %arg14[%c456_309, %c378] : memref<600x400xbf16, #tpu.memory_space<vmem>>, vector<24x22xbf16>
    tpu.vector_store %arg14[%c456_309, %c378], %275 {strides = array<i32>} : memref<600x400xbf16, #tpu.memory_space<vmem>>, vector<24x22xbf16>,
    %c0_310 = arith.constant 0 : index
    %c38_311 = arith.constant 38 : index
    %277 = vector.load %arg13[%c0_310, %c38_311] : memref<24x400xf32, #tpu.memory_space<vmem>>, vector<24x362xf32>
    %278 = arith.truncf %277 : vector<24x362xf32> to vector<24x362xbf16>
    %c480 = arith.constant 480 : index
    %c0_312 = arith.constant 0 : index
    %279 = vector.load %arg14[%c480, %c0_312] : memref<600x400xbf16, #tpu.memory_space<vmem>>, vector<24x362xbf16>
    tpu.vector_store %arg14[%c480, %c0_312], %278 {strides = array<i32>} : memref<600x400xbf16, #tpu.memory_space<vmem>>, vector<24x362xbf16>,
    %cst_313 = arith.constant 0.000000e+00 : bf16
    %280 = vector.broadcast %cst_313 : bf16 to vector<24x38xbf16>
    %c480_314 = arith.constant 480 : index
    %c362 = arith.constant 362 : index
    %281 = vector.load %arg14[%c480_314, %c362] : memref<600x400xbf16, #tpu.memory_space<vmem>>, vector<24x38xbf16>
    tpu.vector_store %arg14[%c480_314, %c362], %280 {strides = array<i32>} : memref<600x400xbf16, #tpu.memory_space<vmem>>, vector<24x38xbf16>,
    %c0_315 = arith.constant 0 : index
    %c39_316 = arith.constant 39 : index
    %282 = vector.load %arg13[%c0_315, %c39_316] : memref<24x400xf32, #tpu.memory_space<vmem>>, vector<24x361xf32>
    %283 = arith.truncf %282 : vector<24x361xf32> to vector<24x361xbf16>
    %c504 = arith.constant 504 : index
    %c0_317 = arith.constant 0 : index
    %284 = vector.load %arg14[%c504, %c0_317] : memref<600x400xbf16, #tpu.memory_space<vmem>>, vector<24x361xbf16>
    tpu.vector_store %arg14[%c504, %c0_317], %283 {strides = array<i32>} : memref<600x400xbf16, #tpu.memory_space<vmem>>, vector<24x361xbf16>,
    %cst_318 = arith.constant 0.000000e+00 : bf16
    %285 = vector.broadcast %cst_318 : bf16 to vector<24x39xbf16>
    %c504_319 = arith.constant 504 : index
    %c361 = arith.constant 361 : index
    %286 = vector.load %arg14[%c504_319, %c361] : memref<600x400xbf16, #tpu.memory_space<vmem>>, vector<24x39xbf16>
    tpu.vector_store %arg14[%c504_319, %c361], %285 {strides = array<i32>} : memref<600x400xbf16, #tpu.memory_space<vmem>>, vector<24x39xbf16>,
    %c0_320 = arith.constant 0 : index
    %c40_321 = arith.constant 40 : index
    %287 = vector.load %arg13[%c0_320, %c40_321] : memref<24x400xf32, #tpu.memory_space<vmem>>, vector<24x360xf32>
    %288 = arith.truncf %287 : vector<24x360xf32> to vector<24x360xbf16>
    %c528 = arith.constant 528 : index
    %c0_322 = arith.constant 0 : index
    %289 = vector.load %arg14[%c528, %c0_322] : memref<600x400xbf16, #tpu.memory_space<vmem>>, vector<24x360xbf16>
    tpu.vector_store %arg14[%c528, %c0_322], %288 {strides = array<i32>} : memref<600x400xbf16, #tpu.memory_space<vmem>>, vector<24x360xbf16>,
    %cst_323 = arith.constant 0.000000e+00 : bf16
    %290 = vector.broadcast %cst_323 : bf16 to vector<24x40xbf16>
    %c528_324 = arith.constant 528 : index
    %c360_325 = arith.constant 360 : index
    %291 = vector.load %arg14[%c528_324, %c360_325] : memref<600x400xbf16, #tpu.memory_space<vmem>>, vector<24x40xbf16>
    tpu.vector_store %arg14[%c528_324, %c360_325], %290 {strides = array<i32>} : memref<600x400xbf16, #tpu.memory_space<vmem>>, vector<24x40xbf16>,
    %c0_326 = arith.constant 0 : index
    %c41_327 = arith.constant 41 : index
    %292 = vector.load %arg13[%c0_326, %c41_327] : memref<24x400xf32, #tpu.memory_space<vmem>>, vector<24x359xf32>
    %293 = arith.truncf %292 : vector<24x359xf32> to vector<24x359xbf16>
    %c552 = arith.constant 552 : index
    %c0_328 = arith.constant 0 : index
    %294 = vector.load %arg14[%c552, %c0_328] : memref<600x400xbf16, #tpu.memory_space<vmem>>, vector<24x359xbf16>
    tpu.vector_store %arg14[%c552, %c0_328], %293 {strides = array<i32>} : memref<600x400xbf16, #tpu.memory_space<vmem>>, vector<24x359xbf16>,
    %cst_329 = arith.constant 0.000000e+00 : bf16
    %295 = vector.broadcast %cst_329 : bf16 to vector<24x41xbf16>
    %c552_330 = arith.constant 552 : index
    %c359 = arith.constant 359 : index
    %296 = vector.load %arg14[%c552_330, %c359] : memref<600x400xbf16, #tpu.memory_space<vmem>>, vector<24x41xbf16>
    tpu.vector_store %arg14[%c552_330, %c359], %295 {strides = array<i32>} : memref<600x400xbf16, #tpu.memory_space<vmem>>, vector<24x41xbf16>,
    %c0_331 = arith.constant 0 : index
    %c42_332 = arith.constant 42 : index
    %297 = vector.load %arg13[%c0_331, %c42_332] : memref<24x400xf32, #tpu.memory_space<vmem>>, vector<24x358xf32>
    %298 = arith.truncf %297 : vector<24x358xf32> to vector<24x358xbf16>
    %c576 = arith.constant 576 : index
    %c0_333 = arith.constant 0 : index
    %299 = vector.load %arg14[%c576, %c0_333] : memref<600x400xbf16, #tpu.memory_space<vmem>>, vector<24x358xbf16>
    tpu.vector_store %arg14[%c576, %c0_333], %298 {strides = array<i32>} : memref<600x400xbf16, #tpu.memory_space<vmem>>, vector<24x358xbf16>,
    %cst_334 = arith.constant 0.000000e+00 : bf16
    %300 = vector.broadcast %cst_334 : bf16 to vector<24x42xbf16>
    %c576_335 = arith.constant 576 : index
    %c358 = arith.constant 358 : index
    %301 = vector.load %arg14[%c576_335, %c358] : memref<600x400xbf16, #tpu.memory_space<vmem>>, vector<24x42xbf16>
    tpu.vector_store %arg14[%c576_335, %c358], %300 {strides = array<i32>} : memref<600x400xbf16, #tpu.memory_space<vmem>>, vector<24x42xbf16>,
    %c0_336 = arith.constant 0 : index
    %c0_337 = arith.constant 0 : index
    %302 = vector.load %arg4[%c0_336, %c0_337] : memref<24x600xbf16, #tpu.memory_space<vmem>>, vector<24x600xbf16>
    %c0_338 = arith.constant 0 : index
    %c0_339 = arith.constant 0 : index
    %303 = vector.load %arg14[%c0_338, %c0_339] : memref<600x400xbf16, #tpu.memory_space<vmem>>, vector<600x400xbf16>
    %cst_340 = arith.constant dense<0.000000e+00> : vector<24x400xf32>
    %304 = tpu.matmul %302, %303, %cst_340 {dimension_numbers = #tpu.dot_dimension_numbers<[1], [0], [0], [1], [0, 0, 1, 1], [], []>} : vector<24x600xbf16>, vector<600x400xbf16>, vector<24x400xf32> -> vector<24x400xf32>
    %c0_341 = arith.constant 0 : index
    %c0_342 = arith.constant 0 : index
    %305 = vector.load %arg5[%c0_341, %c0_342] : memref<24x1xf32, #tpu.memory_space<vmem>>, vector<24x1xf32>
    %306 = vector.broadcast %305 : vector<24x1xf32> to vector<24x400xf32>
    %307 = arith.addf %304, %306 : vector<24x400xf32>
    %cst_343 = arith.constant 0.000000e+00 : f32
    %308 = vector.broadcast %cst_343 : f32 to vector<24x400xf32>
    %309 = arith.maximumf %307, %308 : vector<24x400xf32>
    %310 = vector.extract_strided_slice %309 {offsets = [0, 0], sizes = [8, 400], strides = [1, 1]} : vector<24x400xf32> to vector<8x400xf32>
    %311 = vector.extract_strided_slice %309 {offsets = [8, 0], sizes = [8, 400], strides = [1, 1]} : vector<24x400xf32> to vector<8x400xf32>
    %312 = arith.addf %310, %311 : vector<8x400xf32>
    %313 = vector.extract_strided_slice %309 {offsets = [16, 0], sizes = [8, 400], strides = [1, 1]} : vector<24x400xf32> to vector<8x400xf32>
    %314 = arith.addf %312, %313 : vector<8x400xf32>
    %cst_344 = arith.constant 0.333333343 : f32
    %315 = vector.broadcast %cst_344 : f32 to vector<8x400xf32>
    %316 = arith.mulf %314, %315 : vector<8x400xf32>
    %c0_345 = arith.constant 0 : index
    %c0_346 = arith.constant 0 : index
    %317 = vector.load %arg8[%c0_345, %c0_346] : memref<1x1200xf32, #tpu.memory_space<vmem>>, vector<1x400xf32>
    %318 = vector.broadcast %317 : vector<1x400xf32> to vector<8x400xf32>
    %319 = arith.mulf %316, %318 : vector<8x400xf32>
    %c0_347 = arith.constant 0 : index
    %c0_348 = arith.constant 0 : index
    %320 = vector.load %arg15[%c0_347, %c0_348] : memref<8x400xf32, #tpu.memory_space<vmem>>, vector<8x400xf32>
    tpu.vector_store %arg15[%c0_347, %c0_348], %319 {strides = array<i32>} : memref<8x400xf32, #tpu.memory_space<vmem>>, vector<8x400xf32>,
    %cst_349 = arith.constant 0.000000e+00 : f32
    %321 = vector.broadcast %cst_349 : f32 to vector<24x400xf32>
    %c0_350 = arith.constant 0 : index
    %c0_351 = arith.constant 0 : index
    %322 = vector.load %arg16[%c0_350, %c0_351] : memref<24x400xf32, #tpu.memory_space<vmem>>, vector<24x400xf32>
    tpu.vector_store %arg16[%c0_350, %c0_351], %321 {strides = array<i32>} : memref<24x400xf32, #tpu.memory_space<vmem>>, vector<24x400xf32>,
    %c0_352 = arith.constant 0 : index
    %c0_353 = arith.constant 0 : index
    %323 = vector.load %arg15[%c0_352, %c0_353] : memref<8x400xf32, #tpu.memory_space<vmem>>, vector<8x400xf32>
    %c8_354 = arith.constant 8 : index
    %c0_355 = arith.constant 0 : index
    %324 = vector.load %arg16[%c8_354, %c0_355] : memref<24x400xf32, #tpu.memory_space<vmem>>, vector<8x400xf32>
    tpu.vector_store %arg16[%c8_354, %c0_355], %323 {strides = array<i32>} : memref<24x400xf32, #tpu.memory_space<vmem>>, vector<8x400xf32>,
    %c0_356 = arith.constant 0 : index
    %c0_357 = arith.constant 0 : index
    %325 = vector.load %arg16[%c0_356, %c0_357] : memref<24x400xf32, #tpu.memory_space<vmem>>, vector<24x358xf32>
    %326 = arith.truncf %325 : vector<24x358xf32> to vector<24x358xbf16>
    %c0_358 = arith.constant 0 : index
    %c42_359 = arith.constant 42 : index
    %327 = vector.load %arg17[%c0_358, %c42_359] : memref<600x400xbf16, #tpu.memory_space<vmem>>, vector<24x358xbf16>
    tpu.vector_store %arg17[%c0_358, %c42_359], %326 {strides = array<i32>} : memref<600x400xbf16, #tpu.memory_space<vmem>>, vector<24x358xbf16>,
    %cst_360 = arith.constant 0.000000e+00 : bf16
    %328 = vector.broadcast %cst_360 : bf16 to vector<24x42xbf16>
    %c0_361 = arith.constant 0 : index
    %c0_362 = arith.constant 0 : index
    %329 = vector.load %arg17[%c0_361, %c0_362] : memref<600x400xbf16, #tpu.memory_space<vmem>>, vector<24x42xbf16>
    tpu.vector_store %arg17[%c0_361, %c0_362], %328 {strides = array<i32>} : memref<600x400xbf16, #tpu.memory_space<vmem>>, vector<24x42xbf16>,
    %c0_363 = arith.constant 0 : index
    %c0_364 = arith.constant 0 : index
    %330 = vector.load %arg16[%c0_363, %c0_364] : memref<24x400xf32, #tpu.memory_space<vmem>>, vector<24x359xf32>
    %331 = arith.truncf %330 : vector<24x359xf32> to vector<24x359xbf16>
    %c24_365 = arith.constant 24 : index
    %c41_366 = arith.constant 41 : index
    %332 = vector.load %arg17[%c24_365, %c41_366] : memref<600x400xbf16, #tpu.memory_space<vmem>>, vector<24x359xbf16>
    tpu.vector_store %arg17[%c24_365, %c41_366], %331 {strides = array<i32>} : memref<600x400xbf16, #tpu.memory_space<vmem>>, vector<24x359xbf16>,
    %cst_367 = arith.constant 0.000000e+00 : bf16
    %333 = vector.broadcast %cst_367 : bf16 to vector<24x41xbf16>
    %c24_368 = arith.constant 24 : index
    %c0_369 = arith.constant 0 : index
    %334 = vector.load %arg17[%c24_368, %c0_369] : memref<600x400xbf16, #tpu.memory_space<vmem>>, vector<24x41xbf16>
    tpu.vector_store %arg17[%c24_368, %c0_369], %333 {strides = array<i32>} : memref<600x400xbf16, #tpu.memory_space<vmem>>, vector<24x41xbf16>,
    %c0_370 = arith.constant 0 : index
    %c0_371 = arith.constant 0 : index
    %335 = vector.load %arg16[%c0_370, %c0_371] : memref<24x400xf32, #tpu.memory_space<vmem>>, vector<24x360xf32>
    %336 = arith.truncf %335 : vector<24x360xf32> to vector<24x360xbf16>
    %c48_372 = arith.constant 48 : index
    %c40_373 = arith.constant 40 : index
    %337 = vector.load %arg17[%c48_372, %c40_373] : memref<600x400xbf16, #tpu.memory_space<vmem>>, vector<24x360xbf16>
    tpu.vector_store %arg17[%c48_372, %c40_373], %336 {strides = array<i32>} : memref<600x400xbf16, #tpu.memory_space<vmem>>, vector<24x360xbf16>,
    %cst_374 = arith.constant 0.000000e+00 : bf16
    %338 = vector.broadcast %cst_374 : bf16 to vector<24x40xbf16>
    %c48_375 = arith.constant 48 : index
    %c0_376 = arith.constant 0 : index
    %339 = vector.load %arg17[%c48_375, %c0_376] : memref<600x400xbf16, #tpu.memory_space<vmem>>, vector<24x40xbf16>
    tpu.vector_store %arg17[%c48_375, %c0_376], %338 {strides = array<i32>} : memref<600x400xbf16, #tpu.memory_space<vmem>>, vector<24x40xbf16>,
    %c0_377 = arith.constant 0 : index
    %c0_378 = arith.constant 0 : index
    %340 = vector.load %arg16[%c0_377, %c0_378] : memref<24x400xf32, #tpu.memory_space<vmem>>, vector<24x361xf32>
    %341 = arith.truncf %340 : vector<24x361xf32> to vector<24x361xbf16>
    %c72_379 = arith.constant 72 : index
    %c39_380 = arith.constant 39 : index
    %342 = vector.load %arg17[%c72_379, %c39_380] : memref<600x400xbf16, #tpu.memory_space<vmem>>, vector<24x361xbf16>
    tpu.vector_store %arg17[%c72_379, %c39_380], %341 {strides = array<i32>} : memref<600x400xbf16, #tpu.memory_space<vmem>>, vector<24x361xbf16>,
    %cst_381 = arith.constant 0.000000e+00 : bf16
    %343 = vector.broadcast %cst_381 : bf16 to vector<24x39xbf16>
    %c72_382 = arith.constant 72 : index
    %c0_383 = arith.constant 0 : index
    %344 = vector.load %arg17[%c72_382, %c0_383] : memref<600x400xbf16, #tpu.memory_space<vmem>>, vector<24x39xbf16>
    tpu.vector_store %arg17[%c72_382, %c0_383], %343 {strides = array<i32>} : memref<600x400xbf16, #tpu.memory_space<vmem>>, vector<24x39xbf16>,
    %c0_384 = arith.constant 0 : index
    %c0_385 = arith.constant 0 : index
    %345 = vector.load %arg16[%c0_384, %c0_385] : memref<24x400xf32, #tpu.memory_space<vmem>>, vector<24x362xf32>
    %346 = arith.truncf %345 : vector<24x362xf32> to vector<24x362xbf16>
    %c96_386 = arith.constant 96 : index
    %c38_387 = arith.constant 38 : index
    %347 = vector.load %arg17[%c96_386, %c38_387] : memref<600x400xbf16, #tpu.memory_space<vmem>>, vector<24x362xbf16>
    tpu.vector_store %arg17[%c96_386, %c38_387], %346 {strides = array<i32>} : memref<600x400xbf16, #tpu.memory_space<vmem>>, vector<24x362xbf16>,
    %cst_388 = arith.constant 0.000000e+00 : bf16
    %348 = vector.broadcast %cst_388 : bf16 to vector<24x38xbf16>
    %c96_389 = arith.constant 96 : index
    %c0_390 = arith.constant 0 : index
    %349 = vector.load %arg17[%c96_389, %c0_390] : memref<600x400xbf16, #tpu.memory_space<vmem>>, vector<24x38xbf16>
    tpu.vector_store %arg17[%c96_389, %c0_390], %348 {strides = array<i32>} : memref<600x400xbf16, #tpu.memory_space<vmem>>, vector<24x38xbf16>,
    %c0_391 = arith.constant 0 : index
    %c0_392 = arith.constant 0 : index
    %350 = vector.load %arg16[%c0_391, %c0_392] : memref<24x400xf32, #tpu.memory_space<vmem>>, vector<24x378xf32>
    %351 = arith.truncf %350 : vector<24x378xf32> to vector<24x378xbf16>
    %c120_393 = arith.constant 120 : index
    %c22_394 = arith.constant 22 : index
    %352 = vector.load %arg17[%c120_393, %c22_394] : memref<600x400xbf16, #tpu.memory_space<vmem>>, vector<24x378xbf16>
    tpu.vector_store %arg17[%c120_393, %c22_394], %351 {strides = array<i32>} : memref<600x400xbf16, #tpu.memory_space<vmem>>, vector<24x378xbf16>,
    %cst_395 = arith.constant 0.000000e+00 : bf16
    %353 = vector.broadcast %cst_395 : bf16 to vector<24x22xbf16>
    %c120_396 = arith.constant 120 : index
    %c0_397 = arith.constant 0 : index
    %354 = vector.load %arg17[%c120_396, %c0_397] : memref<600x400xbf16, #tpu.memory_space<vmem>>, vector<24x22xbf16>
    tpu.vector_store %arg17[%c120_396, %c0_397], %353 {strides = array<i32>} : memref<600x400xbf16, #tpu.memory_space<vmem>>, vector<24x22xbf16>,
    %c0_398 = arith.constant 0 : index
    %c0_399 = arith.constant 0 : index
    %355 = vector.load %arg16[%c0_398, %c0_399] : memref<24x400xf32, #tpu.memory_space<vmem>>, vector<24x379xf32>
    %356 = arith.truncf %355 : vector<24x379xf32> to vector<24x379xbf16>
    %c144_400 = arith.constant 144 : index
    %c21_401 = arith.constant 21 : index
    %357 = vector.load %arg17[%c144_400, %c21_401] : memref<600x400xbf16, #tpu.memory_space<vmem>>, vector<24x379xbf16>
    tpu.vector_store %arg17[%c144_400, %c21_401], %356 {strides = array<i32>} : memref<600x400xbf16, #tpu.memory_space<vmem>>, vector<24x379xbf16>,
    %cst_402 = arith.constant 0.000000e+00 : bf16
    %358 = vector.broadcast %cst_402 : bf16 to vector<24x21xbf16>
    %c144_403 = arith.constant 144 : index
    %c0_404 = arith.constant 0 : index
    %359 = vector.load %arg17[%c144_403, %c0_404] : memref<600x400xbf16, #tpu.memory_space<vmem>>, vector<24x21xbf16>
    tpu.vector_store %arg17[%c144_403, %c0_404], %358 {strides = array<i32>} : memref<600x400xbf16, #tpu.memory_space<vmem>>, vector<24x21xbf16>,
    %c0_405 = arith.constant 0 : index
    %c0_406 = arith.constant 0 : index
    %360 = vector.load %arg16[%c0_405, %c0_406] : memref<24x400xf32, #tpu.memory_space<vmem>>, vector<24x380xf32>
    %361 = arith.truncf %360 : vector<24x380xf32> to vector<24x380xbf16>
    %c168_407 = arith.constant 168 : index
    %c20_408 = arith.constant 20 : index
    %362 = vector.load %arg17[%c168_407, %c20_408] : memref<600x400xbf16, #tpu.memory_space<vmem>>, vector<24x380xbf16>
    tpu.vector_store %arg17[%c168_407, %c20_408], %361 {strides = array<i32>} : memref<600x400xbf16, #tpu.memory_space<vmem>>, vector<24x380xbf16>,
    %cst_409 = arith.constant 0.000000e+00 : bf16
    %363 = vector.broadcast %cst_409 : bf16 to vector<24x20xbf16>
    %c168_410 = arith.constant 168 : index
    %c0_411 = arith.constant 0 : index
    %364 = vector.load %arg17[%c168_410, %c0_411] : memref<600x400xbf16, #tpu.memory_space<vmem>>, vector<24x20xbf16>
    tpu.vector_store %arg17[%c168_410, %c0_411], %363 {strides = array<i32>} : memref<600x400xbf16, #tpu.memory_space<vmem>>, vector<24x20xbf16>,
    %c0_412 = arith.constant 0 : index
    %c0_413 = arith.constant 0 : index
    %365 = vector.load %arg16[%c0_412, %c0_413] : memref<24x400xf32, #tpu.memory_space<vmem>>, vector<24x381xf32>
    %366 = arith.truncf %365 : vector<24x381xf32> to vector<24x381xbf16>
    %c192_414 = arith.constant 192 : index
    %c19_415 = arith.constant 19 : index
    %367 = vector.load %arg17[%c192_414, %c19_415] : memref<600x400xbf16, #tpu.memory_space<vmem>>, vector<24x381xbf16>
    tpu.vector_store %arg17[%c192_414, %c19_415], %366 {strides = array<i32>} : memref<600x400xbf16, #tpu.memory_space<vmem>>, vector<24x381xbf16>,
    %cst_416 = arith.constant 0.000000e+00 : bf16
    %368 = vector.broadcast %cst_416 : bf16 to vector<24x19xbf16>
    %c192_417 = arith.constant 192 : index
    %c0_418 = arith.constant 0 : index
    %369 = vector.load %arg17[%c192_417, %c0_418] : memref<600x400xbf16, #tpu.memory_space<vmem>>, vector<24x19xbf16>
    tpu.vector_store %arg17[%c192_417, %c0_418], %368 {strides = array<i32>} : memref<600x400xbf16, #tpu.memory_space<vmem>>, vector<24x19xbf16>,
    %c0_419 = arith.constant 0 : index
    %c0_420 = arith.constant 0 : index
    %370 = vector.load %arg16[%c0_419, %c0_420] : memref<24x400xf32, #tpu.memory_space<vmem>>, vector<24x382xf32>
    %371 = arith.truncf %370 : vector<24x382xf32> to vector<24x382xbf16>
    %c216_421 = arith.constant 216 : index
    %c18_422 = arith.constant 18 : index
    %372 = vector.load %arg17[%c216_421, %c18_422] : memref<600x400xbf16, #tpu.memory_space<vmem>>, vector<24x382xbf16>
    tpu.vector_store %arg17[%c216_421, %c18_422], %371 {strides = array<i32>} : memref<600x400xbf16, #tpu.memory_space<vmem>>, vector<24x382xbf16>,
    %cst_423 = arith.constant 0.000000e+00 : bf16
    %373 = vector.broadcast %cst_423 : bf16 to vector<24x18xbf16>
    %c216_424 = arith.constant 216 : index
    %c0_425 = arith.constant 0 : index
    %374 = vector.load %arg17[%c216_424, %c0_425] : memref<600x400xbf16, #tpu.memory_space<vmem>>, vector<24x18xbf16>
    tpu.vector_store %arg17[%c216_424, %c0_425], %373 {strides = array<i32>} : memref<600x400xbf16, #tpu.memory_space<vmem>>, vector<24x18xbf16>,
    %c0_426 = arith.constant 0 : index
    %c0_427 = arith.constant 0 : index
    %375 = vector.load %arg16[%c0_426, %c0_427] : memref<24x400xf32, #tpu.memory_space<vmem>>, vector<24x398xf32>
    %376 = arith.truncf %375 : vector<24x398xf32> to vector<24x398xbf16>
    %c240_428 = arith.constant 240 : index
    %c2_429 = arith.constant 2 : index
    %377 = vector.load %arg17[%c240_428, %c2_429] : memref<600x400xbf16, #tpu.memory_space<vmem>>, vector<24x398xbf16>
    tpu.vector_store %arg17[%c240_428, %c2_429], %376 {strides = array<i32>} : memref<600x400xbf16, #tpu.memory_space<vmem>>, vector<24x398xbf16>,
    %cst_430 = arith.constant 0.000000e+00 : bf16
    %378 = vector.broadcast %cst_430 : bf16 to vector<24x2xbf16>
    %c240_431 = arith.constant 240 : index
    %c0_432 = arith.constant 0 : index
    %379 = vector.load %arg17[%c240_431, %c0_432] : memref<600x400xbf16, #tpu.memory_space<vmem>>, vector<24x2xbf16>
    tpu.vector_store %arg17[%c240_431, %c0_432], %378 {strides = array<i32>} : memref<600x400xbf16, #tpu.memory_space<vmem>>, vector<24x2xbf16>,
    %c0_433 = arith.constant 0 : index
    %c0_434 = arith.constant 0 : index
    %380 = vector.load %arg16[%c0_433, %c0_434] : memref<24x400xf32, #tpu.memory_space<vmem>>, vector<24x399xf32>
    %381 = arith.truncf %380 : vector<24x399xf32> to vector<24x399xbf16>
    %c264_435 = arith.constant 264 : index
    %c1_436 = arith.constant 1 : index
    %382 = vector.load %arg17[%c264_435, %c1_436] : memref<600x400xbf16, #tpu.memory_space<vmem>>, vector<24x399xbf16>
    tpu.vector_store %arg17[%c264_435, %c1_436], %381 {strides = array<i32>} : memref<600x400xbf16, #tpu.memory_space<vmem>>, vector<24x399xbf16>,
    %cst_437 = arith.constant 0.000000e+00 : bf16
    %383 = vector.broadcast %cst_437 : bf16 to vector<24x1xbf16>
    %c264_438 = arith.constant 264 : index
    %c0_439 = arith.constant 0 : index
    %384 = vector.load %arg17[%c264_438, %c0_439] : memref<600x400xbf16, #tpu.memory_space<vmem>>, vector<24x1xbf16>
    tpu.vector_store %arg17[%c264_438, %c0_439], %383 {strides = array<i32>} : memref<600x400xbf16, #tpu.memory_space<vmem>>, vector<24x1xbf16>,
    %c0_440 = arith.constant 0 : index
    %c0_441 = arith.constant 0 : index
    %385 = vector.load %arg16[%c0_440, %c0_441] : memref<24x400xf32, #tpu.memory_space<vmem>>, vector<24x400xf32>
    %386 = arith.truncf %385 : vector<24x400xf32> to vector<24x400xbf16>
    %c288_442 = arith.constant 288 : index
    %c0_443 = arith.constant 0 : index
    %387 = vector.load %arg17[%c288_442, %c0_443] : memref<600x400xbf16, #tpu.memory_space<vmem>>, vector<24x400xbf16>
    tpu.vector_store %arg17[%c288_442, %c0_443], %386 {strides = array<i32>} : memref<600x400xbf16, #tpu.memory_space<vmem>>, vector<24x400xbf16>,
    %c0_444 = arith.constant 0 : index
    %c1_445 = arith.constant 1 : index
    %388 = vector.load %arg16[%c0_444, %c1_445] : memref<24x400xf32, #tpu.memory_space<vmem>>, vector<24x399xf32>
    %389 = arith.truncf %388 : vector<24x399xf32> to vector<24x399xbf16>
    %c312_446 = arith.constant 312 : index
    %c0_447 = arith.constant 0 : index
    %390 = vector.load %arg17[%c312_446, %c0_447] : memref<600x400xbf16, #tpu.memory_space<vmem>>, vector<24x399xbf16>
    tpu.vector_store %arg17[%c312_446, %c0_447], %389 {strides = array<i32>} : memref<600x400xbf16, #tpu.memory_space<vmem>>, vector<24x399xbf16>,
    %cst_448 = arith.constant 0.000000e+00 : bf16
    %391 = vector.broadcast %cst_448 : bf16 to vector<24x1xbf16>
    %c312_449 = arith.constant 312 : index
    %c399_450 = arith.constant 399 : index
    %392 = vector.load %arg17[%c312_449, %c399_450] : memref<600x400xbf16, #tpu.memory_space<vmem>>, vector<24x1xbf16>
    tpu.vector_store %arg17[%c312_449, %c399_450], %391 {strides = array<i32>} : memref<600x400xbf16, #tpu.memory_space<vmem>>, vector<24x1xbf16>,
    %c0_451 = arith.constant 0 : index
    %c2_452 = arith.constant 2 : index
    %393 = vector.load %arg16[%c0_451, %c2_452] : memref<24x400xf32, #tpu.memory_space<vmem>>, vector<24x398xf32>
    %394 = arith.truncf %393 : vector<24x398xf32> to vector<24x398xbf16>
    %c336_453 = arith.constant 336 : index
    %c0_454 = arith.constant 0 : index
    %395 = vector.load %arg17[%c336_453, %c0_454] : memref<600x400xbf16, #tpu.memory_space<vmem>>, vector<24x398xbf16>
    tpu.vector_store %arg17[%c336_453, %c0_454], %394 {strides = array<i32>} : memref<600x400xbf16, #tpu.memory_space<vmem>>, vector<24x398xbf16>,
    %cst_455 = arith.constant 0.000000e+00 : bf16
    %396 = vector.broadcast %cst_455 : bf16 to vector<24x2xbf16>
    %c336_456 = arith.constant 336 : index
    %c398_457 = arith.constant 398 : index
    %397 = vector.load %arg17[%c336_456, %c398_457] : memref<600x400xbf16, #tpu.memory_space<vmem>>, vector<24x2xbf16>
    tpu.vector_store %arg17[%c336_456, %c398_457], %396 {strides = array<i32>} : memref<600x400xbf16, #tpu.memory_space<vmem>>, vector<24x2xbf16>,
    %c0_458 = arith.constant 0 : index
    %c18_459 = arith.constant 18 : index
    %398 = vector.load %arg16[%c0_458, %c18_459] : memref<24x400xf32, #tpu.memory_space<vmem>>, vector<24x382xf32>
    %399 = arith.truncf %398 : vector<24x382xf32> to vector<24x382xbf16>
    %c360_460 = arith.constant 360 : index
    %c0_461 = arith.constant 0 : index
    %400 = vector.load %arg17[%c360_460, %c0_461] : memref<600x400xbf16, #tpu.memory_space<vmem>>, vector<24x382xbf16>
    tpu.vector_store %arg17[%c360_460, %c0_461], %399 {strides = array<i32>} : memref<600x400xbf16, #tpu.memory_space<vmem>>, vector<24x382xbf16>,
    %cst_462 = arith.constant 0.000000e+00 : bf16
    %401 = vector.broadcast %cst_462 : bf16 to vector<24x18xbf16>
    %c360_463 = arith.constant 360 : index
    %c382_464 = arith.constant 382 : index
    %402 = vector.load %arg17[%c360_463, %c382_464] : memref<600x400xbf16, #tpu.memory_space<vmem>>, vector<24x18xbf16>
    tpu.vector_store %arg17[%c360_463, %c382_464], %401 {strides = array<i32>} : memref<600x400xbf16, #tpu.memory_space<vmem>>, vector<24x18xbf16>,
    %c0_465 = arith.constant 0 : index
    %c19_466 = arith.constant 19 : index
    %403 = vector.load %arg16[%c0_465, %c19_466] : memref<24x400xf32, #tpu.memory_space<vmem>>, vector<24x381xf32>
    %404 = arith.truncf %403 : vector<24x381xf32> to vector<24x381xbf16>
    %c384_467 = arith.constant 384 : index
    %c0_468 = arith.constant 0 : index
    %405 = vector.load %arg17[%c384_467, %c0_468] : memref<600x400xbf16, #tpu.memory_space<vmem>>, vector<24x381xbf16>
    tpu.vector_store %arg17[%c384_467, %c0_468], %404 {strides = array<i32>} : memref<600x400xbf16, #tpu.memory_space<vmem>>, vector<24x381xbf16>,
    %cst_469 = arith.constant 0.000000e+00 : bf16
    %406 = vector.broadcast %cst_469 : bf16 to vector<24x19xbf16>
    %c384_470 = arith.constant 384 : index
    %c381_471 = arith.constant 381 : index
    %407 = vector.load %arg17[%c384_470, %c381_471] : memref<600x400xbf16, #tpu.memory_space<vmem>>, vector<24x19xbf16>
    tpu.vector_store %arg17[%c384_470, %c381_471], %406 {strides = array<i32>} : memref<600x400xbf16, #tpu.memory_space<vmem>>, vector<24x19xbf16>,
    %c0_472 = arith.constant 0 : index
    %c20_473 = arith.constant 20 : index
    %408 = vector.load %arg16[%c0_472, %c20_473] : memref<24x400xf32, #tpu.memory_space<vmem>>, vector<24x380xf32>
    %409 = arith.truncf %408 : vector<24x380xf32> to vector<24x380xbf16>
    %c408_474 = arith.constant 408 : index
    %c0_475 = arith.constant 0 : index
    %410 = vector.load %arg17[%c408_474, %c0_475] : memref<600x400xbf16, #tpu.memory_space<vmem>>, vector<24x380xbf16>
    tpu.vector_store %arg17[%c408_474, %c0_475], %409 {strides = array<i32>} : memref<600x400xbf16, #tpu.memory_space<vmem>>, vector<24x380xbf16>,
    %cst_476 = arith.constant 0.000000e+00 : bf16
    %411 = vector.broadcast %cst_476 : bf16 to vector<24x20xbf16>
    %c408_477 = arith.constant 408 : index
    %c380_478 = arith.constant 380 : index
    %412 = vector.load %arg17[%c408_477, %c380_478] : memref<600x400xbf16, #tpu.memory_space<vmem>>, vector<24x20xbf16>
    tpu.vector_store %arg17[%c408_477, %c380_478], %411 {strides = array<i32>} : memref<600x400xbf16, #tpu.memory_space<vmem>>, vector<24x20xbf16>,
    %c0_479 = arith.constant 0 : index
    %c21_480 = arith.constant 21 : index
    %413 = vector.load %arg16[%c0_479, %c21_480] : memref<24x400xf32, #tpu.memory_space<vmem>>, vector<24x379xf32>
    %414 = arith.truncf %413 : vector<24x379xf32> to vector<24x379xbf16>
    %c432_481 = arith.constant 432 : index
    %c0_482 = arith.constant 0 : index
    %415 = vector.load %arg17[%c432_481, %c0_482] : memref<600x400xbf16, #tpu.memory_space<vmem>>, vector<24x379xbf16>
    tpu.vector_store %arg17[%c432_481, %c0_482], %414 {strides = array<i32>} : memref<600x400xbf16, #tpu.memory_space<vmem>>, vector<24x379xbf16>,
    %cst_483 = arith.constant 0.000000e+00 : bf16
    %416 = vector.broadcast %cst_483 : bf16 to vector<24x21xbf16>
    %c432_484 = arith.constant 432 : index
    %c379_485 = arith.constant 379 : index
    %417 = vector.load %arg17[%c432_484, %c379_485] : memref<600x400xbf16, #tpu.memory_space<vmem>>, vector<24x21xbf16>
    tpu.vector_store %arg17[%c432_484, %c379_485], %416 {strides = array<i32>} : memref<600x400xbf16, #tpu.memory_space<vmem>>, vector<24x21xbf16>,
    %c0_486 = arith.constant 0 : index
    %c22_487 = arith.constant 22 : index
    %418 = vector.load %arg16[%c0_486, %c22_487] : memref<24x400xf32, #tpu.memory_space<vmem>>, vector<24x378xf32>
    %419 = arith.truncf %418 : vector<24x378xf32> to vector<24x378xbf16>
    %c456_488 = arith.constant 456 : index
    %c0_489 = arith.constant 0 : index
    %420 = vector.load %arg17[%c456_488, %c0_489] : memref<600x400xbf16, #tpu.memory_space<vmem>>, vector<24x378xbf16>
    tpu.vector_store %arg17[%c456_488, %c0_489], %419 {strides = array<i32>} : memref<600x400xbf16, #tpu.memory_space<vmem>>, vector<24x378xbf16>,
    %cst_490 = arith.constant 0.000000e+00 : bf16
    %421 = vector.broadcast %cst_490 : bf16 to vector<24x22xbf16>
    %c456_491 = arith.constant 456 : index
    %c378_492 = arith.constant 378 : index
    %422 = vector.load %arg17[%c456_491, %c378_492] : memref<600x400xbf16, #tpu.memory_space<vmem>>, vector<24x22xbf16>
    tpu.vector_store %arg17[%c456_491, %c378_492], %421 {strides = array<i32>} : memref<600x400xbf16, #tpu.memory_space<vmem>>, vector<24x22xbf16>,
    %c0_493 = arith.constant 0 : index
    %c38_494 = arith.constant 38 : index
    %423 = vector.load %arg16[%c0_493, %c38_494] : memref<24x400xf32, #tpu.memory_space<vmem>>, vector<24x362xf32>
    %424 = arith.truncf %423 : vector<24x362xf32> to vector<24x362xbf16>
    %c480_495 = arith.constant 480 : index
    %c0_496 = arith.constant 0 : index
    %425 = vector.load %arg17[%c480_495, %c0_496] : memref<600x400xbf16, #tpu.memory_space<vmem>>, vector<24x362xbf16>
    tpu.vector_store %arg17[%c480_495, %c0_496], %424 {strides = array<i32>} : memref<600x400xbf16, #tpu.memory_space<vmem>>, vector<24x362xbf16>,
    %cst_497 = arith.constant 0.000000e+00 : bf16
    %426 = vector.broadcast %cst_497 : bf16 to vector<24x38xbf16>
    %c480_498 = arith.constant 480 : index
    %c362_499 = arith.constant 362 : index
    %427 = vector.load %arg17[%c480_498, %c362_499] : memref<600x400xbf16, #tpu.memory_space<vmem>>, vector<24x38xbf16>
    tpu.vector_store %arg17[%c480_498, %c362_499], %426 {strides = array<i32>} : memref<600x400xbf16, #tpu.memory_space<vmem>>, vector<24x38xbf16>,
    %c0_500 = arith.constant 0 : index
    %c39_501 = arith.constant 39 : index
    %428 = vector.load %arg16[%c0_500, %c39_501] : memref<24x400xf32, #tpu.memory_space<vmem>>, vector<24x361xf32>
    %429 = arith.truncf %428 : vector<24x361xf32> to vector<24x361xbf16>
    %c504_502 = arith.constant 504 : index
    %c0_503 = arith.constant 0 : index
    %430 = vector.load %arg17[%c504_502, %c0_503] : memref<600x400xbf16, #tpu.memory_space<vmem>>, vector<24x361xbf16>
    tpu.vector_store %arg17[%c504_502, %c0_503], %429 {strides = array<i32>} : memref<600x400xbf16, #tpu.memory_space<vmem>>, vector<24x361xbf16>,
    %cst_504 = arith.constant 0.000000e+00 : bf16
    %431 = vector.broadcast %cst_504 : bf16 to vector<24x39xbf16>
    %c504_505 = arith.constant 504 : index
    %c361_506 = arith.constant 361 : index
    %432 = vector.load %arg17[%c504_505, %c361_506] : memref<600x400xbf16, #tpu.memory_space<vmem>>, vector<24x39xbf16>
    tpu.vector_store %arg17[%c504_505, %c361_506], %431 {strides = array<i32>} : memref<600x400xbf16, #tpu.memory_space<vmem>>, vector<24x39xbf16>,
    %c0_507 = arith.constant 0 : index
    %c40_508 = arith.constant 40 : index
    %433 = vector.load %arg16[%c0_507, %c40_508] : memref<24x400xf32, #tpu.memory_space<vmem>>, vector<24x360xf32>
    %434 = arith.truncf %433 : vector<24x360xf32> to vector<24x360xbf16>
    %c528_509 = arith.constant 528 : index
    %c0_510 = arith.constant 0 : index
    %435 = vector.load %arg17[%c528_509, %c0_510] : memref<600x400xbf16, #tpu.memory_space<vmem>>, vector<24x360xbf16>
    tpu.vector_store %arg17[%c528_509, %c0_510], %434 {strides = array<i32>} : memref<600x400xbf16, #tpu.memory_space<vmem>>, vector<24x360xbf16>,
    %cst_511 = arith.constant 0.000000e+00 : bf16
    %436 = vector.broadcast %cst_511 : bf16 to vector<24x40xbf16>
    %c528_512 = arith.constant 528 : index
    %c360_513 = arith.constant 360 : index
    %437 = vector.load %arg17[%c528_512, %c360_513] : memref<600x400xbf16, #tpu.memory_space<vmem>>, vector<24x40xbf16>
    tpu.vector_store %arg17[%c528_512, %c360_513], %436 {strides = array<i32>} : memref<600x400xbf16, #tpu.memory_space<vmem>>, vector<24x40xbf16>,
    %c0_514 = arith.constant 0 : index
    %c41_515 = arith.constant 41 : index
    %438 = vector.load %arg16[%c0_514, %c41_515] : memref<24x400xf32, #tpu.memory_space<vmem>>, vector<24x359xf32>
    %439 = arith.truncf %438 : vector<24x359xf32> to vector<24x359xbf16>
    %c552_516 = arith.constant 552 : index
    %c0_517 = arith.constant 0 : index
    %440 = vector.load %arg17[%c552_516, %c0_517] : memref<600x400xbf16, #tpu.memory_space<vmem>>, vector<24x359xbf16>
    tpu.vector_store %arg17[%c552_516, %c0_517], %439 {strides = array<i32>} : memref<600x400xbf16, #tpu.memory_space<vmem>>, vector<24x359xbf16>,
    %cst_518 = arith.constant 0.000000e+00 : bf16
    %441 = vector.broadcast %cst_518 : bf16 to vector<24x41xbf16>
    %c552_519 = arith.constant 552 : index
    %c359_520 = arith.constant 359 : index
    %442 = vector.load %arg17[%c552_519, %c359_520] : memref<600x400xbf16, #tpu.memory_space<vmem>>, vector<24x41xbf16>
    tpu.vector_store %arg17[%c552_519, %c359_520], %441 {strides = array<i32>} : memref<600x400xbf16, #tpu.memory_space<vmem>>, vector<24x41xbf16>,
    %c0_521 = arith.constant 0 : index
    %c42_522 = arith.constant 42 : index
    %443 = vector.load %arg16[%c0_521, %c42_522] : memref<24x400xf32, #tpu.memory_space<vmem>>, vector<24x358xf32>
    %444 = arith.truncf %443 : vector<24x358xf32> to vector<24x358xbf16>
    %c576_523 = arith.constant 576 : index
    %c0_524 = arith.constant 0 : index
    %445 = vector.load %arg17[%c576_523, %c0_524] : memref<600x400xbf16, #tpu.memory_space<vmem>>, vector<24x358xbf16>
    tpu.vector_store %arg17[%c576_523, %c0_524], %444 {strides = array<i32>} : memref<600x400xbf16, #tpu.memory_space<vmem>>, vector<24x358xbf16>,
    %cst_525 = arith.constant 0.000000e+00 : bf16
    %446 = vector.broadcast %cst_525 : bf16 to vector<24x42xbf16>
    %c576_526 = arith.constant 576 : index
    %c358_527 = arith.constant 358 : index
    %447 = vector.load %arg17[%c576_526, %c358_527] : memref<600x400xbf16, #tpu.memory_space<vmem>>, vector<24x42xbf16>
    tpu.vector_store %arg17[%c576_526, %c358_527], %446 {strides = array<i32>} : memref<600x400xbf16, #tpu.memory_space<vmem>>, vector<24x42xbf16>,
    %c0_528 = arith.constant 0 : index
    %c0_529 = arith.constant 0 : index
    %448 = vector.load %arg6[%c0_528, %c0_529] : memref<24x600xbf16, #tpu.memory_space<vmem>>, vector<24x600xbf16>
    %c0_530 = arith.constant 0 : index
    %c0_531 = arith.constant 0 : index
    %449 = vector.load %arg17[%c0_530, %c0_531] : memref<600x400xbf16, #tpu.memory_space<vmem>>, vector<600x400xbf16>
    %cst_532 = arith.constant dense<0.000000e+00> : vector<24x400xf32>
    %450 = tpu.matmul %448, %449, %cst_532 {dimension_numbers = #tpu.dot_dimension_numbers<[1], [0], [0], [1], [0, 0, 1, 1], [], []>} : vector<24x600xbf16>, vector<600x400xbf16>, vector<24x400xf32> -> vector<24x400xf32>
    %c0_533 = arith.constant 0 : index
    %c0_534 = arith.constant 0 : index
    %451 = vector.load %arg7[%c0_533, %c0_534] : memref<24x1xf32, #tpu.memory_space<vmem>>, vector<24x1xf32>
    %452 = vector.broadcast %451 : vector<24x1xf32> to vector<24x400xf32>
    %453 = arith.addf %450, %452 : vector<24x400xf32>
    %cst_535 = arith.constant 0.000000e+00 : f32
    %454 = vector.broadcast %cst_535 : f32 to vector<24x400xf32>
    %455 = arith.maximumf %453, %454 : vector<24x400xf32>
    %456 = vector.extract_strided_slice %455 {offsets = [0, 0], sizes = [8, 400], strides = [1, 1]} : vector<24x400xf32> to vector<8x400xf32>
    %457 = vector.extract_strided_slice %455 {offsets = [8, 0], sizes = [8, 400], strides = [1, 1]} : vector<24x400xf32> to vector<8x400xf32>
    %458 = arith.addf %456, %457 : vector<8x400xf32>
    %459 = vector.extract_strided_slice %455 {offsets = [16, 0], sizes = [8, 400], strides = [1, 1]} : vector<24x400xf32> to vector<8x400xf32>
    %460 = arith.addf %458, %459 : vector<8x400xf32>
    %cst_536 = arith.constant 0.333333343 : f32
    %461 = vector.broadcast %cst_536 : f32 to vector<8x400xf32>
    %462 = arith.mulf %460, %461 : vector<8x400xf32>
    %c0_537 = arith.constant 0 : index
    %c0_538 = arith.constant 0 : index
    %463 = vector.load %arg8[%c0_537, %c0_538] : memref<1x1200xf32, #tpu.memory_space<vmem>>, vector<1x400xf32>
    %464 = vector.broadcast %463 : vector<1x400xf32> to vector<8x400xf32>
    %465 = arith.mulf %462, %464 : vector<8x400xf32>
    %c0_539 = arith.constant 0 : index
    %c0_540 = arith.constant 0 : index
    %c0_541 = arith.constant 0 : index
    %466 = vector.load %arg9[%c0_539, %c0_540, %c0_541] : memref<1x8x400xf32, #tpu.memory_space<vmem>>, vector<1x8x400xf32>
    %467 = vector.shape_cast %466 : vector<1x8x400xf32> to vector<8x400xf32>
    %468 = vector.shape_cast %465 : vector<8x400xf32> to vector<1x8x400xf32>
    tpu.vector_store %arg9[%c0_539, %c0_540, %c0_541], %468 {strides = array<i32>} : memref<1x8x400xf32, #tpu.memory_space<vmem>>, vector<1x8x400xf32>,
    return
  }
  func.func @transform_0(%arg0: i32) -> (i32, i32, i32) {
    %c0_i32 = arith.constant 0 : i32
    %c0_i32_0 = arith.constant 0 : i32
    %c0_i32_1 = arith.constant 0 : i32
    return %arg0, %c0_i32, %c0_i32_0 : i32, i32, i32
  }
  func.func @transform_1(%arg0: i32) -> (i32, i32) {
    %c0_i32 = arith.constant 0 : i32
    %c0_i32_0 = arith.constant 0 : i32
    %c0_i32_1 = arith.constant 0 : i32
    return %c0_i32, %c0_i32_0 : i32, i32
  }
  func.func @transform_2(%arg0: i32) -> (i32, i32) {
    %c0_i32 = arith.constant 0 : i32
    %c0_i32_0 = arith.constant 0 : i32
    %c0_i32_1 = arith.constant 0 : i32
    return %c0_i32, %c0_i32_0 : i32, i32
  }
  func.func @transform_3(%arg0: i32) -> (i32, i32) {
    %c0_i32 = arith.constant 0 : i32
    %c0_i32_0 = arith.constant 0 : i32
    %c0_i32_1 = arith.constant 0 : i32
    return %c0_i32, %c0_i32_0 : i32, i32
  }
  func.func @transform_4(%arg0: i32) -> (i32, i32) {
    %c0_i32 = arith.constant 0 : i32
    %c0_i32_0 = arith.constant 0 : i32
    %c0_i32_1 = arith.constant 0 : i32
    return %c0_i32, %c0_i32_0 : i32, i32
  }
  func.func @transform_5(%arg0: i32) -> (i32, i32) {
    %c0_i32 = arith.constant 0 : i32
    %c0_i32_0 = arith.constant 0 : i32
    %c0_i32_1 = arith.constant 0 : i32
    return %c0_i32, %c0_i32_0 : i32, i32
  }
  func.func @transform_6(%arg0: i32) -> (i32, i32) {
    %c0_i32 = arith.constant 0 : i32
    %c0_i32_0 = arith.constant 0 : i32
    %c0_i32_1 = arith.constant 0 : i32
    return %c0_i32, %c0_i32_0 : i32, i32
  }
  func.func @transform_7(%arg0: i32) -> (i32, i32) {
    %c0_i32 = arith.constant 0 : i32
    %c0_i32_0 = arith.constant 0 : i32
    %c0_i32_1 = arith.constant 0 : i32
    return %c0_i32, %c0_i32_0 : i32, i32
  }
  func.func @transform_8(%arg0: i32) -> (i32, i32, i32) {
    %c0_i32 = arith.constant 0 : i32
    %c0_i32_0 = arith.constant 0 : i32
    %c0_i32_1 = arith.constant 0 : i32
    return %arg0, %c0_i32, %c0_i32_0 : i32, i32, i32
  }
}

</mosaic_0001>

<bundles_post_ra>
// kernel: avfeat_forward.1
= control target key start
LH: loop header
LB: loop body
LE: loop exit
PB: predicated region body
PF: predicated region fallthrough
CT: control target
= control target key end

     0   :  { %s12663_s27 = smov 0   ;;  %s17039_s0 = inlined_call_operand.vmem [shape: f32[2,25,400], index: 0, kind: input, shape index: {}]   ;;  %s17040_s1 = inlined_call_operand.vmem [shape: bf16[24,200], index: 1, kind: input, shape index: {}]   ;;  %s17041_s2 = inlined_call_operand.vmem [shape: f32[24,1], index: 2, kind: input, shape index: {}]   ;;  %s17042_s3 = inlined_call_operand.vmem [shape: bf16[24,600], index: 3, kind: input, shape index: {}]   ;;  %s17043_s4 = inlined_call_operand.vmem [shape: f32[24,1], index: 4, kind: input, shape index: {}]   ;;  %s17044_s5 = inlined_call_operand.vmem [shape: bf16[24,600], index: 5, kind: input, shape index: {}]   ;;  %s17045_s6 = inlined_call_operand.vmem [shape: f32[24,1], index: 6, kind: input, shape index: {}]   ;;  %s17046_s7 = inlined_call_operand.vmem [shape: f32[1,1200], index: 7, kind: input, shape index: {}]   ;;  %s17047_s8 = inlined_call_operand.vmem [shape: f32[2,8,400], index: 8, kind: output, shape index: {}]  }
   0x1   :  { %17390 = sst [smem:[#allocation39_spill]] %s17039_s0 }
   0x2   :  { %17391 = sst [smem:[#allocation40_spill]] %s17040_s1 }
   0x3   :  { %17392 = sst [smem:[#allocation41_spill]] %s17041_s2 }
   0x4   :  { %17393 = sst [smem:[#allocation42_spill]] %s17045_s6 }
   0x5   :  { %17394 = sst [smem:[#allocation43_spill]] %s17047_s8 }
   0x6 LB: > { %17395 = sst [smem:[#allocation10_spill]] %s12586_s27  ;;  %s10721_s28 = sadd.s32 4294967295, %s12586_s27   ;;  %s12586_s27 = sphi %s12663_s27, %s18_s27  }
   0x7   : > { %p10725_p0 = scmp.ge.s32.totalorder %s12586_s27, 1  ;;  %p262_p1 = scmp.lt.s32.totalorder %s12586_s27, 3 }
   0x9   : > { %p263_p2 = pnand %p10725_p0, %p262_p1 }
   0xb   : > { %266 = sbr.rel (%p263_p2) target bundleno = 1926 (0x786), region = 52 }
  0x10   : > { %p12671_p3 = scmp.lt.s32.totalorder %s10721_s28, 1  ;;  %v17093_v0 = vlaneseq  ;;  %vm17059_vm0 = vcmask 130048   ;;  %v12588_v1 = vmov 0.0   ;;  %s17398_s0 = sld [smem:[#allocation39_spill]]  ;;  %vm17057_vm2 = vcmask 392192  }
  0x11   : > { %307 = vst [vmem:[#allocation2] sm:$0xff] %v12588_v1  ;;  %308 = vst [vmem:[#allocation2 + $0x8] sm:$0xff] %v12588_v1  ;;  %s12589_s12 = smov 16   ;;  %s12590_s13 = smov 32   ;;  %v17094_v14 = vmov 0   ;;  %vm378_vm8 = vcmask 261120  }
  0x12   : > { %309 = vst [vmem:[#allocation2 + $0x10] sm:$0xff] %v12588_v1  ;;  %310 = vst [vmem:[#allocation2 + $0x18] sm:$0xff] %v12588_v1  ;;  %s18509_s28 = smov (!%p12671_p3, %s10721_s28), 1  ;;  %vm321_vm1 = vcmp.lt.s32.totalorder %v17093_v0, 400  ;;  %s17201_s14 = smov 126   ;;  %12116 = vset.pattern.permute.xlu1 %v17094_v14  ;;  %12115 = vset.pattern.permute.xlu0 %v17094_v14  ;;  %vm344_vm3 = vcmp.ge.s32.totalorder %v17093_v0, 16 }
  0x13   : > { %311 = vst [vmem:[#allocation2 + $0x20] sm:$0xff] %v12588_v1  ;;  %312 = vst [vmem:[#allocation2 + $0x28] sm:$0xff] %v12588_v1  ;;  %17397 = sst [smem:[#allocation11_spill]] %s18509_s28  ;;  %s11650_s30 = sshll.u32 %s18509_s28, 7  ;;  %vm345_vm4 = vcmp.lt.s32.totalorder %v17093_v0, 416  ;;  %vm381_vm6 = vcmp.ge.s32.totalorder %v17093_v0, 32 }
  0x14   : > { %313 = vst [vmem:[#allocation2 + $0x30] sm:$0xff] %v12588_v1  ;;  %314 = vst [vmem:[#allocation2 + $0x38] sm:$0xff] %v12588_v1  ;;  %s17155_s15 = smov 1   ;;  %s17209_s16 = smov 110   ;;  %vm382_vm7 = vcmp.lt.s32.totalorder %v17093_v0, 432  ;;  %vm486_vm10 = vcmask 1047556  }
  0x15   : > { %315 = vst [vmem:[#allocation2 + $0x40] sm:$0xff] %v12588_v1  ;;  %7229 = vst [vmem:[#allocation8] sm:$0xff] %v12588_v1  ;;  %s17239_s17 = smov 18   ;;  %s17157_s18 = smov 127   ;;  %vm1413_vm11 = vcmask 1043464   ;;  %vm17062_vm12 = vcmask 7168  }
  0x16   : > { %3700 = vst.msk [vmem:[#allocation5 + $0x18] sm:$0xff] %vm17059_vm0, %v12588_v1  ;;  %3704 = vst.msk [vmem:[#allocation5 + $0x38] sm:$0xff] %vm17059_vm0, %v12588_v1  ;;  %s300_s11 = scalar_lea.vmem %s17398_s0, %s11650_s30  ;;  %s17054_s19 = smov 20   ;;  %v17403_v38 = vmov 0  ;;  %vm17056_vm14 = vcmask 3072   ;;  %vm1245_vm15 = vcmask 1043600  }
  0x17   : > { %3708 = vst.msk [vmem:[#allocation5 + $0x58] sm:$0xff] %vm17059_vm0, %v12588_v1  ;;  %7232 = vst.msk [vmem:[#allocation8 + $0x18] sm:$0xff] %vm17059_vm0, %v12588_v1  ;;  %v10732_v2 = vld [vmem:[%s300_s11 + $0x5] ss:$8 sm:$0xf]  ;;  %s17203_s20 = smov 2  }
  0x18   : > { %7236 = vst.msk [vmem:[#allocation8 + $0x38] sm:$0xff] %vm17059_vm0, %v12588_v1  ;;  %7240 = vst.msk [vmem:[#allocation8 + $0x58] sm:$0xff] %vm17059_vm0, %v12588_v1  ;;  %v318_v3 = vld [vmem:[%s300_s11] ss:$8 sm:$0xf]  ;;  %338 = vrot.lane.b32.xlu0 %v10732_v2, %s12589_s12  ;;  %s17052_s21 = smov 22  }
  0x19   : > { %v10730_v4 = vld [vmem:[%s300_s11 + $0x1] ss:$8 sm:$0xf]  ;;  %v10731_v5 = vld [vmem:[%s300_s11 + $0x2] ss:$8 sm:$0xf]  ;;  %vm12736_vm5 = vmand %vm344_vm3, %vm345_vm4 }
  0x1a   : > { %323 = vst.msk [vmem:[#allocation2] ss:$8 sm:$0xf] %vm321_vm1, %v318_v3  ;;  %v10734_v6 = vld [vmem:[%s300_s11 + $0x7] ss:$8 sm:$0xf]  ;;  %vm12749_vm9 = vmand %vm381_vm6, %vm382_vm7 }
  0x1b   : > { %v10733_v7 = vld [vmem:[%s300_s11 + $0x6] ss:$8 sm:$0xf]  ;;  %328 = vst.msk [vmem:[#allocation2 + $0x1] ss:$8 sm:$0xf] %vm321_vm1, %v10730_v4  ;;  %364 = vrot.lane.b32.xlu1 %v10734_v6, %s12589_s12  ;;  %vm12767_vm13 = vmor %vm486_vm10, %vm1413_vm11 }
  0x1c   : > { %333 = vst.msk [vmem:[#allocation2 + $0x2] ss:$8 sm:$0xf] %vm321_vm1, %v10731_v5  ;;  %v10735_v8 = vld [vmem:[%s300_s11 + $0x22] ss:$8 sm:$0xf]  ;;  %353 = vrot.lane.b32.xlu0 %v10733_v7, %s12589_s12 }
  0x1d   : > { %v10736_v9 = vld [vmem:[%s300_s11 + $0x23] ss:$8 sm:$0xf]  ;;  %v10737_v10 = vld [vmem:[%s300_s11 + $0x24] ss:$8 sm:$0xf] }
  0x1e   : > { %s17199_s22 = smov 19   ;;  %s17050_s23 = smov 39   ;;  %317 = vst.msk [vmem:[#allocation2 + $0x48] sm:$0xff] %vm17057_vm2, %v12588_v1  ;;  %v17404_v38 = vsel %vm12767_vm13, 4294967295, %v17403_v38  ;;  %vm17061_vm1 = vcmask 146432   ;;  %vm17067_vm3 = vcmask 1043456  }
  0x1f   : > { %375 = vrot.lane.b32.xlu1 %v10735_v8, %s12590_s13  ;;  %s17085_s24 = smov 21   ;;  %s17048_s25 = smov 41   ;;  %17405 = vst [vmem:[#allocation12_spill] sm:$0xff] %v17404_v38  ;;  %vm493_vm4 = vcmask 392196   ;;  %v17406_v57 = vmov 0  ;;  %vm1077_vm6 = vcmask 1043616  }
  0x20   : > { %390 = vrot.lane.b32.xlu0 %v10736_v9, %s12590_s13  ;;  %s17083_s26 = smov 38   ;;  %s17079_s29 = smov 40   ;;  %vm17058_vm7 = vcmask 142336   ;;  %vm17060_vm11 = vcmask 162816   ;;  %v17411_v62 = vmov 0  ;;  %vm909_vm2 = vcmask 1043632  }
  0x21   : > { %s17081_s30 = smov 42   ;;  %s17207_s9 = smov 86   ;;  %v17414_v8 = vmov 0  ;;  %v17427_v26 = vmov 0 }
  0x22   : > { %s17149_s10 = smov 88   ;;  %s17176_s11 = smov 87  }
  0x23   : > { %v1561_v11 = vld [vmem:[#allocation2] sm:$0xff]  ;;  %v1562_v12 = vld [vmem:[#allocation2 + $0x8] sm:$0xff]  ;;  %401 = vrot.lane.b32.xlu1 %v10737_v10, %s12590_s13  ;;  %s17087_s12 = smov 90   ;;  %s17174_s13 = smov 89   ;;  %v1563_v35 = vld [vmem:[#allocation2 + $0x10] sm:$0xff] }
  0x24   : > { %v11722_v13 = vpack.c.bf16 %v1562_v12, %v1561_v11  ;;  %v1424_v37 = vld [vmem:[#allocation2 + $0x10] sm:$0xff]  ;;  %v1422_v40 = vld [vmem:[#allocation2] sm:$0xff]  ;;  %v1423_v41 = vld [vmem:[#allocation2 + $0x8] sm:$0xff]  ;;  %s17448_s1 = sld [smem:[#allocation40_spill]]  ;;  %s17820_s0 = smov 106  }
  0x25   : > { %v12774_v46 = vpack.c.bf16 %v1423_v41, %v1422_v40  ;;  %s17528_s2 = sld [smem:[#allocation41_spill]]  ;;  %s17823_s27 = smov 18  }
  0x26   : > { %1606 = vrot.lane.b32.xlu0 %v11722_v13, %s17201_s14  ;;  %s18281_s8 = smov 88  }
  0x27   : > { %1383 = vrot.lane.b32.xlu1 %v11722_v13, %s17155_s15 }
  0x2a   : > { %1690 = vrot.lane.b32.xlu0 %v11722_v13, %s17209_s16 }
  0x2b   : > { %1215 = vrot.lane.b32.xlu1 %v11722_v13, %s17239_s17 }
  0x2e   : > { %1522 = vrot.lane.b32.xlu0 %v11722_v13, %s17157_s18 }
  0x2f   : > { %1047 = vrot.lane.b32.xlu1 %v11722_v13, %s17054_s19  ;;  %s17197_s19 = smov 108  }
  0x32   : > { %1299 = vrot.lane.b32.xlu0 %v11722_v13, %s17203_s20 }
  0x33   : > { %879 = vrot.lane.b32.xlu1 %v11722_v13, %s17052_s21  ;;  %s17153_s21 = smov 109  }
  0x36   : > { %1131 = vrot.lane.b32.xlu0 %v11722_v13, %s17199_s22 }
  0x37   : > { %711 = vrot.lane.b32.xlu1 %v11722_v13, %s17050_s23  ;;  %s17205_s23 = smov 106  }
  0x3a   : > { %963 = vrot.lane.b32.xlu0 %v11722_v13, %s17085_s24 }
  0x3b   : > { %543 = vrot.lane.b32.xlu1 %v11722_v13, %s17048_s25  ;;  %s17089_s25 = smov 107  }
  0x3e   : > { %795 = vrot.lane.b32.xlu0 %v11722_v13, %s17083_s26 }
  0x42   : > { %627 = vrot.lane.b32.xlu0 %v11722_v13, %s17079_s29 }
  0x46   : > { %454 = vrot.lane.b32.xlu0 %v11722_v13, %s17081_s30 }
  0x4a   : > { %2446 = vrot.lane.b32.xlu0 %v11722_v13, %s17207_s9 }
  0x4e   : > { %2278 = vrot.lane.b32.xlu0 %v11722_v13, %s17149_s10 }
  0x52   : > { %2362 = vrot.lane.b32.xlu0 %v11722_v13, %s17176_s11 }
  0x56   : > { %2110 = vrot.lane.b32.xlu0 %v11722_v13, %s17087_s12 }
  0x5a   : > { %2194 = vrot.lane.b32.xlu0 %v11722_v13, %s17174_s13 }
  0x5e   : > { %1942 = vrot.lane.b32.xlu0 %v11722_v13, %s17089_s25 }
  0x62   : > { %2026 = vrot.lane.b32.xlu0 %v11722_v13, %s17205_s23 }
  0x66   : > { %1774 = vrot.lane.b32.xlu0 %v11722_v13, %s17153_s21 }
  0x6a   : > { %1858 = vrot.lane.b32.xlu0 %v11722_v13, %s17197_s19 }
  0x8a   : > { %v339_v15 = vpop.permute.xlu0 %338 }
  0x8b   : > { %v340_v17 = vrot.slane %v339_v15, 7 }
  0x8d   : > { %v365_v18 = vpop.permute.xlu1 %364  ;;  %v342_v19 = vsel %vm17059_vm0, %v340_v17, %v339_v15  ;;  %v17417_v15 = vmov 0 }
  0x8e   : > { %v366_v20 = vrot.slane %v365_v18, 7  ;;  %348 = vst.msk [vmem:[#allocation2 + $0x18] ss:$8 sm:$0xf] %vm12736_vm5, %v342_v19  ;;  %v354_v21 = vpop.permute.xlu0 %353 }
  0x8f   : > { %v355_v23 = vrot.slane %v354_v21, 7 }
  0x90   : > { %v367_v22 = vsel %vm17059_vm0, %v366_v20, %v365_v18  ;;  %v17420_v18 = vmov 0 }
  0x91   : > { %370 = vst.msk [vmem:[#allocation2 + $0x1a] ss:$8 sm:$0xf] %vm12736_vm5, %v367_v22  ;;  %v376_v24 = vpop.permute.xlu1 %375  ;;  %v356_v25 = vsel %vm17059_vm0, %v355_v23, %v354_v21  ;;  %vm1161_vm0 = vcmask 1043608   ;;  %v17423_v23 = vmov 0 }
  0x92   : > { %v377_v27 = vrot.slane %v376_v24, 7  ;;  %359 = vst.msk [vmem:[#allocation2 + $0x19] ss:$8 sm:$0xf] %vm12736_vm5, %v356_v25  ;;  %v391_v28 = vpop.permute.xlu0 %390  ;;  %vm12800_vm5 = vmor %vm486_vm10, %vm1245_vm15 }
  0x93   : > { %v392_v30 = vrot.slane %v391_v28, 7  ;;  %v17407_v57 = vsel %vm12800_vm5, 4294967295, %v17406_v57  ;;  %vm12823_vm15 = vmor %vm486_vm10, %vm1077_vm6 }
  0x94   : > { %v379_v29 = vsel %vm378_vm8, %v377_v27, %v376_v24  ;;  %17408 = vst [vmem:[#allocation13_spill] sm:$0xff] %v17407_v57  ;;  %v17412_v62 = vsel %vm12823_vm15, 4294967295, %v17411_v62 }
  0x95   : > { %385 = vst.msk [vmem:[#allocation2 + $0x30] ss:$8 sm:$0xf] %vm12749_vm9, %v379_v29  ;;  %v402_v31 = vpop.permute.xlu1 %401  ;;  %v393_v33 = vsel %vm378_vm8, %v392_v30, %v391_v28  ;;  %17413 = vst [vmem:[#allocation14_spill] sm:$0xff] %v17412_v62 }
  0x96   : > { %v403_v32 = vrot.slane %v402_v31, 7  ;;  %396 = vst.msk [vmem:[#allocation2 + $0x31] ss:$8 sm:$0xf] %vm12749_vm9, %v393_v33 }
  0x98   : > { %v12761_v34 = vpop.permute.xlu0 %1606  ;;  %v404_v36 = vsel %vm378_vm8, %v403_v32, %v402_v31  ;;  %vm12812_vm8 = vmor %vm493_vm4, %vm17067_vm3  ;;  %vm17063_vm4 = vcmask 15360   ;;  %vm17074_vm3 = vcmask 171008   ;;  %v17432_v31 = vmov 0 }
  0x99   : > { %407 = vst.msk [vmem:[#allocation2 + $0x32] ss:$8 sm:$0xf] %vm12749_vm9, %v404_v36  ;;  %v12771_v39 = vpop.permute.xlu1 %1383  ;;  %v1565_v42 = vld [vmem:[#allocation2 + $0x20] sm:$0xff]  ;;  %v1566_v43 = vld [vmem:[#allocation2 + $0x28] sm:$0xff]  ;;  %v1564_v44 = vld [vmem:[#allocation2 + $0x18] sm:$0xff] }
  0x9a   : > { %v17103_v45 = vrot.slane %v12771_v39, 4  ;;  %v12776_v47 = vpack.c.bf16 %v1566_v43, %v1565_v42  ;;  %v12778_v48 = vpack.c.bf16 %v1564_v44, %v1563_v35  ;;  %v1425_v50 = vld [vmem:[#allocation2 + $0x18] sm:$0xff]  ;;  %v1426_v51 = vld [vmem:[#allocation2 + $0x20] sm:$0xff]  ;;  %v1427_v52 = vld [vmem:[#allocation2 + $0x28] sm:$0xff]  ;;  %vm1329_vm9 = vcmask 1043472  }
  0x9b   : > { %v12786_v54 = vpack.c.bf16 %v1425_v50, %v1424_v37  ;;  %v11714_v56 = vpack.c.bf16 %v1427_v52, %v1426_v51  ;;  %vm12838_vm6 = vmor %vm486_vm10, %vm1329_vm9  ;;  %vm17066_vm9 = vcmask 179200   ;;  %v17439_v42 = vmov 0 }
  0x9c   : > { %v12780_v49 = vpop.permute.xlu0 %1690  ;;  %v1399_v53 = vsel %vm17062_vm12, %v17103_v45, %v12771_v39  ;;  %1610 = vrot.lane.b32.xlu0 %v12776_v47, %s17201_s14  ;;  %1608 = vrot.lane.b32.xlu1 %v12778_v48, %s17201_s14  ;;  %v17415_v8 = vsel %vm12838_vm6, 4294967295, %v17414_v8  ;;  %vm17069_vm12 = vcmask 175104   ;;  %v17442_v51 = vmov 0 }
  0x9d   : > { %1415 = vst.msk [vmem:[#allocation3 + $0x1b8] sm:$0xff] %vm12767_vm13, %v1399_v53  ;;  %v12794_v55 = vpop.permute.xlu1 %1215  ;;  %1474 = vst [vmem:[#allocation3 + $0x1f0] sm:$0xff] %v11714_v56 }
  0x9e   : > { %1421 = vst.msk [vmem:[#allocation3 + $0x1b8] sm:$0xf] %vm17056_vm14, %v17094_v14  ;;  %v17101_v58 = vrot.slane %v12794_v55, 4  ;;  %vm17064_vm14 = vcmask 158720   ;;  %17416 = vst [vmem:[#allocation15_spill] sm:$0xff] %v17415_v8 }
  0xa0   : > { %v12805_v59 = vpop.permute.xlu0 %1522  ;;  %v1231_v60 = vsel %vm17061_vm1, %v17101_v58, %v12794_v55  ;;  %1692 = vrot.lane.b32.xlu1 %v12778_v48, %s17209_s16  ;;  %1526 = vrot.lane.b32.xlu0 %v12776_v47, %s17157_s18  ;;  %v417_v2 = vld [vmem:[#allocation2 + $0x40] sm:$0xff]  ;;  %v418_v3 = vld [vmem:[#allocation2 + $0x48] sm:$0xff]  ;;  %v1428_v4 = vld [vmem:[#allocation2 + $0x30] sm:$0xff]  ;;  %vm17068_vm1 = vcmask 154624  }
  0xa1   : > { %1247 = vst.msk [vmem:[#allocation3 + $0x168] sm:$0xff] %vm12800_vm5, %v1231_v60  ;;  %v12827_v63 = vpop.permute.xlu1 %1047  ;;  %v12834_v6 = vpack.c.bf16 %v418_v3, %v417_v2  ;;  %v1429_v7 = vld [vmem:[#allocation2 + $0x38] sm:$0xff]  ;;  %v1567_v56 = vld [vmem:[#allocation2 + $0x30] sm:$0xff] }
  0xa2   : > { %1253 = vst.msk [vmem:[#allocation3 + $0x168] sm:$0xf] %vm17058_vm7, %v17094_v14  ;;  %v17099_v1 = vrot.slane %v12827_v63, 4  ;;  %v11715_v11 = vpack.c.bf16 %v1429_v7, %v1428_v4  ;;  %vm17065_vm7 = vcmask 11264   ;;  %v1568_v60 = vld [vmem:[#allocation2 + $0x38] sm:$0xff] }
  0xa3   : > { %1476 = vst.msk [vmem:[#allocation3 + $0x200] sm:$0xff] %vm12812_vm8, %v12834_v6  ;;  %v13036_v2 = vpack.c.bf16 %v1568_v60, %v1567_v56  ;;  %v1616_v56 = vrot.slane %v12761_v34, 4 }
  0xa4   : > { %v12832_v5 = vpop.permute.xlu0 %1299  ;;  %v1063_v10 = vsel %vm17060_vm11, %v17099_v1, %v12827_v63  ;;  %1524 = vrot.lane.b32.xlu1 %v12778_v48, %s17157_s18  ;;  %1301 = vrot.lane.b32.xlu0 %v12778_v48, %s17203_s20  ;;  %vm12866_vm11 = vmor %vm486_vm10, %vm909_vm2  ;;  %1475 = vst [vmem:[#allocation3 + $0x1f8] sm:$0xff] %v11715_v11  ;;  %v1700_v1 = vrot.slane %v12780_v49, 4 }
  0xa5   : > { %v1309_v9 = vrot.slane %v12832_v5, 4  ;;  %1079 = vst.msk [vmem:[#allocation3 + $0x118] sm:$0xff] %vm12823_vm15, %v1063_v10  ;;  %v12853_v12 = vpop.permute.xlu1 %879  ;;  %v17418_v15 = vsel %vm12866_vm11, 4294967295, %v17417_v15  ;;  %vm12879_vm2 = vmor %vm486_vm10, %vm1161_vm0  ;;  %vm17075_vm0 = vcmask 330752   ;;  %vm17435_vm15 = vcmask 166912  }
  0xa6   : > { %1085 = vst.msk [vmem:[#allocation3 + $0x118] sm:$0xf] %vm17064_vm14, %v17094_v14  ;;  %17419 = vst [vmem:[#allocation16_spill] sm:$0xff] %v17418_v15  ;;  %v17098_v16 = vrot.slane %v12853_v12, 4  ;;  %v17421_v18 = vsel %vm12879_vm2, 4294967295, %v17420_v18  ;;  %vm573_vm14 = vcmask 1043784  }
  0xa7   : > { %v1315_v13 = vsel %vm17063_vm4, %v1309_v9, %v12832_v5  ;;  %vm741_vm4 = vcmask 1043768   ;;  %17422 = vst [vmem:[#allocation17_spill] sm:$0xff] %v17421_v18  ;;  %vm12939_vm13 = vmor %vm486_vm10, %vm573_vm14  ;;  %vm17438_vm14 = vcmask 334848  }
  0xa8   : > { %1331 = vst.msk [vmem:[#allocation3 + $0x190] sm:$0xff] %vm12838_vm6, %v1315_v13  ;;  %v12873_v17 = vpop.permute.xlu0 %1131  ;;  %v895_v20 = vsel %vm17066_vm9, %v17098_v16, %v12853_v12  ;;  %2448 = vrot.lane.b32.xlu1 %v12778_v48, %s17207_s9  ;;  %1303 = vrot.lane.b32.xlu0 %v12776_v47, %s17203_s20  ;;  %vm12903_vm9 = vmor %vm486_vm10, %vm741_vm4  ;;  %vm17430_vm4 = vcmask 318464   ;;  %v17433_v31 = vsel %vm12939_vm13, 4294967295, %v17432_v31  ;;  %v13091_v13 = vld [vmem:[%s17448_s1 + $0x4] ss:$8 sps:$4 sm:$0xff]   ;;  %vm17636_vm6 = vcmask 875520  }
  0xa9   : > { %1337 = vst.msk [vmem:[#allocation3 + $0x190] sm:$0xf] %vm17065_vm7, %v17094_v14  ;;  %v1141_v19 = vrot.slane %v12873_v17, 4  ;;  %vm993_vm7 = vcmask 1043624   ;;  %v12894_v21 = vpop.permute.xlu1 %711  ;;  %v17424_v23 = vsel %vm12903_vm9, 4294967295, %v17423_v23  ;;  %17434 = vst [vmem:[#allocation20_spill] sm:$0xff] %v17433_v31 }
  0xaa   : > { %911 = vst.msk [vmem:[#allocation3 + $0xc8] sm:$0xff] %vm12866_vm11, %v895_v20  ;;  %17425 = vst [vmem:[#allocation18_spill] sm:$0xff] %v17424_v23  ;;  %v17097_v24 = vrot.slane %v12894_v21, 4 }
  0xab   : > { %v1147_v22 = vsel %vm17068_vm1, %v1141_v19, %v12873_v17  ;;  %917 = vst.msk [vmem:[#allocation3 + $0xc8] sm:$0xf] %vm17069_vm12, %v17094_v14  ;;  %vm17426_vm1 = vcmask 150528   ;;  %vm12915_vm12 = vmor %vm486_vm10, %vm993_vm7  ;;  %vm17076_vm7 = vcmask 310272  }
  0xac   : > { %1163 = vst.msk [vmem:[#allocation3 + $0x140] sm:$0xff] %vm12879_vm2, %v1147_v22  ;;  %v12910_v25 = vpop.permute.xlu0 %963  ;;  %v17428_v26 = vsel %vm12915_vm12, 4294967295, %v17427_v26  ;;  %v727_v28 = vsel %vm17430_vm4, %v17097_v24, %v12894_v21  ;;  %2280 = vrot.lane.b32.xlu1 %v12778_v48, %s17149_s10  ;;  %1133 = vrot.lane.b32.xlu0 %v12778_v48, %s17199_s22  ;;  %vm17431_vm4 = vcmask 314368   ;;  %v1569_v22 = vld [vmem:[#allocation2 + $0x40] sm:$0xff] }
  0xad   : > { %1169 = vst.msk [vmem:[#allocation3 + $0x140] sm:$0xf] %vm17426_vm1, %v17094_v14  ;;  %17429 = vst [vmem:[#allocation19_spill] sm:$0xff] %v17428_v26  ;;  %v17113_v27 = vrot.slane %v12910_v25, 4  ;;  %vm825_vm1 = vcmask 1043760   ;;  %v12930_v29 = vpop.permute.xlu1 %543 }
  0xae   : > { %743 = vst.msk [vmem:[#allocation3 + $0x78] sm:$0xff] %vm12903_vm9, %v727_v28  ;;  %v17096_v32 = vrot.slane %v12930_v29, 4  ;;  %v1570_v28 = vld [vmem:[#allocation2 + $0x48] sm:$0xff] }
  0xaf   : > { %v979_v30 = vsel %vm17074_vm3, %v17113_v27, %v12910_v25  ;;  %749 = vst.msk [vmem:[#allocation3 + $0x78] sm:$0xf] %vm17431_vm4, %v17094_v14  ;;  %vm12951_vm3 = vmor %vm486_vm10, %vm825_vm1  ;;  %vm17077_vm4 = vcmask 306176   ;;  %vm17078_vm1 = vcmask 326656  }
  0xb0   : > { %995 = vst.msk [vmem:[#allocation3 + $0xf0] sm:$0xff] %vm12915_vm12, %v979_v30  ;;  %v12946_v33 = vpop.permute.xlu0 %795  ;;  %v559_v37 = vsel %vm17438_vm14, %v17096_v32, %v12930_v29  ;;  %2364 = vrot.lane.b32.xlu1 %v12778_v48, %s17176_s11  ;;  %1135 = vrot.lane.b32.xlu0 %v12776_v47, %s17199_s22  ;;  %v13103_v30 = vpack.c.bf16 %v1570_v28, %v1569_v22  ;;  %vm17163_vm12 = vcmask 703488  }
  0xb1   : > { %1001 = vst.msk [vmem:[#allocation3 + $0xf0] sm:$0xf] %vm17435_vm15, %v17094_v14  ;;  %v17110_v36 = vrot.slane %v12946_v33, 4  ;;  %vm657_vm15 = vcmask 1043776  }
  0xb2   : > { %575 = vst.msk [vmem:[#allocation3 + $0x28] sm:$0xff] %vm12939_vm13, %v559_v37  ;;  %vm12979_vm14 = vmor %vm486_vm10, %vm657_vm15  ;;  %vm17108_vm15 = vcmask 343040  }
  0xb3   : > { %v811_v40 = vsel %vm17076_vm7, %v17110_v36, %v12946_v33  ;;  %581 = vst.msk [vmem:[#allocation3 + $0x28] sm:$0xf] %vm17075_vm0, %v17094_v14  ;;  %v17440_v42 = vsel %vm12979_vm14, 4294967295, %v17439_v42  ;;  %vm17092_vm0 = vcmask 322560   ;;  %vm485_vm7 = vcmask 1043792  }
  0xb4   : > { %827 = vst.msk [vmem:[#allocation3 + $0xa0] sm:$0xff] %vm12951_vm3, %v811_v40  ;;  %v12974_v41 = vpop.permute.xlu0 %627  ;;  %17441 = vst [vmem:[#allocation21_spill] sm:$0xff] %v17440_v42  ;;  %2112 = vrot.lane.b32.xlu1 %v12778_v48, %s17087_s12  ;;  %965 = vrot.lane.b32.xlu0 %v12778_v48, %s17085_s24 }
  0xb5   : > { %833 = vst.msk [vmem:[#allocation3 + $0xa0] sm:$0xf] %vm17077_vm4, %v17094_v14  ;;  %v17105_v43 = vrot.slane %v12974_v41, 4  ;;  %vm12999_vm4 = vmor %vm486_vm10, %vm485_vm7  ;;  %vm17100_vm10 = vcmask 588800   ;;  %vm17107_vm7 = vcmask 1031168  }
  0xb6   : > { %v17443_v51 = vsel %vm12999_vm4, 4294967295, %v17442_v51  ;;  %10998 = vmatprep.mubr.msk.bf16.mxu0 %vm17100_vm10, %v13091_v13  ;;  %11001 = vmatprep.mubr.msk.bf16.mxu1 %vm17100_vm10, %v13091_v13  ;;  %vm17109_vm10 = vcmask 900096  }
  0xb7   : > { %v643_v44 = vsel %vm17078_vm1, %v17105_v43, %v12974_v41  ;;  %17444 = vst [vmem:[#allocation22_spill] sm:$0xff] %v17443_v51  ;;  %vm17091_vm1 = vcmask 338944  }
  0xb8   : > { %659 = vst.msk [vmem:[#allocation3 + $0x50] sm:$0xff] %vm12979_vm14, %v643_v44  ;;  %v12994_v50 = vpop.permute.xlu0 %454  ;;  %2196 = vrot.lane.b32.xlu1 %v12778_v48, %s17174_s13  ;;  %967 = vrot.lane.b32.xlu0 %v12776_v47, %s17085_s24  ;;  %s17469_s24 = smov 90  }
  0xb9   : > { %665 = vst.msk [vmem:[#allocation3 + $0x50] sm:$0xf] %vm17092_vm0, %v17094_v14  ;;  %v17104_v52 = vrot.slane %v12994_v50, 4 }
  0xbb   : > { %v470_v53 = vsel %vm17108_vm15, %v17104_v52, %v12994_v50 }
  0xbc   : > { %488 = vst.msk [vmem:[#allocation3] sm:$0xff] %vm12999_vm4, %v470_v53  ;;  %1944 = vrot.lane.b32.xlu1 %v12778_v48, %s17089_s25  ;;  %797 = vrot.lane.b32.xlu0 %v12778_v48, %s17083_s26  ;;  %v13050_v3 = vpop.permute.xlu0 %2446 }
  0xbd   : > { %497 = vst.msk [vmem:[#allocation3] sm:$0xf] %vm17091_vm1, %v17094_v14  ;;  %vm17450_vm1 = vcmask 1043456  }
  0xbe   : > { %vm17451_vm0 = vmmov %vm17450_vm1 }
  0xbf   : > { %vm17453_vm15 = vmmov %vm17451_vm0 }
  0xc0   : > { %2028 = vrot.lane.b32.xlu1 %v12778_v48, %s17205_s23  ;;  %799 = vrot.lane.b32.xlu0 %v12776_v47, %s17083_s26  ;;  %v13056_v4 = vpop.permute.xlu0 %2278  ;;  %s17447_s26 = smov 39  }
  0xc4   : > { %1776 = vrot.lane.b32.xlu1 %v12778_v48, %s17153_s21  ;;  %629 = vrot.lane.b32.xlu0 %v12778_v48, %s17079_s29  ;;  %v13066_v7 = vpop.permute.xlu0 %2362 }
  0xc8   : > { %1860 = vrot.lane.b32.xlu1 %v12778_v48, %s17197_s19  ;;  %631 = vrot.lane.b32.xlu0 %v12776_v47, %s17079_s29  ;;  %s17445_s29 = smov 20   ;;  %v13072_v10 = vpop.permute.xlu0 %2110 }
  0xcc   : > { %1694 = vrot.lane.b32.xlu1 %v12776_v47, %s17209_s16  ;;  %456 = vrot.lane.b32.xlu0 %v12778_v48, %s17081_s30  ;;  %v13082_v11 = vpop.permute.xlu0 %2194 }
  0xd0   : > { %1385 = vrot.lane.b32.xlu1 %v12778_v48, %s17155_s15  ;;  %1612 = vrot.lane.b32.xlu0 %v13036_v2, %s17201_s14  ;;  %v13093_v20 = vpop.permute.xlu0 %1942 }
  0xd4   : > { %1387 = vrot.lane.b32.xlu1 %v12776_v47, %s17155_s15  ;;  %458 = vrot.lane.b32.xlu0 %v12776_v47, %s17081_s30  ;;  %s17446_s30 = smov 22   ;;  %v13109_v37 = vpop.permute.xlu0 %2026 }
  0xd8   : > { %1217 = vrot.lane.b32.xlu1 %v12778_v48, %s17239_s17  ;;  %2450 = vrot.lane.b32.xlu0 %v12776_v47, %s17207_s9 }
  0xdc   : > { %1219 = vrot.lane.b32.xlu1 %v12776_v47, %s17239_s17  ;;  %2282 = vrot.lane.b32.xlu0 %v12776_v47, %s17149_s10 }
  0xe0   : > { %1049 = vrot.lane.b32.xlu1 %v12778_v48, %s17445_s29  ;;  %2284 = vrot.lane.b32.xlu0 %v13036_v2, %s17149_s10 }
  0xe4   : > { %1051 = vrot.lane.b32.xlu1 %v12776_v47, %s17445_s29  ;;  %2114 = vrot.lane.b32.xlu0 %v12776_v47, %s17087_s12 }
  0xe8   : > { %881 = vrot.lane.b32.xlu1 %v12778_v48, %s17446_s30  ;;  %2116 = vrot.lane.b32.xlu0 %v13036_v2, %s17087_s12  ;;  %s17475_s12 = smov 107  }
  0xec   : > { %883 = vrot.lane.b32.xlu1 %v12776_v47, %s17446_s30  ;;  %1946 = vrot.lane.b32.xlu0 %v12776_v47, %s17089_s25 }
  0xf0   : > { %713 = vrot.lane.b32.xlu1 %v12778_v48, %s17447_s26  ;;  %1948 = vrot.lane.b32.xlu0 %v13036_v2, %s17089_s25  ;;  %s17449_s25 = smov 41  }
  0xf4   : > { %715 = vrot.lane.b32.xlu1 %v12776_v47, %s17447_s26  ;;  %1778 = vrot.lane.b32.xlu0 %v12776_v47, %s17153_s21 }
  0xf8   : > { %545 = vrot.lane.b32.xlu1 %v12778_v48, %s17449_s25  ;;  %1780 = vrot.lane.b32.xlu0 %v13036_v2, %s17153_s21  ;;  %v13115_v48 = vpop.permute.xlu0 %1774 }
  0xfc   : > { %1696 = vrot.lane.b32.xlu1 %v13036_v2, %s17209_s16  ;;  %1614 = vrot.lane.b32.xlu0 %v13103_v30, %s17201_s14  ;;  %v13125_v40 = vpop.permute.xlu0 %1858 }
 0x100   : > { %1530 = vrot.lane.b32.xlu0 %v13103_v30, %s17157_s18  ;;  %1528 = vrot.lane.b32.xlu1 %v13036_v2, %s17157_s18  ;;  %s17489_s18 = smov 38  }
 0x104   : > { %547 = vrot.lane.b32.xlu1 %v12776_v47, %s17449_s25  ;;  %1389 = vrot.lane.b32.xlu0 %v13036_v2, %s17155_s15 }
 0x108   : > { %2452 = vrot.lane.b32.xlu1 %v13036_v2, %s17207_s9  ;;  %1391 = vrot.lane.b32.xlu0 %v13103_v30, %s17155_s15  ;;  %s17497_s15 = smov 40  }
 0x10c   : > { %2366 = vrot.lane.b32.xlu1 %v12776_v47, %s17176_s11  ;;  %1221 = vrot.lane.b32.xlu0 %v13036_v2, %s17239_s17 }
 0x10e   : > { %v13131_v44 = vpop.permute.xlu0 %1610  ;;  %v1609_v53 = vpop.permute.xlu1 %1608 }
 0x10f   : > { %v17102_v60 = vrot.slane %v13131_v44, 4  ;;  %v1617_v22 = vrot.slane %v1609_v53, 4 }
 0x110   : > { %2368 = vrot.lane.b32.xlu1 %v13036_v2, %s17176_s11  ;;  %1223 = vrot.lane.b32.xlu0 %v13103_v30, %s17239_s17 }
 0x111   : > { %v1621_v28 = vsel %vm17450_vm1, %v1616_v56, %v1617_v22  ;;  %v1624_v0 = vsel %vm17451_vm0, %v1617_v22, %v17102_v60  ;;  %vm17115_vm1 = vcmask 1039360  }
 0x112   : > { %v1623_v14 = vsel %vm17107_vm7, %v12761_v34, %v1621_v28  ;;  %v13146_v32 = vsel %vm17107_vm7, %v1609_v53, %v1624_v0  ;;  %v13148_v24 = vpop.permute.xlu1 %1692  ;;  %v13150_v16 = vpop.permute.xlu0 %1526  ;;  %v1532_v34 = vrot.slane %v12805_v59, 4  ;;  %vm17452_vm7 = vmmov %vm17451_vm0 }
 0x113   : > { %v17106_v58 = vrot.slane %v13148_v24, 4  ;;  %v17116_v56 = vrot.slane %v13150_v16, 4 }
 0x114   : > { %2198 = vrot.lane.b32.xlu1 %v12776_v47, %s17174_s13  ;;  %1053 = vrot.lane.b32.xlu0 %v13036_v2, %s17445_s29 }
 0x115   : > { %v1705_v0 = vsel %vm17451_vm0, %v1700_v1, %v17106_v58  ;;  %v2456_v1 = vrot.slane %v13050_v3, 4 }
 0x116   : > { %v1707_v53 = vsel %vm17109_vm10, %v12780_v49, %v1705_v0  ;;  %v1525_v22 = vpop.permute.xlu1 %1524  ;;  %v1302_v28 = vpop.permute.xlu0 %1301  ;;  %vm17454_vm10 = vcmask 15360  }
 0x117   : > { %v1533_v60 = vrot.slane %v1525_v22, 4  ;;  %v1310_v45 = vrot.slane %v1302_v28, 4  ;;  %v10938_v52 = vcombine.high %v1623_v14, %v1707_v53  ;;  %v10937_v43 = vcombine.low %v1623_v14, %v1707_v53 }
 0x118   : > { %2200 = vrot.lane.b32.xlu1 %v13036_v2, %s17174_s13  ;;  %1055 = vrot.lane.b32.xlu0 %v13103_v30, %s17445_s29 }
 0x119   : > { %v1537_v58 = vsel %vm17451_vm0, %v1532_v34, %v1533_v60  ;;  %v1540_v49 = vsel %vm17452_vm7, %v1533_v60, %v17116_v56  ;;  %v1316_v0 = vsel %vm17453_vm15, %v1309_v9, %v1310_v45  ;;  %3308 = vmatprep.subr.bf16.mxu0 %v10938_v52  ;;  %vm17455_vm15 = vmmov %vm17451_vm0  ;;  %vm17457_vm7 = vcmask 15360  }
 0x11a   : > { %v1539_v14 = vsel %vm17115_vm1, %v12805_v59, %v1537_v58  ;;  %v13180_v53 = vsel %vm17115_vm1, %v1525_v22, %v1540_v49  ;;  %v13183_v36 = vsel %vm17454_vm10, %v1316_v0, %v1302_v28  ;;  %v13185_v34 = vpop.permute.xlu1 %2448  ;;  %v13187_v27 = vpop.permute.xlu0 %1303  ;;  %3309 = vmatpush1.bf16.msra.mxu0 %v10937_v43  ;;  %v2288_v59 = vrot.slane %v13056_v4, 4  ;;  %vm17456_vm10 = vmmov %vm17451_vm0  ;;  %v12117_v22 = vld [vmem:[#allocation3 + $0x194] ss:$40 sps:$4 sm:$0xff]  }
 0x11b   : > { %v17121_v5 = vrot.slane %v13185_v34, 4  ;;  %v17114_v9 = vrot.slane %v13187_v27, 4  ;;  %v10928_v52 = vcombine.high %v12774_v46, %v1539_v14  ;;  %v10927_v58 = vcombine.low %v12774_v46, %v1539_v14 }
 0x11c   : > { %2030 = vrot.lane.b32.xlu1 %v12776_v47, %s17205_s23  ;;  %885 = vrot.lane.b32.xlu0 %v13036_v2, %s17446_s30  ;;  %vm17117_vm0 = vcmask 719872   ;;  %vm17122_vm1 = vcmask 711680  }
 0x11d   : > { %v2461_v43 = vsel %vm17455_vm15, %v2456_v1, %v17121_v5  ;;  %v1318_v60 = vsel %vm17456_vm10, %v1310_v45, %v17114_v9  ;;  %3310 = vmatprep.subr.bf16.mxu0 %v10928_v52  ;;  %v12119_v45 = vld [vmem:[#allocation3 + $0x190] ss:$40 sps:$4 sm:$0xff]   ;;  %vm17458_vm15 = vmmov %vm17456_vm10 }
 0x11e   : > { %v13206_v46 = vsel %vm17163_vm12, %v13050_v3, %v2461_v43  ;;  %v1319_v28 = vsel %vm17457_vm7, %v1318_v60, %v13187_v27  ;;  %v13210_v49 = vpop.permute.xlu1 %2280  ;;  %v1134_v0 = vpop.permute.xlu0 %1133  ;;  %3311 = vmatpush1.bf16.msra.mxu0 %v10927_v58  ;;  %v2372_v3 = vrot.slane %v13066_v7, 4  ;;  %v12120_v43 = vld [vmem:[#allocation3 + $0x144] ss:$40 sps:$4 sm:$0xff]   ;;  %vm17459_vm7 = vcmask 154624  }
 0x11f   : > { %1333 = vst [vmem:[#allocation3 + $0x1a0] sm:$0xff] %v1319_v28  ;;  %v17120_v1 = vrot.slane %v13210_v49, 4  ;;  %v1142_v14 = vrot.slane %v1134_v0, 4  ;;  %3312 = vmatprep.subr.bf16.mxu0 %v12117_v22 }
 0x120   : > { %2032 = vrot.lane.b32.xlu1 %v13036_v2, %s17205_s23  ;;  %887 = vrot.lane.b32.xlu0 %v13103_v30, %s17446_s30 }
 0x121   : > { %v2293_v52 = vsel %vm17458_vm15, %v2288_v59, %v17120_v1  ;;  %v1148_v58 = vsel %vm17456_vm10, %v1141_v19, %v1142_v14  ;;  %v12122_v19 = vld [vmem:[#allocation3 + $0x140] ss:$40 sps:$4 sm:$0xff]   ;;  %vm17460_vm15 = vmmov %vm17456_vm10 }
 0x122   : > { %v13226_v60 = vsel %vm17117_vm0, %v13056_v4, %v2293_v52  ;;  %v13229_v22 = vsel %vm17459_vm7, %v1148_v58, %v1134_v0  ;;  %v13231_v28 = vpop.permute.xlu1 %2364  ;;  %v13233_v9 = vpop.permute.xlu0 %1135  ;;  %3313 = vmatpush1.bf16.msra.mxu0 %v12119_v45  ;;  %v2120_v4 = vrot.slane %v13072_v10, 4  ;;  %v12123_v52 = vld [vmem:[#allocation3 + $0xf4] ss:$40 sps:$4 sm:$0xff]   ;;  %vm17126_vm0 = vcmask 736256  }
 0x123   : > { %v17118_v59 = vrot.slane %v13231_v28, 4  ;;  %v17119_v17 = vrot.slane %v13233_v9, 4  ;;  %3314 = vmatprep.subr.bf16.mxu0 %v12120_v43 }
 0x124   : > { %1862 = vrot.lane.b32.xlu1 %v12776_v47, %s17197_s19  ;;  %717 = vrot.lane.b32.xlu0 %v13036_v2, %s17447_s26 }
 0x125   : > { %v2377_v0 = vsel %vm17460_vm15, %v2372_v3, %v17118_v59  ;;  %v1150_v45 = vsel %vm17456_vm10, %v1142_v14, %v17119_v17  ;;  %v2204_v14 = vrot.slane %v13082_v11, 4  ;;  %vm17461_vm15 = vmmov %vm17456_vm10 }
 0x126   : > { %v13250_v58 = vsel %vm17122_vm1, %v13066_v7, %v2377_v0  ;;  %v1151_v47 = vsel %vm17459_vm7, %v1150_v45, %v13233_v9  ;;  %v13254_v43 = vpop.permute.xlu1 %2112  ;;  %v966_v56 = vpop.permute.xlu0 %965  ;;  %3315 = vmatpush1.bf16.msra.mxu0 %v12122_v19  ;;  %v12125_v7 = vld [vmem:[#allocation3 + $0xf0] ss:$40 sps:$4 sm:$0xff]   ;;  %v17462_v19 = vrot.slane %v12910_v25, 4  ;;  %vm17463_vm7 = vcmask 171008  }
 0x127   : > { %1165 = vst [vmem:[#allocation3 + $0x150] sm:$0xff] %v1151_v47  ;;  %v17123_v3 = vrot.slane %v13254_v43, 4  ;;  %v974_v59 = vrot.slane %v966_v56, 4  ;;  %3316 = vmatprep.subr.bf16.mxu0 %v12123_v52  ;;  %v12126_v47 = vld [vmem:[#allocation3 + $0xa4] ss:$40 sps:$4 sm:$0xff]   ;;  %vm17135_vm1 = vcmask 728064  }
 0x128   : > { %1864 = vrot.lane.b32.xlu1 %v13036_v2, %s17197_s19  ;;  %719 = vrot.lane.b32.xlu0 %v13103_v30, %s17447_s26 }
 0x129   : > { %v2125_v0 = vsel %vm17461_vm15, %v2120_v4, %v17123_v3  ;;  %v980_v45 = vsel %vm17456_vm10, %v17462_v19, %v974_v59  ;;  %vm17464_vm15 = vmmov %vm17456_vm10  ;;  %v12129_v19 = vld [vmem:[#allocation3 + $0x54] ss:$40 sps:$4 sm:$0xff]  }
 0x12a   : > { %v13270_v52 = vsel %vm17126_vm0, %v13072_v10, %v2125_v0  ;;  %v13273_v17 = vsel %vm17463_vm7, %v980_v45, %v966_v56  ;;  %v13275_v1 = vpop.permute.xlu1 %2196  ;;  %v13277_v5 = vpop.permute.xlu0 %967  ;;  %3317 = vmatpush1.bf16.msra.mxu0 %v12125_v7  ;;  %v12128_v10 = vld [vmem:[#allocation3 + $0xa0] ss:$40 sps:$4 sm:$0xff]   ;;  %v1952_v56 = vrot.slane %v13093_v20, 4  ;;  %vm17141_vm0 = vcmask 875520  }
 0x12b   : > { %v17127_v4 = vrot.slane %v13275_v1, 4  ;;  %v17128_v25 = vrot.slane %v13277_v5, 4  ;;  %3318 = vmatprep.subr.bf16.mxu0 %v12126_v47 }
 0x12c   : > { %1698 = vrot.lane.b32.xlu1 %v13103_v30, %s17209_s16  ;;  %549 = vrot.lane.b32.xlu0 %v13036_v2, %s17449_s25 }
 0x12d   : > { %v2209_v0 = vsel %vm17464_vm15, %v2204_v14, %v17127_v4  ;;  %v982_v7 = vsel %vm17456_vm10, %v974_v59, %v17128_v25  ;;  %v2036_v59 = vrot.slane %v13109_v37, 4  ;;  %vm17465_vm15 = vmmov %vm17456_vm10  ;;  %v12132_v25 = vld [vmem:[#allocation3 + $0x4] ss:$40 sps:$4 sm:$0xff]  }
 0x12e   : > { %v13294_v45 = vsel %vm17135_vm1, %v13082_v11, %v2209_v0  ;;  %v13298_v47 = vsel %vm17463_vm7, %v982_v7, %v13277_v5  ;;  %v13300_v3 = vpop.permute.xlu1 %1944  ;;  %v798_v38 = vpop.permute.xlu0 %797  ;;  %3319 = vmatpush1.bf16.msra.mxu0 %v12128_v10  ;;  %v12131_v11 = vld [vmem:[#allocation3 + $0x50] ss:$40 sps:$4 sm:$0xff]   ;;  %v17466_v10 = vrot.slane %v12946_v33, 4  ;;  %vm17467_vm7 = vcmask 310272  }
 0x12f   : > { %v17136_v14 = vrot.slane %v13300_v3, 4  ;;  %v806_v4 = vrot.slane %v798_v38, 4  ;;  %3320 = vmatprep.subr.bf16.mxu0 %v12129_v19  ;;  %vm17140_vm1 = vcmask 867328  }
 0x130   : > { %1305 = vrot.lane.b32.xlu1 %v13036_v2, %s17203_s20  ;;  %551 = vrot.lane.b32.xlu0 %v13103_v30, %s17449_s25 }
 0x131   : > { %v1957_v0 = vsel %vm17465_vm15, %v1952_v56, %v17136_v14  ;;  %v812_v7 = vsel %vm17456_vm10, %v17466_v10, %v806_v4  ;;  %v1784_v10 = vrot.slane %v13115_v48, 4  ;;  %vm17468_vm15 = vmmov %vm17456_vm10 }
 0x132   : > { %v13316_v19 = vsel %vm17141_vm0, %v13093_v20, %v1957_v0  ;;  %v13319_v26 = vsel %vm17467_vm7, %v812_v7, %v798_v38  ;;  %v13321_v62 = vpop.permute.xlu1 %2028  ;;  %v13323_v18 = vpop.permute.xlu0 %799  ;;  %3321 = vmatpush1.bf16.msra.mxu0 %v12131_v11  ;;  %v12134_v38 = vld [vmem:[#allocation3] ss:$40 sps:$4 sm:$0xff]   ;;  %v10987_v0 = vcombine.low %v13206_v46, %v13206_v46 }
 0x133   : > { %v17142_v56 = vrot.slane %v13321_v62, 4  ;;  %v17139_v33 = vrot.slane %v13323_v18, 4  ;;  %3322 = vmatprep.subr.bf16.mxu0 %v12132_v25  ;;  %v10988_v25 = vcombine.high %v13206_v46, %v13206_v46  ;;  %v1868_v46 = vrot.slane %v13125_v40, 4 }
 0x134   : > { %1307 = vrot.lane.b32.xlu1 %v13103_v30, %s17203_s20  ;;  %2286 = vrot.lane.b32.xlu0 %v13103_v30, %s17149_s10  ;;  %s17477_s10 = smov 21  }
 0x135   : > { %v2041_v20 = vsel %vm17468_vm15, %v2036_v59, %v17142_v56  ;;  %v814_v11 = vsel %vm17456_vm10, %v806_v4, %v17139_v33  ;;  %vm17186_vm15 = vcmask 891904  }
 0x136   : > { %v13344_v7 = vsel %vm17140_vm1, %v13109_v37, %v2041_v20  ;;  %v13348_v14 = vsel %vm17467_vm7, %v814_v11, %v13323_v18  ;;  %v13350_v57 = vpop.permute.xlu1 %1776  ;;  %v630_v59 = vpop.permute.xlu0 %629  ;;  %3323 = vmatpush1.bf16.msra.mxu0 %v12134_v38  ;;  %vm17470_vm7 = vmmov %vm17456_vm10  ;;  %v17471_v38 = vrot.slane %v12974_v41, 4 }
 0x137   : > { %v17147_v4 = vrot.slane %v13350_v57, 4  ;;  %v638_v33 = vrot.slane %v630_v59, 4  ;;  %10997 = vmatprep.subr.msk.bf16.mxu0 %vm17456_vm10, %v10988_v25  ;;  %vm17472_vm1 = vmmov %vm17470_vm7  ;;  %v10978_v25 = vcombine.high %v13226_v60, %v13250_v58  ;;  %vm17474_vm10 = vcmask 326656  }
 0x138   : > { %1137 = vrot.lane.b32.xlu1 %v13036_v2, %s17199_s22  ;;  %2118 = vrot.lane.b32.xlu0 %v13103_v30, %s17469_s24  ;;  %vm17473_vm0 = vmmov %vm17472_vm1 }
 0x139   : > { %v1789_v37 = vsel %vm17470_vm7, %v1784_v10, %v17147_v4  ;;  %v644_v20 = vsel %vm17472_vm1, %v17471_v38, %v638_v33  ;;  %v3279_v11 = vsel %vm17473_vm0, %v10987_v0, 0  ;;  %vm17151_vm7 = vcmask 883712   ;;  %v924_v0 = vld [vmem:[#allocation2 + $0x30] sm:$0xff]  ;;  %v925_v38 = vld [vmem:[#allocation2 + $0x38] sm:$0xff]  ;;  %vm17476_vm1 = vmmov %vm17473_vm0 }
 0x13a   : > { %v13370_v56 = vsel %vm17186_vm15, %v13115_v48, %v1789_v37  ;;  %v13373_v2 = vsel %vm17474_vm10, %v644_v20, %v630_v59  ;;  %v13375_v8 = vpop.permute.xlu1 %1860  ;;  %v13377_v31 = vpop.permute.xlu0 %631  ;;  %3331 = vmatpush2.bf16.msra.mxu0 %v3279_v11  ;;  %v10977_v48 = vcombine.low %v13226_v60, %v13250_v58  ;;  %v10968_v20 = vcombine.high %v13270_v52, %v13294_v45 }
 0x13b   : > { %v17148_v41 = vrot.slane %v13375_v8, 4  ;;  %v17152_v10 = vrot.slane %v13377_v31, 4  ;;  %3332 = vmatprep.subr.bf16.mxu0 %v10978_v25  ;;  %v13403_v58 = vpack.c.bf16 %v925_v38, %v924_v0  ;;  %v17480_v38 = vrot.slane %v12994_v50, 4 }
 0x13c   : > { %1139 = vrot.lane.b32.xlu1 %v13103_v30, %s17199_s22  ;;  %1950 = vrot.lane.b32.xlu0 %v13103_v30, %s17475_s12 }
 0x13d   : > { %v1873_v59 = vsel %vm17476_vm1, %v1868_v46, %v17148_v41  ;;  %v646_v37 = vsel %vm17473_vm0, %v638_v33, %v17152_v10  ;;  %v17478_v33 = vrot.slane %v13148_v24, 4  ;;  %vm17479_vm1 = vmmov %vm17473_vm0 }
 0x13e   : > { %v1875_v11 = vsel %vm17151_vm7, %v13125_v40, %v1873_v59  ;;  %v13399_v25 = vsel %vm17474_vm10, %v646_v37, %v13377_v31  ;;  %v13401_v4 = vpop.permute.xlu1 %1694  ;;  %v457_v60 = vpop.permute.xlu0 %456  ;;  %3333 = vmatpush2.bf16.msra.mxu0 %v10977_v48  ;;  %v10967_v40 = vcombine.low %v13270_v52, %v13294_v45  ;;  %v10958_v59 = vcombine.high %v13316_v19, %v13344_v7 }
 0x13f   : > { %v17167_v46 = vrot.slane %v13401_v4, 4  ;;  %v465_v41 = vrot.slane %v457_v60, 4  ;;  %3334 = vmatprep.subr.bf16.mxu0 %v10968_v20  ;;  %vm17481_vm10 = vcmask 900096   ;;  %vm17482_vm7 = vcmask 343040  }
 0x140   : > { %969 = vrot.lane.b32.xlu1 %v13403_v58, %s17477_s10  ;;  %1782 = vrot.lane.b32.xlu0 %v13103_v30, %s17153_s21  ;;  %s17505_s21 = smov 42  }
 0x141   : > { %v1708_v0 = vsel %vm17479_vm1, %v17478_v33, %v17167_v46  ;;  %v472_v48 = vsel %vm17473_vm0, %v17480_v38, %v465_v41  ;;  %vm17486_vm1 = vmmov %vm17473_vm0 }
 0x142   : > { %v1709_v37 = vsel %vm17481_vm10, %v13148_v24, %v1708_v0  ;;  %v13425_v20 = vsel %vm17482_vm7, %v472_v48, %v457_v60  ;;  %v1386_v52 = vpop.permute.xlu1 %1385  ;;  %v13427_v45 = vpop.permute.xlu0 %1612  ;;  %3335 = vmatpush2.bf16.msra.mxu0 %v10967_v40  ;;  %v10957_v24 = vcombine.low %v13316_v19, %v13344_v7  ;;  %v17483_v60 = vrot.slane %v12771_v39, 4  ;;  %vm17484_vm7 = vmmov %vm17473_vm0 }
 0x143   : > { %v1394_v10 = vrot.slane %v1386_v52, 4  ;;  %v17166_v33 = vrot.slane %v13427_v45, 4  ;;  %3336 = vmatprep.subr.bf16.mxu0 %v10958_v59  ;;  %v10940_v50 = vcombine.high %v13146_v32, %v1709_v37  ;;  %v10939_v38 = vcombine.low %v13146_v32, %v1709_v37 }
 0x144   : > { %971 = vrot.lane.b32.xlu1 %v13103_v30, %s17477_s10  ;;  %v17485_v40 = vrot.slane %v13131_v44, 4  ;;  %v10948_v59 = vcombine.high %v13370_v56, %v1875_v11  ;;  %v10930_v32 = vcombine.high %v12786_v54, %v13180_v53  ;;  %vm17487_vm0 = vcmask 7168  }
 0x145   : > { %v1400_v0 = vsel %vm17484_vm7, %v17483_v60, %v1394_v10  ;;  %3359 = vmatprep.subr.bf16.mxu1 %v10940_v50  ;;  %vm17488_vm10 = vcmask 1031168   ;;  %vm17490_vm7 = vmmov %vm17486_vm1 }
 0x146   : > { %v1626_v48 = vsel %vm17486_vm1, %v17485_v40, %v17166_v33  ;;  %v1401_v37 = vsel %vm17487_vm0, %v1400_v0, %v1386_v52  ;;  %v13452_v39 = vpop.permute.xlu1 %1387  ;;  %v13454_v7 = vpop.permute.xlu0 %458  ;;  %3337 = vmatpush2.bf16.msra.mxu0 %v10957_v24  ;;  %3360 = vmatpush1.bf16.msra.mxu1 %v10939_v38  ;;  %v2487_v52 = vld [vmem:[%s17448_s1 + $0x10] sm:$0xff]  ;;  %v10929_v0 = vcombine.low %v12786_v54, %v13180_v53 }
 0x147   : > { %v13450_v19 = vsel %vm17488_vm10, %v13131_v44, %v1626_v48  ;;  %v17160_v60 = vrot.slane %v13452_v39, 4  ;;  %v17159_v50 = vrot.slane %v13454_v7, 4  ;;  %3338 = vmatprep.subr.bf16.mxu0 %v10948_v59  ;;  %3361 = vmatprep.subr.bf16.mxu1 %v10930_v32  ;;  %v10947_v44 = vcombine.low %v13370_v56, %v1875_v11  ;;  %v13476_v48 = vld [vmem:[%s17448_s1] ss:$8 sps:$4 sm:$0xff]  }
 0x148   : > { %801 = vrot.lane.b32.xlu1 %v13403_v58, %s17489_s18  ;;  %v10920_v40 = vcombine.high %v13183_v36, %v1401_v37  ;;  %vm17491_vm10 = vcmask 343040   ;;  %v10919_v32 = vcombine.low %v13183_v36, %v1401_v37 }
 0x149   : > { %v1402_v38 = vsel %vm17490_vm7, %v1394_v10, %v17160_v60  ;;  %v474_v24 = vsel %vm17486_vm1, %v465_v41, %v17159_v50  ;;  %v13488_v41 = vcombine.high %v2487_v52, %v2487_v52  ;;  %vm17493_vm7 = vmmov %vm17486_vm1 }
 0x14a   : > { %v13480_v56 = vsel %vm17487_vm0, %v1402_v38, %v13452_v39  ;;  %v13484_v54 = vsel %vm17491_vm10, %v474_v24, %v13454_v7  ;;  %v1218_v53 = vpop.permute.xlu1 %1217  ;;  %v13486_v10 = vpop.permute.xlu0 %2450  ;;  %3339 = vmatpush2.bf16.msra.mxu0 %v10947_v44  ;;  %3362 = vmatpush1.bf16.msra.mxu1 %v10929_v0  ;;  %v17492_v38 = vrot.slane %v12794_v55, 4  ;;  %v17494_v44 = vrot.slane %v13185_v34, 4 }
 0x14b   : > { %v1226_v11 = vrot.slane %v1218_v53, 4  ;;  %v17161_v59 = vrot.slane %v13486_v10, 4  ;;  %3363 = vmatprep.subr.bf16.mxu1 %v10920_v40  ;;  %vm17495_vm0 = vcmask 146432   ;;  %vm17496_vm10 = vcmask 588800  }
 0x14c   : > { %803 = vrot.lane.b32.xlu1 %v13103_v30, %s17489_s18 }
 0x14d   : > { %v1232_v24 = vsel %vm17493_vm7, %v17492_v38, %v1226_v11  ;;  %v2464_v0 = vsel %vm17486_vm1, %v17494_v44, %v17161_v59  ;;  %3341 = vmatmul.mubr.bf16.vlgmr.msra.gmra.mxu0 %v13476_v48  ;;  %vm17498_vm7 = vmmov %vm17486_vm1 }
 0x14e   : > { %v1233_v50 = vsel %vm17495_vm0, %v1232_v24, %v1218_v53  ;;  %v13506_v40 = vsel %vm17163_vm12, %v13185_v34, %v2464_v0  ;;  %v13508_v60 = vpop.permute.xlu1 %1219  ;;  %v2283_v36 = vpop.permute.xlu0 %2282  ;;  %3364 = vmatpush1.bf16.msra.mxu1 %v10919_v32  ;;  %10999 = vmatprep.mubr.msk.bf16.mxu0 %vm17496_vm10, %v13488_v41  ;;  %v17499_v53 = vrot.slane %v13210_v49, 4  ;;  %v13523_v24 = vcombine.low %v2487_v52, %v2487_v52 }
 0x14f   : > { %v17162_v55 = vrot.slane %v13508_v60, 4  ;;  %v2290_v37 = vrot.slane %v2283_v36, 4  ;;  %v10910_v38 = vcombine.high %v13229_v22, %v1233_v50  ;;  %v10909_v44 = vcombine.low %v13229_v22, %v1233_v50 }
 0x150   : > { %633 = vrot.lane.b32.xlu1 %v13403_v58, %s17497_s15  ;;  %vm17500_vm10 = vcmask 719872   ;;  %v17501_v52 = vrot.slane %v12827_v63, 4  ;;  %vm17504_vm12 = vcmask 588800  }
 0x151   : > { %v1234_v34 = vsel %vm17498_vm7, %v1226_v11, %v17162_v55  ;;  %v2296_v32 = vsel %vm17486_vm1, %v17499_v53, %v2290_v37  ;;  %3365 = vmatprep.subr.bf16.mxu1 %v10910_v38  ;;  %vm17502_vm7 = vmmov %vm17486_vm1 }
 0x152   : > { %v13527_v0 = vsel %vm17495_vm0, %v1234_v34, %v13508_v60  ;;  %v13531_v22 = vsel %vm17500_vm10, %v13210_v49, %v2296_v32  ;;  %v1050_v50 = vpop.permute.xlu1 %1049  ;;  %v13533_v59 = vpop.permute.xlu0 %2284  ;;  %3366 = vmatpush1.bf16.msra.mxu1 %v10909_v44  ;;  %vm17503_vm0 = vcmask 162816  }
 0x153   : > { %v1058_v11 = vrot.slane %v1050_v50, 4  ;;  %v17164_v55 = vrot.slane %v13533_v59, 4 }
 0x154   : > { %635 = vrot.lane.b32.xlu1 %v13103_v30, %s17497_s15 }
 0x155   : > { %v1064_v38 = vsel %vm17502_vm7, %v17501_v52, %v1058_v11  ;;  %v2298_v34 = vsel %vm17486_vm1, %v2290_v37, %v17164_v55  ;;  %3351 = vmatmul.mubr.bf16.gmra.mxu0 %v13523_v24  ;;  %vm17506_vm7 = vmmov %vm17486_vm1 }
 0x156   : > { %v1065_v49 = vsel %vm17503_vm0, %v1064_v38, %v1050_v50  ;;  %v13547_v44 = vsel %vm17500_vm10, %v2283_v36, %v2298_v34  ;;  %v13549_v53 = vpop.permute.xlu1 %1051  ;;  %v2115_v32 = vpop.permute.xlu0 %2114  ;;  %11004 = vmatprep.mubr.msk.bf16.mxu0 %vm17504_vm12, %v13091_v13  ;;  %v17507_v50 = vrot.slane %v13254_v43, 4  ;;  %vm17508_vm12 = vmmov %vm17503_vm0  ;;  %vm17509_vm0 = vcmask 736256  }
 0x157   : > { %v17165_v63 = vrot.slane %v13549_v53, 4  ;;  %v2122_v30 = vrot.slane %v2115_v32, 4  ;;  %v10900_v52 = vcombine.high %v13273_v17, %v1065_v49  ;;  %v10899_v37 = vcombine.low %v13273_v17, %v1065_v49  ;;  %vm17511_vm10 = vmmov %vm17486_vm1 }
 0x158   : > { %460 = vrot.lane.b32.xlu1 %v13403_v58, %s17505_s21 }
 0x159   : > { %v1066_v36 = vsel %vm17506_vm7, %v1058_v11, %v17165_v63  ;;  %v2128_v38 = vsel %vm17486_vm1, %v17507_v50, %v2122_v30  ;;  %3367 = vmatprep.subr.bf16.mxu1 %v10900_v52  ;;  %v17510_v52 = vrot.slane %v12853_v12, 4  ;;  %vm17512_vm7 = vmmov %vm17486_vm1  ;;  %vm17513_vm1 = vcmask 179200  }
 0x15a   : > { %v13566_v13 = vsel %vm17508_vm12, %v1066_v36, %v13549_v53  ;;  %v13570_v34 = vsel %vm17509_vm0, %v13254_v43, %v2128_v38  ;;  %v882_v17 = vpop.permute.xlu1 %881  ;;  %v13572_v49 = vpop.permute.xlu0 %2116  ;;  %3368 = vmatpush1.bf16.msra.mxu1 %v10899_v37  ;;  %vm17514_vm12 = vmmov %vm17509_vm0 }
 0x15b   : > { %v890_v58 = vrot.slane %v882_v17, 4  ;;  %v17168_v11 = vrot.slane %v13572_v49, 4  ;;  %vm17515_vm0 = vmmov %vm17512_vm7 }
 0x15c   : > { %462 = vrot.lane.b32.xlu1 %v12834_v6, %s17505_s21 }
 0x15d   : > { %v896_v50 = vsel %vm17511_vm10, %v17510_v52, %v890_v58  ;;  %v2130_v36 = vsel %vm17512_vm7, %v2122_v30, %v17168_v11  ;;  %vm17517_vm10 = vmmov %vm17515_vm0 }
 0x15e   : > { %v897_v43 = vsel %vm17513_vm1, %v896_v50, %v882_v17  ;;  %v13585_v38 = vsel %vm17514_vm12, %v2115_v32, %v2130_v36  ;;  %v13587_v37 = vpop.permute.xlu1 %883  ;;  %v1947_v55 = vpop.permute.xlu0 %1946  ;;  %v17516_v32 = vrot.slane %v13300_v3, 4  ;;  %vm17518_vm7 = vmmov %vm17513_vm1  ;;  %vm17519_vm1 = vcmask 875520  }
 0x15f   : > { %v17169_v63 = vrot.slane %v13587_v37, 4  ;;  %v1954_v33 = vrot.slane %v1947_v55, 4  ;;  %v10890_v46 = vcombine.high %v13319_v26, %v897_v43  ;;  %v10889_v12 = vcombine.low %v13319_v26, %v897_v43  ;;  %vm17521_vm12 = vmmov %vm17515_vm0 }
 0x160   : > { %2454 = vrot.lane.b32.xlu1 %v12834_v6, %s17207_s9 }
 0x161   : > { %v898_v30 = vsel %vm17515_vm0, %v890_v58, %v17169_v63  ;;  %v1960_v17 = vsel %vm17517_vm10, %v17516_v32, %v1954_v33  ;;  %3369 = vmatprep.subr.bf16.mxu1 %v10890_v46  ;;  %v17520_v46 = vrot.slane %v12894_v21, 4  ;;  %vm17522_vm10 = vcmask 318464  }
 0x162   : > { %v13602_v52 = vsel %vm17518_vm7, %v898_v30, %v13587_v37  ;;  %v13606_v50 = vsel %vm17519_vm1, %v13300_v3, %v1960_v17  ;;  %v714_v26 = vpop.permute.xlu1 %713  ;;  %v13608_v36 = vpop.permute.xlu0 %1948  ;;  %3370 = vmatpush1.bf16.msra.mxu1 %v10889_v12  ;;  %vm17523_vm7 = vmmov %vm17519_vm1 }
 0x163   : > { %v722_v43 = vrot.slane %v714_v26, 4  ;;  %v17178_v58 = vrot.slane %v13608_v36, 4  ;;  %vm17524_vm1 = vmmov %vm17515_vm0 }
 0x164   : > { %2370 = vrot.lane.b32.xlu1 %v12834_v6, %s17176_s11  ;;  %s12616_s11 = smov 112  }
 0x165   : > { %v728_v32 = vsel %vm17521_vm12, %v17520_v46, %v722_v43  ;;  %v1962_v30 = vsel %vm17515_vm0, %v1954_v33, %v17178_v58  ;;  %vm17526_vm12 = vmmov %vm17515_vm0 }
 0x166   : > { %v729_v3 = vsel %vm17522_vm10, %v728_v32, %v714_v26  ;;  %v13621_v17 = vsel %vm17523_vm7, %v1947_v55, %v1962_v30  ;;  %v13623_v12 = vpop.permute.xlu1 %715  ;;  %v1779_v11 = vpop.permute.xlu0 %1778  ;;  %v17525_v55 = vrot.slane %v13350_v57, 4  ;;  %vm17527_vm0 = vmmov %vm17522_vm10  ;;  %vm1640_vm10 = vcmask 375812  }
 0x167   : > { %v17179_v63 = vrot.slane %v13623_v12, 4  ;;  %v1786_v51 = vrot.slane %v1779_v11, 4  ;;  %v10880_v23 = vcombine.high %v13373_v2, %v729_v3  ;;  %v10879_v21 = vcombine.low %v13373_v2, %v729_v3  ;;  %vm17530_vm7 = vmmov %vm17524_vm1 }
 0x168   : > { %2202 = vrot.lane.b32.xlu1 %v12834_v6, %s17174_s13  ;;  %s17695_s13 = smov 127  }
 0x169   : > { %v730_v33 = vsel %vm17524_vm1, %v722_v43, %v17179_v63  ;;  %v1792_v26 = vsel %vm17526_vm12, %v17525_v55, %v1786_v51  ;;  %3371 = vmatprep.subr.bf16.mxu1 %v10880_v23  ;;  %v2613_v23 = vld [vmem:[%s17528_s2] sm:$0xff]  ;;  %vm17531_vm12 = vcmask 334848  }
 0x16a   : > { %v13638_v46 = vsel %vm17527_vm0, %v730_v33, %v13623_v12  ;;  %v13642_v32 = vsel %vm17186_vm15, %v13350_v57, %v1792_v26  ;;  %v13644_v2 = vpop.permute.xlu1 %545  ;;  %v13646_v30 = vpop.permute.xlu0 %1780  ;;  %3372 = vmatpush1.bf16.msra.mxu1 %v10879_v21  ;;  %2618 = vperm.xlu0 %12115, %v2613_v23   ;;  %v17529_v57 = vrot.slane %v12930_v29, 4  ;;  %vm17532_vm0 = vmmov %vm17524_vm1  ;;  %v17546_v29 = vrot.slane %v13150_v16, 4 }
 0x16b   : > { %v17182_v43 = vrot.slane %v13644_v2, 4  ;;  %v17183_v3 = vrot.slane %v13646_v30, 4  ;;  %vm13672_vm2 = vmor %vm1640_vm10, %vm17532_vm0 }
 0x16c   : > { %2034 = vrot.lane.b32.xlu1 %v12834_v6, %s17205_s23  ;;  %vm17536_vm10 = vmmov %vm17532_vm0 }
 0x16d   : > { %v560_v33 = vsel %vm17530_vm7, %v17529_v57, %v17182_v43  ;;  %v1794_v21 = vsel %vm17524_vm1, %v1786_v51, %v17183_v3  ;;  %vm1643_vm7 = vcmask 388464   ;;  %v17537_v3 = vrot.slane %v13427_v45, 4  ;;  %vm17544_vm5 = vmmov %vm17536_vm10 }
 0x16e   : > { %v561_v55 = vsel %vm17531_vm12, %v560_v33, %v13644_v2  ;;  %v13666_v26 = vsel %vm17186_vm15, %v1779_v11, %v1794_v21  ;;  %v13668_v58 = vpop.permute.xlu1 %1696  ;;  %v1615_v63 = vpop.permute.xlu0 %1614  ;;  %v10990_v11 = vcombine.high %v13506_v40, %v13506_v40  ;;  %v17535_v33 = vrot.slane %v13401_v4, 4  ;;  %vm17538_vm12 = vmmov %vm17532_vm0 }
 0x16f   : > { %v17192_v23 = vrot.slane %v13668_v58, 4  ;;  %v1620_v57 = vrot.slane %v1615_v63, 4  ;;  %v10870_v43 = vcombine.high %v13425_v20, %v561_v55  ;;  %v10869_v51 = vcombine.low %v13425_v20, %v561_v55  ;;  %v2614_v55 = vld [vmem:[%s17528_s2 + $0x8] sm:$0xff] }
 0x170   : > { %1866 = vrot.lane.b32.xlu1 %v12834_v6, %s17197_s19  ;;  %vm17539_vm0 = vcmask 1031168   ;;  %v10989_v6 = vcombine.low %v13506_v40, %v13506_v40  ;;  %vm17540_vm15 = vcmask 900096   ;;  %s17696_s19 = smov 1  }
 0x171   : > { %v1710_v21 = vsel %vm17536_vm10, %v17535_v33, %v17192_v23  ;;  %v1628_v42 = vsel %vm17538_vm12, %v17537_v3, %v1620_v57  ;;  %v1630_v20 = vsel %vm17539_vm0, %v1615_v63, %v1620_v57  ;;  %3373 = vmatprep.subr.bf16.mxu1 %v10870_v43  ;;  %vm17541_vm1 = vmmov %vm17539_vm0  ;;  %v17542_v43 = vmov 0  }
 0x172   : > { %v1711_v15 = vsel %vm17540_vm15, %v13401_v4, %v1710_v21  ;;  %v13700_v33 = vsel %vm17541_vm1, %v13427_v45, %v1628_v42  ;;  %1642 = vst.msk [vmem:[#allocation3 + $0x250] sm:$0xff] %vm13672_vm2, %v1630_v20  ;;  %v1531_v3 = vpop.permute.xlu0 %1530  ;;  %v1529_v63 = vpop.permute.xlu1 %1528  ;;  %3374 = vmatpush1.bf16.msra.mxu1 %v10869_v51  ;;  %vm17543_vm12 = vcmask 384004   ;;  %vm1559_vm15 = vcmask 388472   ;;  %vm17547_vm1 = vmmov %vm17544_vm5 }
 0x173   : > { %1644 = vst.msk [vmem:[#allocation3 + $0x254] sm:$0xf] %vm1643_vm7, %v17542_v43  ;;  %vm1557_vm0 = vmor %vm17543_vm12, %vm17536_vm10  ;;  %v1536_v40 = vrot.slane %v1531_v3, 4  ;;  %v1535_v57 = vrot.slane %v1529_v63, 4  ;;  %11000 = vmatprep.subr.msk.bf16.mxu1 %vm17544_vm5, %v10990_v11  ;;  %v10941_v4 = vcombine.low %v13450_v19, %v1711_v15  ;;  %v10942_v42 = vcombine.high %v13450_v19, %v1711_v15  ;;  %v2615_v11 = vld [vmem:[%s17528_s2 + $0x10] sm:$0xff]  ;;  %s17822_s2 = smov 109  }
 0x174   : > { %2623 = vperm.xlu1 %12116, %v2614_v55   ;;  %vm17545_vm2 = vcmask 1039360   ;;  %vm17548_vm7 = vmmov %vm17547_vm1 }
 0x175   : > { %v1546_v45 = vsel %vm17545_vm2, %v1531_v3, %v1536_v40  ;;  %v1542_v51 = vsel %vm17547_vm1, %v17546_v29, %v1535_v57  ;;  %v1544_v21 = vsel %vm17548_vm7, %v1535_v57, %v1536_v40  ;;  %3410 = vmatprep.subr.bf16.mxu0 %v10942_v42  ;;  %vm17549_vm10 = vmmov %vm17547_vm1  ;;  %v12564_v57 = vld [vmem:[#allocation3 + $0x1f0] sm:$0xff] }
 0x176   : > { %v3285_v20 = vsel %vm17549_vm10, %v10989_v6, 0  ;;  %1558 = vst.msk [vmem:[#allocation3 + $0x228] sm:$0xff] %vm1557_vm0, %v1546_v45  ;;  %vm17550_vm5 = vmmov %vm17545_vm2  ;;  %v13725_v55 = vpop.permute.xlu1 %547  ;;  %v1390_v3 = vpop.permute.xlu0 %1389  ;;  %3411 = vmatpush1.bf16.msra.mxu0 %v10941_v4  ;;  %v2540_v45 = vld [vmem:[#allocation3 + $0x1a0] sm:$0xff] }
 0x177   : > { %v1543_v15 = vsel %vm17550_vm5, %v13150_v16, %v1542_v51  ;;  %vm17551_vm12 = vmmov %vm17545_vm2  ;;  %3382 = vmatpush2.bf16.msra.mxu1 %v3285_v20  ;;  %1560 = vst.msk [vmem:[#allocation3 + $0x22c] sm:$0xf] %vm1559_vm15, %v17542_v43  ;;  %v17191_v6 = vrot.slane %v13725_v55, 4  ;;  %v1396_v40 = vrot.slane %v1390_v3, 4  ;;  %v17552_v16 = vrot.slane %v13644_v2, 4 }
 0x178   : > { %v13723_v19 = vsel %vm17551_vm12, %v1529_v63, %v1544_v21  ;;  %v10931_v42 = vcombine.low %v12564_v57, %v1543_v15  ;;  %v10932_v29 = vcombine.high %v12564_v57, %v1543_v15  ;;  %2628 = vperm.xlu1 %12116, %v2615_v11   ;;  %vm17553_vm0 = vmmov %vm17547_vm1  ;;  %v17554_v51 = vrot.slane %v13452_v39, 4 }
 0x179   : > { %v562_v63 = vsel %vm17553_vm0, %v17552_v16, %v17191_v6  ;;  %vm17555_vm2 = vmmov %vm17553_vm0  ;;  %v10922_v21 = vcombine.high %v2540_v45, %v13480_v56  ;;  %vm17556_vm15 = vcmask 334848   ;;  %vm17557_vm1 = vcmask 7168  }
 0x17a   : > { %v1404_v4 = vsel %vm17555_vm2, %v17554_v51, %v1396_v40  ;;  %3412 = vmatprep.subr.bf16.mxu0 %v10932_v29  ;;  %v13740_v20 = vsel %vm17556_vm15, %v562_v63, %v13725_v55  ;;  %v13745_v11 = vpop.permute.xlu1 %2452  ;;  %v1392_v57 = vpop.permute.xlu0 %1391  ;;  %v10921_v39 = vcombine.low %v2540_v45, %v13480_v56  ;;  %v2530_v29 = vld [vmem:[#allocation3 + $0x150] sm:$0xff]  ;;  %v17558_v51 = vrot.slane %v13486_v10, 4  ;;  %vm17559_vm7 = vmmov %vm17553_vm0 }
 0x17b   : > { %v13743_v15 = vsel %vm17557_vm1, %v1404_v4, %v1390_v3  ;;  %3413 = vmatpush1.bf16.msra.mxu0 %v10931_v42  ;;  %v2459_v2 = vrot.slane %v13745_v11, 4  ;;  %v1397_v16 = vrot.slane %v1392_v57, 4  ;;  %vm17560_vm10 = vmmov %vm17553_vm0  ;;  %v10912_v4 = vcombine.high %v2530_v29, %v13527_v0 }
 0x17c   : > { %3414 = vmatprep.subr.bf16.mxu0 %v10922_v21  ;;  %vm17561_vm5 = vcmask 703488   ;;  %vm17562_vm12 = vmmov %vm17557_vm1  ;;  %vm17566_vm15 = vcmask 711680   ;;  %vm17567_vm1 = vcmask 146432  }
 0x17d   : > { %v2466_v63 = vsel %vm17559_vm7, %v17558_v51, %v2459_v2  ;;  %v1406_v3 = vsel %vm17560_vm10, %v1396_v40, %v1397_v16  ;;  %v10911_v51 = vcombine.low %v2530_v29, %v13527_v0  ;;  %v17563_v40 = vrot.slane %v13231_v28, 4  ;;  %vm17565_vm2 = vmmov %vm17553_vm0 }
 0x17e   : > { %v13758_v42 = vsel %vm17561_vm5, %v13486_v10, %v2466_v63  ;;  %v1407_v6 = vsel %vm17562_vm12, %v1406_v3, %v1392_v57  ;;  %v2367_v21 = vpop.permute.xlu1 %2366  ;;  %v1222_v23 = vpop.permute.xlu0 %1221  ;;  %v17564_v10 = vrot.slane %v13508_v60, 4  ;;  %v10902_v57 = vcombine.high %v13298_v47, %v13566_v13  ;;  %vm17568_vm7 = vmmov %vm17553_vm0 }
 0x17f   : > { %3415 = vmatpush1.bf16.msra.mxu0 %v10921_v39  ;;  %1419 = vst.msk [vmem:[#allocation3 + $0x1d8] sm:$0xff] %vm12812_vm8, %v1407_v6  ;;  %v2374_v56 = vrot.slane %v2367_v21, 4  ;;  %v1228_v45 = vrot.slane %v1222_v23, 4  ;;  %vm17569_vm10 = vmmov %vm17553_vm0 }
 0x180   : > { %3416 = vmatprep.subr.bf16.mxu0 %v10912_v4  ;;  %vm17570_vm5 = vmmov %vm17566_vm15 }
 0x181   : > { %v2380_v16 = vsel %vm17553_vm0, %v17563_v40, %v2374_v56  ;;  %v1236_v63 = vsel %vm17565_vm2, %v17564_v10, %v1228_v45  ;;  %v10901_v10 = vcombine.low %v13298_v47, %v13566_v13  ;;  %vm17571_vm12 = vmmov %vm17567_vm1 }
 0x182   : > { %v2381_v39 = vsel %vm17566_vm15, %v13231_v28, %v2380_v16  ;;  %v13775_v6 = vsel %vm17567_vm1, %v1236_v63, %v1222_v23  ;;  %v13777_v3 = vpop.permute.xlu1 %2368  ;;  %v1224_v0 = vpop.permute.xlu0 %1223  ;;  %vm17574_vm2 = vmmov %vm17553_vm0  ;;  %vm17575_vm15 = vcmask 728064   ;;  %vm17576_vm1 = vcmask 162816  }
 0x183   : > { %3417 = vmatpush1.bf16.msra.mxu0 %v10911_v51  ;;  %v2375_v29 = vrot.slane %v13777_v3, 4  ;;  %v1229_v4 = vrot.slane %v1224_v0, 4  ;;  %v10980_v60 = vcombine.high %v13531_v22, %v2381_v39  ;;  %v10979_v40 = vcombine.low %v13531_v22, %v2381_v39 }
 0x184   : > { %3418 = vmatprep.subr.bf16.mxu0 %v10902_v57  ;;  %v10892_v51 = vcombine.high %v13348_v14, %v13602_v52  ;;  %v17573_v39 = vrot.slane %v13549_v53, 4 }
 0x185   : > { %v2382_v28 = vsel %vm17568_vm7, %v2374_v56, %v2375_v29  ;;  %v1238_v23 = vsel %vm17569_vm10, %v1228_v45, %v1229_v4  ;;  %3383 = vmatprep.subr.bf16.mxu1 %v10980_v60  ;;  %v10891_v56 = vcombine.low %v13348_v14, %v13602_v52  ;;  %v17572_v45 = vrot.slane %v13275_v1, 4  ;;  %vm17577_vm7 = vmmov %vm17553_vm0 }
 0x186   : > { %v13791_v16 = vsel %vm17570_vm5, %v2367_v21, %v2382_v28  ;;  %v1239_v63 = vsel %vm17571_vm12, %v1238_v23, %v1224_v0  ;;  %v2199_v57 = vpop.permute.xlu1 %2198  ;;  %v1054_v22 = vpop.permute.xlu0 %1053  ;;  %3384 = vmatpush2.bf16.msra.mxu1 %v10979_v40  ;;  %v10882_v4 = vcombine.high %v13399_v25, %v13638_v46  ;;  %vm17578_vm10 = vmmov %vm17553_vm0 }
 0x187   : > { %3419 = vmatpush1.bf16.msra.mxu0 %v10901_v10  ;;  %1251 = vst.msk [vmem:[#allocation3 + $0x188] sm:$0xff] %vm12812_vm8, %v1239_v63  ;;  %v2206_v47 = vrot.slane %v2199_v57, 4  ;;  %v1060_v13 = vrot.slane %v1054_v22, 4  ;;  %vm17579_vm5 = vmmov %vm17575_vm15 }
 0x188   : > { %3420 = vmatprep.subr.bf16.mxu0 %v10892_v51  ;;  %v10881_v51 = vcombine.low %v13399_v25, %v13638_v46  ;;  %vm17580_vm12 = vmmov %vm17576_vm1 }
 0x189   : > { %v2212_v21 = vsel %vm17553_vm0, %v17572_v45, %v2206_v47  ;;  %v1068_v0 = vsel %vm17574_vm2, %v17573_v39, %v1060_v13  ;;  %v17582_v39 = vrot.slane %v13587_v37, 4  ;;  %vm17583_vm2 = vmmov %vm17553_vm0 }
 0x18a   : > { %v2213_v60 = vsel %vm17575_vm15, %v13275_v1, %v2212_v21  ;;  %v13809_v40 = vsel %vm17576_vm1, %v1068_v0, %v1054_v22  ;;  %v13811_v10 = vpop.permute.xlu1 %2200  ;;  %v1056_v14 = vpop.permute.xlu0 %1055  ;;  %v10872_v22 = vcombine.high %v13484_v54, %v13740_v20  ;;  %vm17584_vm15 = vcmask 867328  }
 0x18b   : > { %3421 = vmatpush1.bf16.msra.mxu0 %v10891_v56  ;;  %v2207_v52 = vrot.slane %v13811_v10, 4  ;;  %v1061_v28 = vrot.slane %v1056_v14, 4  ;;  %v10970_v53 = vcombine.high %v13570_v34, %v2213_v60  ;;  %v10969_v23 = vcombine.low %v13570_v34, %v2213_v60 }
 0x18c   : > { %3422 = vmatprep.subr.bf16.mxu0 %v10882_v4  ;;  %v10992_v4 = vcombine.high %v13758_v42, %v13758_v42  ;;  %v10991_v60 = vcombine.low %v13758_v42, %v13758_v42  ;;  %vm17585_vm1 = vcmask 179200  }
 0x18d   : > { %v2214_v1 = vsel %vm17577_vm7, %v2206_v47, %v2207_v52  ;;  %v1070_v63 = vsel %vm17578_vm10, %v1060_v13, %v1061_v28  ;;  %3385 = vmatprep.subr.bf16.mxu1 %v10970_v53  ;;  %v10871_v47 = vcombine.low %v13484_v54, %v13740_v20  ;;  %v17581_v13 = vrot.slane %v13321_v62, 4  ;;  %vm17586_vm7 = vmmov %vm17553_vm0 }
 0x18e   : > { %v13825_v56 = vsel %vm17579_vm5, %v2199_v57, %v2214_v1  ;;  %v1071_v45 = vsel %vm17580_vm12, %v1070_v63, %v1056_v14  ;;  %v2031_v21 = vpop.permute.xlu1 %2030  ;;  %v886_v34 = vpop.permute.xlu0 %885  ;;  %3386 = vmatpush2.bf16.msra.mxu1 %v10969_v23  ;;  %vm17587_vm10 = vmmov %vm17553_vm0  ;;  %v10982_v63 = vcombine.high %v13547_v44, %v13791_v16 }
 0x18f   : > { %3423 = vmatpush1.bf16.msra.mxu0 %v10881_v51  ;;  %1083 = vst.msk [vmem:[#allocation3 + $0x138] sm:$0xff] %vm12812_vm8, %v1071_v45  ;;  %v2038_v25 = vrot.slane %v2031_v21, 4  ;;  %v892_v46 = vrot.slane %v886_v34, 4  ;;  %vm17588_vm5 = vmmov %vm17553_vm0 }
 0x190   : > { %3424 = vmatprep.subr.bf16.mxu0 %v10872_v22  ;;  %vm17589_vm12 = vmmov %vm17553_vm0 }
 0x191   : > { %v2044_v57 = vsel %vm17553_vm0, %v17581_v13, %v2038_v25  ;;  %v900_v0 = vsel %vm17583_vm2, %v17582_v39, %v892_v46  ;;  %v3291_v1 = vsel %vm17589_vm12, %v10991_v60, 0  ;;  %vm17590_vm0 = vmmov %vm17584_vm15  ;;  %v17592_v13 = vrot.slane %v13375_v8, 4 }
 0x192   : > { %v2045_v14 = vsel %vm17584_vm15, %v13321_v62, %v2044_v57  ;;  %v13845_v28 = vsel %vm17585_vm1, %v900_v0, %v886_v34  ;;  %v13847_v54 = vpop.permute.xlu1 %2032  ;;  %v888_v20 = vpop.permute.xlu0 %887  ;;  %vm17591_vm2 = vmmov %vm17585_vm1  ;;  %v10972_v0 = vcombine.high %v13585_v38, %v13825_v56 }
 0x193   : > { %3425 = vmatpush1.bf16.msra.mxu0 %v10871_v47  ;;  %v2039_v37 = vrot.slane %v13847_v54, 4  ;;  %v893_v53 = vrot.slane %v888_v20, 4  ;;  %v10960_v23 = vcombine.high %v13606_v50, %v2045_v14  ;;  %v10959_v51 = vcombine.low %v13606_v50, %v2045_v14  ;;  %vm17593_vm15 = vmmov %vm17588_vm5 }
 0x194   : > { %11003 = vmatprep.subr.msk.bf16.mxu0 %vm17586_vm7, %v10992_v4  ;;  %vm17595_vm1 = vmmov %vm17588_vm5  ;;  %vm17596_vm7 = vcmask 883712  }
 0x195   : > { %v2046_v62 = vsel %vm17587_vm10, %v2038_v25, %v2039_v37  ;;  %v902_v42 = vsel %vm17588_vm5, %v892_v46, %v893_v53  ;;  %3387 = vmatprep.subr.bf16.mxu1 %v10960_v23  ;;  %v10981_v46 = vcombine.low %v13547_v44, %v13791_v16  ;;  %vm17597_vm10 = vcmask 318464   ;;  %vm17598_vm12 = vmmov %vm17595_vm1 }
 0x196   : > { %v2047_v22 = vsel %vm17590_vm0, %v2031_v21, %v2046_v62  ;;  %v903_v45 = vsel %vm17591_vm2, %v902_v42, %v888_v20  ;;  %v1863_v34 = vpop.permute.xlu1 %1862  ;;  %v718_v47 = vpop.permute.xlu0 %717  ;;  %3388 = vmatpush2.bf16.msra.mxu1 %v10959_v51  ;;  %v17594_v21 = vrot.slane %v13623_v12, 4  ;;  %vm1724_vm5 = vcmask 244740   ;;  %vm17599_vm0 = vmmov %vm17595_vm1 }
 0x197   : > { %3433 = vmatpush2.bf16.msra.mxu0 %v3291_v1  ;;  %915 = vst.msk [vmem:[#allocation3 + $0xe8] sm:$0xff] %vm12812_vm8, %v903_v45  ;;  %v1870_v50 = vrot.slane %v1863_v34, 4  ;;  %v724_v25 = vrot.slane %v718_v47, 4  ;;  %v10971_v23 = vcombine.low %v13585_v38, %v13825_v56  ;;  %v10962_v62 = vcombine.high %v13621_v17, %v2047_v22  ;;  %vm17600_vm2 = vmmov %vm17596_vm7 }
 0x198   : > { %3434 = vmatprep.subr.bf16.mxu0 %v10982_v63  ;;  %v10961_v56 = vcombine.low %v13621_v17, %v2047_v22 }
 0x199   : > { %v1876_v57 = vsel %vm17593_vm15, %v17592_v13, %v1870_v50  ;;  %v732_v39 = vsel %vm17595_vm1, %v17594_v21, %v724_v25  ;;  %vm17601_vm15 = vmmov %vm17597_vm10 }
 0x19a   : > { %v1877_v4 = vsel %vm17596_vm7, %v13375_v8, %v1876_v57  ;;  %v13877_v60 = vsel %vm17597_vm10, %v732_v39, %v718_v47  ;;  %v13879_v14 = vpop.permute.xlu1 %1864  ;;  %v720_v44 = vpop.permute.xlu0 %719  ;;  %vm17602_vm1 = vmmov %vm17599_vm0  ;;  %vm1727_vm10 = vcmask 388336   ;;  %v17603_v47 = vrot.slane %v13668_v58, 4 }
 0x19b   : > { %3435 = vmatpush2.bf16.msra.mxu0 %v10981_v46  ;;  %v1871_v16 = vrot.slane %v13879_v14, 4  ;;  %v725_v20 = vrot.slane %v720_v44, 4  ;;  %v10950_v12 = vcombine.high %v13642_v32, %v1877_v4  ;;  %v10949_v53 = vcombine.low %v13642_v32, %v1877_v4  ;;  %vm1725_vm7 = vmor %vm1724_vm5, %vm17602_vm1 }
 0x19c   : > { %3436 = vmatprep.subr.bf16.mxu0 %v10972_v0 }
 0x19d   : > { %v1878_v8 = vsel %vm17598_vm12, %v1870_v50, %v1871_v16  ;;  %v734_v51 = vsel %vm17599_vm0, %v724_v25, %v725_v20  ;;  %3389 = vmatprep.subr.bf16.mxu1 %v10950_v12  ;;  %vm17604_vm12 = vmmov %vm17599_vm0  ;;  %vm17605_vm0 = vcmask 900096   ;;  %v17606_v25 = vrot.slane %v13725_v55, 4 }
 0x19e   : > { %v1879_v42 = vsel %vm17600_vm2, %v1863_v34, %v1878_v8  ;;  %v735_v1 = vsel %vm17601_vm15, %v734_v51, %v720_v44  ;;  %v1699_v63 = vpop.permute.xlu1 %1698  ;;  %v550_v45 = vpop.permute.xlu0 %549  ;;  %3390 = vmatpush2.bf16.msra.mxu1 %v10949_v53  ;;  %vm17607_vm2 = vmmov %vm17602_vm1  ;;  %vm17609_vm15 = vcmask 334848   ;;  %vm17610_vm1 = vcmask 588800   ;;  %v12565_v53 = vld [vmem:[#allocation3 + $0x1f8] sm:$0xff] }
 0x19f   : > { %3437 = vmatpush2.bf16.msra.mxu0 %v10971_v23  ;;  %747 = vst.msk [vmem:[#allocation3 + $0x98] sm:$0xff] %vm12812_vm8, %v735_v1  ;;  %v1704_v38 = vrot.slane %v1699_v63, 4  ;;  %v556_v32 = vrot.slane %v550_v45, 4  ;;  %v10952_v13 = vcombine.high %v13666_v26, %v1879_v42  ;;  %vm17608_vm5 = vmmov %vm17605_vm0  ;;  %v17611_v44 = vrot.slane %v13187_v27, 4 }
 0x1a0   : > { %3438 = vmatprep.subr.bf16.mxu0 %v10962_v62  ;;  %v10934_v23 = vcombine.high %v12565_v53, %v13723_v19 }
 0x1a1   : > { %v1712_v34 = vsel %vm17604_vm12, %v17603_v47, %v1704_v38  ;;  %v1714_v50 = vsel %vm17605_vm0, %v1699_v63, %v1704_v38  ;;  %v564_v46 = vsel %vm17607_vm2, %v17606_v25, %v556_v32  ;;  %3392 = vmatmul.mubr.bf16.vlgmr.msra.gmra.mxu1 %v13476_v48  ;;  %vm2312_vm12 = vcmask 64516   ;;  %vm17613_vm0 = vmmov %vm17607_vm2 }
 0x1a2   : > { %v1713_v57 = vsel %vm17608_vm5, %v13668_v58, %v1712_v34  ;;  %1726 = vst.msk [vmem:[#allocation3 + $0x278] sm:$0xff] %vm1725_vm7, %v1714_v50  ;;  %v13909_v17 = vsel %vm17609_vm15, %v564_v46, %v550_v45  ;;  %v1306_v22 = vpop.permute.xlu1 %1305  ;;  %v552_v21 = vpop.permute.xlu0 %551  ;;  %11002 = vmatprep.mubr.msk.bf16.mxu1 %vm17610_vm1, %v13488_v41  ;;  %v10951_v58 = vcombine.low %v13666_v26, %v1879_v42  ;;  %vm17612_vm7 = vmmov %vm17607_vm2  ;;  %vm2315_vm1 = vcmask 388160  }
 0x1a3   : > { %3439 = vmatpush2.bf16.msra.mxu0 %v10961_v56  ;;  %1728 = vst.msk [vmem:[#allocation3 + $0x27c] sm:$0xf] %vm1727_vm10, %v17542_v43  ;;  %v1312_v55 = vrot.slane %v1306_v22, 4  ;;  %v557_v39 = vrot.slane %v552_v21, 4  ;;  %v10943_v0 = vcombine.low %v13700_v33, %v1713_v57  ;;  %v10944_v4 = vcombine.high %v13700_v33, %v1713_v57  ;;  %vm17615_vm2 = vmmov %vm17609_vm15 }
 0x1a4   : > { %3440 = vmatprep.subr.bf16.mxu0 %v10952_v13  ;;  %vm17614_vm10 = vcmask 15360   ;;  %vm17616_vm5 = vmmov %vm17613_vm0  ;;  %v10933_v33 = vcombine.low %v12565_v53, %v13723_v19  ;;  %v17617_v45 = vrot.slane %v13533_v59, 4  ;;  %v12566_v13 = vld [vmem:[%s17448_s1 + $0x4] ss:$8 sps:$4 sm:$0xff]   ;;  %v12143_v53 = vld [vmem:[#allocation3 + $0x200] ss:$40 sps:$4 sm:$0xff]  }
 0x1a5   : > { %v1320_v20 = vsel %vm17612_vm7, %v17611_v44, %v1312_v55  ;;  %v566_v12 = vsel %vm17613_vm0, %v556_v32, %v557_v39  ;;  %3461 = vmatprep.subr.bf16.mxu1 %v10944_v4  ;;  %vm2313_vm15 = vmor %vm2312_vm12, %vm17616_vm5  ;;  %vm2144_vm7 = vcmask 80900   ;;  %vm17620_vm12 = vcmask 15360  }
 0x1a6   : > { %v1321_v8 = vsel %vm17614_vm10, %v1320_v20, %v1306_v22  ;;  %v567_v51 = vsel %vm17615_vm2, %v566_v12, %v552_v21  ;;  %v1308_v62 = vpop.permute.xlu1 %1307  ;;  %v2287_v1 = vpop.permute.xlu0 %2286  ;;  %3462 = vmatpush1.bf16.msra.mxu1 %v10943_v0  ;;  %vm17618_vm10 = vmmov %vm17613_vm0  ;;  %vm17619_vm2 = vcmask 719872   ;;  %v12145_v22 = vld [vmem:[#allocation3 + $0x204] ss:$40 sps:$4 sm:$0xff]   ;;  %v17626_v21 = vrot.slane %v13233_v9, 4 }
 0x1a7   : > { %3441 = vmatpush2.bf16.msra.mxu0 %v10951_v58  ;;  %579 = vst.msk [vmem:[#allocation3 + $0x48] sm:$0xff] %vm12812_vm8, %v567_v51  ;;  %v1313_v27 = vrot.slane %v1308_v62, 4  ;;  %v2292_v26 = vrot.slane %v2287_v1, 4  ;;  %3463 = vmatprep.subr.bf16.mxu1 %v10934_v23  ;;  %v10924_v42 = vcombine.high %v1321_v8, %v13743_v15  ;;  %vm17621_vm5 = vmmov %vm17619_vm2  ;;  %v10923_v57 = vcombine.low %v1321_v8, %v13743_v15 }
 0x1a8   : > { %v17628_v39 = vrot.slane %v13572_v49, 4  ;;  %v17634_v51 = vrot.slane %v13608_v36, 4 }
 0x1a9   : > { %v1322_v63 = vsel %vm17613_vm0, %v1312_v55, %v1313_v27  ;;  %v2300_v38 = vsel %vm17618_vm10, %v17617_v45, %v2292_v26  ;;  %v2302_v32 = vsel %vm17619_vm2, %v2287_v1, %v2292_v26  ;;  %3402 = vmatmul.mubr.bf16.gmra.mxu1 %v13523_v24  ;;  %v12140_v50 = vld [vmem:[#allocation3 + $0x250] ss:$40 sps:$4 sm:$0xff]   ;;  %vm17622_vm0 = vcmask 588800   ;;  %vm13950_vm2 = vmor %vm2144_vm7, %vm17618_vm10 }
 0x1aa   : > { %3443 = vmatmul.mubr.bf16.vlgmr.msra.gmra.mxu0 %v13476_v48  ;;  %v1323_v56 = vsel %vm17620_vm12, %v1322_v63, %v1308_v62  ;;  %v13940_v47 = vsel %vm17621_vm5, %v13533_v59, %v2300_v38  ;;  %2314 = vst.msk [vmem:[#allocation3 + $0x390] sm:$0xff] %vm2313_vm15, %v2302_v32  ;;  %v1138_v19 = vpop.permute.xlu1 %1137  ;;  %v2119_v34 = vpop.permute.xlu0 %2118  ;;  %v12142_v25 = vld [vmem:[#allocation3 + $0x254] ss:$40 sps:$4 sm:$0xff]   ;;  %3464 = vmatpush1.bf16.msra.mxu1 %v10933_v33  ;;  %vm17625_vm15 = vmmov %vm17622_vm0  ;;  %vm2147_vm12 = vcmask 388176   ;;  %vm1976_vm5 = vcmask 220164  }
 0x1ab   : > { %11005 = vmatprep.mubr.msk.bf16.mxu0 %vm17622_vm0, %v13488_v41  ;;  %1335 = vst.msk [vmem:[#allocation3 + $0x1b0] sm:$0xff] %vm12812_vm8, %v1323_v56  ;;  %v1144_v48 = vrot.slane %v1138_v19, 4  ;;  %v2124_v46 = vrot.slane %v2119_v34, 4  ;;  %3465 = vmatprep.subr.bf16.mxu1 %v10924_v42  ;;  %vm17630_vm0 = vcmask 736256   ;;  %v17641_v38 = vrot.slane %v13277_v5, 4 }
 0x1ac   : > { %2316 = vst.msk [vmem:[#allocation3 + $0x394] sm:$0xf] %vm2315_vm1, %v17542_v43  ;;  %11007 = vmatprep.mubr.msk.bf16.mxu1 %vm17625_vm15, %v12566_v13  ;;  %3512 = vmatprep.subr.bf16.mxu0 %v12142_v25  ;;  %vm17627_vm1 = vmmov %vm17618_vm10  ;;  %vm17631_vm10 = vcmask 154624   ;;  %v17643_v56 = vrot.slane %v13646_v30, 4 }
 0x1ad   : > { %v1152_v55 = vsel %vm17627_vm1, %v17626_v21, %v1144_v48  ;;  %vm17629_vm7 = vmmov %vm17627_vm1  ;;  %v2134_v4 = vsel %vm17630_vm0, %v2119_v34, %v2124_v46  ;;  %3513 = vmatpush1.bf16.msra.mxu0 %v12140_v50 }
 0x1ae   : > { %v2132_v0 = vsel %vm17629_vm7, %v17628_v39, %v2124_v46  ;;  %v1153_v58 = vsel %vm17631_vm10, %v1152_v55, %v1138_v19  ;;  %vm17632_vm15 = vmmov %vm17630_vm0  ;;  %2146 = vst.msk [vmem:[#allocation3 + $0x340] sm:$0xff] %vm13950_vm2, %v2134_v4  ;;  %v1140_v15 = vpop.permute.xlu1 %1139  ;;  %v1951_v9 = vpop.permute.xlu0 %1950  ;;  %3514 = vmatprep.subr.bf16.mxu0 %v12145_v22  ;;  %3466 = vmatpush1.bf16.msra.mxu1 %v10923_v57  ;;  %vm1979_vm0 = vcmask 388312   ;;  %vm1808_vm10 = vcmask 236548  }
 0x1af   : > { %v13969_v44 = vsel %vm17632_vm15, %v13572_v49, %v2132_v0  ;;  %2148 = vst.msk [vmem:[#allocation3 + $0x344] sm:$0xf] %vm2147_vm12, %v17542_v43  ;;  %v1145_v20 = vrot.slane %v1140_v15, 4  ;;  %vm1977_vm7 = vmor %vm1976_vm5, %vm17627_vm1  ;;  %v1956_v12 = vrot.slane %v1951_v9, 4  ;;  %v10913_v23 = vcombine.low %v1153_v58, %v13775_v6 }
 0x1b0   : > { %v10914_v49 = vcombine.high %v1153_v58, %v13775_v6  ;;  %vm17633_vm2 = vmmov %vm17627_vm1  ;;  %vm17637_vm12 = vcmask 154624   ;;  %v17649_v39 = vrot.slane %v13323_v18, 4 }
 0x1b1   : > { %v1154_v8 = vsel %vm17633_vm2, %v1144_v48, %v1145_v20  ;;  %vm17635_vm15 = vmmov %vm17627_vm1  ;;  %v1966_v1 = vsel %vm17636_vm6, %v1951_v9, %v1956_v12  ;;  %3515 = vmatpush1.bf16.msra.mxu0 %v12143_v53  ;;  %vm17640_vm2 = vcmask 588800  }
 0x1b2   : > { %v1964_v62 = vsel %vm17635_vm15, %v17634_v51, %v1956_v12  ;;  %3467 = vmatprep.subr.bf16.mxu1 %v10914_v49  ;;  %v1155_v27 = vsel %vm17637_vm12, %v1154_v8, %v1140_v15  ;;  %vm17638_vm5 = vmmov %vm17636_vm6  ;;  %1978 = vst.msk [vmem:[#allocation3 + $0x2f0] sm:$0xff] %vm1977_vm7, %v1966_v1  ;;  %v970_v6 = vpop.permute.xlu1 %969  ;;  %v1783_v33 = vpop.permute.xlu0 %1782  ;;  %v12146_v42 = vld [vmem:[#allocation3 + $0x1b0] ss:$40 sps:$4 sm:$0xff]   ;;  %v12148_v63 = vld [vmem:[#allocation3 + $0x1b4] ss:$40 sps:$4 sm:$0xff]   ;;  %3453 = vmatmul.mubr.bf16.gmra.mxu0 %v13523_v24  ;;  %vm1811_vm7 = vcmask 388328  }
 0x1b3   : > { %v13987_v26 = vsel %vm17638_vm5, %v13608_v36, %v1964_v62  ;;  %3468 = vmatpush1.bf16.msra.mxu1 %v10913_v23  ;;  %1167 = vst.msk [vmem:[#allocation3 + $0x160] sm:$0xff] %vm12812_vm8, %v1155_v27  ;;  %v976_v45 = vrot.slane %v970_v6, 4  ;;  %vm17639_vm6 = vmmov %vm17627_vm1  ;;  %v1788_v36 = vrot.slane %v1783_v33, 4  ;;  %11010 = vmatprep.mubr.msk.bf16.mxu0 %vm17640_vm2, %v12566_v13  ;;  %vm17645_vm5 = vcmask 891904  }
 0x1b4   : > { %1980 = vst.msk [vmem:[#allocation3 + $0x2f4] sm:$0xf] %vm1979_vm0, %v17542_v43  ;;  %vm1809_vm1 = vmor %vm1808_vm10, %vm17639_vm6  ;;  %3516 = vmatprep.subr.bf16.mxu0 %v12148_v63  ;;  %vm17646_vm0 = vcmask 171008   ;;  %v17654_v8 = vrot.slane %v13377_v31, 4 }
 0x1b5   : > { %vm17642_vm15 = vmmov %vm17639_vm6  ;;  %v1798_v34 = vsel %vm17645_vm5, %v1783_v33, %v1788_v36  ;;  %3517 = vmatpush1.bf16.msra.mxu0 %v12146_v42 }
 0x1b6   : > { %v984_v32 = vsel %vm17642_vm15, %v17641_v38, %v976_v45  ;;  %vm17644_vm12 = vmmov %vm17639_vm6  ;;  %1810 = vst.msk [vmem:[#allocation3 + $0x2a0] sm:$0xff] %vm1809_vm1, %v1798_v34  ;;  %v972_v48 = vpop.permute.xlu1 %971  ;;  %v17659_v38 = vrot.slane %v13454_v7, 4 }
 0x1b7   : > { %v1796_v19 = vsel %vm17644_vm12, %v17643_v56, %v1788_v36  ;;  %v985_v50 = vsel %vm17646_vm0, %v984_v32, %v970_v6  ;;  %vm17647_vm10 = vmmov %vm17645_vm5  ;;  %1812 = vst.msk [vmem:[#allocation3 + $0x2a4] sm:$0xf] %vm1811_vm7, %v17542_v43  ;;  %v977_v5 = vrot.slane %v972_v48, 4  ;;  %vm17651_vm7 = vcmask 310272  }
 0x1b8   : > { %v14007_v25 = vsel %vm17647_vm10, %v13646_v30, %v1796_v19  ;;  %v10903_v59 = vcombine.low %v985_v50, %v13809_v40  ;;  %v10904_v46 = vcombine.high %v985_v50, %v13809_v40  ;;  %vm17648_vm2 = vmmov %vm17646_vm0  ;;  %vm17656_vm0 = vcmask 326656  }
 0x1b9   : > { %v986_v13 = vsel %vm17639_vm6, %v976_v45, %v977_v5  ;;  %vm17650_vm1 = vmmov %vm17639_vm6 }
 0x1ba   : > { %3469 = vmatprep.subr.bf16.mxu1 %v10904_v46  ;;  %v987_v57 = vsel %vm17648_vm2, %v986_v13, %v972_v48  ;;  %v802_v22 = vpop.permute.xlu1 %801  ;;  %v12149_v21 = vld [vmem:[#allocation3 + $0x160] ss:$40 sps:$4 sm:$0xff]   ;;  %v12151_v55 = vld [vmem:[#allocation3 + $0x164] ss:$40 sps:$4 sm:$0xff]   ;;  %vm17652_vm15 = vmmov %vm17650_vm1 }
 0x1bb   : > { %3470 = vmatpush1.bf16.msra.mxu1 %v10903_v59  ;;  %999 = vst.msk [vmem:[#allocation3 + $0x110] sm:$0xff] %vm12812_vm8, %v987_v57  ;;  %v808_v30 = vrot.slane %v802_v22, 4  ;;  %3518 = vmatprep.subr.bf16.mxu0 %v12151_v55  ;;  %vm17653_vm12 = vmmov %vm17651_vm7 }
 0x1bc   : > { %3519 = vmatpush1.bf16.msra.mxu0 %v12149_v21  ;;  %vm17655_vm5 = vmmov %vm17650_vm1 }
 0x1bd   : > { %v816_v0 = vsel %vm17650_vm1, %v17649_v39, %v808_v30  ;;  %vm17657_vm10 = vmmov %vm17650_vm1 }
 0x1be   : > { %v817_v40 = vsel %vm17651_vm7, %v816_v0, %v802_v22  ;;  %v804_v4 = vpop.permute.xlu1 %803  ;;  %vm17658_vm6 = vmmov %vm17656_vm0  ;;  %vm2480_vm7 = vcmask 48132  }
 0x1bf   : > { %v809_v58 = vrot.slane %v804_v4, 4  ;;  %v10893_v15 = vcombine.low %v817_v40, %v13845_v28  ;;  %v10894_v9 = vcombine.high %v817_v40, %v13845_v28  ;;  %vm17660_vm2 = vmmov %vm17650_vm1  ;;  %vm17661_vm1 = vcmask 343040  }
 0x1c0   : > { %vm17669_vm13 = vmmov %vm17660_vm2 }
 0x1c1   : > { %v818_v20 = vsel %vm17652_vm15, %v808_v30, %v809_v58  ;;  %3471 = vmatprep.subr.bf16.mxu1 %v10894_v9  ;;  %vm17662_vm15 = vmmov %vm17660_vm2 }
 0x1c2   : > { %v819_v12 = vsel %vm17653_vm12, %v818_v20, %v804_v4  ;;  %v634_v53 = vpop.permute.xlu1 %633  ;;  %v12152_v23 = vld [vmem:[#allocation3 + $0x110] ss:$40 sps:$4 sm:$0xff]   ;;  %v12154_v49 = vld [vmem:[#allocation3 + $0x114] ss:$40 sps:$4 sm:$0xff]   ;;  %3472 = vmatpush1.bf16.msra.mxu1 %v10893_v15  ;;  %vm17663_vm12 = vmmov %vm17661_vm1 }
 0x1c3   : > { %831 = vst.msk [vmem:[#allocation3 + $0xc0] sm:$0xff] %vm12812_vm8, %v819_v12  ;;  %v640_v18 = vrot.slane %v634_v53, 4  ;;  %3520 = vmatprep.subr.bf16.mxu0 %v12154_v49 }
 0x1c4   : > { %3521 = vmatpush1.bf16.msra.mxu0 %v12152_v23 }
 0x1c5   : > { %v648_v51 = vsel %vm17655_vm5, %v17654_v8, %v640_v18  ;;  %vm17664_vm5 = vmmov %vm17660_vm2 }
 0x1c6   : > { %v649_v28 = vsel %vm17656_vm0, %v648_v51, %v634_v53  ;;  %v636_v62 = vpop.permute.xlu1 %635  ;;  %vm2481_vm0 = vmor %vm2480_vm7, %vm17664_vm5  ;;  %vm2228_vm5 = vcmask 72708  }
 0x1c7   : > { %v641_v1 = vrot.slane %v636_v62, 4  ;;  %v10883_v27 = vcombine.low %v649_v28, %v13877_v60  ;;  %v10884_v6 = vcombine.high %v649_v28, %v13877_v60 }
 0x1c9   : > { %v650_v33 = vsel %vm17657_vm10, %v640_v18, %v641_v1  ;;  %3473 = vmatprep.subr.bf16.mxu1 %v10884_v6  ;;  %vm2483_vm10 = vcmask 388144  }
 0x1ca   : > { %v651_v42 = vsel %vm17658_vm6, %v650_v33, %v636_v62  ;;  %v461_v63 = vpop.permute.xlu1 %460  ;;  %v12155_v45 = vld [vmem:[#allocation3 + $0xc0] ss:$40 sps:$4 sm:$0xff]   ;;  %v12157_v36 = vld [vmem:[#allocation3 + $0xc4] ss:$40 sps:$4 sm:$0xff]   ;;  %3474 = vmatpush1.bf16.msra.mxu1 %v10883_v27  ;;  %vm2396_vm6 = vcmask 56324  }
 0x1cb   : > { %663 = vst.msk [vmem:[#allocation3 + $0x70] sm:$0xff] %vm12812_vm8, %v651_v42  ;;  %v467_v31 = vrot.slane %v461_v63, 4  ;;  %3522 = vmatprep.subr.bf16.mxu0 %v12157_v36 }
 0x1cc   : > { %3523 = vmatpush1.bf16.msra.mxu0 %v12155_v45 }
 0x1cd   : > { %v476_v32 = vsel %vm17660_vm2, %v17659_v38, %v467_v31 }
 0x1ce   : > { %v477_v60 = vsel %vm17661_vm1, %v476_v32, %v461_v63  ;;  %v463_v56 = vpop.permute.xlu1 %462  ;;  %vm17665_vm1 = vcmask 703488   ;;  %v12567_v32 = vld [vmem:[%s17448_s1] ss:$8 sps:$4 sm:$0xff]   ;;  %s17821_s1 = smov 108  }
 0x1cf   : > { %v468_v19 = vrot.slane %v463_v56, 4  ;;  %v10873_v34 = vcombine.low %v477_v60, %v13909_v17  ;;  %v10874_v50 = vcombine.high %v477_v60, %v13909_v17 }
 0x1d1   : > { %v478_v48 = vsel %vm17662_vm15, %v467_v31, %v468_v19  ;;  %3475 = vmatprep.subr.bf16.mxu1 %v10874_v50  ;;  %vm17666_vm15 = vmmov %vm17665_vm1 }
 0x1d2   : > { %v479_v5 = vsel %vm17663_vm12, %v478_v48, %v463_v56  ;;  %v2455_v59 = vpop.permute.xlu1 %2454  ;;  %v12158_v46 = vld [vmem:[#allocation3 + $0x70] ss:$40 sps:$4 sm:$0xff]   ;;  %v12160_v7 = vld [vmem:[#allocation3 + $0x74] ss:$40 sps:$4 sm:$0xff]   ;;  %3476 = vmatpush1.bf16.msra.mxu1 %v10873_v34  ;;  %vm2399_vm12 = vcmask 388152  }
 0x1d3   : > { %495 = vst.msk [vmem:[#allocation3 + $0x20] sm:$0xff] %vm12812_vm8, %v479_v5  ;;  %v2460_v13 = vrot.slane %v2455_v59, 4  ;;  %3524 = vmatprep.subr.bf16.mxu0 %v12160_v7  ;;  %vm17667_vm8 = vmmov %vm17660_vm2 }
 0x1d4   : > { %3525 = vmatpush1.bf16.msra.mxu0 %v12158_v46  ;;  %vm2397_vm7 = vmor %vm2396_vm6, %vm17667_vm8  ;;  %vm2060_vm8 = vcmask 211972  }
 0x1d5   : > { %v2468_v17 = vsel %vm17660_vm2, %v2459_v2, %v2460_v13  ;;  %v2470_v57 = vsel %vm17665_vm1, %v2455_v59, %v2460_v13  ;;  %vm17668_vm1 = vcmask 711680  }
 0x1d6   : > { %v2469_v22 = vsel %vm17666_vm15, %v13745_v11, %v2468_v17  ;;  %2482 = vst.msk [vmem:[#allocation3 + $0x3e0] sm:$0xff] %vm2481_vm0, %v2470_v57  ;;  %v2371_v21 = vpop.permute.xlu1 %2370  ;;  %vm17670_vm15 = vmmov %vm17660_vm2 }
 0x1d7   : > { %2484 = vst.msk [vmem:[#allocation3 + $0x3e4] sm:$0xf] %vm2483_vm10, %v17542_v43  ;;  %v2376_v61 = vrot.slane %v2371_v21, 4  ;;  %v10994_v55 = vcombine.high %v2469_v22, %v2469_v22  ;;  %v10993_v30 = vcombine.low %v2469_v22, %v2469_v22  ;;  %vm17671_vm0 = vmmov %vm17668_vm1 }
 0x1d8   : > { %vm17672_vm10 = vmmov %vm17660_vm2 }
 0x1d9   : > { %v2384_v2 = vsel %vm17660_vm2, %v2375_v29, %v2376_v61  ;;  %v2386_v39 = vsel %vm17668_vm1, %v2371_v21, %v2376_v61  ;;  %11006 = vmatprep.subr.msk.bf16.mxu1 %vm17669_vm13, %v10994_v55  ;;  %v3297_v11 = vsel %vm17670_vm15, %v10993_v30, 0  ;;  %vm2229_vm6 = vmor %vm2228_vm5, %vm17672_vm10  ;;  %vm2231_vm13 = vcmask 388168  }
 0x1da   : > { %v2385_v0 = vsel %vm17671_vm0, %v13777_v3, %v2384_v2  ;;  %2398 = vst.msk [vmem:[#allocation3 + $0x3b8] sm:$0xff] %vm2397_vm7, %v2386_v39  ;;  %v2203_v40 = vpop.permute.xlu1 %2202  ;;  %v12161_v4 = vld [vmem:[#allocation3 + $0x20] ss:$40 sps:$4 sm:$0xff]   ;;  %v12163_v58 = vld [vmem:[#allocation3 + $0x24] ss:$40 sps:$4 sm:$0xff]   ;;  %3484 = vmatpush2.bf16.msra.mxu1 %v3297_v11  ;;  %vm17673_vm7 = vcmask 728064   ;;  %vm17675_vm5 = vmmov %vm17660_vm2 }
 0x1db   : > { %2400 = vst.msk [vmem:[#allocation3 + $0x3bc] sm:$0xf] %vm2399_vm12, %v17542_v43  ;;  %v2208_v15 = vrot.slane %v2203_v40, 4  ;;  %v10983_v29 = vcombine.low %v13940_v47, %v2385_v0  ;;  %v10984_v9 = vcombine.high %v13940_v47, %v2385_v0  ;;  %3526 = vmatprep.subr.bf16.mxu0 %v12163_v58  ;;  %vm17674_vm12 = vmmov %vm17673_vm7  ;;  %vm2063_vm15 = vcmask 388304  }
 0x1dc   : > { %3527 = vmatpush1.bf16.msra.mxu0 %v12161_v4  ;;  %vm2061_vm1 = vmor %vm2060_vm8, %vm17675_vm5  ;;  %vm1892_vm0 = vcmask 228356   ;;  %vm1895_vm5 = vcmask 388320  }
 0x1dd   : > { %v2216_v3 = vsel %vm17660_vm2, %v2207_v52, %v2208_v15  ;;  %v2218_v20 = vsel %vm17673_vm7, %v2203_v40, %v2208_v15  ;;  %3485 = vmatprep.subr.bf16.mxu1 %v10984_v9  ;;  %vm17676_vm10 = vmmov %vm17660_vm2  ;;  %v14131_v15 = vld [vmem:[%s17046_s7] sm:$0xff] }
 0x1de   : > { %v2217_v12 = vsel %vm17674_vm12, %v13811_v10, %v2216_v3  ;;  %2230 = vst.msk [vmem:[#allocation3 + $0x368] sm:$0xff] %vm2229_vm6, %v2218_v20  ;;  %v2035_v53 = vpop.permute.xlu1 %2034  ;;  %v2612_v23 = vld [vmem:[#allocation3 + $0x3e0] sm:$0xff]  ;;  %3486 = vmatpush2.bf16.msra.mxu1 %v10983_v29  ;;  %vm17677_vm6 = vcmask 867328   ;;  %vm17680_vm7 = vmmov %vm17660_vm2 }
 0x1df   : > { %2232 = vst.msk [vmem:[#allocation3 + $0x36c] sm:$0xf] %vm2231_vm13, %v17542_v43  ;;  %v2040_v47 = vrot.slane %v2035_v53, 4  ;;  %v10996_v49 = vcombine.high %v2612_v23, %v2612_v23  ;;  %v10995_v18 = vcombine.low %v2612_v23, %v2612_v23  ;;  %v10973_v52 = vcombine.low %v13969_v44, %v2217_v12  ;;  %vm17678_vm13 = vmmov %vm17660_vm2 }
 0x1e0   : > { %v10974_v8 = vcombine.high %v13969_v44, %v2217_v12  ;;  %vm17679_vm8 = vmmov %vm17677_vm6 }
 0x1e1   : > { %v2048_v10 = vsel %vm17676_vm10, %v2039_v37, %v2040_v47  ;;  %v2050_v51 = vsel %vm17677_vm6, %v2035_v53, %v2040_v47  ;;  %11009 = vmatprep.subr.msk.bf16.mxu0 %vm17660_vm2, %v10996_v49  ;;  %v3303_v28 = vsel %vm17678_vm13, %v10995_v18, 0  ;;  %vm1893_vm12 = vmor %vm1892_vm0, %vm17680_vm7  ;;  %v12166_v33 = vld [vmem:[#allocation3 + $0x390] ss:$40 sps:$4 sm:$0xff]   ;;  %vm17682_vm10 = vcmask 883712  }
 0x1e2   : > { %v2049_v62 = vsel %vm17679_vm8, %v13847_v54, %v2048_v10  ;;  %2062 = vst.msk [vmem:[#allocation3 + $0x318] sm:$0xff] %vm2061_vm1, %v2050_v51  ;;  %3535 = vmatpush2.bf16.msra.mxu0 %v3303_v28  ;;  %v1867_v1 = vpop.permute.xlu1 %1866  ;;  %v12168_v27 = vld [vmem:[#allocation3 + $0x394] ss:$40 sps:$4 sm:$0xff]   ;;  %3487 = vmatprep.subr.bf16.mxu1 %v10974_v8  ;;  %vm17681_vm1 = vmmov %vm17660_vm2  ;;  %vm17684_vm0 = vcmask 588800   ;;  %vm17691_vm2 = vcmask 130048   ;;  %vm17214_vm13 = vcmask 130052  }
 0x1e3   : > { %2064 = vst.msk [vmem:[#allocation3 + $0x31c] sm:$0xf] %vm2063_vm15, %v17542_v43  ;;  %v1872_v44 = vrot.slane %v1867_v1, 4  ;;  %3488 = vmatpush2.bf16.msra.mxu1 %v10973_v52  ;;  %v10963_v37 = vcombine.low %v13987_v26, %v2049_v62  ;;  %v10964_v6 = vcombine.high %v13987_v26, %v2049_v62  ;;  %3536 = vmatprep.subr.bf16.mxu0 %v12168_v27  ;;  %vm17683_vm15 = vmmov %vm17682_vm10 }
 0x1e4   : > { %vm17685_vm6 = vmmov %vm17684_vm0 }
 0x1e5   : > { %v1880_v54 = vsel %vm17681_vm1, %v1871_v16, %v1872_v44  ;;  %v1882_v42 = vsel %vm17682_vm10, %v1867_v1, %v1872_v44  ;;  %3489 = vmatprep.subr.bf16.mxu1 %v10964_v6  ;;  %v12169_v31 = vld [vmem:[#allocation3 + $0x340] ss:$40 sps:$4 sm:$0xff]   ;;  %v14107_v56 = vpop.permute.xlu0 %2618  ;;  %vm17692_vm8 = vmmov %vm17681_vm1 }
 0x1e6   : > { %v1881_v63 = vsel %vm17683_vm15, %v13879_v14, %v1880_v54  ;;  %1894 = vst.msk [vmem:[#allocation3 + $0x2c8] sm:$0xff] %vm1893_vm12, %v1882_v42  ;;  %3537 = vmatpush2.bf16.msra.mxu0 %v12166_v33  ;;  %v12171_v45 = vld [vmem:[#allocation3 + $0x344] ss:$40 sps:$4 sm:$0xff]   ;;  %vm14177_vm7 = vmor %vm17214_vm13, %vm17692_vm8  ;;  %vm17700_vm12 = vcmask 392192   ;;  %vm17703_vm15 = vcmask 306176  }
 0x1e7   : > { %1896 = vst.msk [vmem:[#allocation3 + $0x2cc] sm:$0xf] %vm1895_vm5, %v17542_v43  ;;  %3490 = vmatpush2.bf16.msra.mxu1 %v10963_v37  ;;  %v10953_v26 = vcombine.low %v14007_v25, %v1881_v63  ;;  %v10954_v36 = vcombine.high %v14007_v25, %v1881_v63  ;;  %3538 = vmatprep.subr.bf16.mxu0 %v12171_v45  ;;  %vm17701_vm5 = vcmask 310272  }
 0x1e8   : > { %vm17702_vm10 = vmmov %vm17701_vm5 }
 0x1e9   : > { %3491 = vmatprep.subr.bf16.mxu1 %v10954_v36  ;;  %v12172_v38 = vld [vmem:[#allocation3 + $0x2f0] ss:$40 sps:$4 sm:$0xff]  }
 0x1ea   : > { %3539 = vmatpush2.bf16.msra.mxu0 %v12169_v31  ;;  %v12174_v16 = vld [vmem:[#allocation3 + $0x2f4] ss:$40 sps:$4 sm:$0xff]  }
 0x1eb   : > { %3492 = vmatpush2.bf16.msra.mxu1 %v10953_v26  ;;  %3540 = vmatprep.subr.bf16.mxu0 %v12174_v16 }
 0x1ed   : > { %v12175_v60 = vld [vmem:[#allocation3 + $0x2a0] ss:$40 sps:$4 sm:$0xff]  }
 0x1ee   : > { %3541 = vmatpush2.bf16.msra.mxu0 %v12172_v38  ;;  %v12177_v14 = vld [vmem:[#allocation3 + $0x2a4] ss:$40 sps:$4 sm:$0xff]   ;;  %3494 = vmatmul.mubr.bf16.vlgmr.msra.gmra.mxu1 %v12567_v32 }
 0x1ef   : > { %11008 = vmatprep.mubr.msk.bf16.mxu1 %vm17684_vm0, %v13488_v41  ;;  %3542 = vmatprep.subr.bf16.mxu0 %v12177_v14  ;;  %v14110_v50 = vpop.permute.xlu1 %2623  ;;  %vm17704_vm0 = vcmask 179200  }
 0x1f0   : > { %vm17707_vm8 = vmmov %vm17704_vm0 }
 0x1f2   : > { %3543 = vmatpush2.bf16.msra.mxu0 %v12175_v60 }
 0x1f3   : > { %v14118_v21 = vpop.permute.xlu1 %2628 }
 0x1f5   : > { %3545 = vmatmul.mubr.bf16.vlgmr.msra.gmra.mxu0 %v12567_v32 }
 0x1f6   : > { %11011 = vmatprep.mubr.msk.bf16.mxu0 %vm17685_vm6, %v13488_v41  ;;  %3504 = vmatmul.mubr.bf16.gmra.mxu1 %v13523_v24  ;;  %vm17705_vm6 = vmmov %vm17681_vm1 }
 0x1fd   : > { %3555 = vmatmul.mubr.bf16.gmra.mxu0 %v13523_v24  ;;  %v17686_v24 = vlaneseq }
 0x1ff   : > { %v14116_v57 = vshrl.u32 %v17686_v24, 7 }
 0x201   : > { %v14122_v2 = vsub.s32 0, %v14116_v57  ;;  %v14126_v4 = vsub.s32 1, %v14116_v57  ;;  %v14144_v45 = vsub.s32 2, %v14116_v57  ;;  %v14148_v38 = vsub.s32 3, %v14116_v57 }
 0x203   : > { %17687 = vst [vmem:[#allocation23_spill] sm:$0xff] %v14122_v2  ;;  %17688 = vst [vmem:[#allocation24_spill] sm:$0xff] %v14126_v4  ;;  %v3630_v3 = vrot.slane %v14131_v15, %v14122_v2  ;;  %v3634_v23 = vrot.slane %v14131_v15, %v14126_v4 }
 0x204   : > { %17689 = vst [vmem:[#allocation25_spill] sm:$0xff] %v14144_v45  ;;  %17690 = vst [vmem:[#allocation26_spill] sm:$0xff] %v14148_v38 }
 0x20d   : > { %v3342_v25 = vpop.f32.mrf.mxu0 }
 0x20e   : > { %v3343_v19 = vadd.f32 %v3342_v25, %v14107_v56 }
 0x20f   : > { %v3344_v34 = vpop.f32.mrf.mxu0 }
 0x210   : > { %v3345_v48 = vadd.f32 %v3344_v34, %v14107_v56  ;;  %v3563_v59 = vmax.f32 %v3343_v19, 0.0  ;;  %v3638_v34 = vrot.slane %v14131_v15, %v14144_v45 }
 0x211   : > { %v3346_v5 = vpop.f32.mrf.mxu0 }
 0x212   : > { %v3347_v46 = vadd.f32 %v3346_v5, %v14110_v50  ;;  %v3564_v41 = vmax.f32 %v3345_v48, 0.0 }
 0x213   : > { %v3348_v7 = vpop.f32.mrf.mxu0 }
 0x214   : > { %v3349_v13 = vadd.f32 %v3348_v7, %v14110_v50  ;;  %v3573_v17 = vmax.f32 %v3347_v46, 0.0 }
 0x215   : > { %v3352_v22 = vpop.f32.mrf.mxu0 }
 0x216   : > { %v3574_v61 = vmax.f32 %v3349_v13, 0.0  ;;  %v3593_v55 = vadd.f32 %v3573_v17, %v3563_v59  ;;  %v3353_v30 = vadd.f32 %v3352_v22, %v14118_v21 }
 0x217   : > { %v3354_v39 = vpop.f32.mrf.mxu0 }
 0x218   : > { %v3594_v11 = vadd.f32 %v3574_v61, %v3564_v41  ;;  %v3355_v0 = vadd.f32 %v3354_v39, %v14118_v21  ;;  %v3583_v40 = vmax.f32 %v3353_v30, 0.0 }
 0x219   : > { %v3356_v58 = vpop.f32.mrf.mxu0 }
 0x21a   : > { %v3584_v29 = vmax.f32 %v3355_v0, 0.0  ;;  %v3603_v9 = vadd.f32 %v3593_v55, %v3583_v40  ;;  %v3642_v55 = vrot.slane %v14131_v15, %v14148_v38 }
 0x21b   : > { %v3357_v20 = vpop.f32.mrf.mxu0 }
 0x21c   : > { %v3604_v12 = vadd.f32 %v3594_v11, %v3584_v29  ;;  %v3613_v53 = vmul.f32 0.33333334, %v3603_v9  ;;  %v3645_v20 = vsub.s32 4, %v14116_v57 }
 0x21e   : > { %v3614_v47 = vmul.f32 0.33333334, %v3604_v12  ;;  %v3677_v49 = vmul.f32 %v3630_v3, %v3613_v53 }
 0x220   : > { %v3678_v18 = vmul.f32 %v3634_v23, %v3614_v47  ;;  %3713 = vst [vmem:[#allocation5] sm:$0xff] %v3677_v49  ;;  %v3649_v23 = vsub.s32 5, %v14116_v57 }
 0x222   : > { %3714 = vst [vmem:[#allocation5 + $0x8] sm:$0xff] %v3678_v18  ;;  %v14137_v52 = vpack.c.bf16 %v3678_v18, %v3677_v49 }
 0x227   : > { %v4731_v8 = vld [vmem:[#allocation5] sm:$0xff] }
 0x229   : > { %v4732_v10 = vld [vmem:[#allocation5 + $0x8] sm:$0xff] }
 0x22a   : > { %v11849_v51 = vpack.c.bf16 %v4732_v10, %v4731_v8 }
 0x22c   : > { %4783 = vst [vmem:[#allocation6 + $0x240] sm:$0xff] %v11849_v51 }
 0x261   : > { %v3393_v28 = vpop.f32.mrf.mxu1 }
 0x262   : > { %v3394_v1 = vadd.f32 %v3393_v28, %v14107_v56 }
 0x263   : > { %v3395_v62 = vpop.f32.mrf.mxu1 }
 0x264   : > { %v3396_v6 = vadd.f32 %v3395_v62, %v14107_v56  ;;  %v3565_v33 = vmax.f32 %v3394_v1, 0.0  ;;  %v3646_v1 = vrot.slane %v14131_v15, %v3645_v20 }
 0x265   : > { %v3397_v27 = vpop.f32.mrf.mxu1 }
 0x266   : > { %v3398_v44 = vadd.f32 %v3397_v27, %v14110_v50  ;;  %v3566_v32 = vmax.f32 %v3396_v6, 0.0 }
 0x267   : > { %v3399_v37 = vpop.f32.mrf.mxu1 }
 0x268   : > { %v3575_v54 = vmax.f32 %v3398_v44, 0.0  ;;  %v3400_v42 = vadd.f32 %v3399_v37, %v14110_v50 }
 0x269   : > { %v3403_v63 = vpop.f32.mrf.mxu1 }
 0x26a   : > { %v3444_v26 = vpop.f32.mrf.mxu0  ;;  %v3576_v36 = vmax.f32 %v3400_v42, 0.0  ;;  %v3404_v31 = vadd.f32 %v3403_v63, %v14118_v21  ;;  %v3595_v60 = vadd.f32 %v3575_v54, %v3565_v33  ;;  %v3650_v33 = vrot.slane %v14131_v15, %v3649_v23 }
 0x26b   : > { %v3405_v16 = vpop.f32.mrf.mxu1  ;;  %v3445_v48 = vadd.f32 %v3444_v26, %v14107_v56 }
 0x26c   : > { %v3446_v14 = vpop.f32.mrf.mxu0  ;;  %v3585_v25 = vmax.f32 %v3404_v31, 0.0  ;;  %v3406_v19 = vadd.f32 %v3405_v16, %v14118_v21  ;;  %v3596_v46 = vadd.f32 %v3576_v36, %v3566_v32 }
 0x26d   : > { %v3407_v5 = vpop.f32.mrf.mxu1  ;;  %v3567_v39 = vmax.f32 %v3445_v48, 0.0  ;;  %v3447_v11 = vadd.f32 %v3446_v14, %v14107_v56 }
 0x26e   : > { %v3448_v59 = vpop.f32.mrf.mxu0  ;;  %v3605_v7 = vadd.f32 %v3595_v60, %v3585_v25  ;;  %v3586_v41 = vmax.f32 %v3406_v19, 0.0 }
 0x26f   : > { %v3449_v13 = vadd.f32 %v3448_v59, %v14110_v50  ;;  %v3408_v17 = vpop.f32.mrf.mxu1  ;;  %v3568_v49 = vmax.f32 %v3447_v11, 0.0 }
 0x270   : > { %v3450_v24 = vpop.f32.mrf.mxu0  ;;  %v3615_v22 = vmul.f32 0.33333334, %v3605_v7  ;;  %v3606_v61 = vadd.f32 %v3596_v46, %v3586_v41 }
 0x271   : > { %v3451_v30 = vadd.f32 %v3450_v24, %v14110_v50  ;;  %v3577_v0 = vmax.f32 %v3449_v13, 0.0 }
 0x272   : > { %v3679_v40 = vmul.f32 %v3638_v34, %v3615_v22  ;;  %v3616_v58 = vmul.f32 0.33333334, %v3606_v61  ;;  %v3454_v29 = vpop.f32.mrf.mxu0 }
 0x273   : > { %v3578_v9 = vmax.f32 %v3451_v30, 0.0  ;;  %v3455_v3 = vadd.f32 %v3454_v29, %v14118_v21  ;;  %v3597_v18 = vadd.f32 %v3577_v0, %v3567_v39  ;;  %v3657_v39 = vsub.s32 7, %v14116_v57 }
 0x274   : > { %3715 = vst [vmem:[#allocation5 + $0x10] sm:$0xff] %v3679_v40  ;;  %v3680_v12 = vmul.f32 %v3642_v55, %v3616_v58  ;;  %v3456_v53 = vpop.f32.mrf.mxu0  ;;  %v11808_v47 = vpack.c.bf16 %v3679_v40, %v3679_v40  ;;  %v3653_v55 = vsub.s32 6, %v14116_v57 }
 0x275   : > { %v3587_v8 = vmax.f32 %v3455_v3, 0.0  ;;  %v3457_v10 = vadd.f32 %v3456_v53, %v14118_v21  ;;  %v3598_v28 = vadd.f32 %v3578_v9, %v3568_v49 }
 0x276   : > { %3716 = vst.msk [vmem:[#allocation5 + $0x18] sm:$0xff] %vm17691_vm2, %v3680_v12  ;;  %3725 = vrot.lane.b32.xlu1 %v3680_v12, %s12616_s11  ;;  %4125 = vrot.lane.b32.xlu0 %v11808_v47, %s17489_s18  ;;  %v3458_v51 = vpop.f32.mrf.mxu0  ;;  %v3654_v23 = vrot.slane %v14131_v15, %v3653_v55  ;;  %vm17706_vm2 = vcmask 326656  }
 0x277   : > { %v3607_v62 = vadd.f32 %v3597_v18, %v3587_v8  ;;  %v3588_v27 = vmax.f32 %v3457_v10, 0.0 }
 0x278   : > { %v3459_v44 = vpop.f32.mrf.mxu0 }
 0x279   : > { %v3617_v37 = vmul.f32 0.33333334, %v3607_v62  ;;  %v3608_v6 = vadd.f32 %v3598_v28, %v3588_v27  ;;  %v3658_v62 = vrot.slane %v14131_v15, %v3657_v39 }
 0x27a   : > { %4203 = vrot.lane.b32.xlu1 %v11808_v47, %s17446_s30  ;;  %4123 = vrot.lane.b32.xlu0 %v14137_v52, %s17489_s18 }
 0x27b   : > { %v14171_v54 = vmul.f32 %v3646_v1, %v3617_v37  ;;  %v3618_v42 = vmul.f32 0.33333334, %v3608_v6  ;;  %v4733_v36 = vld [vmem:[#allocation5 + $0x10] sm:$0xff]  ;;  %v3624_v6 = vld [vmem:[%s17046_s7 + $0x8] sm:$0x3] }
 0x27d   : > { %v14173_v63 = vmul.f32 %v3650_v33, %v3618_v42  ;;  %v4734_v31 = vld [vmem:[#allocation5 + $0x18] sm:$0xff] }
 0x27e   : > { %4201 = vrot.lane.b32.xlu1 %v14137_v52, %s17446_s30  ;;  %3967 = vrot.lane.b32.xlu0 %v14137_v52, %s17497_s15  ;;  %v11850_v16 = vpack.c.bf16 %v4734_v31, %v4733_v36  ;;  %v4974_v14 = vld [vmem:[#allocation5 + $0x18] sm:$0xff] }
 0x27f   : > { %v11868_v32 = vpack.c.bf16 %v4974_v14, %v3679_v40 }
 0x280   : > { %4784 = vst.msk [vmem:[#allocation6 + $0x248] sm:$0xff] %vm14177_vm7, %v11850_v16 }
 0x282   : > { %4045 = vrot.lane.b32.xlu1 %v14137_v52, %s17447_s26  ;;  %3809 = vrot.lane.b32.xlu0 %v14137_v52, %s17505_s21 }
 0x286   : > { %3889 = vrot.lane.b32.xlu1 %v14137_v52, %s17449_s25  ;;  %4601 = vrot.lane.b32.xlu0 %v14137_v52, %s17203_s20  ;;  %s17699_s20 = smov 88  }
 0x28a   : > { %4513 = vrot.lane.b32.xlu1 %v14137_v52, %s17239_s17  ;;  %4435 = vrot.lane.b32.xlu0 %v14137_v52, %s17199_s22  ;;  %s17697_s22 = smov 87  }
 0x28e   : > { %5019 = vrot.lane.b32.xlu1 %v11868_v32, %s17209_s16  ;;  %5017 = vrot.lane.b32.xlu0 %v14137_v52, %s17209_s16  ;;  %s12617_s16 = smov 96  }
 0x292   : > { %4357 = vrot.lane.b32.xlu1 %v14137_v52, %s17445_s29  ;;  %4926 = vrot.lane.b32.xlu0 %v14137_v52, %s17201_s14 }
 0x296   : > { %4928 = vrot.lane.b32.xlu1 %v11868_v32, %s17201_s14  ;;  %4279 = vrot.lane.b32.xlu0 %v14137_v52, %s17477_s10  ;;  %s17698_s14 = smov 89  }
 0x29a   : > { %4837 = vrot.lane.b32.xlu1 %v11868_v32, %s17695_s13  ;;  %4835 = vrot.lane.b32.xlu0 %v14137_v52, %s17695_s13 }
 0x29e   : > { %5838 = vrot.lane.b32.xlu1 %v11868_v32, %s17207_s9  ;;  %5836 = vrot.lane.b32.xlu0 %v14137_v52, %s17207_s9  ;;  %s17817_s9 = smov 19  }
 0x2a2   : > { %4689 = vrot.lane.b32.xlu1 %v14137_v52, %s17696_s19  ;;  %5745 = vrot.lane.b32.xlu0 %v14137_v52, %s17697_s22 }
 0x2a6   : > { %5747 = vrot.lane.b32.xlu1 %v11868_v32, %s17697_s22  ;;  %5563 = vrot.lane.b32.xlu0 %v14137_v52, %s17698_s14 }
 0x2aa   : > { %5565 = vrot.lane.b32.xlu1 %v11868_v32, %s17698_s14  ;;  %5654 = vrot.lane.b32.xlu0 %v14137_v52, %s17699_s20 }
 0x2ae   : > { %v3495_v60 = vpop.f32.mrf.mxu1  ;;  %5656 = vrot.lane.b32.xlu1 %v11868_v32, %s17699_s20  ;;  %5472 = vrot.lane.b32.xlu0 %v14137_v52, %s17469_s24 }
 0x2af   : > { %v3496_v34 = vadd.f32 %v3495_v60, %v14107_v56  ;;  %v3662_v60 = vrot.slane %v3624_v6, %v14122_v2 }
 0x2b0   : > { %v3497_v25 = vpop.f32.mrf.mxu1 }
 0x2b1   : > { %v3498_v46 = vadd.f32 %v3497_v25, %v14107_v56  ;;  %v3569_v17 = vmax.f32 %v3496_v34, 0.0 }
 0x2b2   : > { %v3499_v19 = vpop.f32.mrf.mxu1  ;;  %5474 = vrot.lane.b32.xlu1 %v11868_v32, %s17469_s24  ;;  %5381 = vrot.lane.b32.xlu0 %v14137_v52, %s17205_s23 }
 0x2b3   : > { %v3500_v48 = vadd.f32 %v3499_v19, %v14110_v50  ;;  %v3570_v11 = vmax.f32 %v3498_v46, 0.0 }
 0x2b4   : > { %v3501_v5 = vpop.f32.mrf.mxu1 }
 0x2b5   : > { %v3546_v59 = vpop.f32.mrf.mxu0  ;;  %v3579_v7 = vmax.f32 %v3500_v48, 0.0  ;;  %v3502_v41 = vadd.f32 %v3501_v5, %v14110_v50  ;;  %v3666_v5 = vrot.slane %v3624_v6, %v14126_v4  ;;  %v17722_v6 = vld [vmem:[#allocation15_spill] sm:$0xff] }
 0x2b6   : > { %v3505_v13 = vpop.f32.mrf.mxu1  ;;  %5383 = vrot.lane.b32.xlu1 %v11868_v32, %s17205_s23  ;;  %5290 = vrot.lane.b32.xlu0 %v14137_v52, %s17475_s12  ;;  %v3547_v9 = vadd.f32 %v3546_v59, %v14107_v56  ;;  %s17816_s23 = smov 2  }
 0x2b7   : > { %v3548_v24 = vpop.f32.mrf.mxu0  ;;  %v3580_v22 = vmax.f32 %v3502_v41, 0.0  ;;  %v3506_v61 = vadd.f32 %v3505_v13, %v14118_v21  ;;  %v3599_v0 = vadd.f32 %v3579_v7, %v3569_v17 }
 0x2b8   : > { %v3507_v30 = vpop.f32.mrf.mxu1  ;;  %v3549_v57 = vadd.f32 %v3548_v24, %v14107_v56  ;;  %v3571_v1 = vmax.f32 %v3547_v9, 0.0 }
 0x2b9   : > { %v3550_v40 = vpop.f32.mrf.mxu0  ;;  %v3589_v58 = vmax.f32 %v3506_v61, 0.0  ;;  %v3508_v29 = vadd.f32 %v3507_v30, %v14118_v21  ;;  %v3600_v20 = vadd.f32 %v3580_v22, %v3570_v11 }
 0x2ba   : > { %v3551_v52 = vadd.f32 %v3550_v40, %v14110_v50  ;;  %v3509_v3 = vpop.f32.mrf.mxu1  ;;  %5292 = vrot.lane.b32.xlu1 %v11868_v32, %s17475_s12  ;;  %v3572_v42 = vmax.f32 %v3549_v57, 0.0 }
 0x2bb   : > { %v3552_v12 = vpop.f32.mrf.mxu0  ;;  %v3609_v53 = vadd.f32 %v3599_v0, %v3589_v58  ;;  %v3590_v47 = vmax.f32 %v3508_v29, 0.0  ;;  %v17708_v3 = vld [vmem:[#allocation16_spill] sm:$0xff] }
 0x2bc   : > { %v3581_v49 = vmax.f32 %v3551_v52, 0.0  ;;  %v3553_v18 = vadd.f32 %v3552_v12, %v14110_v50  ;;  %v3510_v8 = vpop.f32.mrf.mxu1 }
 0x2bd   : > { %v3619_v10 = vmul.f32 0.33333334, %v3609_v53  ;;  %v3556_v51 = vpop.f32.mrf.mxu0  ;;  %v3610_v28 = vadd.f32 %v3600_v20, %v3590_v47 }
 0x2be   : > { %v3582_v27 = vmax.f32 %v3553_v18, 0.0  ;;  %v3557_v44 = vadd.f32 %v3556_v51, %v14118_v21  ;;  %v3601_v36 = vadd.f32 %v3581_v49, %v3571_v1 }
 0x2bf   : > { %v3683_v37 = vmul.f32 %v3654_v23, %v3619_v10  ;;  %v3620_v33 = vmul.f32 0.33333334, %v3610_v28  ;;  %v3558_v56 = vpop.f32.mrf.mxu0 }
 0x2c0   : > { %v3591_v50 = vmax.f32 %v3557_v44, 0.0  ;;  %v3559_v31 = vadd.f32 %v3558_v56, %v14118_v21  ;;  %v3602_v14 = vadd.f32 %v3582_v27, %v3572_v42  ;;  %v17720_v44 = vld [vmem:[#allocation20_spill] sm:$0xff] }
 0x2c1   : > { %v3684_v16 = vmul.f32 %v3658_v62, %v3620_v33  ;;  %3753 = vrot.lane.b32.xlu0 %v3683_v37, %s12617_s16  ;;  %v3560_v15 = vpop.f32.mrf.mxu0 }
 0x2c2   : > { %v3611_v32 = vadd.f32 %v3601_v36, %v3591_v50  ;;  %v3592_v25 = vmax.f32 %v3559_v31, 0.0  ;;  %v17728_v31 = vld [vmem:[#allocation13_spill] sm:$0xff] }
 0x2c3   : > { %3755 = vrot.lane.b32.xlu1 %v3684_v16, %s12617_s16  ;;  %v3561_v19 = vpop.f32.mrf.mxu0  ;;  %v17730_v15 = vld [vmem:[#allocation17_spill] sm:$0xff] }
 0x2c4   : > { %v3621_v34 = vmul.f32 0.33333334, %v3611_v32  ;;  %v3612_v48 = vadd.f32 %v3602_v14, %v3592_v25  ;;  %v17734_v25 = vmov 0 }
 0x2c5   : > { %3727 = vrot.lane.b32.xlu0 %v14171_v54, %s12616_s11 }
 0x2c6   : > { %v3685_v59 = vmul.f32 %v3662_v60, %v3621_v34  ;;  %v3622_v21 = vmul.f32 0.33333334, %v3612_v48 }
 0x2c7   : > { %3729 = vrot.lane.b32.xlu1 %v14173_v63, %s12616_s11 }
 0x2c8   : > { %v3686_v46 = vmul.f32 %v3666_v5, %v3622_v21 }
 0x2c9   : > { %3731 = vrot.lane.b32.xlu0 %v3683_v37, %s12616_s11  ;;  %s17818_s11 = smov 126  }
 0x2ca   : > { %3696 = vst.msk [vmem:[#allocation4 + $0x48] sm:$0xff] %vm17700_vm12, %v3686_v46  ;;  %vm17710_vm12 = vcmask 175104  }
 0x2cd   : > { %3757 = vrot.lane.b32.xlu0 %v3685_v59, %s12617_s16 }
 0x2d1   : > { %v3748_v7 = vld [vmem:[#allocation4 + $0x48] sm:$0xff] }
 0x2d2   : > { %3759 = vrot.lane.b32.xlu1 %v3748_v7, %s12617_s16  ;;  %v17741_v7 = vld [vmem:[#allocation14_spill] sm:$0xff]  ;;  %s17815_s16 = smov 110  }
 0x2e8   : > { %v14262_v41 = vpop.permute.xlu1 %3725  ;;  %v4126_v13 = vpop.permute.xlu0 %4125 }
 0x2e9   : > { %v4136_v22 = vrot.slane %v4126_v13, 4 }
 0x2ec   : > { %v4204_v17 = vpop.permute.xlu1 %4203  ;;  %v4124_v24 = vpop.permute.xlu0 %4123 }
 0x2ed   : > { %v4135_v54 = vrot.slane %v4124_v24, 4  ;;  %v4214_v11 = vrot.slane %v4204_v17, 4 }
 0x2ef   : > { %v4141_v61 = vsel %vm17701_vm5, %v4135_v54, %v4124_v24  ;;  %v4142_v55 = vsel %vm17681_vm1, %v4135_v54, %v4136_v22  ;;  %vm17711_vm5 = vcmask 322560   ;;  %vm17712_vm1 = vcmask 318464  }
 0x2f0   : > { %v4202_v63 = vpop.permute.xlu1 %4201  ;;  %v4143_v30 = vsel %vm17702_vm10, %v4142_v55, %v4126_v13  ;;  %4156 = vst.msk [vmem:[#allocation6 + $0xc0] sm:$0xff] %vm12951_vm3, %v4141_v61  ;;  %v14269_v39 = vpop.permute.xlu0 %3967  ;;  %vm17713_vm10 = vcmask 343040   ;;  %v17746_v24 = vmov 0 }
 0x2f1   : > { %v4213_v0 = vrot.slane %v4202_v63, 4  ;;  %4157 = vst.msk [vmem:[#allocation6 + $0xc8] sm:$0xff] %vm14177_vm7, %v4143_v30  ;;  %v17253_v40 = vrot.slane %v14269_v39, 4 }
 0x2f2   : > { %4162 = vst.msk [vmem:[#allocation6 + $0xc0] sm:$0xf] %vm17703_vm15, %v17542_v43  ;;  %vm17716_vm15 = vcmask 314368  }
 0x2f3   : > { %v4219_v58 = vsel %vm17704_vm0, %v4213_v0, %v4202_v63  ;;  %v4220_v29 = vsel %vm17705_vm6, %v4213_v0, %v4214_v11  ;;  %v3985_v9 = vsel %vm17706_vm2, %v17253_v40, %v14269_v39  ;;  %vm17717_vm0 = vcmask 338944  }
 0x2f4   : > { %v4221_v52 = vsel %vm17707_vm8, %v4220_v29, %v4204_v17  ;;  %4234 = vst.msk [vmem:[#allocation6 + $0xf0] sm:$0xff] %vm12866_vm11, %v4219_v58  ;;  %v14285_v20 = vpop.permute.xlu1 %4045  ;;  %v14289_v53 = vpop.permute.xlu0 %3809  ;;  %vm17718_vm6 = vcmask 334848   ;;  %vm17719_vm2 = vcmask 15360   ;;  %vm17721_vm8 = vnez %v17720_v44  ;;  %v17752_v58 = vld [vmem:[#allocation19_spill] sm:$0xff] }
 0x2f5   : > { %4000 = vst.msk [vmem:[#allocation6 + $0x60] sm:$0xff] %vm12979_vm14, %v3985_v9  ;;  %v17257_v23 = vrot.slane %v14285_v20, 4  ;;  %v17248_v47 = vrot.slane %v14289_v53, 4  ;;  %v17755_v9 = vmov 0 }
 0x2f6   : > { %4235 = vst.msk [vmem:[#allocation6 + $0xf8] sm:$0xff] %vm14177_vm7, %v4221_v52 }
 0x2f7   : > { %4240 = vst.msk [vmem:[#allocation6 + $0xf0] sm:$0xf] %vm17710_vm12, %v17542_v43  ;;  %v4063_v57 = vsel %vm17712_vm1, %v17257_v23, %v14285_v20  ;;  %v3827_v49 = vsel %vm17713_vm10, %v17248_v47, %v14289_v53  ;;  %vm17723_vm12 = vnez %v17722_v6  ;;  %vm17725_vm1 = vcmask 11264  }
 0x2f8   : > { %4006 = vst.msk [vmem:[#allocation6 + $0x60] sm:$0xf] %vm17711_vm5, %v17542_v43  ;;  %v14309_v8 = vpop.permute.xlu1 %3889  ;;  %v14313_v51 = vpop.permute.xlu0 %4601  ;;  %vm17724_vm5 = vcmask 330752   ;;  %vm17726_vm10 = vcmask 146432  }
 0x2f9   : > { %4078 = vst.msk [vmem:[#allocation6 + $0x90] sm:$0xff] %vm12903_vm9, %v4063_v57  ;;  %v17252_v28 = vrot.slane %v14309_v8, 4  ;;  %v17247_v62 = vrot.slane %v14313_v51, 4 }
 0x2fa   : > { %3842 = vst.msk [vmem:[#allocation6] sm:$0xff] %vm12999_vm4, %v3827_v49 }
 0x2fb   : > { %4084 = vst.msk [vmem:[#allocation6 + $0x90] sm:$0xf] %vm17716_vm15, %v17542_v43  ;;  %v3907_v1 = vsel %vm17718_vm6, %v17252_v28, %v14309_v8  ;;  %v4619_v27 = vsel %vm17719_vm2, %v17247_v62, %v14313_v51  ;;  %vm5057_vm15 = vcmask 1044464   ;;  %vm17729_vm6 = vnez %v17728_v31 }
 0x2fc   : > { %3850 = vst.msk [vmem:[#allocation6] sm:$0xf] %vm17717_vm0, %v17542_v43  ;;  %v14331_v37 = vpop.permute.xlu1 %4513  ;;  %v14335_v33 = vpop.permute.xlu0 %4435  ;;  %vm17727_vm0 = vcmask 154624   ;;  %vm17731_vm2 = vnez %v17730_v15  ;;  %vm14360_vm11 = vmor %vm17214_vm13, %vm5057_vm15  ;;  %vm4960_vm15 = vcmask 113668   ;;  %vm17219_vm13 = vcmask 126064  }
 0x2fd   : > { %3922 = vst.msk [vmem:[#allocation6 + $0x30] sm:$0xff] %vm17721_vm8, %v3907_v1  ;;  %v17246_v56 = vrot.slane %v14331_v37, 4  ;;  %v17245_v42 = vrot.slane %v14335_v33, 4  ;;  %v17735_v25 = vsel %vm14360_vm11, 4294967295, %v17734_v25 }
 0x2fe   : > { %4634 = vst.msk [vmem:[#allocation6 + $0x1e0] sm:$0xff] %vm17723_vm12, %v4619_v27  ;;  %vm17737_vm12 = vcmask 1043456  }
 0x2ff   : > { %3928 = vst.msk [vmem:[#allocation6 + $0x30] sm:$0xf] %vm17724_vm5, %v17542_v43  ;;  %v4531_v36 = vsel %vm17726_vm10, %v17246_v56, %v14331_v37  ;;  %v4453_v50 = vsel %vm17727_vm0, %v17245_v42, %v14335_v33  ;;  %vm17732_vm5 = vcmask 142336   ;;  %vm17733_vm10 = vcmask 150528  }
 0x300   : > { %4640 = vst.msk [vmem:[#allocation6 + $0x1e0] sm:$0xf] %vm17725_vm1, %v17542_v43  ;;  %v5020_v16 = vpop.permute.xlu1 %5019  ;;  %v5018_v14 = vpop.permute.xlu0 %5017  ;;  %vm17213_vm1 = vcmask 1027072   ;;  %vm17736_vm0 = vcmask 900096  }
 0x301   : > { %4546 = vst.msk [vmem:[#allocation6 + $0x1b0] sm:$0xff] %vm17729_vm6, %v4531_v36  ;;  %v5030_v32 = vrot.slane %v5020_v16, 4  ;;  %v5029_v60 = vrot.slane %v5018_v14, 4 }
 0x302   : > { %4468 = vst.msk [vmem:[#allocation6 + $0x180] sm:$0xff] %vm17731_vm2, %v4453_v50  ;;  %vm17750_vm2 = vcmask 171008  }
 0x303   : > { %4552 = vst.msk [vmem:[#allocation6 + $0x1b0] sm:$0xf] %vm17732_vm5, %v17542_v43  ;;  %v5037_v19 = vsel %vm17736_vm0, %v5020_v16, %v5030_v32  ;;  %v5035_v34 = vsel %vm17737_vm12, %v5029_v60, %v5030_v32  ;;  %vm17739_vm5 = vmmov %vm17736_vm0  ;;  %vm17742_vm12 = vnez %v17741_v7  ;;  %vm17744_vm0 = vcmask 158720  }
 0x304   : > { %4474 = vst.msk [vmem:[#allocation6 + $0x180] sm:$0xf] %vm17733_vm10, %v17542_v43  ;;  %v14367_v48 = vpop.permute.xlu1 %4357  ;;  %v5036_v5 = vsel %vm17739_vm5, %v5018_v14, %v5035_v34  ;;  %v4927_v59 = vpop.permute.xlu0 %4926  ;;  %vm17740_vm10 = vcmask 162816   ;;  %vm17745_vm5 = vcmask 1043456   ;;  %v17762_v32 = vmov 0 }
 0x305   : > { %5052 = vst.msk [vmem:[#allocation6 + $0x2d8] sm:$0xf] %vm17213_vm1, %v5037_v19  ;;  %17738 = vst [vmem:[#allocation16_spill] sm:$0xff] %v14367_v48  ;;  %v17243_v21 = vrot.slane %v14367_v48, 4  ;;  %v4938_v54 = vrot.slane %v4927_v59, 4 }
 0x306   : > { %5059 = vst.msk [vmem:[#allocation6 + $0x2d8] sm:$0xff] %vm14360_vm11, %v17542_v43  ;;  %5050 = vst [vmem:[#allocation6 + $0x2d0] sm:$0xff] %v5036_v5  ;;  %vm17748_vm11 = vcmask 1031168  }
 0x307   : > { %v4375_v46 = vsel %vm17740_vm10, %v17243_v21, %v14367_v48  ;;  %vm14385_vm1 = vmor %vm4960_vm15, %vm17745_vm5  ;;  %vm4869_vm10 = vcmask 121860  }
 0x308   : > { %4390 = vst.msk [vmem:[#allocation6 + $0x150] sm:$0xff] %vm17742_vm12, %v4375_v46  ;;  %v4929_v13 = vpop.permute.xlu1 %4928  ;;  %v14380_v17 = vpop.permute.xlu0 %4279  ;;  %v17747_v24 = vsel %vm14385_vm1, 4294967295, %v17746_v24  ;;  %vm17749_vm12 = vmmov %vm17745_vm5 }
 0x309   : > { %17743 = vst [vmem:[#allocation27_spill] sm:$0xff] %v14380_v17  ;;  %4396 = vst.msk [vmem:[#allocation6 + $0x150] sm:$0xf] %vm17744_vm0, %v17542_v43  ;;  %v4939_v22 = vrot.slane %v4929_v13, 4  ;;  %v17242_v61 = vrot.slane %v14380_v17, 4  ;;  %vm17753_vm0 = vnez %v17752_v58 }
 0x30a   : > { %vm17751_vm15 = vmmov %vm17748_vm11 }
 0x30b   : > { %v4946_v55 = vsel %vm17748_vm11, %v4929_v13, %v4939_v22  ;;  %v4944_v63 = vsel %vm17749_vm12, %v4938_v54, %v4939_v22  ;;  %v4297_v30 = vsel %vm17750_vm2, %v17242_v61, %v14380_v17  ;;  %vm17754_vm11 = vmmov %vm17745_vm5  ;;  %vm17757_vm2 = vcmask 166912   ;;  %v17769_v22 = vld [vmem:[#allocation12_spill] sm:$0xff] }
 0x30c   : > { %4962 = vst.msk [vmem:[#allocation6 + $0x2a8] sm:$0xff] %vm14385_vm1, %v4946_v55  ;;  %v4945_v11 = vsel %vm17751_vm15, %v4927_v59, %v4944_v63  ;;  %v4838_v0 = vpop.permute.xlu1 %4837  ;;  %v4836_v29 = vpop.permute.xlu0 %4835  ;;  %vm14404_vm12 = vmor %vm4869_vm10, %vm17754_vm11  ;;  %vm17221_vm5 = vcmask 126072   ;;  %vm17758_vm15 = vcmask 1039360   ;;  %vm17220_vm10 = vcmask 830464  }
 0x30d   : > { %4312 = vst.msk [vmem:[#allocation6 + $0x120] sm:$0xff] %vm17753_vm0, %v4297_v30  ;;  %4959 = vst [vmem:[#allocation6 + $0x2a0] sm:$0xff] %v4945_v11  ;;  %v17756_v9 = vsel %vm14404_vm12, 4294967295, %v17755_v9  ;;  %v4848_v52 = vrot.slane %v4838_v0, 4  ;;  %v4847_v57 = vrot.slane %v4836_v29, 4  ;;  %v5980_v44 = vld [vmem:[#allocation6 + $0x2d0] sm:$0xff] }
 0x30e   : > { %4968 = vst.msk [vmem:[#allocation6 + $0x2ac] sm:$0xf] %vm17219_vm13, %v17542_v43  ;;  %vm17759_vm1 = vmmov %vm17754_vm11  ;;  %vm5876_vm13 = vcmask 1044272   ;;  %vm17761_vm11 = vcmask 130052  }
 0x30f   : > { %4318 = vst.msk [vmem:[#allocation6 + $0x120] sm:$0xf] %vm17757_vm2, %v17542_v43  ;;  %v4855_v49 = vsel %vm17758_vm15, %v4838_v0, %v4848_v52  ;;  %v4853_v1 = vsel %vm17759_vm1, %v4847_v57, %v4848_v52  ;;  %vm17760_vm0 = vmmov %vm17758_vm15  ;;  %vm17765_vm1 = vcmask 703488   ;;  %vm17766_vm15 = vcmask 1043456  }
 0x310   : > { %4871 = vst.msk [vmem:[#allocation6 + $0x278] sm:$0xff] %vm14404_vm12, %v4855_v49  ;;  %v5839_v27 = vpop.permute.xlu1 %5838  ;;  %v4854_v36 = vsel %vm17760_vm0, %v4836_v29, %v4853_v1  ;;  %v5837_v50 = vpop.permute.xlu0 %5836  ;;  %vm14418_vm2 = vmor %vm17761_vm11, %vm5876_vm13  ;;  %vm17768_vm13 = vcmask 7168   ;;  %vm17770_vm11 = vnez %v17769_v22  ;;  %vm17774_vm12 = vcmask 130052  }
 0x311   : > { %4877 = vst.msk [vmem:[#allocation6 + $0x27c] sm:$0xf] %vm17221_vm5, %v17542_v43  ;;  %v5849_v16 = vrot.slane %v5839_v27, 4  ;;  %4868 = vst [vmem:[#allocation6 + $0x270] sm:$0xff] %v4854_v36  ;;  %v5848_v14 = vrot.slane %v5837_v50, 4  ;;  %v17763_v32 = vsel %vm14418_vm2, 4294967295, %v17762_v32 }
 0x312   : > { %17764 = vst [vmem:[#allocation28_spill] sm:$0xff] %v17763_v32  ;;  %vm17767_vm0 = vmmov %vm17765_vm1  ;;  %vm17773_vm5 = vcmask 1043456   ;;  %v17775_v29 = vmov 0  ;;  %v17780_v36 = vmov 0 }
 0x313   : > { %v5856_v60 = vsel %vm17765_vm1, %v5839_v27, %v5849_v16  ;;  %v5854_v19 = vsel %vm17766_vm15, %v5848_v14, %v5849_v16  ;;  %vm17771_vm1 = vcmask 3072   ;;  %vm17226_vm15 = vcmask 838656  }
 0x314   : > { %5871 = vst.msk [vmem:[#allocation6 + $0x488] sm:$0xf] %vm17220_vm10, %v5856_v60  ;;  %v14425_v34 = vpop.permute.xlu1 %4689  ;;  %v5855_v5 = vsel %vm17767_vm0, %v5837_v50, %v5854_v19  ;;  %v5746_v59 = vpop.permute.xlu0 %5745  ;;  %vm5785_vm0 = vcmask 1044280   ;;  %vm17772_vm10 = vcmask 711680  }
 0x315   : > { %5878 = vst.msk [vmem:[#allocation6 + $0x488] sm:$0xff] %vm14418_vm2, %v17542_v43  ;;  %v17244_v46 = vrot.slane %v14425_v34, 4  ;;  %5869 = vst [vmem:[#allocation6 + $0x480] sm:$0xff] %v5855_v5  ;;  %v5757_v30 = vrot.slane %v5746_v59, 4  ;;  %vm5603_vm2 = vcmask 1044296  }
 0x316   : > { %vm14443_vm6 = vmor %vm17774_vm12, %vm5785_vm0  ;;  %vm17784_vm0 = vcmask 1043456  }
 0x317   : > { %v4707_v13 = vsel %vm17768_vm13, %v17244_v46, %v14425_v34  ;;  %v17776_v29 = vsel %vm14443_vm6, 4294967295, %v17775_v29  ;;  %vm17778_vm13 = vmmov %vm17772_vm10 }
 0x318   : > { %4722 = vst.msk [vmem:[#allocation6 + $0x210] sm:$0xff] %vm17770_vm11, %v4707_v13  ;;  %v5748_v54 = vpop.permute.xlu1 %5747  ;;  %v5564_v55 = vpop.permute.xlu0 %5563  ;;  %17777 = vst [vmem:[#allocation29_spill] sm:$0xff] %v17776_v29 }
 0x319   : > { %4728 = vst.msk [vmem:[#allocation6 + $0x210] sm:$0xf] %vm17771_vm1, %v17542_v43  ;;  %v5758_v63 = vrot.slane %v5748_v54, 4  ;;  %v5575_v27 = vrot.slane %v5564_v55, 4 }
 0x31b   : > { %v5765_v11 = vsel %vm17772_vm10, %v5748_v54, %v5758_v63  ;;  %v5763_v0 = vsel %vm17773_vm5, %v5757_v30, %v5758_v63  ;;  %vm17229_vm10 = vcmask 855040   ;;  %vm17779_vm5 = vmmov %vm17774_vm12  ;;  %vm17783_vm12 = vcmask 728064  }
 0x31c   : > { %5780 = vst.msk [vmem:[#allocation6 + $0x458] sm:$0xf] %vm17226_vm15, %v5765_v11  ;;  %v5764_v52 = vsel %vm17778_vm13, %v5746_v59, %v5763_v0  ;;  %v5566_v57 = vpop.permute.xlu1 %5565  ;;  %v5655_v49 = vpop.permute.xlu0 %5654  ;;  %vm14453_vm1 = vmor %vm17779_vm5, %vm5603_vm2  ;;  %vm17232_vm15 = vcmask 846848   ;;  %vm5694_vm2 = vcmask 1044288   ;;  %vm17786_vm5 = vcmask 719872  }
 0x31d   : > { %5787 = vst.msk [vmem:[#allocation6 + $0x458] sm:$0xff] %vm14443_vm6, %v17542_v43  ;;  %5778 = vst [vmem:[#allocation6 + $0x450] sm:$0xff] %v5764_v52  ;;  %v5576_v1 = vrot.slane %v5566_v57, 4  ;;  %v17781_v36 = vsel %vm14453_vm1, 4294967295, %v17780_v36  ;;  %v5666_v59 = vrot.slane %v5655_v49, 4  ;;  %v17789_v63 = vmov 0 }
 0x31e   : > { %17782 = vst [vmem:[#allocation30_spill] sm:$0xff] %v17781_v36  ;;  %vm17785_vm13 = vmmov %vm17783_vm12 }
 0x31f   : > { %v5583_v50 = vsel %vm17783_vm12, %v5566_v57, %v5576_v1  ;;  %v5581_v16 = vsel %vm17784_vm0, %v5575_v27, %v5576_v1  ;;  %vm17787_vm12 = vmmov %vm17784_vm0  ;;  %vm17788_vm0 = vcmask 130052   ;;  %v17795_v27 = vmov 0 }
 0x320   : > { %5598 = vst.msk [vmem:[#allocation6 + $0x3f8] sm:$0xf] %vm17229_vm10, %v5583_v50  ;;  %v5582_v14 = vsel %vm17785_vm13, %v5564_v55, %v5581_v16  ;;  %v5657_v60 = vpop.permute.xlu1 %5656  ;;  %v5473_v19 = vpop.permute.xlu0 %5472  ;;  %vm14467_vm6 = vmor %vm17788_vm0, %vm5694_vm2  ;;  %vm17235_vm10 = vcmask 863232   ;;  %vm17794_vm2 = vcmask 1043456  }
 0x321   : > { %5605 = vst.msk [vmem:[#allocation6 + $0x3f8] sm:$0xff] %vm14453_vm1, %v17542_v43  ;;  %5596 = vst [vmem:[#allocation6 + $0x3f0] sm:$0xff] %v5582_v14  ;;  %v5667_v5 = vrot.slane %v5657_v60, 4  ;;  %v17790_v63 = vsel %vm14467_vm6, 4294967295, %v17789_v63  ;;  %v5484_v52 = vrot.slane %v5473_v19, 4 }
 0x322   : > { %17791 = vst [vmem:[#allocation31_spill] sm:$0xff] %v17790_v63  ;;  %vm17792_vm13 = vmmov %vm17786_vm5 }
 0x323   : > { %v5674_v13 = vsel %vm17786_vm5, %v5657_v60, %v5667_v5  ;;  %v5672_v54 = vsel %vm17787_vm12, %v5666_v59, %v5667_v5  ;;  %vm5512_vm5 = vcmask 1044304   ;;  %vm17793_vm12 = vcmask 736256  }
 0x324   : > { %5689 = vst.msk [vmem:[#allocation6 + $0x428] sm:$0xf] %vm17232_vm15, %v5674_v13  ;;  %v5673_v55 = vsel %vm17792_vm13, %v5655_v49, %v5672_v54  ;;  %v5475_v30 = vpop.permute.xlu1 %5474  ;;  %v5382_v11 = vpop.permute.xlu0 %5381  ;;  %vm14479_vm1 = vmor %vm17788_vm0, %vm5512_vm5  ;;  %vm17238_vm15 = vcmask 994304   ;;  %v17802_v13 = vmov 0 }
 0x325   : > { %5696 = vst.msk [vmem:[#allocation6 + $0x428] sm:$0xff] %vm14467_vm6, %v17542_v43  ;;  %5687 = vst [vmem:[#allocation6 + $0x420] sm:$0xff] %v5673_v55  ;;  %v5485_v0 = vrot.slane %v5475_v30, 4  ;;  %v17796_v27 = vsel %vm14479_vm1, 4294967295, %v17795_v27  ;;  %vm5421_vm6 = vcmask 1044432   ;;  %v5393_v14 = vrot.slane %v5382_v11, 4 }
 0x326   : > { %17797 = vst [vmem:[#allocation32_spill] sm:$0xff] %v17796_v27  ;;  %vm17798_vm13 = vmmov %vm17793_vm12 }
 0x327   : > { %v5492_v57 = vsel %vm17793_vm12, %v5475_v30, %v5485_v0  ;;  %v5490_v1 = vsel %vm17794_vm2, %v5484_v52, %v5485_v0  ;;  %vm17799_vm12 = vcmask 867328   ;;  %vm17800_vm5 = vmmov %vm17794_vm2 }
 0x328   : > { %5507 = vst.msk [vmem:[#allocation6 + $0x3c8] sm:$0xf] %vm17235_vm10, %v5492_v57  ;;  %v5491_v49 = vsel %vm17798_vm13, %v5473_v19, %v5490_v1  ;;  %v5384_v50 = vpop.permute.xlu1 %5383  ;;  %v5291_v60 = vpop.permute.xlu0 %5290  ;;  %vm17801_vm2 = vmmov %vm17788_vm0  ;;  %vm17260_vm10 = vcmask 1002496   ;;  %v17809_v57 = vmov 0 }
 0x329   : > { %5514 = vst.msk [vmem:[#allocation6 + $0x3c8] sm:$0xff] %vm14479_vm1, %v17542_v43  ;;  %5505 = vst [vmem:[#allocation6 + $0x3c0] sm:$0xff] %v5491_v49  ;;  %v5394_v16 = vrot.slane %v5384_v50, 4  ;;  %vm5330_vm1 = vcmask 1044440   ;;  %v5302_v30 = vrot.slane %v5291_v60, 4 }
 0x32a   : > { %vm14491_vm0 = vmor %vm17801_vm2, %vm5421_vm6 }
 0x32b   : > { %v5401_v5 = vsel %vm17799_vm12, %v5384_v50, %v5394_v16  ;;  %v5399_v59 = vsel %vm17800_vm5, %v5393_v14, %v5394_v16  ;;  %v17803_v13 = vsel %vm14491_vm0, 4294967295, %v17802_v13  ;;  %vm17805_vm13 = vmmov %vm17799_vm12  ;;  %vm17806_vm12 = vcmask 875520  }
 0x32c   : > { %17804 = vst [vmem:[#allocation33_spill] sm:$0xff] %v17803_v13  ;;  %5416 = vst.msk [vmem:[#allocation6 + $0x398] sm:$0xf] %vm17238_vm15, %v5401_v5  ;;  %v5400_v19 = vsel %vm17805_vm13, %v5382_v11, %v5399_v59  ;;  %v5293_v54 = vpop.permute.xlu1 %5292  ;;  %vm3761_vm15 = vcmask 785408  }
 0x32d   : > { %5423 = vst.msk [vmem:[#allocation6 + $0x398] sm:$0xff] %vm14491_vm0, %v17542_v43  ;;  %5414 = vst [vmem:[#allocation6 + $0x390] sm:$0xff] %v5400_v19  ;;  %v5303_v55 = vrot.slane %v5293_v54, 4 }
 0x32e   : > { %vm17807_vm6 = vmmov %vm17800_vm5 }
 0x32f   : > { %v5310_v0 = vsel %vm17806_vm12, %v5293_v54, %v5303_v55  ;;  %v5308_v52 = vsel %vm17807_vm6, %v5302_v30, %v5303_v55  ;;  %vm17808_vm5 = vmmov %vm17801_vm2 }
 0x330   : > { %vm14503_vm2 = vmor %vm17808_vm5, %vm5330_vm1  ;;  %5325 = vst.msk [vmem:[#allocation6 + $0x368] sm:$0xf] %vm17260_vm10, %v5310_v0  ;;  %vm17813_vm1 = vcmask 130048   ;;  %vm17825_vm5 = vcmask 318464   ;;  %vm17844_vm10 = vcmask 150528  }
 0x331   : > { %v17810_v57 = vsel %vm14503_vm2, 4294967295, %v17809_v57  ;;  %vm17812_vm13 = vmmov %vm17806_vm12  ;;  %5332 = vst.msk [vmem:[#allocation6 + $0x368] sm:$0xff] %vm14503_vm2, %v17542_v43  ;;  %vm3733_vm12 = vcmask 916480  }
 0x332   : > { %17811 = vst [vmem:[#allocation34_spill] sm:$0xff] %v17810_v57  ;;  %v5309_v11 = vsel %vm17812_vm13, %v5291_v60, %v5308_v52  ;;  %vm17814_vm6 = vmmov %vm17813_vm1  ;;  %vm17826_vm13 = vcmask 306176  }
 0x333   : > { %5323 = vst [vmem:[#allocation6 + $0x360] sm:$0xff] %v5309_v11  ;;  %v3754_v1 = vpop.permute.xlu0 %3753 }
 0x335   : > { %v3756_v49 = vpop.permute.xlu1 %3755 }
 0x336   : > { %v3762_v50 = vsel %vm3761_vm15, %v3754_v1, %v3756_v49 }
 0x337   : > { %v3728_v16 = vpop.permute.xlu0 %3727 }
 0x338   : > { %v3734_v14 = vsel %vm3733_vm12, %v14262_v41, %v3728_v16 }
 0x339   : > { %v3730_v5 = vpop.permute.xlu1 %3729 }
 0x33a   : > { %v3735_v59 = vsel %vm3733_vm12, %v3728_v16, %v3730_v5 }
 0x33b   : > { %v3732_v19 = vpop.permute.xlu0 %3731  ;;  %v14514_v54 = vpack.c.bf16 %v3735_v59, %v3734_v14  ;;  %v4011_v14 = vld [vmem:[#allocation5 + $0x10] sm:$0xff]  ;;  %v5153_v59 = vld [vmem:[#allocation5] sm:$0xff] }
 0x33c   : > { %v3736_v60 = vsel %vm3733_vm12, %v3730_v5, %v3732_v19  ;;  %3744 = vst.msk [vmem:[#allocation5 + $0x38] sm:$0xff] %vm17813_vm1, %v3732_v19  ;;  %v14612_v5 = vpack.c.bf16 %v4011_v14, %v4011_v14  ;;  %v5154_v19 = vld [vmem:[#allocation5 + $0x8] sm:$0xff]  ;;  %vm17827_vm12 = vcmask 314368   ;;  %vm17828_vm1 = vcmask 326656  }
 0x33d   : > { %3743 = vst [vmem:[#allocation5 + $0x30] sm:$0xff] %v3736_v60  ;;  %4127 = vrot.lane.b32.xlu1 %v14514_v54, %s17489_s18  ;;  %4049 = vrot.lane.b32.xlu0 %v14514_v54, %s17447_s26  ;;  %4785 = vst [vmem:[#allocation6 + $0x250] sm:$0xff] %v14514_v54  ;;  %v14598_v16 = vpack.c.bf16 %v3736_v60, %v3736_v60 }
 0x33f   : > { %v3758_v55 = vpop.permute.xlu0 %3757 }
 0x340   : > { %v3763_v41 = vsel %vm3761_vm15, %v3756_v49, %v3758_v55 }
 0x341   : > { %3971 = vrot.lane.b32.xlu1 %v14514_v54, %s17497_s15  ;;  %3893 = vrot.lane.b32.xlu0 %v14514_v54, %s17449_s25  ;;  %v14527_v30 = vpack.c.bf16 %v3763_v41, %v3762_v50 }
 0x343   : > { %v4738_v0 = vld [vmem:[#allocation5 + $0x38] sm:$0xff]  ;;  %4787 = vst [vmem:[#allocation6 + $0x260] sm:$0xff] %v14527_v30 }
 0x344   : > { %v3760_v52 = vpop.permute.xlu1 %3759  ;;  %v14530_v11 = vpack.c.bf16 %v4738_v0, %v3736_v60  ;;  %v11879_v60 = vpack.c.bf16 %v5154_v19, %v5153_v59 }
 0x345   : > { %3772 = vst.msk [vmem:[#allocation5 + $0x58] sm:$0xff] %vm17814_vm6, %v3760_v52  ;;  %v14534_v1 = vsel %vm3761_vm15, %v3758_v55, %v3760_v52  ;;  %4517 = vrot.lane.b32.xlu0 %v14514_v54, %s17239_s17  ;;  %3813 = vrot.lane.b32.xlu1 %v14514_v54, %s17505_s21  ;;  %s17819_s17 = smov 86   ;;  %v5156_v55 = vld [vmem:[#allocation5 + $0x18] sm:$0xff]  ;;  %vm17824_vm15 = vcmask 310272   ;;  %vm17829_vm6 = vcmask 334848  }
 0x346   : > { %4786 = vst.msk [vmem:[#allocation6 + $0x258] sm:$0xff] %vm14177_vm7, %v14530_v11  ;;  %3771 = vst [vmem:[#allocation5 + $0x50] sm:$0xff] %v14534_v1  ;;  %v14621_v41 = vpack.c.bf16 %v5156_v55, %v4011_v14 }
 0x349   : > { %5021 = vrot.lane.b32.xlu0 %v14514_v54, %s17815_s16  ;;  %4605 = vrot.lane.b32.xlu1 %v14514_v54, %s17816_s23 }
 0x34c   : > { %v4742_v49 = vld [vmem:[#allocation5 + $0x58] sm:$0xff] }
 0x34d   : > { %v14549_v50 = vpack.c.bf16 %v4742_v49, %v14534_v1  ;;  %4361 = vrot.lane.b32.xlu0 %v14514_v54, %s17445_s29  ;;  %4439 = vrot.lane.b32.xlu1 %v14514_v54, %s17817_s9 }
 0x34f   : > { %4788 = vst.msk [vmem:[#allocation6 + $0x268] sm:$0xff] %vm14177_vm7, %v14549_v50 }
 0x351   : > { %4930 = vrot.lane.b32.xlu0 %v14514_v54, %s17818_s11  ;;  %5023 = vrot.lane.b32.xlu1 %v14530_v11, %s17815_s16 }
 0x355   : > { %4839 = vrot.lane.b32.xlu0 %v14514_v54, %s17695_s13  ;;  %4932 = vrot.lane.b32.xlu1 %v14530_v11, %s17818_s11 }
 0x359   : > { %4205 = vrot.lane.b32.xlu0 %v14514_v54, %s17446_s30  ;;  %4283 = vrot.lane.b32.xlu1 %v14514_v54, %s17477_s10 }
 0x35d   : > { %5840 = vrot.lane.b32.xlu0 %v14514_v54, %s17819_s17  ;;  %4841 = vrot.lane.b32.xlu1 %v14530_v11, %s17695_s13 }
 0x361   : > { %4693 = vrot.lane.b32.xlu0 %v14514_v54, %s17696_s19  ;;  %5842 = vrot.lane.b32.xlu1 %v14530_v11, %s17819_s17 }
 0x365   : > { %5749 = vrot.lane.b32.xlu0 %v14514_v54, %s17697_s22  ;;  %5751 = vrot.lane.b32.xlu1 %v14530_v11, %s17697_s22 }
 0x369   : > { %5658 = vrot.lane.b32.xlu0 %v14514_v54, %s17699_s20  ;;  %5660 = vrot.lane.b32.xlu1 %v14530_v11, %s17699_s20 }
 0x36d   : > { %5476 = vrot.lane.b32.xlu0 %v14514_v54, %s17469_s24  ;;  %5478 = vrot.lane.b32.xlu1 %v14530_v11, %s17469_s24 }
 0x371   : > { %5567 = vrot.lane.b32.xlu0 %v14514_v54, %s17698_s14  ;;  %5569 = vrot.lane.b32.xlu1 %v14530_v11, %s17698_s14 }
 0x375   : > { %5385 = vrot.lane.b32.xlu0 %v14514_v54, %s17820_s0  ;;  %5387 = vrot.lane.b32.xlu1 %v14530_v11, %s17820_s0 }
 0x379   : > { %5294 = vrot.lane.b32.xlu0 %v14514_v54, %s17475_s12  ;;  %4129 = vrot.lane.b32.xlu1 %v14598_v16, %s17489_s18 }
 0x37d   : > { %5296 = vrot.lane.b32.xlu1 %v14530_v11, %s17475_s12  ;;  %4051 = vrot.lane.b32.xlu0 %v14598_v16, %s17447_s26 }
 0x381   : > { %5205 = vrot.lane.b32.xlu1 %v14530_v11, %s17821_s1  ;;  %4131 = vrot.lane.b32.xlu0 %v14527_v30, %s17489_s18 }
 0x385   : > { %4047 = vrot.lane.b32.xlu1 %v14612_v5, %s17447_s26  ;;  %5203 = vrot.lane.b32.xlu0 %v14514_v54, %s17821_s1 }
 0x389   : > { %5199 = vrot.lane.b32.xlu0 %v11879_v60, %s17821_s1  ;;  %4053 = vrot.lane.b32.xlu1 %v14527_v30, %s17447_s26 }
 0x38d   : > { %5201 = vrot.lane.b32.xlu1 %v14621_v41, %s17821_s1  ;;  %3975 = vrot.lane.b32.xlu0 %v14527_v30, %s17497_s15 }
 0x391   : > { %3973 = vrot.lane.b32.xlu1 %v14598_v16, %s17497_s15  ;;  %3969 = vrot.lane.b32.xlu0 %v14612_v5, %s17497_s15 }
 0x395   : > { %5108 = vrot.lane.b32.xlu0 %v11879_v60, %s17822_s2  ;;  %3897 = vrot.lane.b32.xlu1 %v14527_v30, %s17449_s25 }
 0x399   : > { %5110 = vrot.lane.b32.xlu1 %v14621_v41, %s17822_s2  ;;  %3817 = vrot.lane.b32.xlu0 %v14527_v30, %s17505_s21 }
 0x39d   : > { %4521 = vrot.lane.b32.xlu1 %v14527_v30, %s17823_s27  ;;  %4443 = vrot.lane.b32.xlu0 %v14527_v30, %s17817_s9 }
 0x3a1   : > { %4365 = vrot.lane.b32.xlu1 %v14527_v30, %s17445_s29  ;;  %5025 = vrot.lane.b32.xlu0 %v14527_v30, %s17815_s16 }
 0x3a5   : > { %4209 = vrot.lane.b32.xlu1 %v14527_v30, %s17446_s30  ;;  %4934 = vrot.lane.b32.xlu0 %v14527_v30, %s17818_s11 }
 0x3a9   : > { %4697 = vrot.lane.b32.xlu1 %v14527_v30, %s17696_s19  ;;  %4287 = vrot.lane.b32.xlu0 %v14527_v30, %s17477_s10 }
 0x3ad   : > { %5027 = vrot.lane.b32.xlu1 %v14549_v50, %s17815_s16  ;;  %4843 = vrot.lane.b32.xlu0 %v14527_v30, %s17695_s13 }
 0x3af   : > { %v14658_v0 = vpop.permute.xlu1 %4127  ;;  %v14660_v52 = vpop.permute.xlu0 %4049 }
 0x3b0   : > { %v17259_v49 = vrot.slane %v14658_v0, 4  ;;  %v17258_v14 = vrot.slane %v14660_v52, 4 }
 0x3b1   : > { %4936 = vrot.lane.b32.xlu1 %v14549_v50, %s17818_s11  ;;  %5844 = vrot.lane.b32.xlu0 %v14527_v30, %s17819_s17 }
 0x3b2   : > { %v4144_v59 = vsel %vm17824_vm15, %v17259_v49, %v14658_v0  ;;  %v4066_v19 = vsel %vm17825_vm5, %v17258_v14, %v14660_v52  ;;  %vm17830_vm15 = vcmask 322560   ;;  %vm17831_vm5 = vcmask 330752  }
 0x3b3   : > { %4158 = vst.msk [vmem:[#allocation6 + $0xd0] sm:$0xff] %vm12951_vm3, %v4144_v59  ;;  %v14680_v60 = vpop.permute.xlu1 %3971  ;;  %v14682_v55 = vpop.permute.xlu0 %3893 }
 0x3b4   : > { %4080 = vst.msk [vmem:[#allocation6 + $0xa0] sm:$0xff] %vm12903_vm9, %v4066_v19  ;;  %v17255_v61 = vrot.slane %v14680_v60, 4  ;;  %v17249_v21 = vrot.slane %v14682_v55, 4 }
 0x3b5   : > { %4163 = vst.msk [vmem:[#allocation6 + $0xd0] sm:$0xf] %vm17826_vm13, %v17542_v43  ;;  %4845 = vrot.lane.b32.xlu1 %v14549_v50, %s17695_s13  ;;  %5753 = vrot.lane.b32.xlu0 %v14527_v30, %s17697_s22  ;;  %vm17832_vm13 = vcmask 343040  }
 0x3b6   : > { %4085 = vst.msk [vmem:[#allocation6 + $0xa0] sm:$0xf] %vm17827_vm12, %v17542_v43  ;;  %v3988_v59 = vsel %vm17828_vm1, %v17255_v61, %v14680_v60  ;;  %v3910_v19 = vsel %vm17829_vm6, %v17249_v21, %v14682_v55  ;;  %vm17833_vm12 = vcmask 146432   ;;  %vm17834_vm1 = vnez %v17728_v31  ;;  %v12231_v61 = vld [vmem:[%s17042_s3 + $0x4] ss:$20 sps:$4 sm:$0xff]  }
 0x3b7   : > { %4002 = vst.msk [vmem:[#allocation6 + $0x70] sm:$0xff] %vm12979_vm14, %v3988_v59  ;;  %v14706_v46 = vpop.permute.xlu1 %3813  ;;  %v14708_v42 = vpop.permute.xlu0 %4517  ;;  %vm17835_vm6 = vcmask 338944   ;;  %6901 = vmatprep.mubr.bf16.mxu1 %v12231_v61 }
 0x3b8   : > { %3924 = vst.msk [vmem:[#allocation6 + $0x40] sm:$0xff] %vm17721_vm8, %v3910_v19  ;;  %v17250_v56 = vrot.slane %v14706_v46, 4  ;;  %v17251_v62 = vrot.slane %v14708_v42, 4 }
 0x3b9   : > { %4007 = vst.msk [vmem:[#allocation6 + $0x70] sm:$0xf] %vm17830_vm15, %v17542_v43  ;;  %5846 = vrot.lane.b32.xlu1 %v14549_v50, %s17819_s17  ;;  %4609 = vrot.lane.b32.xlu0 %v14527_v30, %s17816_s23  ;;  %vm17836_vm15 = vcmask 142336  }
 0x3ba   : > { %3929 = vst.msk [vmem:[#allocation6 + $0x40] sm:$0xf] %vm17831_vm5, %v17542_v43  ;;  %v3830_v59 = vsel %vm17832_vm13, %v17250_v56, %v14706_v46  ;;  %v4534_v19 = vsel %vm17833_vm12, %v17251_v62, %v14708_v42  ;;  %vm17837_vm5 = vcmask 15360   ;;  %vm17838_vm13 = vnez %v17722_v6 }
 0x3bb   : > { %3846 = vst.msk [vmem:[#allocation6 + $0x10] sm:$0xff] %vm12999_vm4, %v3830_v59  ;;  %v14732_v47 = vpop.permute.xlu1 %4605  ;;  %v5022_v21 = vpop.permute.xlu0 %5021  ;;  %vm17839_vm12 = vcmask 11264  }
 0x3bc   : > { %4548 = vst.msk [vmem:[#allocation6 + $0x1c0] sm:$0xff] %vm17834_vm1, %v4534_v19  ;;  %v17256_v56 = vrot.slane %v14732_v47, 4  ;;  %v5031_v49 = vrot.slane %v5022_v21, 4 }
 0x3bd   : > { %3851 = vst.msk [vmem:[#allocation6 + $0x10] sm:$0xf] %vm17835_vm6, %v17542_v43  ;;  %5755 = vrot.lane.b32.xlu1 %v14549_v50, %s17697_s22  ;;  %5662 = vrot.lane.b32.xlu0 %v14527_v30, %s17699_s20  ;;  %vm17840_vm6 = vcmask 154624  }
 0x3be   : > { %4553 = vst.msk [vmem:[#allocation6 + $0x1c0] sm:$0xf] %vm17836_vm15, %v17542_v43  ;;  %v4622_v59 = vsel %vm17837_vm5, %v17256_v56, %v14732_v47  ;;  %vm17841_vm15 = vcmask 162816   ;;  %vm17842_vm5 = vnez %v17730_v15 }
 0x3bf   : > { %4636 = vst.msk [vmem:[#allocation6 + $0x1f0] sm:$0xff] %vm17838_vm13, %v4622_v59  ;;  %v14749_v19 = vpop.permute.xlu1 %4439  ;;  %v14751_v62 = vpop.permute.xlu0 %4361  ;;  %vm17847_vm13 = vcmask 900096  }
 0x3c0   : > { %4641 = vst.msk [vmem:[#allocation6 + $0x1f0] sm:$0xf] %vm17839_vm12, %v17542_v43  ;;  %v17261_v28 = vrot.slane %v14749_v19, 4  ;;  %v17262_v40 = vrot.slane %v14751_v62, 4  ;;  %vm17843_vm12 = vnez %v17741_v7 }
 0x3c1   : > { %5664 = vrot.lane.b32.xlu1 %v14549_v50, %s17699_s20  ;;  %5480 = vrot.lane.b32.xlu0 %v14527_v30, %s17469_s24 }
 0x3c2   : > { %v4456_v59 = vsel %vm17840_vm6, %v17261_v28, %v14749_v19  ;;  %v4378_v56 = vsel %vm17841_vm15, %v17262_v40, %v14751_v62  ;;  %vm17845_vm6 = vcmask 158720   ;;  %vm17846_vm15 = vcmask 1043456  }
 0x3c3   : > { %4470 = vst.msk [vmem:[#allocation6 + $0x190] sm:$0xff] %vm17842_vm5, %v4456_v59  ;;  %v5024_v23 = vpop.permute.xlu1 %5023  ;;  %v4931_v14 = vpop.permute.xlu0 %4930  ;;  %vm17849_vm5 = vcmask 1027072  }
 0x3c4   : > { %4392 = vst.msk [vmem:[#allocation6 + $0x160] sm:$0xff] %vm17843_vm12, %v4378_v56  ;;  %v5032_v28 = vrot.slane %v5024_v23, 4  ;;  %vm17848_vm12 = vmmov %vm17847_vm13  ;;  %v4940_v45 = vrot.slane %v4931_v14, 4 }
 0x3c5   : > { %4475 = vst.msk [vmem:[#allocation6 + $0x190] sm:$0xf] %vm17844_vm10, %v17542_v43  ;;  %5482 = vrot.lane.b32.xlu1 %v14549_v50, %s17469_s24  ;;  %5571 = vrot.lane.b32.xlu0 %v14527_v30, %s17698_s14  ;;  %vm17850_vm10 = vnez %v17735_v25 }
 0x3c6   : > { %4397 = vst.msk [vmem:[#allocation6 + $0x160] sm:$0xf] %vm17845_vm6, %v17542_v43  ;;  %v5038_v61 = vsel %vm17846_vm15, %v5031_v49, %v5032_v28  ;;  %v5040_v56 = vsel %vm17847_vm13, %v5024_v23, %v5032_v28  ;;  %vm17851_vm13 = vmmov %vm17846_vm15  ;;  %vm17857_vm15 = vcmask 126064  }
 0x3c7   : > { %v14787_v59 = vsel %vm17848_vm12, %v5022_v21, %v5038_v61  ;;  %5054 = vst.msk [vmem:[#allocation6 + $0x2e8] sm:$0xf] %vm17849_vm5, %v5040_v56  ;;  %v4933_v40 = vpop.permute.xlu1 %4932  ;;  %v4840_v38 = vpop.permute.xlu0 %4839  ;;  %vm17852_vm12 = vcmask 1031168   ;;  %vm17854_vm5 = vnez %v17747_v24 }
 0x3c8   : > { %5060 = vst.msk [vmem:[#allocation6 + $0x2e8] sm:$0xff] %vm17850_vm10, %v17542_v43  ;;  %v4941_v4 = vrot.slane %v4933_v40, 4  ;;  %vm17853_vm6 = vmmov %vm17852_vm12  ;;  %vm17863_vm10 = vcmask 175104  }
 0x3c9   : > { %5573 = vrot.lane.b32.xlu1 %v14549_v50, %s17698_s14  ;;  %5389 = vrot.lane.b32.xlu0 %v14527_v30, %s17820_s0 }
 0x3ca   : > { %v4947_v23 = vsel %vm17851_vm13, %v4940_v45, %v4941_v4  ;;  %v4949_v28 = vsel %vm17852_vm12, %v4933_v40, %v4941_v4  ;;  %vm17858_vm13 = vcmask 171008   ;;  %vm17859_vm12 = vcmask 179200  }
 0x3cb   : > { %v4948_v21 = vsel %vm17853_vm6, %v4931_v14, %v4947_v23  ;;  %4964 = vst.msk [vmem:[#allocation6 + $0x2b8] sm:$0xff] %vm17854_vm5, %v4949_v28  ;;  %v14802_v49 = vpop.permute.xlu1 %4283  ;;  %v14804_v61 = vpop.permute.xlu0 %4205  ;;  %vm17860_vm6 = vnez %v17752_v58  ;;  %v4849_v23 = vrot.slane %v4840_v38, 4  ;;  %vm17862_vm5 = vcmask 166912  }
 0x3cc   : > { %17855 = vst [vmem:[#allocation35_spill] sm:$0xff] %v14802_v49  ;;  %17856 = vst [vmem:[#allocation36_spill] sm:$0xff] %v14804_v61  ;;  %v17272_v56 = vrot.slane %v14802_v49, 4  ;;  %v17271_v2 = vrot.slane %v14804_v61, 4 }
 0x3cd   : > { %4963 = vst [vmem:[#allocation6 + $0x2b0] sm:$0xff] %v4948_v21  ;;  %4969 = vst.msk [vmem:[#allocation6 + $0x2bc] sm:$0xf] %vm17857_vm15, %v17542_v43  ;;  %5391 = vrot.lane.b32.xlu1 %v14549_v50, %s17820_s0  ;;  %5298 = vrot.lane.b32.xlu0 %v14527_v30, %s17475_s12  ;;  %vm17861_vm15 = vnez %v17708_v3 }
 0x3ce   : > { %v4300_v4 = vsel %vm17858_vm13, %v17272_v56, %v14802_v49  ;;  %v4222_v45 = vsel %vm17859_vm12, %v17271_v2, %v14804_v61  ;;  %vm17864_vm13 = vcmask 1043456   ;;  %vm17865_vm12 = vcmask 1039360  }
 0x3cf   : > { %4314 = vst.msk [vmem:[#allocation6 + $0x130] sm:$0xff] %vm17860_vm6, %v4300_v4  ;;  %v4842_v40 = vpop.permute.xlu1 %4841  ;;  %v5841_v14 = vpop.permute.xlu0 %5840  ;;  %vm17866_vm6 = vmmov %vm17865_vm12 }
 0x3d0   : > { %4236 = vst.msk [vmem:[#allocation6 + $0x100] sm:$0xff] %vm17861_vm15, %v4222_v45  ;;  %v4850_v28 = vrot.slane %v4842_v40, 4  ;;  %vm17867_vm15 = vnez %v17756_v9 }
 0x3d1   : > { %4319 = vst.msk [vmem:[#allocation6 + $0x130] sm:$0xf] %vm17862_vm5, %v17542_v43  ;;  %5114 = vrot.lane.b32.xlu1 %v14530_v11, %s17822_s2  ;;  %5207 = vrot.lane.b32.xlu0 %v14527_v30, %s17821_s1  ;;  %v5850_v11 = vrot.slane %v5841_v14, 4  ;;  %vm17869_vm5 = vmmov %vm17864_vm13 }
 0x3d2   : > { %4241 = vst.msk [vmem:[#allocation6 + $0x100] sm:$0xf] %vm17863_vm10, %v17542_v43  ;;  %v4856_v21 = vsel %vm17864_vm13, %v4849_v23, %v4850_v28  ;;  %v4858_v4 = vsel %vm17865_vm12, %v4842_v40, %v4850_v28  ;;  %vm17868_vm10 = vcmask 126072   ;;  %vm17871_vm13 = vcmask 7168  }
 0x3d3   : > { %v14837_v45 = vsel %vm17866_vm6, %v4840_v38, %v4856_v21  ;;  %4873 = vst.msk [vmem:[#allocation6 + $0x288] sm:$0xff] %vm17867_vm15, %v4858_v4  ;;  %v5843_v2 = vpop.permute.xlu1 %5842  ;;  %v14841_v56 = vpop.permute.xlu0 %4693  ;;  %vm17870_vm6 = vcmask 703488  }
 0x3d4   : > { %4878 = vst.msk [vmem:[#allocation6 + $0x28c] sm:$0xf] %vm17868_vm10, %v17542_v43  ;;  %v5851_v61 = vrot.slane %v5843_v2, 4  ;;  %v17275_v17 = vrot.slane %v14841_v56, 4  ;;  %vm17872_vm12 = vmmov %vm17870_vm6  ;;  %vm17873_vm10 = vcmask 830464  }
 0x3d5   : > { %3891 = vrot.lane.b32.xlu1 %v14612_v5, %s17449_s25  ;;  %5116 = vrot.lane.b32.xlu0 %v14527_v30, %s17822_s2  ;;  %v14862_v30 = vpack.c.bf16 %v14534_v1, %v14534_v1 }
 0x3d6   : > { %v5857_v38 = vsel %vm17869_vm5, %v5850_v11, %v5851_v61  ;;  %v5859_v40 = vsel %vm17870_vm6, %v5843_v2, %v5851_v61  ;;  %v4710_v23 = vsel %vm17871_vm13, %v17275_v17, %v14841_v56  ;;  %vm17874_vm5 = vnez %v17763_v32 }
 0x3d7   : > { %v5858_v28 = vsel %vm17872_vm12, %v5841_v14, %v5857_v38  ;;  %5873 = vst.msk [vmem:[#allocation6 + $0x498] sm:$0xf] %vm17873_vm10, %v5859_v40  ;;  %v5752_v21 = vpop.permute.xlu1 %5751  ;;  %v5750_v4 = vpop.permute.xlu0 %5749  ;;  %vm17875_vm6 = vcmask 3072   ;;  %vm17876_vm13 = vcmask 711680   ;;  %vm17877_vm12 = vcmask 1043456  }
 0x3d8   : > { %4724 = vst.msk [vmem:[#allocation6 + $0x220] sm:$0xff] %vm17770_vm11, %v4710_v23  ;;  %5872 = vst [vmem:[#allocation6 + $0x490] sm:$0xff] %v5858_v28  ;;  %v5760_v2 = vrot.slane %v5752_v21, 4  ;;  %v5759_v61 = vrot.slane %v5750_v4, 4  ;;  %vm17878_vm10 = vcmask 838656  }
 0x3d9   : > { %5879 = vst.msk [vmem:[#allocation6 + $0x498] sm:$0xff] %vm17874_vm5, %v17542_v43  ;;  %5300 = vrot.lane.b32.xlu1 %v14549_v50, %s17475_s12  ;;  %4133 = vrot.lane.b32.xlu0 %v14862_v30, %s17489_s18  ;;  %vm17879_vm15 = vmmov %vm17876_vm13  ;;  %vm17904_vm5 = vcmask 318464  }
 0x3da   : > { %4729 = vst.msk [vmem:[#allocation6 + $0x220] sm:$0xf] %vm17875_vm6, %v17542_v43  ;;  %v5768_v14 = vsel %vm17876_vm13, %v5752_v21, %v5760_v2  ;;  %v5766_v1 = vsel %vm17877_vm12, %v5759_v61, %v5760_v2  ;;  %vm17880_vm6 = vnez %v17776_v29  ;;  %vm17881_vm13 = vcmask 719872  }
 0x3db   : > { %5782 = vst.msk [vmem:[#allocation6 + $0x468] sm:$0xf] %vm17878_vm10, %v5768_v14  ;;  %v5767_v11 = vsel %vm17879_vm15, %v5750_v4, %v5766_v1  ;;  %v5661_v38 = vpop.permute.xlu1 %5660  ;;  %v5659_v40 = vpop.permute.xlu0 %5658  ;;  %vm17882_vm15 = vcmask 846848   ;;  %vm17883_vm10 = vmmov %vm17881_vm13 }
 0x3dc   : > { %5788 = vst.msk [vmem:[#allocation6 + $0x468] sm:$0xff] %vm17880_vm6, %v17542_v43  ;;  %5781 = vst [vmem:[#allocation6 + $0x460] sm:$0xff] %v5767_v11  ;;  %v5669_v23 = vrot.slane %v5661_v38, 4  ;;  %v5668_v28 = vrot.slane %v5659_v40, 4  ;;  %vm17884_vm6 = vnez %v17790_v63 }
 0x3dd   : > { %4055 = vrot.lane.b32.xlu1 %v14862_v30, %s17447_s26  ;;  %5112 = vrot.lane.b32.xlu0 %v14514_v54, %s17822_s2 }
 0x3de   : > { %v5677_v21 = vsel %vm17881_vm13, %v5661_v38, %v5669_v23  ;;  %v5675_v2 = vsel %vm17877_vm12, %v5668_v28, %v5669_v23  ;;  %vm17885_vm13 = vcmask 736256  }
 0x3df   : > { %5691 = vst.msk [vmem:[#allocation6 + $0x438] sm:$0xf] %vm17882_vm15, %v5677_v21  ;;  %v5676_v4 = vsel %vm17883_vm10, %v5659_v40, %v5675_v2  ;;  %v5479_v61 = vpop.permute.xlu1 %5478  ;;  %v5477_v14 = vpop.permute.xlu0 %5476  ;;  %vm17886_vm15 = vcmask 863232   ;;  %vm17887_vm10 = vmmov %vm17885_vm13 }
 0x3e0   : > { %5697 = vst.msk [vmem:[#allocation6 + $0x438] sm:$0xff] %vm17884_vm6, %v17542_v43  ;;  %5690 = vst [vmem:[#allocation6 + $0x430] sm:$0xff] %v5676_v4  ;;  %v5487_v1 = vrot.slane %v5479_v61, 4  ;;  %v5486_v11 = vrot.slane %v5477_v14, 4  ;;  %vm17888_vm6 = vnez %v17796_v27  ;;  %v12270_v4 = vld [vmem:[%s17042_s3 + $0xc] ss:$20 sps:$4 sm:$0xff]  }
 0x3e1   : > { %5209 = vrot.lane.b32.xlu1 %v14549_v50, %s17821_s1  ;;  %3895 = vrot.lane.b32.xlu0 %v14598_v16, %s17449_s25 }
 0x3e2   : > { %v5495_v54 = vsel %vm17885_vm13, %v5479_v61, %v5487_v1  ;;  %v5493_v38 = vsel %vm17877_vm12, %v5486_v11, %v5487_v1  ;;  %vm17889_vm13 = vcmask 728064   ;;  %6952 = vmatprep.mubr.bf16.mxu0 %v12270_v4  ;;  %v4562_v4 = vld [vmem:[#allocation5 + $0x38] sm:$0xff] }
 0x3e3   : > { %5509 = vst.msk [vmem:[#allocation6 + $0x3d8] sm:$0xf] %vm17886_vm15, %v5495_v54  ;;  %v5494_v40 = vsel %vm17887_vm10, %v5477_v14, %v5493_v38  ;;  %v5570_v23 = vpop.permute.xlu1 %5569  ;;  %v5568_v28 = vpop.permute.xlu0 %5567  ;;  %vm17890_vm15 = vcmask 855040   ;;  %vm17891_vm10 = vmmov %vm17889_vm13 }
 0x3e4   : > { %5515 = vst.msk [vmem:[#allocation6 + $0x3d8] sm:$0xff] %vm17888_vm6, %v17542_v43  ;;  %5508 = vst [vmem:[#allocation6 + $0x3d0] sm:$0xff] %v5494_v40  ;;  %v5578_v21 = vrot.slane %v5570_v23, 4  ;;  %v5577_v2 = vrot.slane %v5568_v28, 4  ;;  %vm17892_vm6 = vnez %v17781_v36 }
 0x3e5   : > { %5118 = vrot.lane.b32.xlu1 %v14549_v50, %s17822_s2  ;;  %3977 = vrot.lane.b32.xlu0 %v14862_v30, %s17497_s15 }
 0x3e6   : > { %v5586_v61 = vsel %vm17889_vm13, %v5570_v23, %v5578_v21  ;;  %v5584_v14 = vsel %vm17877_vm12, %v5577_v2, %v5578_v21  ;;  %vm17893_vm13 = vcmask 867328  }
 0x3e7   : > { %5600 = vst.msk [vmem:[#allocation6 + $0x408] sm:$0xf] %vm17890_vm15, %v5586_v61  ;;  %v5585_v1 = vsel %vm17891_vm10, %v5568_v28, %v5584_v14  ;;  %v5388_v11 = vpop.permute.xlu1 %5387  ;;  %v5386_v54 = vpop.permute.xlu0 %5385  ;;  %vm17894_vm15 = vcmask 994304   ;;  %vm17895_vm10 = vmmov %vm17893_vm13  ;;  %v4561_v61 = vld [vmem:[#allocation5 + $0x30] sm:$0xff] }
 0x3e8   : > { %5606 = vst.msk [vmem:[#allocation6 + $0x408] sm:$0xff] %vm17892_vm6, %v17542_v43  ;;  %5599 = vst [vmem:[#allocation6 + $0x400] sm:$0xff] %v5585_v1  ;;  %v5396_v50 = vrot.slane %v5388_v11, 4  ;;  %v5395_v38 = vrot.slane %v5386_v54, 4  ;;  %v14927_v14 = vld [vmem:[#allocation5 + $0x50] sm:$0xff]  ;;  %v17896_v1 = vrot.slane %v14658_v0, 4  ;;  %v14956_v48 = vpack.c.bf16 %v4561_v61, %v4561_v61 }
 0x3e9   : > { %3815 = vrot.lane.b32.xlu1 %v14598_v16, %s17505_s21  ;;  %3811 = vrot.lane.b32.xlu0 %v14612_v5, %s17505_s21  ;;  %vm17903_vm6 = vcmask 1002496  }
 0x3ea   : > { %v5404_v40 = vsel %vm17893_vm13, %v5388_v11, %v5396_v50  ;;  %v5402_v23 = vsel %vm17877_vm12, %v5395_v38, %v5396_v50  ;;  %vm17897_vm13 = vmmov %vm17877_vm12  ;;  %vm17898_vm12 = vcmask 310272  }
 0x3eb   : > { %5418 = vst.msk [vmem:[#allocation6 + $0x3a8] sm:$0xf] %vm17894_vm15, %v5404_v40  ;;  %v5403_v28 = vsel %vm17895_vm10, %v5386_v54, %v5402_v23  ;;  %v4130_v21 = vpop.permute.xlu1 %4129  ;;  %v5295_v2 = vpop.permute.xlu0 %5294  ;;  %v11840_v40 = vpack.c.bf16 %v4562_v4, %v4561_v61  ;;  %v14939_v23 = vpack.c.bf16 %v14927_v14, %v14927_v14  ;;  %vm17899_vm15 = vmmov %vm17897_vm13  ;;  %vm17900_vm10 = vcmask 875520  }
 0x3ec   : > { %5424 = vst.msk [vmem:[#allocation6 + $0x3a8] sm:$0xff] %vm14491_vm0, %v17542_v43  ;;  %5417 = vst [vmem:[#allocation6 + $0x3a0] sm:$0xff] %v5403_v28  ;;  %v4138_v16 = vrot.slane %v4130_v21, 4  ;;  %v17901_v4 = vrot.slane %v14660_v52, 4 }
 0x3ed   : > { %3899 = vrot.lane.b32.xlu1 %v14862_v30, %s17449_s25  ;;  %4603 = vrot.lane.b32.xlu0 %v14621_v41, %s17816_s23  ;;  %v5304_v30 = vrot.slane %v5295_v2, 4  ;;  %vm17902_vm0 = vmmov %vm17900_vm10 }
 0x3ee   : > { %v4145_v11 = vsel %vm17897_vm13, %v17896_v1, %v4138_v16 }
 0x3ef   : > { %v4146_v54 = vsel %vm17898_vm12, %v4145_v11, %v4130_v21  ;;  %v5297_v50 = vpop.permute.xlu1 %5296  ;;  %v4052_v38 = vpop.permute.xlu0 %4051  ;;  %vm5239_vm12 = vcmask 1044448  }
 0x3f0   : > { %4159 = vst.msk [vmem:[#allocation6 + $0xd8] sm:$0xff] %vm14177_vm7, %v4146_v54  ;;  %v5305_v28 = vrot.slane %v5297_v50, 4  ;;  %v4060_v17 = vrot.slane %v4052_v38, 4 }
 0x3f1   : > { %4607 = vrot.lane.b32.xlu1 %v11840_v40, %s17816_s23  ;;  %3819 = vrot.lane.b32.xlu0 %v14939_v23, %s17505_s21 }
 0x3f2   : > { %v5311_v0 = vsel %vm17899_vm15, %v5304_v30, %v5305_v28  ;;  %v5313_v21 = vsel %vm17900_vm10, %v5297_v50, %v5305_v28  ;;  %v4067_v16 = vsel %vm17897_vm13, %v17901_v4, %v4060_v17  ;;  %vm17282_vm15 = vcmask 1010688  }
 0x3f3   : > { %v5312_v1 = vsel %vm17902_vm0, %v5295_v2, %v5311_v0  ;;  %5327 = vst.msk [vmem:[#allocation6 + $0x378] sm:$0xf] %vm17903_vm6, %v5313_v21  ;;  %v4068_v11 = vsel %vm17904_vm5, %v4067_v16, %v4052_v38  ;;  %v5206_v54 = vpop.permute.xlu1 %5205  ;;  %v14954_v49 = vpop.permute.xlu0 %4131  ;;  %vm17905_vm0 = vcmask 130052   ;;  %v17906_v2 = vmov 0 }
 0x3f4   : > { %5326 = vst [vmem:[#allocation6 + $0x370] sm:$0xff] %v5312_v1  ;;  %5333 = vst.msk [vmem:[#allocation6 + $0x378] sm:$0xff] %vm14503_vm2, %v17542_v43  ;;  %v5214_v17 = vrot.slane %v5206_v54, 4  ;;  %v17294_v52 = vrot.slane %v14954_v49, 4  ;;  %vm17909_vm5 = vcmask 883712   ;;  %vm17910_vm10 = vcmask 310272  }
 0x3f5   : > { %4081 = vst.msk [vmem:[#allocation6 + $0xa8] sm:$0xff] %vm14177_vm7, %v4068_v11  ;;  %vm14965_vm6 = vmor %vm17905_vm0, %vm5239_vm12  ;;  %4515 = vrot.lane.b32.xlu1 %v14612_v5, %s17823_s27  ;;  %4519 = vrot.lane.b32.xlu0 %v14956_v48, %s17823_s27  ;;  %vm17911_vm13 = vcmask 306176   ;;  %v17912_v21 = vrot.slane %v14285_v20, 4  ;;  %vm17913_vm12 = vcmask 1043456  }
 0x3f6   : > { %v17907_v2 = vsel %vm14965_vm6, 4294967295, %v17906_v2  ;;  %v5222_v61 = vsel %vm17909_vm5, %v5206_v54, %v5214_v17  ;;  %v4147_v50 = vsel %vm17910_vm10, %v17294_v52, %v14954_v49  ;;  %vm17914_vm0 = vmmov %vm17913_vm12  ;;  %vm17915_vm5 = vcmask 318464   ;;  %v12204_v52 = vld [vmem:[#allocation6 + $0x1e4] ss:$16 sps:$4 sm:$0xff]  }
 0x3f7   : > { %17908 = vst [vmem:[#allocation37_spill] sm:$0xff] %v17907_v2  ;;  %5236 = vst.msk [vmem:[#allocation6 + $0x348] sm:$0xf] %vm17282_vm15, %v5222_v61  ;;  %v4048_v38 = vpop.permute.xlu1 %4047  ;;  %v5204_v30 = vpop.permute.xlu0 %5203  ;;  %vm17916_vm10 = vcmask 883712  }
 0x3f8   : > { %4160 = vst.msk [vmem:[#allocation6 + $0xe0] sm:$0xff] %vm12951_vm3, %v4147_v50  ;;  %v4058_v28 = vrot.slane %v4048_v38, 4  ;;  %v5213_v0 = vrot.slane %v5204_v30, 4 }
 0x3f9   : > { %5242 = vst.msk [vmem:[#allocation6 + $0x348] sm:$0xff] %vm14965_vm6, %v17542_v43  ;;  %4441 = vrot.lane.b32.xlu1 %v14956_v48, %s17817_s9  ;;  %4437 = vrot.lane.b32.xlu0 %v14612_v5, %s17817_s9 }
 0x3fa   : > { %4164 = vst.msk [vmem:[#allocation6 + $0xe0] sm:$0xf] %vm17911_vm13, %v17542_v43  ;;  %v4064_v4 = vsel %vm17913_vm12, %v17912_v21, %v4058_v28  ;;  %v5220_v16 = vsel %vm17914_vm0, %v5213_v0, %v5214_v17  ;;  %vm17917_vm13 = vmmov %vm17915_vm5  ;;  %vm17918_vm12 = vcmask 314368   ;;  %v4654_v21 = vld [vmem:[#allocation5 + $0x58] sm:$0xff] }
 0x3fb   : > { %v4065_v1 = vsel %vm17915_vm5, %v4064_v4, %v4048_v38  ;;  %v5221_v11 = vsel %vm17916_vm10, %v5204_v30, %v5220_v16  ;;  %v14996_v54 = vpop.permute.xlu1 %4053  ;;  %v5200_v61 = vpop.permute.xlu0 %5199  ;;  %vm17919_vm5 = vmmov %vm17916_vm10  ;;  %vm17920_vm10 = vcmask 326656  }
 0x3fc   : > { %4079 = vst.msk [vmem:[#allocation6 + $0x98] sm:$0xff] %vm14177_vm7, %v4065_v1  ;;  %5235 = vst [vmem:[#allocation6 + $0x340] sm:$0xff] %v5221_v11  ;;  %v17280_v50 = vrot.slane %v14996_v54, 4  ;;  %v5211_v28 = vrot.slane %v5200_v61, 4  ;;  %v12183_v11 = vld [vmem:[#allocation6 + $0xc4] ss:$16 sps:$4 sm:$0xff]  }
 0x3fd   : > { %4523 = vrot.lane.b32.xlu1 %v14939_v23, %s17823_s27  ;;  %4695 = vrot.lane.b32.xlu0 %v11840_v40, %s17696_s19 }
 0x3fe   : > { %v4069_v20 = vsel %vm17917_vm13, %v17280_v50, %v14996_v54  ;;  %vm17921_vm13 = vmmov %vm17919_vm5 }
 0x3ff   : > { %4082 = vst.msk [vmem:[#allocation6 + $0xb0] sm:$0xff] %vm12903_vm9, %v4069_v20  ;;  %v5202_v5 = vpop.permute.xlu1 %5201  ;;  %v15010_v17 = vpop.permute.xlu0 %3975  ;;  %v12180_v30 = vld [vmem:[#allocation6 + $0xe4] ss:$16 sps:$4 sm:$0xff]  }
 0x400   : > { %4086 = vst.msk [vmem:[#allocation6 + $0xb0] sm:$0xf] %vm17918_vm12, %v17542_v43  ;;  %v5212_v0 = vrot.slane %v5202_v5, 4  ;;  %v17281_v40 = vrot.slane %v15010_v17, 4  ;;  %6869 = vmatprep.subr.bf16.mxu1 %v12180_v30  ;;  %vm17922_vm12 = vcmask 322560  }
 0x401   : > { %v12178_v38 = vld [vmem:[#allocation6 + $0xe0] ss:$16 sps:$4 sm:$0xff]   ;;  %4691 = vrot.lane.b32.xlu1 %v14621_v41, %s17696_s19  ;;  %4445 = vrot.lane.b32.xlu0 %v14939_v23, %s17817_s9 }
 0x402   : > { %v5217_v4 = vsel %vm17914_vm0, %v5211_v28, %v5212_v0  ;;  %v5219_v16 = vsel %vm17919_vm5, %v5202_v5, %v5212_v0  ;;  %v3991_v1 = vsel %vm17920_vm10, %v17281_v40, %v15010_v17  ;;  %6870 = vmatpush1.bf16.msra.mxu1 %v12178_v38  ;;  %v11848_v28 = vpack.c.bf16 %v4654_v21, %v14927_v14  ;;  %v12181_v30 = vld [vmem:[#allocation6 + $0xc0] ss:$16 sps:$4 sm:$0xff]   ;;  %vm17925_vm5 = vmmov %vm17914_vm0 }
 0x403   : > { %v5218_v20 = vsel %vm17921_vm13, %v5200_v61, %v5217_v4  ;;  %5234 = vst.msk [vmem:[#allocation6 + $0x338] sm:$0xf] %vm17282_vm15, %v5219_v16  ;;  %v3974_v41 = vpop.permute.xlu1 %3973  ;;  %v3970_v50 = vpop.permute.xlu0 %3969  ;;  %6871 = vmatprep.subr.bf16.mxu1 %v12183_v11  ;;  %v17923_v38 = vrot.slane %v14680_v60, 4  ;;  %v17924_v0 = vrot.slane %v14269_v39, 4  ;;  %vm17926_vm13 = vmmov %vm17920_vm10  ;;  %v4323_v60 = vld [vmem:[#allocation5 + $0x10] sm:$0xff]  ;;  %vm17931_vm15 = vcmask 343040  }
 0x404   : > { %4004 = vst.msk [vmem:[#allocation6 + $0x80] sm:$0xff] %vm12979_vm14, %v3991_v1  ;;  %5232 = vst [vmem:[#allocation6 + $0x330] sm:$0xff] %v5218_v20  ;;  %v3982_v5 = vrot.slane %v3974_v41, 4  ;;  %v3980_v61 = vrot.slane %v3970_v50, 4  ;;  %vm17937_vm14 = vcmask 1018880  }
 0x405   : > { %5241 = vst.msk [vmem:[#allocation6 + $0x338] sm:$0xff] %vm14965_vm6, %v17542_v43  ;;  %4699 = vrot.lane.b32.xlu1 %v11848_v28, %s17696_s19  ;;  %4363 = vrot.lane.b32.xlu0 %v14956_v48, %s17445_s29 }
 0x406   : > { %4008 = vst.msk [vmem:[#allocation6 + $0x80] sm:$0xf] %vm17922_vm12, %v17542_v43  ;;  %v3989_v14 = vsel %vm17914_vm0, %v17923_v38, %v3982_v5  ;;  %v3986_v21 = vsel %vm17925_vm5, %v17924_v0, %v3980_v61  ;;  %6872 = vmatpush1.bf16.msra.mxu1 %v12181_v30  ;;  %v12186_v40 = vld [vmem:[#allocation6 + $0xa4] ss:$16 sps:$4 sm:$0xff]   ;;  %vm17927_vm12 = vcmask 334848   ;;  %v11820_v61 = vpack.c.bf16 %v4323_v60, %v4323_v60 }
 0x407   : > { %v3990_v4 = vsel %vm17920_vm10, %v3989_v14, %v3974_v41  ;;  %v3987_v16 = vsel %vm17926_vm13, %v3986_v21, %v3970_v50  ;;  %v15046_v1 = vpop.permute.xlu1 %3897  ;;  %v5109_v11 = vpop.permute.xlu0 %5108  ;;  %v12184_v20 = vld [vmem:[#allocation6 + $0xa0] ss:$16 sps:$4 sm:$0xff]   ;;  %6873 = vmatprep.subr.bf16.mxu1 %v12186_v40  ;;  %vm17928_vm5 = vcmask 330752   ;;  %vm5148_vm10 = vcmask 1044456   ;;  %vm17929_vm13 = vmmov %vm17914_vm0 }
 0x408   : > { %4003 = vst.msk [vmem:[#allocation6 + $0x78] sm:$0xff] %vm14177_vm7, %v3990_v4  ;;  %4001 = vst.msk [vmem:[#allocation6 + $0x68] sm:$0xff] %vm14177_vm7, %v3987_v16  ;;  %v17292_v39 = vrot.slane %v15046_v1, 4  ;;  %v12192_v16 = vld [vmem:[#allocation6 + $0x64] ss:$16 sps:$4 sm:$0xff]  }
 0x409   : > { %4367 = vrot.lane.b32.xlu1 %v14939_v23, %s17445_s29  ;;  %4611 = vrot.lane.b32.xlu0 %v11848_v28, %s17816_s23  ;;  %v5120_v28 = vrot.slane %v5109_v11, 4 }
 0x40a   : > { %v3913_v50 = vsel %vm17927_vm12, %v17292_v39, %v15046_v1  ;;  %6874 = vmatpush1.bf16.msra.mxu1 %v12184_v20  ;;  %vm17930_vm12 = vcmask 891904   ;;  %v17933_v20 = vmov 0 }
 0x40b   : > { %3926 = vst.msk [vmem:[#allocation6 + $0x50] sm:$0xff] %vm17721_vm8, %v3913_v50  ;;  %v5111_v41 = vpop.permute.xlu1 %5110  ;;  %v15062_v5 = vpop.permute.xlu0 %3817  ;;  %v12189_v38 = vld [vmem:[#allocation6 + $0x84] ss:$16 sps:$4 sm:$0xff]   ;;  %vm17936_vm8 = vmmov %vm17930_vm12 }
 0x40c   : > { %3930 = vst.msk [vmem:[#allocation6 + $0x50] sm:$0xf] %vm17928_vm5, %v17542_v43  ;;  %v5121_v14 = vrot.slane %v5111_v41, 4  ;;  %v17291_v0 = vrot.slane %v15062_v5, 4  ;;  %6875 = vmatprep.subr.bf16.mxu1 %v12189_v38  ;;  %vm17932_vm5 = vcmask 130052  }
 0x40d   : > { %v12187_v30 = vld [vmem:[#allocation6 + $0x80] ss:$16 sps:$4 sm:$0xff]   ;;  %4359 = vrot.lane.b32.xlu1 %v11820_v61, %s17445_s29  ;;  %4289 = vrot.lane.b32.xlu0 %v14939_v23, %s17477_s10  ;;  %vm15077_vm0 = vmor %vm17932_vm5, %vm5148_vm10  ;;  %vm17941_vm10 = vnez %v17730_v15  ;;  %vm17944_vm5 = vcmask 162816  }
 0x40e   : > { %v5126_v40 = vsel %vm17929_vm13, %v5120_v28, %v5121_v14  ;;  %v5128_v21 = vsel %vm17930_vm12, %v5111_v41, %v5121_v14  ;;  %v3833_v4 = vsel %vm17931_vm15, %v17291_v0, %v15062_v5  ;;  %v17934_v20 = vsel %vm15077_vm0, 4294967295, %v17933_v20  ;;  %6876 = vmatpush1.bf16.msra.mxu1 %v12187_v30  ;;  %v12190_v28 = vld [vmem:[#allocation6 + $0x60] ss:$16 sps:$4 sm:$0xff]   ;;  %v6042_v0 = vld [vmem:[%s17043_s4 + $0x10] sm:$0xff] }
 0x40f   : > { %17935 = vst [vmem:[#allocation38_spill] sm:$0xff] %v17934_v20  ;;  %v5127_v60 = vsel %vm17936_vm8, %v5109_v11, %v5126_v40  ;;  %5143 = vst.msk [vmem:[#allocation6 + $0x308] sm:$0xf] %vm17937_vm14, %v5128_v21  ;;  %v15085_v50 = vpop.permute.xlu1 %4521  ;;  %v15087_v41 = vpop.permute.xlu0 %4443  ;;  %vm17938_vm15 = vcmask 338944   ;;  %6877 = vmatprep.subr.bf16.mxu1 %v12192_v16  ;;  %vm17939_vm14 = vcmask 146432   ;;  %vm17940_vm8 = vcmask 154624  }
 0x410   : > { %3848 = vst.msk [vmem:[#allocation6 + $0x20] sm:$0xff] %vm12999_vm4, %v3833_v4  ;;  %5141 = vst [vmem:[#allocation6 + $0x300] sm:$0xff] %v5127_v60  ;;  %v17290_v11 = vrot.slane %v15085_v50, 4  ;;  %v17288_v38 = vrot.slane %v15087_v41, 4  ;;  %vm17942_vm13 = vcmask 142336   ;;  %vm17943_vm12 = vcmask 150528  }
 0x411   : > { %5150 = vst.msk [vmem:[#allocation6 + $0x308] sm:$0xff] %vm15077_vm0, %v17542_v43  ;;  %4285 = vrot.lane.b32.xlu1 %v14956_v48, %s17477_s10  ;;  %4281 = vrot.lane.b32.xlu0 %v11820_v61, %s17477_s10  ;;  %vm17974_vm4 = vnez %v17722_v6  ;;  %v12248_v6 = vld [vmem:[#allocation6 + $0x424] ss:$16 sps:$4 sm:$0xff]  }
 0x412   : > { %3852 = vst.msk [vmem:[#allocation6 + $0x20] sm:$0xf] %vm17938_vm15, %v17542_v43  ;;  %v4537_v30 = vsel %vm17939_vm14, %v17290_v11, %v15085_v50  ;;  %v4459_v14 = vsel %vm17940_vm8, %v17288_v38, %v15087_v41  ;;  %6878 = vmatpush1.bf16.msra.mxu1 %v12190_v28  ;;  %v12195_v4 = vld [vmem:[#allocation6 + $0x44] ss:$16 sps:$4 sm:$0xff]   ;;  %vm17945_vm15 = vnez %v17741_v7  ;;  %vm17946_vm14 = vcmask 158720   ;;  %v8450_v7 = vld [vmem:[#allocation8 + $0x58] sm:$0xff] }
 0x413   : > { %4550 = vst.msk [vmem:[#allocation6 + $0x1d0] sm:$0xff] %vm17834_vm1, %v4537_v30  ;;  %v15111_v40 = vpop.permute.xlu1 %4365  ;;  %v5026_v61 = vpop.permute.xlu0 %5025  ;;  %v12193_v21 = vld [vmem:[#allocation6 + $0x40] ss:$16 sps:$4 sm:$0xff]   ;;  %6879 = vmatprep.subr.bf16.mxu1 %v12195_v4  ;;  %v6040_v30 = vld [vmem:[%s17043_s4] sm:$0xff]  ;;  %vm17947_vm8 = vcmask 179200   ;;  %vm17969_vm1 = vcmask 126072  }
 0x414   : > { %4472 = vst.msk [vmem:[#allocation6 + $0x1a0] sm:$0xff] %vm17941_vm10, %v4459_v14  ;;  %v17289_v16 = vrot.slane %v15111_v40, 4  ;;  %v6041_v28 = vld [vmem:[%s17043_s4 + $0x8] sm:$0xff]  ;;  %v5033_v15 = vrot.slane %v5026_v61, 4  ;;  %vm17968_vm10 = vnez %v17756_v9 }
 0x415   : > { %4554 = vst.msk [vmem:[#allocation6 + $0x1d0] sm:$0xf] %vm17942_vm13, %v17542_v43  ;;  %4211 = vrot.lane.b32.xlu1 %v14939_v23, %s17446_s30  ;;  %4207 = vrot.lane.b32.xlu0 %v14956_v48, %s17446_s30  ;;  %vm17948_vm13 = vnez %v17708_v3 }
 0x416   : > { %4476 = vst.msk [vmem:[#allocation6 + $0x1a0] sm:$0xf] %vm17943_vm12, %v17542_v43  ;;  %v4381_v60 = vsel %vm17944_vm5, %v17289_v16, %v15111_v40  ;;  %6880 = vmatpush1.bf16.msra.mxu1 %v12193_v21  ;;  %v15141_v16 = vld [vmem:[#allocation8] sm:$0xff]  ;;  %vm17949_vm12 = vcmask 175104   ;;  %vm17950_vm5 = vcmask 7168  }
 0x417   : > { %4394 = vst.msk [vmem:[#allocation6 + $0x170] sm:$0xff] %vm17945_vm15, %v4381_v60  ;;  %v15134_v23 = vpop.permute.xlu1 %4209  ;;  %v15136_v48 = vpop.permute.xlu0 %4934  ;;  %v12198_v38 = vld [vmem:[#allocation6 + $0x24] ss:$16 sps:$4 sm:$0xff]   ;;  %v15145_v11 = vpack.c.bf16 %v15141_v16, %v15141_v16  ;;  %vm17959_vm15 = vnez %v17735_v25 }
 0x418   : > { %4398 = vst.msk [vmem:[#allocation6 + $0x170] sm:$0xf] %vm17946_vm14, %v17542_v43  ;;  %v17293_v4 = vrot.slane %v15134_v23, 4  ;;  %6881 = vmatprep.subr.bf16.mxu1 %v12198_v38  ;;  %v12201_v60 = vld [vmem:[#allocation6 + $0x4] ss:$16 sps:$4 sm:$0xff]   ;;  %vm17951_vm14 = vcmask 171008  }
 0x419   : > { %v12196_v14 = vld [vmem:[#allocation6 + $0x20] ss:$16 sps:$4 sm:$0xff]   ;;  %6050 = vperm.xlu1 %12116, %v6041_v28   ;;  %6045 = vperm.xlu0 %12115, %v6040_v30   ;;  %v4942_v10 = vrot.slane %v15136_v48, 4 }
 0x41a   : > { %v4225_v21 = vsel %vm17947_vm8, %v17293_v4, %v15134_v23  ;;  %6882 = vmatpush1.bf16.msra.mxu1 %v12196_v14  ;;  %v12199_v4 = vld [vmem:[#allocation6] ss:$16 sps:$4 sm:$0xff]   ;;  %vm17952_vm8 = vnez %v17752_v58  ;;  %v12207_v58 = vld [vmem:[#allocation6 + $0x1c4] ss:$16 sps:$4 sm:$0xff]  }
 0x41b   : > { %4238 = vst.msk [vmem:[#allocation6 + $0x110] sm:$0xff] %vm17948_vm13, %v4225_v21  ;;  %v15156_v28 = vpop.permute.xlu1 %4697  ;;  %v15158_v30 = vpop.permute.xlu0 %4287  ;;  %6883 = vmatprep.subr.bf16.mxu1 %v12201_v60 }
 0x41c   : > { %4242 = vst.msk [vmem:[#allocation6 + $0x110] sm:$0xf] %vm17949_vm12, %v17542_v43  ;;  %v17297_v39 = vrot.slane %v15156_v28, 4  ;;  %v17298_v38 = vrot.slane %v15158_v30, 4  ;;  %vm17953_vm12 = vcmask 3072  }
 0x41d   : > { %6055 = vperm.xlu0 %12115, %v6042_v0   ;;  %7605 = vrot.lane.b32.xlu1 %v15145_v11, %s17489_s18 }
 0x41e   : > { %v4713_v14 = vsel %vm17950_vm5, %v17297_v39, %v15156_v28  ;;  %v4303_v21 = vsel %vm17951_vm14, %v17298_v38, %v15158_v30  ;;  %6884 = vmatpush1.bf16.msra.mxu1 %v12199_v4  ;;  %vm17954_vm5 = vcmask 166912   ;;  %v12202_v38 = vld [vmem:[#allocation6 + $0x1e0] ss:$16 sps:$4 sm:$0xff]   ;;  %vm17955_vm14 = vcmask 1043456  }
 0x41f   : > { %4726 = vst.msk [vmem:[#allocation6 + $0x230] sm:$0xff] %vm17770_vm11, %v4713_v14  ;;  %v5028_v0 = vpop.permute.xlu1 %5027  ;;  %v4844_v60 = vpop.permute.xlu0 %4843  ;;  %6885 = vmatprep.subr.bf16.mxu1 %v12204_v52  ;;  %v15187_v14 = vpack.c.bf16 %v8450_v7, %v15141_v16  ;;  %vm17973_vm11 = vcmask 830464  }
 0x420   : > { %4316 = vst.msk [vmem:[#allocation6 + $0x140] sm:$0xff] %vm17952_vm8, %v4303_v21  ;;  %v5034_v39 = vrot.slane %v5028_v0, 4  ;;  %vm17956_vm8 = vcmask 900096   ;;  %v4851_v12 = vrot.slane %v4844_v60, 4 }
 0x421   : > { %4730 = vst.msk [vmem:[#allocation6 + $0x230] sm:$0xf] %vm17953_vm12, %v17542_v43  ;;  %7675 = vrot.lane.b32.xlu0 %v15145_v11, %s17446_s30  ;;  %8493 = vrot.lane.b32.xlu1 %v15145_v11, %s17815_s16  ;;  %vm17957_vm12 = vmmov %vm17956_vm8 }
 0x422   : > { %4320 = vst.msk [vmem:[#allocation6 + $0x140] sm:$0xf] %vm17954_vm5, %v17542_v43  ;;  %v5041_v4 = vsel %vm17955_vm14, %v5033_v15, %v5034_v39  ;;  %v5043_v21 = vsel %vm17956_vm8, %v5028_v0, %v5034_v39  ;;  %vm17958_vm5 = vcmask 1027072   ;;  %6886 = vmatpush2.bf16.msra.mxu1 %v12202_v38  ;;  %v12205_v0 = vld [vmem:[#allocation6 + $0x1c0] ss:$16 sps:$4 sm:$0xff]   ;;  %vm17960_vm8 = vmmov %vm17955_vm14  ;;  %vm17961_vm14 = vcmask 1031168  }
 0x423   : > { %v5042_v31 = vsel %vm17957_vm12, %v5026_v61, %v5041_v4  ;;  %5056 = vst.msk [vmem:[#allocation6 + $0x2f8] sm:$0xf] %vm17958_vm5, %v5043_v21  ;;  %v4937_v52 = vpop.permute.xlu1 %4936  ;;  %v5845_v22 = vpop.permute.xlu0 %5844  ;;  %6887 = vmatprep.subr.bf16.mxu1 %v12207_v58  ;;  %v12210_v4 = vld [vmem:[#allocation6 + $0x1a4] ss:$16 sps:$4 sm:$0xff]   ;;  %v8442_v21 = vld [vmem:[#allocation8 + $0x18] sm:$0xff]  ;;  %vm17962_vm12 = vmmov %vm17961_vm14  ;;  %vm17963_vm5 = vnez %v17747_v24 }
 0x424   : > { %5061 = vst.msk [vmem:[#allocation6 + $0x2f8] sm:$0xff] %vm17959_vm15, %v17542_v43  ;;  %v4943_v7 = vrot.slane %v4937_v52, 4  ;;  %v11264_v15 = vcombine.low %v14787_v59, %v5042_v31  ;;  %v11265_v39 = vcombine.high %v14787_v59, %v5042_v31  ;;  %v5852_v18 = vrot.slane %v5845_v22, 4 }
 0x425   : > { %8495 = vrot.lane.b32.xlu0 %v15187_v14, %s17815_s16  ;;  %7597 = vrot.lane.b32.xlu1 %v15145_v11, %s17489_s18 }
 0x426   : > { %v4950_v61 = vsel %vm17960_vm8, %v4942_v10, %v4943_v7  ;;  %v4952_v38 = vsel %vm17961_vm14, %v4937_v52, %v4943_v7  ;;  %6920 = vmatprep.subr.bf16.mxu0 %v11265_v39  ;;  %6888 = vmatpush2.bf16.msra.mxu1 %v12205_v0  ;;  %vm17964_vm8 = vcmask 126064   ;;  %v12208_v39 = vld [vmem:[#allocation6 + $0x1a0] ss:$16 sps:$4 sm:$0xff]   ;;  %vm17965_vm14 = vcmask 1043456  }
 0x427   : > { %v4951_v58 = vsel %vm17962_vm12, %v15136_v48, %v4950_v61  ;;  %4966 = vst.msk [vmem:[#allocation6 + $0x2c8] sm:$0xff] %vm17963_vm5, %v4952_v38  ;;  %v4846_v31 = vpop.permute.xlu1 %4845  ;;  %v15209_v59 = vpop.permute.xlu0 %5753  ;;  %6921 = vmatpush1.bf16.msra.mxu0 %v11264_v15  ;;  %6889 = vmatprep.subr.bf16.mxu1 %v12210_v4  ;;  %v15218_v48 = vpack.c.bf16 %v8442_v21, %v15141_v16  ;;  %vm17966_vm12 = vcmask 1039360   ;;  %v12213_v61 = vld [vmem:[#allocation6 + $0x184] ss:$16 sps:$4 sm:$0xff]   ;;  %v12211_v21 = vld [vmem:[#allocation6 + $0x180] ss:$16 sps:$4 sm:$0xff]  }
 0x428   : > { %4970 = vst.msk [vmem:[#allocation6 + $0x2cc] sm:$0xf] %vm17964_vm8, %v17542_v43  ;;  %v4852_v10 = vrot.slane %v4846_v31, 4  ;;  %v11260_v52 = vcombine.low %v4951_v58, %v5980_v44  ;;  %v11261_v7 = vcombine.high %v4951_v58, %v5980_v44  ;;  %v12222_v38 = vld [vmem:[#allocation6 + $0x2a4] ss:$16 sps:$4 sm:$0xff]   ;;  %vm17967_vm8 = vmmov %vm17966_vm12 }
 0x429   : > { %8407 = vrot.lane.b32.xlu0 %v15187_v14, %s17818_s11  ;;  %8405 = vrot.lane.b32.xlu1 %v15145_v11, %s17818_s11 }
 0x42a   : > { %v4859_v15 = vsel %vm17965_vm14, %v4851_v12, %v4852_v10  ;;  %v4861_v0 = vsel %vm17966_vm12, %v4846_v31, %v4852_v10  ;;  %6922 = vmatprep.subr.bf16.mxu0 %v11261_v7  ;;  %6890 = vmatpush2.bf16.msra.mxu1 %v12208_v39  ;;  %v12220_v31 = vld [vmem:[#allocation6 + $0x2a0] ss:$16 sps:$4 sm:$0xff]   ;;  %vm17970_vm12 = vcmask 703488   ;;  %v12216_v7 = vld [vmem:[#allocation6 + $0x164] ss:$16 sps:$4 sm:$0xff]  }
 0x42b   : > { %v4860_v4 = vsel %vm17967_vm8, %v4844_v60, %v4859_v15  ;;  %4875 = vst.msk [vmem:[#allocation6 + $0x298] sm:$0xff] %vm17968_vm10, %v4861_v0  ;;  %v5847_v44 = vpop.permute.xlu1 %5846  ;;  %v15225_v58 = vpop.permute.xlu0 %4609  ;;  %6923 = vmatpush1.bf16.msra.mxu0 %v11260_v52  ;;  %6891 = vmatprep.subr.bf16.mxu1 %v12213_v61  ;;  %vm17972_vm8 = vmmov %vm17970_vm12  ;;  %v5761_v61 = vrot.slane %v15209_v59, 4 }
 0x42c   : > { %4879 = vst.msk [vmem:[#allocation6 + $0x29c] sm:$0xf] %vm17969_vm1, %v17542_v43  ;;  %v5853_v12 = vrot.slane %v5847_v44, 4  ;;  %v17310_v16 = vrot.slane %v15225_v58, 4  ;;  %6924 = vmatprep.subr.bf16.mxu0 %v12222_v38  ;;  %vm17971_vm1 = vcmask 15360   ;;  %v11253_v39 = vcombine.high %v14837_v45, %v4860_v4 }
 0x42d   : > { %8487 = vrot.lane.b32.xlu0 %v15218_v48, %s17815_s16  ;;  %8485 = vrot.lane.b32.xlu1 %v15145_v11, %s17815_s16  ;;  %v12214_v38 = vld [vmem:[#allocation6 + $0x160] ss:$16 sps:$4 sm:$0xff]  }
 0x42e   : > { %v5860_v60 = vsel %vm17965_vm14, %v5852_v18, %v5853_v12  ;;  %v5862_v10 = vsel %vm17970_vm12, %v5847_v44, %v5853_v12  ;;  %v4625_v52 = vsel %vm17971_vm1, %v17310_v16, %v15225_v58  ;;  %6892 = vmatpush2.bf16.msra.mxu1 %v12211_v21  ;;  %vm17975_vm14 = vnez %v17763_v32  ;;  %v5968_v12 = vld [vmem:[#allocation6 + $0x270] sm:$0xff] }
 0x42f   : > { %v15242_v15 = vsel %vm17972_vm8, %v5845_v22, %v5860_v60  ;;  %5875 = vst.msk [vmem:[#allocation6 + $0x4a8] sm:$0xf] %vm17973_vm11, %v5862_v10  ;;  %v5756_v0 = vpop.permute.xlu1 %5755  ;;  %v5663_v18 = vpop.permute.xlu0 %5662  ;;  %6925 = vmatpush1.bf16.msra.mxu0 %v12220_v31  ;;  %vm17976_vm12 = vcmask 11264   ;;  %6893 = vmatprep.subr.bf16.mxu1 %v12216_v7  ;;  %v11252_v44 = vcombine.low %v14837_v45, %v4860_v4  ;;  %vm17977_vm11 = vcmask 1043456   ;;  %v12219_v60 = vld [vmem:[#allocation6 + $0x144] ss:$16 sps:$4 sm:$0xff]  }
 0x430   : > { %4638 = vst.msk [vmem:[#allocation6 + $0x200] sm:$0xff] %vm17974_vm4, %v4625_v52  ;;  %v5762_v22 = vrot.slane %v5756_v0, 4  ;;  %6926 = vmatprep.subr.bf16.mxu0 %v11253_v39  ;;  %vm17978_vm1 = vcmask 711680   ;;  %v12569_v10 = vld [vmem:[#allocation6 + $0x260] sm:$0xff]  ;;  %v5670_v39 = vrot.slane %v5663_v18, 4  ;;  %vm18012_vm4 = vcmask 310272  }
 0x431   : > { %5880 = vst.msk [vmem:[#allocation6 + $0x4a8] sm:$0xff] %vm17975_vm14, %v17542_v43  ;;  %7527 = vrot.lane.b32.xlu0 %v15145_v11, %s17447_s26  ;;  %8397 = vrot.lane.b32.xlu1 %v15145_v11, %s17818_s11  ;;  %v11249_v52 = vcombine.high %v12569_v10, %v5968_v12  ;;  %vm17979_vm8 = vmmov %vm17978_vm1  ;;  %vm17981_vm14 = vnez %v17776_v29 }
 0x432   : > { %4642 = vst.msk [vmem:[#allocation6 + $0x200] sm:$0xf] %vm17976_vm12, %v17542_v43  ;;  %v5769_v21 = vsel %vm17977_vm11, %v5761_v61, %v5762_v22  ;;  %v5771_v31 = vsel %vm17978_vm1, %v5756_v0, %v5762_v22  ;;  %vm17980_vm12 = vcmask 838656   ;;  %6894 = vmatpush2.bf16.msra.mxu1 %v12214_v38  ;;  %v12217_v0 = vld [vmem:[#allocation6 + $0x140] ss:$16 sps:$4 sm:$0xff]   ;;  %v11248_v22 = vcombine.low %v12569_v10, %v5968_v12 }
 0x433   : > { %v15262_v7 = vsel %vm17979_vm8, %v15209_v59, %v5769_v21  ;;  %5784 = vst.msk [vmem:[#allocation6 + $0x478] sm:$0xf] %vm17980_vm12, %v5771_v31  ;;  %v5665_v45 = vpop.permute.xlu1 %5664  ;;  %v5481_v4 = vpop.permute.xlu0 %5480  ;;  %6927 = vmatpush1.bf16.msra.mxu0 %v11252_v44  ;;  %6895 = vmatprep.subr.bf16.mxu1 %v12219_v60  ;;  %vm17982_vm1 = vcmask 719872   ;;  %v12225_v44 = vld [vmem:[#allocation6 + $0x124] ss:$16 sps:$4 sm:$0xff]   ;;  %vm17984_vm12 = vcmask 846848  }
 0x434   : > { %5789 = vst.msk [vmem:[#allocation6 + $0x478] sm:$0xff] %vm17981_vm14, %v17542_v43  ;;  %v5671_v61 = vrot.slane %v5665_v45, 4  ;;  %6928 = vmatprep.subr.bf16.mxu0 %v11249_v52  ;;  %v12570_v21 = vld [vmem:[#allocation6 + $0x240] sm:$0xff]  ;;  %v12571_v31 = vld [vmem:[#allocation6 + $0x250] sm:$0xff]  ;;  %vm17983_vm8 = vmmov %vm17982_vm1  ;;  %vm17985_vm14 = vnez %v17790_v63  ;;  %v5488_v10 = vrot.slane %v5481_v4, 4 }
 0x435   : > { %8399 = vrot.lane.b32.xlu0 %v15218_v48, %s17818_s11  ;;  %7449 = vrot.lane.b32.xlu1 %v15145_v11, %s17497_s15  ;;  %v11245_v16 = vcombine.high %v12570_v21, %v12571_v31 }
 0x436   : > { %v5678_v59 = vsel %vm17977_vm11, %v5670_v39, %v5671_v61  ;;  %v5680_v38 = vsel %vm17982_vm1, %v5665_v45, %v5671_v61  ;;  %6896 = vmatpush2.bf16.msra.mxu1 %v12217_v0  ;;  %v12223_v45 = vld [vmem:[#allocation6 + $0x120] ss:$16 sps:$4 sm:$0xff]   ;;  %v11244_v39 = vcombine.low %v12570_v21, %v12571_v31  ;;  %vm17986_vm1 = vcmask 736256   ;;  %v12228_v0 = vld [vmem:[#allocation6 + $0x104] ss:$16 sps:$4 sm:$0xff]  }
 0x437   : > { %v15275_v29 = vsel %vm17983_vm8, %v5663_v18, %v5678_v59  ;;  %5693 = vst.msk [vmem:[#allocation6 + $0x448] sm:$0xf] %vm17984_vm12, %v5680_v38  ;;  %v5483_v12 = vpop.permute.xlu1 %5482  ;;  %v5572_v60 = vpop.permute.xlu0 %5571  ;;  %6929 = vmatpush1.bf16.msra.mxu0 %v11248_v22  ;;  %6897 = vmatprep.subr.bf16.mxu1 %v12225_v44  ;;  %v12234_v22 = vld [vmem:[#allocation6 + $0x224] ss:$16 sps:$4 sm:$0xff]   ;;  %vm17987_vm8 = vmmov %vm17986_vm1  ;;  %vm17988_vm12 = vcmask 863232  }
 0x438   : > { %5698 = vst.msk [vmem:[#allocation6 + $0x448] sm:$0xff] %vm17985_vm14, %v17542_v43  ;;  %v5489_v52 = vrot.slane %v5483_v12, 4  ;;  %6930 = vmatprep.subr.bf16.mxu0 %v11245_v16  ;;  %vm17989_vm14 = vnez %v17796_v27  ;;  %v5579_v44 = vrot.slane %v5572_v60, 4  ;;  %v5887_v31 = vld [vmem:[%s17042_s3 + $0x28] sm:$0xff] }
 0x439   : > { %7519 = vrot.lane.b32.xlu0 %v15145_v11, %s17447_s26  ;;  %8317 = vrot.lane.b32.xlu1 %v15145_v11, %s17695_s13 }
 0x43a   : > { %v5496_v18 = vsel %vm17977_vm11, %v5488_v10, %v5489_v52  ;;  %v5498_v61 = vsel %vm17986_vm1, %v5483_v12, %v5489_v52  ;;  %6898 = vmatpush2.bf16.msra.mxu1 %v12223_v45  ;;  %v12232_v12 = vld [vmem:[#allocation6 + $0x220] ss:$16 sps:$4 sm:$0xff]   ;;  %vm17990_vm1 = vcmask 728064   ;;  %v11321_v45 = vcombine.high %v15242_v15, %v15242_v15 }
 0x43b   : > { %v15288_v59 = vsel %vm17987_vm8, %v5481_v4, %v5496_v18  ;;  %5511 = vst.msk [vmem:[#allocation6 + $0x3e8] sm:$0xf] %vm17988_vm12, %v5498_v61  ;;  %v5574_v16 = vpop.permute.xlu1 %5573  ;;  %v5390_v38 = vpop.permute.xlu0 %5389  ;;  %6931 = vmatpush1.bf16.msra.mxu0 %v11244_v39  ;;  %6899 = vmatprep.subr.bf16.mxu1 %v12228_v0  ;;  %v12226_v4 = vld [vmem:[#allocation6 + $0x100] ss:$16 sps:$4 sm:$0xff]   ;;  %v15308_v39 = vld [vmem:[%s17042_s3] ss:$20 sps:$4 sm:$0xff]   ;;  %v11320_v18 = vcombine.low %v15242_v15, %v15242_v15  ;;  %vm17991_vm8 = vmmov %vm17990_vm1 }
 0x43c   : > { %5516 = vst.msk [vmem:[#allocation6 + $0x3e8] sm:$0xff] %vm17989_vm14, %v17542_v43  ;;  %v5580_v21 = vrot.slane %v5574_v16, 4  ;;  %6932 = vmatprep.subr.bf16.mxu0 %v12234_v22  ;;  %v12240_v61 = vld [vmem:[#allocation6 + $0x204] ss:$16 sps:$4 sm:$0xff]   ;;  %vm17992_vm12 = vcmask 855040  }
 0x43d   : > { %8319 = vrot.lane.b32.xlu0 %v15187_v14, %s17695_s13  ;;  %7441 = vrot.lane.b32.xlu1 %v15145_v11, %s17497_s15 }
 0x43e   : > { %v5587_v10 = vsel %vm17977_vm11, %v5579_v44, %v5580_v21  ;;  %v5589_v52 = vsel %vm17990_vm1, %v5574_v16, %v5580_v21  ;;  %6900 = vmatpush2.bf16.msra.mxu1 %v12226_v4  ;;  %v15318_v44 = vcombine.high %v5887_v31, %v5887_v31  ;;  %vm17993_vm11 = vnez %v17781_v36  ;;  %v6006_v36 = vld [vmem:[#allocation6 + $0x3a0] sm:$0xff] }
 0x43f   : > { %v15313_v0 = vsel %vm17991_vm8, %v5572_v60, %v5587_v10  ;;  %5602 = vst.msk [vmem:[#allocation6 + $0x418] sm:$0xf] %vm17992_vm12, %v5589_v52  ;;  %v5392_v22 = vpop.permute.xlu1 %5391  ;;  %v15316_v16 = vpop.permute.xlu0 %5298  ;;  %6933 = vmatpush1.bf16.msra.mxu0 %v12232_v12  ;;  %v5397_v21 = vrot.slane %v5390_v38, 4  ;;  %vm17994_vm1 = vcmask 1043456   ;;  %vm17996_vm12 = vcmask 867328   ;;  %v6016_v52 = vld [vmem:[#allocation6 + $0x3f0] sm:$0xff] }
 0x440   : > { %5607 = vst.msk [vmem:[#allocation6 + $0x418] sm:$0xff] %vm17993_vm11, %v17542_v43  ;;  %v5398_v63 = vrot.slane %v5392_v22, 4  ;;  %11324 = vmatprep.subr.msk.bf16.mxu1 %vm17994_vm1, %v11321_v45  ;;  %6934 = vmatprep.subr.bf16.mxu0 %v12240_v61  ;;  %vm17995_vm8 = vmmov %vm17994_vm1  ;;  %v12237_v12 = vld [vmem:[#allocation6 + $0x484] ss:$16 sps:$4 sm:$0xff]   ;;  %v12238_v10 = vld [vmem:[#allocation6 + $0x200] ss:$16 sps:$4 sm:$0xff]  }
 0x441   : > { %8311 = vrot.lane.b32.xlu0 %v15218_v48, %s17695_s13  ;;  %8309 = vrot.lane.b32.xlu1 %v15145_v11, %s17695_s13  ;;  %vm17997_vm14 = vmmov %vm17994_vm1  ;;  %vm17999_vm1 = vcmask 994304  }
 0x442   : > { %v5405_v15 = vsel %vm17995_vm8, %v5397_v21, %v5398_v63  ;;  %v5407_v60 = vsel %vm17996_vm12, %v5392_v22, %v5398_v63  ;;  %6902 = vmatmul.mubr.bf16.vlgmr.msra.gmra.mxu1 %v15308_v39  ;;  %v6858_v4 = vsel %vm17997_vm14, %v11320_v18, 0  ;;  %vm17998_vm11 = vmmov %vm17996_vm12  ;;  %v11297_v63 = vcombine.high %v15288_v59, %v6016_v52  ;;  %v6030_v22 = vld [vmem:[#allocation6 + $0x460] sm:$0xff] }
 0x443   : > { %v15333_v45 = vsel %vm17998_vm11, %v5390_v38, %v5405_v15  ;;  %5420 = vst.msk [vmem:[#allocation6 + $0x3b8] sm:$0xf] %vm17999_vm1, %v5407_v60  ;;  %v15336_v61 = vpop.permute.xlu1 %5114  ;;  %6976 = vmatpush1.bf16.msra.mxu1 %v6858_v4  ;;  %v15338_v32 = vpop.permute.xlu0 %5207  ;;  %6911 = vmatprep.mubr.bf16.mxu1 %v15318_v44  ;;  %vm18000_vm14 = vnez %v17803_v13  ;;  %v12235_v38 = vld [vmem:[#allocation6 + $0x480] ss:$16 sps:$4 sm:$0xff]   ;;  %vm18001_vm11 = vcmask 891904   ;;  %v11313_v15 = vcombine.high %v6030_v22, %v15262_v7 }
 0x444   : > { %5425 = vst.msk [vmem:[#allocation6 + $0x3b8] sm:$0xff] %vm18000_vm14, %v17542_v43  ;;  %v17317_v18 = vrot.slane %v15336_v61, 4  ;;  %6977 = vmatprep.subr.bf16.mxu1 %v12237_v12  ;;  %6935 = vmatpush1.bf16.msra.mxu0 %v12238_v10  ;;  %v15353_v60 = vcombine.low %v5887_v31, %v5887_v31  ;;  %v11296_v4 = vcombine.low %v15288_v59, %v6016_v52  ;;  %vm18002_vm8 = vcmask 1018880   ;;  %v6028_v59 = vld [vmem:[#allocation6 + $0x450] sm:$0xff] }
 0x445   : > { %6936 = vmatprep.subr.bf16.mxu0 %v11297_v63  ;;  %7371 = vrot.lane.b32.xlu0 %v15145_v11, %s17449_s25  ;;  %v12245_v63 = vld [vmem:[#allocation6 + $0x3c4] ss:$16 sps:$4 sm:$0xff]   ;;  %v11312_v31 = vcombine.low %v6030_v22, %v15262_v7  ;;  %v18003_v52 = vrot.slane %v14309_v8, 4  ;;  %vm18004_vm12 = vcmask 1043456   ;;  %v12243_v13 = vld [vmem:[#allocation6 + $0x3c0] ss:$16 sps:$4 sm:$0xff]  }
 0x446   : > { %v5131_v21 = vsel %vm18001_vm11, %v15336_v61, %v17317_v18  ;;  %7293 = vrot.lane.b32.xlu1 %v15145_v11, %s17505_s21  ;;  %vm18005_vm1 = vcmask 334848   ;;  %v5306_v8 = vrot.slane %v15316_v16, 4  ;;  %vm18006_vm11 = vmmov %vm18004_vm12  ;;  %vm18011_vm14 = vcmask 1002496  }
 0x447   : > { %5145 = vst.msk [vmem:[#allocation6 + $0x318] sm:$0xf] %vm18002_vm8, %v5131_v21  ;;  %v3892_v12 = vpop.permute.xlu1 %3891  ;;  %6978 = vmatpush1.bf16.msra.mxu1 %v12235_v38  ;;  %v15359_v10 = vpop.permute.xlu0 %5116  ;;  %v11309_v21 = vcombine.high %v15275_v29, %v6028_v59  ;;  %vm18007_vm8 = vcmask 875520  }
 0x448   : > { %5151 = vst.msk [vmem:[#allocation6 + $0x318] sm:$0xff] %vm15077_vm0, %v17542_v43  ;;  %v3902_v18 = vrot.slane %v3892_v12, 4  ;;  %6979 = vmatprep.subr.bf16.mxu1 %v11313_v15  ;;  %6937 = vmatpush2.bf16.msra.mxu0 %v11296_v4  ;;  %v11289_v4 = vcombine.high %v6006_v36, %v15333_v45 }
 0x449   : > { %6938 = vmatprep.subr.bf16.mxu0 %v12245_v63  ;;  %7363 = vrot.lane.b32.xlu0 %v15145_v11, %s17449_s25 }
 0x44a   : > { %v3908_v38 = vsel %vm18004_vm12, %v18003_v52, %v3902_v18  ;;  %6912 = vmatmul.mubr.bf16.gmra.mxu1 %v15353_v60  ;;  %7285 = vrot.lane.b32.xlu1 %v15145_v11, %s17505_s21  ;;  %v11308_v52 = vcombine.low %v15275_v29, %v6028_v59  ;;  %vm18009_vm12 = vmmov %vm18006_vm11 }
 0x44b   : > { %v3909_v7 = vsel %vm18005_vm1, %v3908_v38, %v3892_v12  ;;  %v5301_v22 = vpop.permute.xlu1 %5300  ;;  %6980 = vmatpush1.bf16.msra.mxu1 %v11312_v31  ;;  %v4134_v15 = vpop.permute.xlu0 %4133  ;;  %7003 = vmatprep.mubr.bf16.mxu1 %v17542_v43  ;;  %v18008_v38 = vrot.slane %v14954_v49, 4  ;;  %vm18010_vm1 = vmmov %vm18007_vm8 }
 0x44c   : > { %3923 = vst.msk [vmem:[#allocation6 + $0x38] sm:$0xff] %vm14177_vm7, %v3909_v7  ;;  %v5307_v18 = vrot.slane %v5301_v22, 4  ;;  %v4140_v63 = vrot.slane %v4134_v15, 4  ;;  %6981 = vmatprep.subr.bf16.mxu1 %v11309_v21  ;;  %6939 = vmatpush2.bf16.msra.mxu0 %v12243_v13  ;;  %v11288_v7 = vcombine.low %v6006_v36, %v15333_v45 }
 0x44d   : > { %6940 = vmatprep.subr.bf16.mxu0 %v11289_v4  ;;  %8171 = vrot.lane.b32.xlu0 %v15145_v11, %s17696_s19  ;;  %v12246_v4 = vld [vmem:[#allocation6 + $0x420] ss:$16 sps:$4 sm:$0xff]  }
 0x44e   : > { %v5314_v12 = vsel %vm18006_vm11, %v5306_v8, %v5307_v18  ;;  %v5316_v31 = vsel %vm18007_vm8, %v5301_v22, %v5307_v18  ;;  %v4148_v27 = vsel %vm18009_vm12, %v18008_v38, %v4140_v63  ;;  %8083 = vrot.lane.b32.xlu1 %v15145_v11, %s17816_s23  ;;  %v6004_v22 = vld [vmem:[#allocation6 + $0x390] sm:$0xff]  ;;  %v6018_v8 = vld [vmem:[#allocation6 + $0x400] sm:$0xff]  ;;  %v18015_v18 = vrot.slane %v15336_v61, 4 }
 0x44f   : > { %v5315_v29 = vsel %vm18010_vm1, %v15316_v16, %v5314_v12  ;;  %5329 = vst.msk [vmem:[#allocation6 + $0x388] sm:$0xf] %vm18011_vm14, %v5316_v31  ;;  %v4149_v13 = vsel %vm18012_vm4, %v4148_v27, %v4134_v15  ;;  %v4056_v59 = vpop.permute.xlu1 %4055  ;;  %6982 = vmatpush1.bf16.msra.mxu1 %v11308_v52  ;;  %v5113_v21 = vpop.permute.xlu0 %5112  ;;  %v18013_v27 = vrot.slane %v14996_v54, 4  ;;  %vm18014_vm4 = vmmov %vm18006_vm11  ;;  %v11301_v52 = vcombine.high %v6018_v8, %v15313_v0  ;;  %v12255_v38 = vld [vmem:[#allocation6 + $0x364] ss:$16 sps:$4 sm:$0xff]  }
 0x450   : > { %5334 = vst.msk [vmem:[#allocation6 + $0x388] sm:$0xff] %vm14503_vm2, %v17542_v43  ;;  %v4062_v36 = vrot.slane %v4056_v59, 4  ;;  %v5122_v49 = vrot.slane %v5113_v21, 4  ;;  %6983 = vmatprep.subr.bf16.mxu1 %v12248_v6  ;;  %6941 = vmatpush2.bf16.msra.mxu0 %v11288_v7  ;;  %v11284_v16 = vcombine.low %v5315_v29, %v6004_v22  ;;  %v11285_v45 = vcombine.high %v5315_v29, %v6004_v22  ;;  %vm18016_vm14 = vmmov %vm18014_vm4 }
 0x451   : > { %4161 = vst.msk [vmem:[#allocation6 + $0xe8] sm:$0xff] %vm14177_vm7, %v4149_v13  ;;  %8163 = vrot.lane.b32.xlu0 %v15145_v11, %s17696_s19  ;;  %vm18017_vm11 = vcmask 318464   ;;  %vm18018_vm8 = vcmask 891904   ;;  %v5215_v7 = vrot.slane %v15338_v32, 4  ;;  %v11300_v13 = vcombine.low %v6018_v8, %v15313_v0  ;;  %vm18019_vm12 = vmmov %vm18014_vm4 }
 0x452   : > { %v4070_v15 = vsel %vm18014_vm4, %v18013_v27, %v4062_v36  ;;  %v5129_v63 = vsel %vm18016_vm14, %v5122_v49, %v18015_v18  ;;  %6942 = vmatprep.subr.bf16.mxu0 %v11285_v45  ;;  %8075 = vrot.lane.b32.xlu1 %v15145_v11, %s17816_s23  ;;  %vm18020_vm1 = vcmask 883712   ;;  %v18021_v22 = vrot.slane %v14682_v55, 4  ;;  %v15429_v49 = vld [vmem:[%s17042_s3 + $0x10] ss:$20 sps:$4 sm:$0xff]   ;;  %v5994_v45 = vld [vmem:[#allocation6 + $0x340] sm:$0xff] }
 0x453   : > { %v4071_v6 = vsel %vm18017_vm11, %v4070_v15, %v4056_v59  ;;  %v15413_v12 = vsel %vm18018_vm8, %v5113_v21, %v5129_v63  ;;  %v5210_v31 = vpop.permute.xlu1 %5209  ;;  %6984 = vmatpush1.bf16.msra.mxu1 %v12246_v4  ;;  %v3896_v54 = vpop.permute.xlu0 %3895  ;;  %v5124_v0 = vrot.slane %v15359_v10, 4  ;;  %vm18022_vm14 = vmmov %vm18020_vm1  ;;  %vm18023_vm11 = vcmask 1010688  }
 0x454   : > { %4083 = vst.msk [vmem:[#allocation6 + $0xb8] sm:$0xff] %vm14177_vm7, %v4071_v6  ;;  %v5216_v61 = vrot.slane %v5210_v31, 4  ;;  %v3904_v29 = vrot.slane %v3896_v54, 4  ;;  %6985 = vmatprep.subr.bf16.mxu1 %v11301_v52  ;;  %6943 = vmatpush2.bf16.msra.mxu0 %v11284_v16  ;;  %v12253_v16 = vld [vmem:[#allocation6 + $0x360] ss:$16 sps:$4 sm:$0xff]   ;;  %vm18024_vm8 = vcmask 334848  }
 0x455   : > { %6944 = vmatprep.subr.bf16.mxu0 %v12255_v38  ;;  %8935 = vrot.lane.b32.xlu0 %v15187_v14, %s17469_s24  ;;  %v18027_v38 = vrot.slane %v15010_v17, 4 }
 0x456   : > { %v5223_v59 = vsel %vm18019_vm12, %v5215_v7, %v5216_v61  ;;  %v5225_v21 = vsel %vm18020_vm1, %v5210_v31, %v5216_v61  ;;  %v3911_v36 = vsel %vm18014_vm4, %v18021_v22, %v3904_v29  ;;  %8933 = vrot.lane.b32.xlu1 %v15145_v11, %s17469_s24  ;;  %vm18025_vm12 = vmmov %vm18014_vm4  ;;  %vm18026_vm1 = vcmask 891904   ;;  %v12258_v61 = vld [vmem:[#allocation6 + $0xcc] ss:$16 sps:$4 sm:$0xff]   ;;  %v5992_v22 = vld [vmem:[#allocation6 + $0x330] sm:$0xff] }
 0x457   : > { %v5224_v4 = vsel %vm18022_vm14, %v15338_v32, %v5223_v59  ;;  %5238 = vst.msk [vmem:[#allocation6 + $0x358] sm:$0xf] %vm18023_vm11, %v5225_v21  ;;  %v3912_v55 = vsel %vm18024_vm8, %v3911_v36, %v3896_v54  ;;  %v5119_v8 = vpop.permute.xlu1 %5118  ;;  %6986 = vmatpush1.bf16.msra.mxu1 %v11300_v13  ;;  %v3978_v27 = vpop.permute.xlu0 %3977  ;;  %vm18028_vm14 = vcmask 719872   ;;  %vm18029_vm11 = vmmov %vm18026_vm1  ;;  %vm18030_vm8 = vcmask 1018880  }
 0x458   : > { %v12250_v15 = vld [vmem:[#allocation6 + $0xe8] ss:$16 sps:$4 sm:$0xff]   ;;  %v12252_v18 = vld [vmem:[#allocation6 + $0xec] ss:$16 sps:$4 sm:$0xff]   ;;  %5243 = vst.msk [vmem:[#allocation6 + $0x358] sm:$0xff] %vm14965_vm6, %v17542_v43  ;;  %v5125_v63 = vrot.slane %v5119_v8, 4  ;;  %6945 = vmatpush2.bf16.msra.mxu0 %v12253_v16  ;;  %v11276_v32 = vcombine.low %v5994_v45, %v5224_v4  ;;  %v11277_v6 = vcombine.high %v5994_v45, %v5224_v4 }
 0x459   : > { %3925 = vst.msk [vmem:[#allocation6 + $0x48] sm:$0xff] %vm14177_vm7, %v3912_v55  ;;  %v3984_v52 = vrot.slane %v3978_v27, 4  ;;  %7022 = vmatprep.subr.bf16.mxu1 %v12252_v18  ;;  %9015 = vrot.lane.b32.xlu0 %v15218_v48, %s17698_s14  ;;  %vm18031_vm6 = vcmask 326656   ;;  %v12256_v45 = vld [vmem:[#allocation6 + $0xc8] ss:$16 sps:$4 sm:$0xff]   ;;  %v18034_v55 = vrot.slane %v14289_v53, 4 }
 0x45a   : > { %v5132_v31 = vsel %vm18025_vm12, %v5124_v0, %v5125_v63  ;;  %v5134_v54 = vsel %vm18026_vm1, %v5119_v8, %v5125_v63  ;;  %11325 = vmatmul.mubr.msk.bf16.vlgmr.msra.gmra.mxu1 %vm18028_vm14, %v15429_v49  ;;  %6946 = vmatprep.subr.bf16.mxu0 %v11277_v6  ;;  %v18032_v0 = vrot.slane %v14706_v46, 4  ;;  %vm18035_vm12 = vmmov %vm18014_vm4  ;;  %v15475_v18 = vld [vmem:[%s17042_s3 + $0x38] ss:$0 sps:$4 sm:$0xff]   ;;  %vm18036_vm1 = vcmask 343040  }
 0x45b   : > { %v3992_v7 = vsel %vm18014_vm4, %v18027_v38, %v3984_v52  ;;  %v5133_v29 = vsel %vm18029_vm11, %v15359_v10, %v5132_v31  ;;  %5147 = vst.msk [vmem:[#allocation6 + $0x328] sm:$0xf] %vm18030_vm8, %v5134_v54  ;;  %v3816_v59 = vpop.permute.xlu1 %3815  ;;  %7023 = vmatpush1.bf16.msra.mxu1 %v12250_v15  ;;  %v3812_v21 = vpop.permute.xlu0 %3811  ;;  %7013 = vmatprep.mubr.bf16.mxu1 %v17542_v43  ;;  %v5986_v15 = vld [vmem:[#allocation6 + $0x300] sm:$0xff]  ;;  %v12259_v54 = vld [vmem:[#allocation6 + $0xa8] ss:$16 sps:$4 sm:$0xff]   ;;  %vm18042_vm8 = vcmask 719872  }
 0x45c   : > { %v3993_v13 = vsel %vm18031_vm6, %v3992_v7, %v3978_v27  ;;  %5152 = vst.msk [vmem:[#allocation6 + $0x328] sm:$0xff] %vm15077_vm0, %v17542_v43  ;;  %v3824_v17 = vrot.slane %v3816_v59, 4  ;;  %v3822_v36 = vrot.slane %v3812_v21, 4  ;;  %7024 = vmatprep.subr.bf16.mxu1 %v12258_v61  ;;  %6947 = vmatpush2.bf16.msra.mxu0 %v11276_v32  ;;  %v11272_v10 = vcombine.low %v5133_v29, %v5992_v22  ;;  %vm18033_vm6 = vmmov %vm18014_vm4  ;;  %v12261_v27 = vld [vmem:[#allocation6 + $0xac] ss:$16 sps:$4 sm:$0xff]  }
 0x45d   : > { %4005 = vst.msk [vmem:[#allocation6 + $0x88] sm:$0xff] %vm14177_vm7, %v3993_v13  ;;  %v11273_v16 = vcombine.high %v5133_v29, %v5992_v22  ;;  %9013 = vrot.lane.b32.xlu1 %v15145_v11, %s17698_s14  ;;  %7995 = vrot.lane.b32.xlu0 %v15145_v11, %s17823_s27  ;;  %vm18037_vm4 = vmmov %vm18036_vm1  ;;  %v11269_v6 = vcombine.high %v5986_v15, %v15413_v12  ;;  %v12276_v38 = vld [vmem:[#allocation6 + $0x2ec] ss:$16 sps:$4 sm:$0xff]   ;;  %v18038_v7 = vrot.slane %v15046_v1, 4  ;;  %v18040_v29 = vrot.slane %v14313_v51, 4 }
 0x45e   : > { %v3831_v4 = vsel %vm18033_vm6, %v18032_v0, %v3824_v17  ;;  %v3828_v8 = vsel %vm18035_vm12, %v18034_v55, %v3822_v36  ;;  %vm18039_vm14 = vmmov %vm18033_vm6  ;;  %v5888_v22 = vld [vmem:[%s17042_s3 + $0x30] sm:$0xff]  ;;  %vm18044_vm12 = vcmask 15360  }
 0x45f   : > { %6948 = vmatprep.subr.bf16.mxu0 %v11273_v16  ;;  %v3832_v63 = vsel %vm18036_vm1, %v3831_v4, %v3816_v59  ;;  %v3829_v52 = vsel %vm18037_vm4, %v3828_v8, %v3812_v21  ;;  %v3900_v32 = vpop.permute.xlu1 %3899  ;;  %7025 = vmatpush1.bf16.msra.mxu1 %v12256_v45  ;;  %v4604_v46 = vpop.permute.xlu0 %4603  ;;  %vm18041_vm11 = vmmov %vm18033_vm6  ;;  %v11268_v59 = vcombine.low %v5986_v15, %v15413_v12  ;;  %v15496_v21 = vld [vmem:[%s17042_s3 + $0x8] ss:$20 sps:$4 sm:$0xff]   ;;  %vm18043_vm6 = vcmask 334848   ;;  %v12572_v16 = vld [vmem:[%s17042_s3 + $0x4] ss:$20 sps:$4 sm:$0xff]  }
 0x460   : > { %3847 = vst.msk [vmem:[#allocation6 + $0x18] sm:$0xff] %vm14177_vm7, %v3832_v63  ;;  %3845 = vst.msk [vmem:[#allocation6 + $0x8] sm:$0xff] %vm14177_vm7, %v3829_v52  ;;  %v3906_v53 = vrot.slane %v3900_v32, 4  ;;  %v4614_v31 = vrot.slane %v4604_v46, 4  ;;  %7026 = vmatprep.subr.bf16.mxu1 %v12261_v27  ;;  %6949 = vmatpush2.bf16.msra.mxu0 %v11272_v10  ;;  %v12274_v4 = vld [vmem:[#allocation6 + $0x2e8] ss:$16 sps:$4 sm:$0xff]   ;;  %v15514_v55 = vcombine.high %v5888_v22, %v5888_v22 }
 0x461   : > { %6950 = vmatprep.subr.bf16.mxu0 %v11269_v6  ;;  %8925 = vrot.lane.b32.xlu1 %v15145_v11, %s17469_s24  ;;  %v18045_v8 = vrot.slane %v14732_v47, 4  ;;  %vm18046_vm1 = vmmov %vm18041_vm11  ;;  %v18047_v15 = vrot.slane %v15062_v5, 4  ;;  %v12267_v52 = vld [vmem:[#allocation6 + $0x6c] ss:$16 sps:$4 sm:$0xff]  }
 0x462   : > { %v3914_v61 = vsel %vm18039_vm14, %v18038_v7, %v3906_v53  ;;  %v4620_v13 = vsel %vm18041_vm11, %v18040_v29, %v4614_v31  ;;  %11326 = vmatmul.mubr.msk.bf16.gmra.mxu1 %vm18042_vm8, %v15475_v18  ;;  %8927 = vrot.lane.b32.xlu0 %v15218_v48, %s17469_s24  ;;  %vm18048_vm4 = vmmov %vm18046_vm1  ;;  %vm18050_vm11 = vcmask 343040   ;;  %v12279_v53 = vld [vmem:[#allocation6 + $0x2cc] ss:$16 sps:$4 sm:$0xff]  }
 0x463   : > { %v3915_v51 = vsel %vm18043_vm6, %v3914_v61, %v3900_v32  ;;  %v4621_v1 = vsel %vm18044_vm12, %v4620_v13, %v4604_v46  ;;  %v4608_v12 = vpop.permute.xlu1 %4607  ;;  %7027 = vmatpush1.bf16.msra.mxu1 %v12259_v54  ;;  %v3820_v17 = vpop.permute.xlu0 %3819  ;;  %7054 = vmatprep.mubr.bf16.mxu1 %v12572_v16  ;;  %vm18049_vm14 = vmmov %vm18044_vm12  ;;  %v12265_v54 = vld [vmem:[#allocation6 + $0x68] ss:$16 sps:$4 sm:$0xff]   ;;  %v18053_v61 = vrot.slane %v14708_v42, 4  ;;  %vm18055_vm12 = vcmask 146432  }
 0x464   : > { %v12262_v36 = vld [vmem:[#allocation6 + $0x88] ss:$16 sps:$4 sm:$0xff]   ;;  %v12264_v10 = vld [vmem:[#allocation6 + $0x8c] ss:$16 sps:$4 sm:$0xff]   ;;  %3927 = vst.msk [vmem:[#allocation6 + $0x58] sm:$0xff] %vm14177_vm7, %v3915_v51  ;;  %4635 = vst.msk [vmem:[#allocation6 + $0x1e8] sm:$0xff] %vm14177_vm7, %v4621_v1  ;;  %6951 = vmatpush2.bf16.msra.mxu0 %v11268_v59  ;;  %v15546_v42 = vcombine.low %v5888_v22, %v5888_v22 }
 0x465   : > { %v4616_v45 = vrot.slane %v4608_v12, 4  ;;  %v3826_v0 = vrot.slane %v3820_v17, 4  ;;  %7028 = vmatprep.subr.bf16.mxu1 %v12264_v10  ;;  %7073 = vmatprep.subr.bf16.mxu0 %v12276_v38  ;;  %v18051_v38 = vrot.slane %v14331_v37, 4  ;;  %vm18052_vm8 = vmmov %vm18046_vm1  ;;  %v12277_v13 = vld [vmem:[#allocation6 + $0x2c8] ss:$16 sps:$4 sm:$0xff]  }
 0x466   : > { %7917 = vrot.lane.b32.xlu1 %v15145_v11, %s17817_s9  ;;  %7987 = vrot.lane.b32.xlu0 %v15145_v11, %s17823_s27  ;;  %vm18054_vm6 = vmmov %vm18046_vm1  ;;  %v12288_v59 = vld [vmem:[#allocation6 + $0x2ac] ss:$16 sps:$4 sm:$0xff]  }
 0x467   : > { %v4623_v27 = vsel %vm18046_vm1, %v18045_v8, %v4616_v45  ;;  %v3834_v63 = vsel %vm18048_vm4, %v18047_v15, %v3826_v0  ;;  %v4516_v6 = vpop.permute.xlu1 %4515  ;;  %7029 = vmatpush1.bf16.msra.mxu1 %v12262_v36  ;;  %v4520_v47 = vpop.permute.xlu0 %4519  ;;  %6953 = vmatmul.mubr.bf16.vlgmr.msra.gmra.mxu0 %v15496_v21  ;;  %vm18056_vm1 = vmmov %vm18055_vm12  ;;  %v18057_v45 = vrot.slane %v14749_v19, 4  ;;  %v12286_v8 = vld [vmem:[#allocation6 + $0x2a8] ss:$16 sps:$4 sm:$0xff]  }
 0x468   : > { %v4624_v32 = vsel %vm18049_vm14, %v4623_v27, %v4608_v12  ;;  %v3835_v46 = vsel %vm18050_vm11, %v3834_v63, %v3820_v17  ;;  %v4526_v5 = vrot.slane %v4516_v6, 4  ;;  %v4528_v31 = vrot.slane %v4520_v47, 4  ;;  %7030 = vmatprep.subr.bf16.mxu1 %v12267_v52  ;;  %7074 = vmatpush1.bf16.msra.mxu0 %v12274_v4  ;;  %vm18059_vm14 = vmmov %vm18048_vm4  ;;  %v12297_v27 = vld [vmem:[#allocation6 + $0x28c] ss:$16 sps:$4 sm:$0xff]  }
 0x469   : > { %4637 = vst.msk [vmem:[#allocation6 + $0x1f8] sm:$0xff] %vm14177_vm7, %v4624_v32  ;;  %3849 = vst.msk [vmem:[#allocation6 + $0x28] sm:$0xff] %vm14177_vm7, %v3835_v46  ;;  %7075 = vmatprep.subr.bf16.mxu0 %v12279_v53  ;;  %6962 = vmatprep.mubr.bf16.mxu0 %v15514_v55  ;;  %v18058_v4 = vrot.slane %v14335_v33, 4  ;;  %vm18060_vm11 = vcmask 154624   ;;  %v18062_v53 = vrot.slane %v15085_v50, 4 }
 0x46a   : > { %v4532_v7 = vsel %vm18052_vm8, %v18051_v38, %v4526_v5  ;;  %v4535_v29 = vsel %vm18054_vm6, %v18053_v61, %v4528_v31  ;;  %8845 = vrot.lane.b32.xlu1 %v15145_v11, %s17820_s0  ;;  %8847 = vrot.lane.b32.xlu0 %v15187_v14, %s17820_s0  ;;  %vm18061_vm8 = vmmov %vm18060_vm11  ;;  %v18064_v31 = vrot.slane %v14841_v56, 4  ;;  %v12285_v38 = vld [vmem:[#allocation6 + $0xc] ss:$16 sps:$4 sm:$0xff]  }
 0x46b   : > { %v4533_v51 = vsel %vm18055_vm12, %v4532_v7, %v4516_v6  ;;  %v4536_v1 = vsel %vm18056_vm1, %v4535_v29, %v4520_v47  ;;  %v4442_v12 = vpop.permute.xlu1 %4441  ;;  %7031 = vmatpush1.bf16.msra.mxu1 %v12265_v54  ;;  %v4438_v37 = vpop.permute.xlu0 %4437  ;;  %v12271_v17 = vld [vmem:[#allocation6 + $0x48] ss:$16 sps:$4 sm:$0xff]   ;;  %v12273_v36 = vld [vmem:[#allocation6 + $0x4c] ss:$16 sps:$4 sm:$0xff]   ;;  %vm18063_vm6 = vmmov %vm18048_vm4 }
 0x46c   : > { %4547 = vst.msk [vmem:[#allocation6 + $0x1b8] sm:$0xff] %vm14177_vm7, %v4533_v51  ;;  %4549 = vst.msk [vmem:[#allocation6 + $0x1c8] sm:$0xff] %vm14177_vm7, %v4536_v1  ;;  %v4450_v10 = vrot.slane %v4442_v12, 4  ;;  %v4448_v16 = vrot.slane %v4438_v37, 4  ;;  %7076 = vmatpush1.bf16.msra.mxu0 %v12277_v13  ;;  %7032 = vmatprep.subr.bf16.mxu1 %v12273_v36  ;;  %v12573_v47 = vld [vmem:[%s17042_s3 + $0xc] ss:$20 sps:$4 sm:$0xff]  }
 0x46d   : > { %7077 = vmatprep.subr.bf16.mxu0 %v12288_v59  ;;  %vm18065_vm12 = vmmov %vm18048_vm4  ;;  %v12295_v7 = vld [vmem:[#allocation6 + $0x288] ss:$16 sps:$4 sm:$0xff]   ;;  %v12300_v59 = vld [vmem:[#allocation6 + $0x26c] ss:$16 sps:$4 sm:$0xff]  }
 0x46e   : > { %v4457_v0 = vsel %vm18048_vm4, %v18057_v45, %v4450_v10  ;;  %v4454_v22 = vsel %vm18059_vm14, %v18058_v4, %v4448_v16  ;;  %7909 = vrot.lane.b32.xlu1 %v15145_v11, %s17817_s9  ;;  %8759 = vrot.lane.b32.xlu0 %v15187_v14, %s17475_s12  ;;  %vm18066_vm4 = vcmask 7168   ;;  %v12283_v1 = vld [vmem:[#allocation6 + $0x8] ss:$16 sps:$4 sm:$0xff]   ;;  %vm18068_vm14 = vmmov %vm18063_vm6 }
 0x46f   : > { %v4458_v15 = vsel %vm18060_vm11, %v4457_v0, %v4442_v12  ;;  %v4455_v63 = vsel %vm18061_vm8, %v4454_v22, %v4438_v37  ;;  %v4524_v52 = vpop.permute.xlu1 %4523  ;;  %7033 = vmatpush1.bf16.msra.mxu1 %v12271_v17  ;;  %v4696_v19 = vpop.permute.xlu0 %4695  ;;  %6963 = vmatmul.mubr.bf16.gmra.mxu0 %v15546_v42  ;;  %v18067_v12 = vrot.slane %v14425_v34, 4  ;;  %v18069_v17 = vrot.slane %v15087_v41, 4  ;;  %vm18070_vm11 = vmmov %vm18063_vm6  ;;  %v12298_v16 = vld [vmem:[#allocation6 + $0x268] ss:$16 sps:$4 sm:$0xff]   ;;  %v12306_v22 = vld [vmem:[#allocation6 + $0x24c] ss:$16 sps:$4 sm:$0xff]  }
 0x470   : > { %v12280_v32 = vld [vmem:[#allocation6 + $0x28] ss:$16 sps:$4 sm:$0xff]   ;;  %v12282_v46 = vld [vmem:[#allocation6 + $0x2c] ss:$16 sps:$4 sm:$0xff]   ;;  %4471 = vst.msk [vmem:[#allocation6 + $0x198] sm:$0xff] %vm14177_vm7, %v4458_v15  ;;  %4469 = vst.msk [vmem:[#allocation6 + $0x188] sm:$0xff] %vm14177_vm7, %v4455_v63  ;;  %7078 = vmatpush1.bf16.msra.mxu0 %v12286_v8  ;;  %7105 = vmatprep.mubr.bf16.mxu0 %v12573_v47 }
 0x471   : > { %v4530_v33 = vrot.slane %v4524_v52, 4  ;;  %v4704_v6 = vrot.slane %v4696_v19, 4  ;;  %7034 = vmatprep.subr.bf16.mxu1 %v12282_v46  ;;  %7079 = vmatprep.subr.bf16.mxu0 %v12297_v27  ;;  %v12294_v10 = vld [vmem:[#allocation6 + $0x1ec] ss:$16 sps:$4 sm:$0xff]   ;;  %vm18071_vm8 = vmmov %vm18066_vm4  ;;  %v12292_v27 = vld [vmem:[#allocation6 + $0x1e8] ss:$16 sps:$4 sm:$0xff]  }
 0x472   : > { %8757 = vrot.lane.b32.xlu1 %v15145_v11, %s17475_s12  ;;  %8839 = vrot.lane.b32.xlu0 %v15218_v48, %s17820_s0  ;;  %v18073_v15 = vrot.slane %v15156_v28, 4 }
 0x473   : > { %v4538_v5 = vsel %vm18063_vm6, %v18062_v53, %v4530_v33  ;;  %v4711_v54 = vsel %vm18065_vm12, %v18064_v31, %v4704_v6  ;;  %v4692_v13 = vpop.permute.xlu1 %4691  ;;  %7035 = vmatpush1.bf16.msra.mxu1 %v12280_v32  ;;  %v4446_v50 = vpop.permute.xlu0 %4445  ;;  %vm18072_vm6 = vcmask 154624   ;;  %vm18074_vm12 = vmmov %vm18070_vm11  ;;  %v12304_v32 = vld [vmem:[#allocation6 + $0x248] ss:$16 sps:$4 sm:$0xff]   ;;  %v18078_v31 = vrot.slane %v15111_v40, 4 }
 0x474   : > { %v4539_v61 = vsel %vm18056_vm1, %v4538_v5, %v4524_v52  ;;  %v4712_v29 = vsel %vm18066_vm4, %v4711_v54, %v4696_v19  ;;  %v4702_v56 = vrot.slane %v4692_v13, 4  ;;  %v4452_v51 = vrot.slane %v4446_v50, 4  ;;  %7036 = vmatprep.subr.bf16.mxu1 %v12285_v38  ;;  %7080 = vmatpush1.bf16.msra.mxu0 %v12295_v7  ;;  %vm18076_vm1 = vmmov %vm18070_vm11 }
 0x475   : > { %4551 = vst.msk [vmem:[#allocation6 + $0x1d8] sm:$0xff] %vm14177_vm7, %v4539_v61  ;;  %4725 = vst.msk [vmem:[#allocation6 + $0x228] sm:$0xff] %vm14177_vm7, %v4712_v29  ;;  %7081 = vmatprep.subr.bf16.mxu0 %v12300_v59  ;;  %v18075_v52 = vrot.slane %v14751_v62, 4  ;;  %v18080_v38 = vrot.slane %v15225_v58, 4 }
 0x476   : > { %v4708_v37 = vsel %vm18068_vm14, %v18067_v12, %v4702_v56  ;;  %v4460_v36 = vsel %vm18070_vm11, %v18069_v17, %v4452_v51  ;;  %8837 = vrot.lane.b32.xlu1 %v15145_v11, %s17820_s0  ;;  %7839 = vrot.lane.b32.xlu0 %v15145_v11, %s17445_s29  ;;  %vm18077_vm14 = vcmask 162816   ;;  %vm18079_vm11 = vmmov %vm18076_vm1  ;;  %v18084_v51 = vld [vmem:[#allocation16_spill] sm:$0xff] }
 0x477   : > { %v4709_v45 = vsel %vm18071_vm8, %v4708_v37, %v4692_v13  ;;  %v4461_v0 = vsel %vm18072_vm6, %v4460_v36, %v4446_v50  ;;  %v4700_v4 = vpop.permute.xlu1 %4699  ;;  %7037 = vmatpush1.bf16.msra.mxu1 %v12283_v1  ;;  %v4364_v34 = vpop.permute.xlu0 %4363  ;;  %vm18081_vm8 = vmmov %vm18076_vm1  ;;  %v18085_v1 = vrot.slane %v18084_v51, 4  ;;  %v18086_v37 = vrot.slane %v15158_v30, 4  ;;  %v12312_v36 = vld [vmem:[#allocation6 + $0x18c] ss:$16 sps:$4 sm:$0xff]  }
 0x478   : > { %4723 = vst.msk [vmem:[#allocation6 + $0x218] sm:$0xff] %vm14177_vm7, %v4709_v45  ;;  %4473 = vst.msk [vmem:[#allocation6 + $0x1a8] sm:$0xff] %vm14177_vm7, %v4461_v0  ;;  %v4706_v41 = vrot.slane %v4700_v4, 4  ;;  %v4372_v8 = vrot.slane %v4364_v34, 4  ;;  %7038 = vmatprep.subr.bf16.mxu1 %v12294_v10  ;;  %7082 = vmatpush1.bf16.msra.mxu0 %v12298_v16 }
 0x479   : > { %7083 = vmatprep.subr.bf16.mxu0 %v12306_v22  ;;  %vm18082_vm6 = vmmov %vm18077_vm14 }
 0x47a   : > { %v4714_v63 = vsel %vm18074_vm12, %v18073_v15, %v4706_v41  ;;  %v4379_v19 = vsel %vm18076_vm1, %v18075_v52, %v4372_v8  ;;  %8749 = vrot.lane.b32.xlu1 %v15145_v11, %s17475_s12  ;;  %8751 = vrot.lane.b32.xlu0 %v15218_v48, %s17475_s12  ;;  %vm18083_vm12 = vcmask 15360   ;;  %v12310_v41 = vld [vmem:[#allocation6 + $0x188] ss:$16 sps:$4 sm:$0xff]  }
 0x47b   : > { %v4715_v46 = vsel %vm18066_vm4, %v4714_v63, %v4700_v4  ;;  %v4380_v33 = vsel %vm18077_vm14, %v4379_v19, %v4364_v34  ;;  %v4368_v6 = vpop.permute.xlu1 %4367  ;;  %7039 = vmatpush2.bf16.msra.mxu1 %v12292_v27  ;;  %v4612_v28 = vpop.permute.xlu0 %4611  ;;  %vm18087_vm4 = vmmov %vm18076_vm1  ;;  %v18090_v8 = vld [vmem:[#allocation35_spill] sm:$0xff] }
 0x47c   : > { %v12301_v47 = vld [vmem:[#allocation6 + $0x1c8] ss:$16 sps:$4 sm:$0xff]   ;;  %v12303_v53 = vld [vmem:[#allocation6 + $0x1cc] ss:$16 sps:$4 sm:$0xff]   ;;  %4727 = vst.msk [vmem:[#allocation6 + $0x238] sm:$0xff] %vm14177_vm7, %v4715_v46  ;;  %4393 = vst.msk [vmem:[#allocation6 + $0x168] sm:$0xff] %vm14177_vm7, %v4380_v33  ;;  %7084 = vmatpush1.bf16.msra.mxu0 %v12304_v32 }
 0x47d   : > { %v4374_v62 = vrot.slane %v4368_v6, 4  ;;  %v4618_v5 = vrot.slane %v4612_v28, 4  ;;  %7040 = vmatprep.subr.bf16.mxu1 %v12303_v53  ;;  %vm18088_vm14 = vmmov %vm18082_vm6  ;;  %v18091_v27 = vrot.slane %v18090_v8, 4  ;;  %v18093_v63 = vld [vmem:[#allocation27_spill] sm:$0xff] }
 0x47e   : > { %7761 = vrot.lane.b32.xlu1 %v15145_v11, %s17477_s10  ;;  %7831 = vrot.lane.b32.xlu0 %v15145_v11, %s17445_s29  ;;  %v18094_v52 = vrot.slane %v18093_v63, 4 }
 0x47f   : > { %v4382_v54 = vsel %vm18079_vm11, %v18078_v31, %v4374_v62  ;;  %v4626_v7 = vsel %vm18081_vm8, %v18080_v38, %v4618_v5  ;;  %v4360_v13 = vpop.permute.xlu1 %4359  ;;  %7041 = vmatpush2.bf16.msra.mxu1 %v12301_v47  ;;  %v4290_v50 = vpop.permute.xlu0 %4289  ;;  %v12307_v40 = vld [vmem:[#allocation6 + $0x1a8] ss:$16 sps:$4 sm:$0xff]   ;;  %v12309_v59 = vld [vmem:[#allocation6 + $0x1ac] ss:$16 sps:$4 sm:$0xff]   ;;  %vm18089_vm11 = vcmask 171008   ;;  %vm18092_vm8 = vmmov %vm18076_vm1  ;;  %v18098_v38 = vrot.slane %v15134_v23, 4 }
 0x480   : > { %v4383_v61 = vsel %vm18082_vm6, %v4382_v54, %v4368_v6  ;;  %v4627_v29 = vsel %vm18083_vm12, %v4626_v7, %v4612_v28  ;;  %v4370_v58 = vrot.slane %v4360_v13, 4  ;;  %v4296_v56 = vrot.slane %v4290_v50, 4  ;;  %7042 = vmatprep.subr.bf16.mxu1 %v12309_v59  ;;  %vm18095_vm6 = vmmov %vm18076_vm1  ;;  %v12327_v54 = vld [vmem:[#allocation6 + $0x3ec] ss:$16 sps:$4 sm:$0xff]  }
 0x481   : > { %4395 = vst.msk [vmem:[#allocation6 + $0x178] sm:$0xff] %vm14177_vm7, %v4383_v61  ;;  %4639 = vst.msk [vmem:[#allocation6 + $0x208] sm:$0xff] %vm14177_vm7, %v4627_v29  ;;  %v18099_v61 = vld [vmem:[#allocation36_spill] sm:$0xff] }
 0x482   : > { %v4376_v12 = vsel %vm18076_vm1, %v18085_v1, %v4370_v58  ;;  %v4304_v17 = vsel %vm18087_vm4, %v18086_v37, %v4296_v56  ;;  %8669 = vrot.lane.b32.xlu1 %v15145_v11, %s17821_s1  ;;  %8671 = vrot.lane.b32.xlu0 %v15187_v14, %s17821_s1  ;;  %vm18096_vm12 = vmmov %vm18089_vm11  ;;  %v18100_v29 = vrot.slane %v18099_v61, 4  ;;  %v12325_v58 = vld [vmem:[#allocation6 + $0x3e8] ss:$16 sps:$4 sm:$0xff]   ;;  %v12333_v56 = vld [vmem:[#allocation6 + $0x3cc] ss:$16 sps:$4 sm:$0xff]  }
 0x483   : > { %v4377_v10 = vsel %vm18088_vm14, %v4376_v12, %v4360_v13  ;;  %v4305_v16 = vsel %vm18089_vm11, %v4304_v17, %v4290_v50  ;;  %v4286_v45 = vpop.permute.xlu1 %4285  ;;  %7043 = vmatpush2.bf16.msra.mxu1 %v12307_v40  ;;  %v4282_v0 = vpop.permute.xlu0 %4281  ;;  %v12313_v4 = vld [vmem:[#allocation6 + $0x228] ss:$16 sps:$4 sm:$0xff]   ;;  %v12315_v34 = vld [vmem:[#allocation6 + $0x22c] ss:$16 sps:$4 sm:$0xff]   ;;  %vm18097_vm1 = vmmov %vm18089_vm11  ;;  %vm18102_vm11 = vcmask 179200  }
 0x484   : > { %4391 = vst.msk [vmem:[#allocation6 + $0x158] sm:$0xff] %vm14177_vm7, %v4377_v10  ;;  %4317 = vst.msk [vmem:[#allocation6 + $0x148] sm:$0xff] %vm14177_vm7, %v4305_v16  ;;  %v4294_v30 = vrot.slane %v4286_v45, 4  ;;  %v4292_v22 = vrot.slane %v4282_v0, 4  ;;  %7044 = vmatprep.subr.bf16.mxu1 %v12312_v36  ;;  %7085 = vmatprep.subr.bf16.mxu0 %v12315_v34  ;;  %v12331_v12 = vld [vmem:[#allocation6 + $0x3c8] ss:$16 sps:$4 sm:$0xff]  }
 0x485   : > { %7086 = vmatpush1.bf16.msra.mxu0 %v12313_v4  ;;  %vm18101_vm14 = vmmov %vm18087_vm4  ;;  %v12339_v37 = vld [vmem:[#allocation6 + $0x3ac] ss:$16 sps:$4 sm:$0xff]   ;;  %v12360_v61 = vld [vmem:[#allocation6 + $0x448] ss:$16 sps:$4 sm:$0xff]  }
 0x486   : > { %v4301_v15 = vsel %vm18092_vm8, %v18091_v27, %v4294_v30  ;;  %v4298_v19 = vsel %vm18095_vm6, %v18094_v52, %v4292_v22  ;;  %7753 = vrot.lane.b32.xlu1 %v15145_v11, %s17477_s10  ;;  %8583 = vrot.lane.b32.xlu0 %v15187_v14, %s17822_s2  ;;  %vm18103_vm8 = vmmov %vm18102_vm11  ;;  %v6039_v17 = vld [vmem:[#allocation6 + $0x4a8] sm:$0xff] }
 0x487   : > { %v4302_v32 = vsel %vm18096_vm12, %v4301_v15, %v4286_v45  ;;  %v4299_v46 = vsel %vm18097_vm1, %v4298_v19, %v4282_v0  ;;  %v4212_v33 = vpop.permute.xlu1 %4211  ;;  %7045 = vmatpush2.bf16.msra.mxu1 %v12310_v41  ;;  %v4208_v6 = vpop.permute.xlu0 %4207  ;;  %v12337_v0 = vld [vmem:[#allocation6 + $0x3a8] ss:$16 sps:$4 sm:$0xff]   ;;  %v11323_v4 = vcombine.high %v6039_v17, %v6039_v17  ;;  %v11322_v34 = vcombine.low %v6039_v17, %v6039_v17  ;;  %v12342_v30 = vld [vmem:[#allocation6 + $0x38c] ss:$16 sps:$4 sm:$0xff]   ;;  %vm18104_vm6 = vmmov %vm18087_vm4 }
 0x488   : > { %v12316_v28 = vld [vmem:[#allocation6 + $0x168] ss:$16 sps:$4 sm:$0xff]   ;;  %v12318_v47 = vld [vmem:[#allocation6 + $0x16c] ss:$16 sps:$4 sm:$0xff]   ;;  %4315 = vst.msk [vmem:[#allocation6 + $0x138] sm:$0xff] %vm14177_vm7, %v4302_v32  ;;  %4313 = vst.msk [vmem:[#allocation6 + $0x128] sm:$0xff] %vm14177_vm7, %v4299_v46 }
 0x489   : > { %v4218_v53 = vrot.slane %v4212_v33, 4  ;;  %v4216_v62 = vrot.slane %v4208_v6, 4  ;;  %v12319_v5 = vld [vmem:[#allocation6 + $0x208] ss:$16 sps:$4 sm:$0xff]   ;;  %7046 = vmatprep.subr.bf16.mxu1 %v12318_v47  ;;  %v12321_v31 = vld [vmem:[#allocation6 + $0x20c] ss:$16 sps:$4 sm:$0xff]   ;;  %vm18105_vm12 = vmmov %vm18087_vm4 }
 0x48a   : > { %8581 = vrot.lane.b32.xlu1 %v15145_v11, %s17822_s2  ;;  %7087 = vmatprep.subr.bf16.mxu0 %v12321_v31  ;;  %v12340_v41 = vld [vmem:[#allocation6 + $0x388] ss:$16 sps:$4 sm:$0xff]   ;;  %v6864_v8 = vsel %vm18105_vm12, %v11322_v34, 0  ;;  %v12350_v27 = vld [vmem:[#allocation6 + $0x48c] ss:$16 sps:$4 sm:$0xff]   ;;  %vm18106_vm1 = vcmask 310272  }
 0x48b   : > { %v4226_v7 = vsel %vm18087_vm4, %v18098_v38, %v4218_v53  ;;  %v4223_v13 = vsel %vm18101_vm14, %v18100_v29, %v4216_v62  ;;  %7047 = vmatpush2.bf16.msra.mxu1 %v12316_v28  ;;  %v12322_v59 = vld [vmem:[#allocation6 + $0x148] ss:$16 sps:$4 sm:$0xff]   ;;  %7088 = vmatpush1.bf16.msra.mxu0 %v12319_v5  ;;  %v12324_v23 = vld [vmem:[#allocation6 + $0x14c] ss:$16 sps:$4 sm:$0xff]   ;;  %vm18107_vm4 = vcmask 306176   ;;  %vm18108_vm14 = vmmov %vm18103_vm8 }
 0x48c   : > { %v4227_v50 = vsel %vm18102_vm11, %v4226_v7, %v4212_v33  ;;  %v4224_v40 = vsel %vm18103_vm8, %v4223_v13, %v4208_v6  ;;  %8663 = vrot.lane.b32.xlu0 %v15218_v48, %s17821_s1  ;;  %7089 = vmatprep.subr.bf16.mxu0 %v12327_v54  ;;  %v12348_v52 = vld [vmem:[#allocation6 + $0x488] ss:$16 sps:$4 sm:$0xff]   ;;  %v12356_v46 = vld [vmem:[#allocation6 + $0x46c] ss:$16 sps:$4 sm:$0xff]   ;;  %vm18109_vm11 = vcmask 175104   ;;  %vm18110_vm8 = vmmov %vm18104_vm6 }
 0x48d   : > { %4239 = vst.msk [vmem:[#allocation6 + $0x118] sm:$0xff] %vm14177_vm7, %v4227_v50  ;;  %4237 = vst.msk [vmem:[#allocation6 + $0x108] sm:$0xff] %vm14177_vm7, %v4224_v40  ;;  %7048 = vmatprep.subr.bf16.mxu1 %v12324_v23  ;;  %v12345_v32 = vld [vmem:[#allocation6 + $0x368] ss:$16 sps:$4 sm:$0xff]   ;;  %v12353_v33 = vld [vmem:[#allocation6 + $0x34c] ss:$16 sps:$4 sm:$0xff]  }
 0x48e   : > { %8661 = vrot.lane.b32.xlu1 %v15145_v11, %s17821_s1  ;;  %v12354_v6 = vld [vmem:[#allocation6 + $0x468] ss:$16 sps:$4 sm:$0xff]   ;;  %v12362_v62 = vld [vmem:[#allocation6 + $0x44c] ss:$16 sps:$4 sm:$0xff]   ;;  %vm18112_vm12 = vmmov %vm18106_vm1 }
 0x48f   : > { %7049 = vmatpush2.bf16.msra.mxu1 %v12322_v59  ;;  %v12328_v51 = vld [vmem:[#allocation6 + $0x128] ss:$16 sps:$4 sm:$0xff]   ;;  %7090 = vmatpush2.bf16.msra.mxu0 %v12325_v58  ;;  %v12330_v1 = vld [vmem:[#allocation6 + $0x12c] ss:$16 sps:$4 sm:$0xff]  }
 0x490   : > { %7683 = vrot.lane.b32.xlu0 %v15145_v11, %s17446_s30  ;;  %7091 = vmatprep.subr.bf16.mxu0 %v12333_v56  ;;  %v12351_v53 = vld [vmem:[#allocation6 + $0x348] ss:$16 sps:$4 sm:$0xff]   ;;  %v12359_v54 = vld [vmem:[#allocation6 + $0x32c] ss:$16 sps:$4 sm:$0xff]  }
 0x491   : > { %7050 = vmatprep.subr.bf16.mxu1 %v12330_v1  ;;  %v12357_v40 = vld [vmem:[#allocation6 + $0x328] ss:$16 sps:$4 sm:$0xff]   ;;  %v12365_v58 = vld [vmem:[#allocation6 + $0x30c] ss:$16 sps:$4 sm:$0xff]  }
 0x492   : > { %8573 = vrot.lane.b32.xlu1 %v15145_v11, %s17822_s2  ;;  %v12366_v1 = vld [vmem:[#allocation6 + $0x428] ss:$16 sps:$4 sm:$0xff]  }
 0x493   : > { %7051 = vmatpush2.bf16.msra.mxu1 %v12328_v51  ;;  %7092 = vmatpush2.bf16.msra.mxu0 %v12331_v12  ;;  %v12363_v17 = vld [vmem:[#allocation6 + $0x308] ss:$16 sps:$4 sm:$0xff]  }
 0x494   : > { %v12334_v36 = vld [vmem:[#allocation6 + $0x108] ss:$16 sps:$4 sm:$0xff]   ;;  %v15690_v10 = vpop.permute.xlu1 %6050  ;;  %v15692_v16 = vpop.permute.xlu0 %6045  ;;  %v12336_v45 = vld [vmem:[#allocation6 + $0x10c] ss:$16 sps:$4 sm:$0xff]   ;;  %8575 = vrot.lane.b32.xlu0 %v15218_v48, %s17822_s2  ;;  %7093 = vmatprep.subr.bf16.mxu0 %v12339_v37 }
 0x495   : > { %7052 = vmatprep.subr.bf16.mxu1 %v12336_v45  ;;  %v12347_v48 = vld [vmem:[#allocation6 + $0x36c] ss:$16 sps:$4 sm:$0xff]  }
 0x496   : > { %9285 = vrot.lane.b32.xlu1 %v15145_v11, %s17819_s17 }
 0x497   : > { %7053 = vmatpush2.bf16.msra.mxu1 %v12334_v36  ;;  %7094 = vmatpush2.bf16.msra.mxu0 %v12337_v0  ;;  %v12371_v36 = vld [vmem:[#allocation6 + $0x40c] ss:$16 sps:$4 sm:$0xff]  }
 0x498   : > { %v15698_v22 = vpop.permute.xlu0 %6055  ;;  %11327 = vmatprep.subr.msk.bf16.mxu1 %vm18104_vm6, %v11323_v4  ;;  %v15702_v15 = vpop.permute.xlu1 %7605  ;;  %7095 = vmatprep.subr.bf16.mxu0 %v12342_v30  ;;  %vm18111_vm6 = vcmask 900096  }
 0x499   : > { %v17358_v63 = vrot.slane %v15702_v15, 4  ;;  %9287 = vrot.lane.b32.xlu0 %v15187_v14, %s17819_s17 }
 0x49a   : > { %7055 = vmatmul.mubr.bf16.vlgmr.msra.gmra.mxu1 %v15308_v39  ;;  %7607 = vrot.lane.b32.xlu1 %v15145_v11, %s17489_s18 }
 0x49b   : > { %7129 = vmatpush1.bf16.msra.mxu1 %v6864_v8  ;;  %7064 = vmatprep.mubr.bf16.mxu1 %v15318_v44  ;;  %v7621_v19 = vsel %vm18106_vm1, %v17358_v63, %v15702_v15  ;;  %vm18113_vm1 = vmmov %vm18111_vm6 }
 0x49c   : > { %7096 = vmatpush2.bf16.msra.mxu0 %v12340_v41  ;;  %7130 = vmatprep.subr.bf16.mxu1 %v12350_v27  ;;  %7634 = vst.msk [vmem:[#allocation9 + $0xe0] sm:$0xff] %vm12951_vm3, %v7621_v19  ;;  %v15717_v14 = vpop.permute.xlu0 %7675  ;;  %v8494_v39 = vpop.permute.xlu1 %8493  ;;  %v12369_v41 = vld [vmem:[#allocation6 + $0x408] ss:$16 sps:$4 sm:$0xff]  }
 0x49d   : > { %7097 = vmatprep.subr.bf16.mxu0 %v12347_v48  ;;  %7638 = vst.msk [vmem:[#allocation9 + $0xe0] sm:$0xf] %vm18107_vm4, %v17542_v43  ;;  %v17354_v44 = vrot.slane %v15717_v14, 4  ;;  %7677 = vrot.lane.b32.xlu0 %v15145_v11, %s17446_s30  ;;  %v8501_v47 = vrot.slane %v8494_v39, 4  ;;  %vm18114_vm4 = vcmask 1027072  }
 0x49e   : > { %9277 = vrot.lane.b32.xlu1 %v15145_v11, %s17819_s17 }
 0x49f   : > { %7131 = vmatpush1.bf16.msra.mxu1 %v12348_v52  ;;  %v7693_v28 = vsel %vm18108_vm14, %v17354_v44, %v15717_v14  ;;  %vm18115_vm14 = vcmask 306176  }
 0x4a0   : > { %7098 = vmatpush2.bf16.msra.mxu0 %v12345_v32  ;;  %7132 = vmatprep.subr.bf16.mxu1 %v12356_v46  ;;  %7708 = vst.msk [vmem:[#allocation9 + $0xf0] sm:$0xff] %vm17948_vm13, %v7693_v28  ;;  %v8496_v5 = vpop.permute.xlu0 %8495  ;;  %v15732_v31 = vpop.permute.xlu1 %7597 }
 0x4a1   : > { %7099 = vmatprep.subr.bf16.mxu0 %v12353_v33  ;;  %7714 = vst.msk [vmem:[#allocation9 + $0xf0] sm:$0xf] %vm18109_vm11, %v17542_v43  ;;  %v8502_v38 = vrot.slane %v8496_v5, 4  ;;  %v17353_v7 = vrot.slane %v15732_v31, 4  ;;  %vm18116_vm11 = vcmask 1031168  }
 0x4a2   : > { %7065 = vmatmul.mubr.bf16.gmra.mxu1 %v15353_v60  ;;  %7599 = vrot.lane.b32.xlu1 %v15145_v11, %s17489_s18  ;;  %v12368_v60 = vld [vmem:[#allocation6 + $0x42c] ss:$16 sps:$4 sm:$0xff]  }
 0x4a3   : > { %7133 = vmatpush1.bf16.msra.mxu1 %v12354_v6  ;;  %7156 = vmatprep.mubr.bf16.mxu1 %v17542_v43  ;;  %v8509_v29 = vsel %vm18110_vm8, %v8501_v47, %v8502_v38  ;;  %v8511_v13 = vsel %vm18111_vm6, %v8496_v5, %v8502_v38  ;;  %v7615_v50 = vsel %vm18112_vm12, %v17353_v7, %v15732_v31  ;;  %vm18117_vm6 = vmmov %vm18116_vm11  ;;  %vm18118_vm12 = vcmask 126064   ;;  %v18224_v7 = vld [vmem:[#allocation19_spill] sm:$0xff] }
 0x4a4   : > { %7100 = vmatpush2.bf16.msra.mxu0 %v12351_v53  ;;  %7134 = vmatprep.subr.bf16.mxu1 %v12362_v62  ;;  %v8510_v59 = vsel %vm18113_vm1, %v8494_v39, %v8509_v29  ;;  %8523 = vst.msk [vmem:[#allocation9 + $0x2f8] sm:$0xf] %vm18114_vm4, %v8511_v13  ;;  %v8408_v11 = vpop.permute.xlu0 %8407  ;;  %v8406_v23 = vpop.permute.xlu1 %8405  ;;  %vm18119_vm4 = vmmov %vm18110_vm8  ;;  %v9234_v29 = vld [vmem:[#allocation8 + $0x18] sm:$0xff] }
 0x4a5   : > { %7630 = vst.msk [vmem:[#allocation9 + $0xc0] sm:$0xff] %vm12951_vm3, %v7615_v50  ;;  %7101 = vmatprep.subr.bf16.mxu0 %v12359_v54  ;;  %8522 = vst [vmem:[#allocation9 + $0x2f0] sm:$0xff] %v8510_v59  ;;  %v8414_v56 = vrot.slane %v8408_v11, 4  ;;  %v8413_v51 = vrot.slane %v8406_v23, 4  ;;  %v18130_v54 = vld [vmem:[#allocation21_spill] sm:$0xff] }
 0x4a6   : > { %8526 = vst.msk [vmem:[#allocation9 + $0x2f8] sm:$0xff] %vm17959_vm15, %v17542_v43 }
 0x4a7   : > { %7636 = vst.msk [vmem:[#allocation9 + $0xc0] sm:$0xf] %vm18115_vm14, %v17542_v43  ;;  %7135 = vmatpush1.bf16.msra.mxu1 %v12360_v61  ;;  %v8423_v12 = vsel %vm18116_vm11, %v8408_v11, %v8414_v56  ;;  %v8421_v37 = vsel %vm18110_vm8, %v8413_v51, %v8414_v56  ;;  %vm18120_vm14 = vcmask 1027072   ;;  %vm18121_vm11 = vmmov %vm18113_vm1  ;;  %vm18122_vm8 = vcmask 318464  }
 0x4a8   : > { %7102 = vmatpush2.bf16.msra.mxu0 %v12357_v40  ;;  %7136 = vmatprep.subr.bf16.mxu1 %v12368_v60  ;;  %8435 = vst.msk [vmem:[#allocation9 + $0x2c8] sm:$0xff] %vm17963_vm5, %v8423_v12  ;;  %v8422_v45 = vsel %vm18117_vm6, %v8406_v23, %v8421_v37  ;;  %v8488_v0 = vpop.permute.xlu0 %8487  ;;  %v8486_v4 = vpop.permute.xlu1 %8485  ;;  %vm18124_vm6 = vcmask 314368   ;;  %v15812_v40 = vld [vmem:[#allocation8] sm:$0xff] }
 0x4a9   : > { %7103 = vmatprep.subr.bf16.mxu0 %v12365_v58  ;;  %8438 = vst.msk [vmem:[#allocation9 + $0x2cc] sm:$0xf] %vm18118_vm12, %v17542_v43  ;;  %8434 = vst [vmem:[#allocation9 + $0x2c0] sm:$0xff] %v8422_v45  ;;  %v8498_v34 = vrot.slane %v8488_v0, 4  ;;  %v8497_v30 = vrot.slane %v8486_v4, 4  ;;  %vm18125_vm12 = vcmask 719872   ;;  %v15815_v60 = vpack.c.bf16 %v9234_v29, %v15812_v40 }
 0x4aa   : > { %v9154_v58 = vld [vmem:[#allocation8 + $0x58] sm:$0xff] }
 0x4ab   : > { %7137 = vmatpush1.bf16.msra.mxu1 %v12366_v1  ;;  %v8505_v8 = vsel %vm18113_vm1, %v8488_v0, %v8498_v34  ;;  %v8503_v27 = vsel %vm18119_vm4, %v8497_v30, %v8498_v34  ;;  %vm18126_vm1 = vmmov %vm18119_vm4  ;;  %vm18127_vm4 = vcmask 1031168   ;;  %9279 = vrot.lane.b32.xlu0 %v15815_v60, %s17819_s17 }
 0x4ac   : > { %7104 = vmatpush2.bf16.msra.mxu0 %v12363_v17  ;;  %7138 = vmatprep.subr.bf16.mxu1 %v12371_v36  ;;  %8519 = vst.msk [vmem:[#allocation9 + $0x2d8] sm:$0xf] %vm18120_vm14, %v8505_v8  ;;  %v8504_v48 = vsel %vm18121_vm11, %v8486_v4, %v8503_v27  ;;  %v15767_v52 = vpop.permute.xlu0 %7527  ;;  %v8398_v19 = vpop.permute.xlu1 %8397  ;;  %vm18128_vm14 = vcmask 326656   ;;  %vm18129_vm11 = vmmov %vm18127_vm4  ;;  %v15841_v17 = vpack.c.bf16 %v15812_v40, %v15812_v40 }
 0x4ad   : > { %8524 = vst.msk [vmem:[#allocation9 + $0x2d8] sm:$0xff] %vm17959_vm15, %v17542_v43  ;;  %8518 = vst [vmem:[#allocation9 + $0x2d0] sm:$0xff] %v8504_v48  ;;  %v17349_v32 = vrot.slane %v15767_v52, 4  ;;  %v8409_v39 = vrot.slane %v8398_v19, 4  ;;  %v15844_v36 = vpack.c.bf16 %v9154_v58, %v15812_v40  ;;  %vm18171_vm15 = vcmask 1043456  }
 0x4ae   : > { %9197 = vrot.lane.b32.xlu1 %v15841_v17, %s17697_s22  ;;  %8261 = vst [vmem:[#allocation9 + $0x260] sm:$0xff] %v15841_v17 }
 0x4af   : > { %7106 = vmatmul.mubr.bf16.vlgmr.msra.gmra.mxu0 %v15496_v21  ;;  %7139 = vmatpush1.bf16.msra.mxu1 %v12369_v41  ;;  %v7543_v46 = vsel %vm18122_vm8, %v17349_v32, %v15767_v52  ;;  %vm18131_vm8 = vnez %v18130_v54 }
 0x4b0   : > { %7115 = vmatprep.mubr.bf16.mxu0 %v15514_v55  ;;  %7556 = vst.msk [vmem:[#allocation9 + $0xb0] sm:$0xff] %vm12903_vm9, %v7543_v46  ;;  %v8400_v6 = vpop.permute.xlu0 %8399  ;;  %v15781_v28 = vpop.permute.xlu1 %7449  ;;  %9199 = vrot.lane.b32.xlu0 %v15844_v36, %s17697_s22 }
 0x4b1   : > { %7560 = vst.msk [vmem:[#allocation9 + $0xb0] sm:$0xf] %vm18124_vm6, %v17542_v43  ;;  %v8410_v47 = vrot.slane %v8400_v6, 4  ;;  %v17351_v21 = vrot.slane %v15781_v28, 4  ;;  %vm18132_vm6 = vcmask 126064  }
 0x4b2   : > { %11328 = vmatmul.mubr.msk.bf16.vlgmr.msra.gmra.mxu1 %vm18125_vm12, %v15429_v49  ;;  %vm18133_vm12 = vcmask 322560  }
 0x4b3   : > { %7166 = vmatprep.mubr.bf16.mxu1 %v17542_v43  ;;  %v8415_v53 = vsel %vm18126_vm1, %v8409_v39, %v8410_v47  ;;  %v8417_v55 = vsel %vm18127_vm4, %v8400_v6, %v8410_v47  ;;  %v7465_v62 = vsel %vm18128_vm14, %v17351_v21, %v15781_v28  ;;  %vm18134_vm1 = vcmask 318464   ;;  %v18150_v39 = vld [vmem:[#allocation20_spill] sm:$0xff]  ;;  %v18152_v6 = vld [vmem:[#allocation22_spill] sm:$0xff] }
 0x4b4   : > { %v8416_v5 = vsel %vm18129_vm11, %v8398_v19, %v8415_v53  ;;  %8431 = vst.msk [vmem:[#allocation9 + $0x2a8] sm:$0xff] %vm17963_vm5, %v8417_v55  ;;  %v15800_v49 = vpop.permute.xlu0 %7519  ;;  %v8318_v38 = vpop.permute.xlu1 %8317  ;;  %vm18135_vm4 = vcmask 314368   ;;  %vm18136_vm14 = vcmask 719872   ;;  %vm18137_vm11 = vcmask 1043456  }
 0x4b5   : > { %7478 = vst.msk [vmem:[#allocation9 + $0x80] sm:$0xff] %vm18131_vm8, %v7465_v62  ;;  %8430 = vst [vmem:[#allocation9 + $0x2a0] sm:$0xff] %v8416_v5  ;;  %v17344_v61 = vrot.slane %v15800_v49, 4  ;;  %v8325_v50 = vrot.slane %v8318_v38, 4  ;;  %vm18169_vm5 = vcmask 15360  }
 0x4b6   : > { %8436 = vst.msk [vmem:[#allocation9 + $0x2ac] sm:$0xf] %vm18132_vm6, %v17542_v43  ;;  %vm18138_vm6 = vcmask 1039360  }
 0x4b7   : > { %7482 = vst.msk [vmem:[#allocation9 + $0x80] sm:$0xf] %vm18133_vm12, %v17542_v43  ;;  %7116 = vmatmul.mubr.bf16.gmra.mxu0 %v15546_v42  ;;  %v7537_v13 = vsel %vm18134_vm1, %v17344_v61, %v15800_v49  ;;  %vm18139_vm12 = vcmask 326656   ;;  %vm18140_vm1 = vmmov %vm18138_vm6 }
 0x4b8   : > { %7552 = vst.msk [vmem:[#allocation9 + $0x90] sm:$0xff] %vm12903_vm9, %v7537_v13  ;;  %v8320_v59 = vpop.permute.xlu0 %8319  ;;  %v15819_v11 = vpop.permute.xlu1 %7441 }
 0x4b9   : > { %7558 = vst.msk [vmem:[#allocation9 + $0x90] sm:$0xf] %vm18135_vm4, %v17542_v43  ;;  %v8326_v42 = vrot.slane %v8320_v59, 4  ;;  %v17347_v23 = vrot.slane %v15819_v11, 4  ;;  %vm18141_vm4 = vcmask 126072  }
 0x4ba   : > { %11329 = vmatmul.mubr.msk.bf16.gmra.mxu1 %vm18136_vm14, %v15475_v18  ;;  %vm18142_vm14 = vcmask 322560  }
 0x4bb   : > { %v8333_v56 = vsel %vm18137_vm11, %v8325_v50, %v8326_v42  ;;  %v8335_v51 = vsel %vm18138_vm6, %v8320_v59, %v8326_v42  ;;  %v7459_v1 = vsel %vm18139_vm12, %v17347_v23, %v15819_v11  ;;  %vm18143_vm11 = vmmov %vm18140_vm1  ;;  %vm18144_vm6 = vcmask 1043456  }
 0x4bc   : > { %v8334_v12 = vsel %vm18140_vm1, %v8318_v38, %v8333_v56  ;;  %8347 = vst.msk [vmem:[#allocation9 + $0x298] sm:$0xff] %vm17968_vm10, %v8335_v51  ;;  %v8312_v37 = vpop.permute.xlu0 %8311  ;;  %v8310_v18 = vpop.permute.xlu1 %8309  ;;  %vm18145_vm12 = vmmov %vm18140_vm1  ;;  %v18161_v56 = vld [vmem:[#allocation12_spill] sm:$0xff]  ;;  %v18163_v51 = vld [vmem:[#allocation15_spill] sm:$0xff] }
 0x4bd   : > { %7474 = vst.msk [vmem:[#allocation9 + $0x60] sm:$0xff] %vm18131_vm8, %v7459_v1  ;;  %8346 = vst [vmem:[#allocation9 + $0x290] sm:$0xff] %v8334_v12  ;;  %v8322_v45 = vrot.slane %v8312_v37, 4  ;;  %v8321_v0 = vrot.slane %v8310_v18, 4 }
 0x4be   : > { %8350 = vst.msk [vmem:[#allocation9 + $0x29c] sm:$0xf] %vm18141_vm4, %v17542_v43  ;;  %vm18147_vm1 = vmmov %vm18141_vm4  ;;  %vm18148_vm4 = vcmask 334848  }
 0x4bf   : > { %7480 = vst.msk [vmem:[#allocation9 + $0x60] sm:$0xf] %vm18142_vm14, %v17542_v43  ;;  %v8329_v4 = vsel %vm18143_vm11, %v8312_v37, %v8322_v45  ;;  %v8327_v34 = vsel %vm18144_vm6, %v8321_v0, %v8322_v45  ;;  %vm18149_vm14 = vcmask 343040   ;;  %vm18151_vm11 = vnez %v18150_v39 }
 0x4c0   : > { %8343 = vst.msk [vmem:[#allocation9 + $0x278] sm:$0xff] %vm17968_vm10, %v8329_v4  ;;  %v8328_v30 = vsel %vm18145_vm12, %v8310_v18, %v8327_v34  ;;  %v15859_v41 = vpop.permute.xlu0 %7371  ;;  %v15861_v8 = vpop.permute.xlu1 %7293  ;;  %vm18153_vm6 = vnez %v18152_v6  ;;  %vm18155_vm12 = vcmask 330752   ;;  %vm18166_vm10 = vcmask 3072  }
 0x4c1   : > { %18146 = vst [vmem:[#allocation16_spill] sm:$0xff] %v15859_v41  ;;  %8348 = vst.msk [vmem:[#allocation9 + $0x27c] sm:$0xf] %vm18147_vm1, %v17542_v43  ;;  %v17337_v27 = vrot.slane %v15859_v41, 4  ;;  %v17345_v48 = vrot.slane %v15861_v8, 4  ;;  %vm18156_vm1 = vcmask 338944  }
 0x4c2   : > { %8342 = vst [vmem:[#allocation9 + $0x270] sm:$0xff] %v8328_v30 }
 0x4c3   : > { %v7387_v19 = vsel %vm18148_vm4, %v17337_v27, %v15859_v41  ;;  %v7309_v46 = vsel %vm18149_vm14, %v17345_v48, %v15861_v8  ;;  %v18192_v27 = vld [vmem:[#allocation17_spill] sm:$0xff] }
 0x4c4   : > { %7400 = vst.msk [vmem:[#allocation9 + $0x50] sm:$0xff] %vm18151_vm11, %v7387_v19  ;;  %v15879_v47 = vpop.permute.xlu0 %7363  ;;  %v15881_v53 = vpop.permute.xlu1 %7285  ;;  %v18202_v48 = vld [vmem:[#allocation33_spill] sm:$0xff] }
 0x4c5   : > { %7322 = vst.msk [vmem:[#allocation9 + $0x20] sm:$0xff] %vm18153_vm6, %v7309_v46  ;;  %18154 = vst [vmem:[#allocation35_spill] sm:$0xff] %v15879_v47  ;;  %v17334_v55 = vrot.slane %v15879_v47, 4  ;;  %v17343_v62 = vrot.slane %v15881_v53, 4 }
 0x4c6   : > { %7404 = vst.msk [vmem:[#allocation9 + $0x50] sm:$0xf] %vm18155_vm12, %v17542_v43 }
 0x4c7   : > { %7326 = vst.msk [vmem:[#allocation9 + $0x20] sm:$0xf] %vm18156_vm1, %v17542_v43  ;;  %v7381_v5 = vsel %vm18148_vm4, %v17334_v55, %v15879_v47  ;;  %v7303_v38 = vsel %vm18149_vm14, %v17343_v62, %v15881_v53  ;;  %vm18159_vm4 = vcmask 7168   ;;  %vm18160_vm14 = vcmask 15360  }
 0x4c8   : > { %7396 = vst.msk [vmem:[#allocation9 + $0x30] sm:$0xff] %vm18151_vm11, %v7381_v5  ;;  %v15901_v29 = vpop.permute.xlu0 %8171  ;;  %v15903_v13 = vpop.permute.xlu1 %8083 }
 0x4c9   : > { %7318 = vst.msk [vmem:[#allocation9] sm:$0xff] %vm18153_vm6, %v7303_v38  ;;  %18157 = vst [vmem:[#allocation27_spill] sm:$0xff] %v15901_v29  ;;  %v17333_v50 = vrot.slane %v15901_v29, 4  ;;  %v17339_v59 = vrot.slane %v15903_v13, 4  ;;  %vm18193_vm6 = vnez %v18192_v27  ;;  %v12381_v27 = vld [vmem:[#allocation9 + $0x80] ss:$16 sps:$4 sm:$0xff]  }
 0x4ca   : > { %18158 = vst [vmem:[#allocation36_spill] sm:$0xff] %v15903_v13  ;;  %7402 = vst.msk [vmem:[#allocation9 + $0x30] sm:$0xf] %vm18155_vm12, %v17542_v43  ;;  %vm18162_vm12 = vnez %v18161_v56 }
 0x4cb   : > { %7324 = vst.msk [vmem:[#allocation9] sm:$0xf] %vm18156_vm1, %v17542_v43  ;;  %v8187_v42 = vsel %vm18159_vm4, %v17333_v50, %v15901_v29  ;;  %v8099_v58 = vsel %vm18160_vm14, %v17339_v59, %v15903_v13  ;;  %vm18164_vm1 = vnez %v18163_v51  ;;  %vm18167_vm4 = vcmask 11264  }
 0x4cc   : > { %8200 = vst.msk [vmem:[#allocation9 + $0x230] sm:$0xff] %vm18162_vm12, %v8187_v42  ;;  %v15924_v1 = vpop.permute.xlu0 %8163  ;;  %v15926_v12 = vpop.permute.xlu1 %8075  ;;  %vm18168_vm14 = vcmask 7168  }
 0x4cd   : > { %8112 = vst.msk [vmem:[#allocation9 + $0x200] sm:$0xff] %vm18164_vm1, %v8099_v58  ;;  %18165 = vst [vmem:[#allocation18_spill] sm:$0xff] %v15924_v1  ;;  %v17332_v37 = vrot.slane %v15924_v1, 4  ;;  %v17340_v18 = vrot.slane %v15926_v12, 4 }
 0x4ce   : > { %8204 = vst.msk [vmem:[#allocation9 + $0x230] sm:$0xf] %vm18166_vm10, %v17542_v43 }
 0x4cf   : > { %8116 = vst.msk [vmem:[#allocation9 + $0x200] sm:$0xf] %vm18167_vm4, %v17542_v43  ;;  %v8181_v45 = vsel %vm18168_vm14, %v17332_v37, %v15924_v1  ;;  %v8093_v0 = vsel %vm18169_vm5, %v17340_v18, %v15926_v12  ;;  %vm18170_vm14 = vcmask 736256   ;;  %vm18172_vm5 = vcmask 863232  }
 0x4d0   : > { %8196 = vst.msk [vmem:[#allocation9 + $0x210] sm:$0xff] %vm18162_vm12, %v8181_v45  ;;  %v8936_v4 = vpop.permute.xlu0 %8935  ;;  %v8934_v34 = vpop.permute.xlu1 %8933  ;;  %vm18173_vm12 = vmmov %vm18170_vm14  ;;  %v18174_v45 = vld [vmem:[#allocation32_spill] sm:$0xff] }
 0x4d1   : > { %8108 = vst.msk [vmem:[#allocation9 + $0x1e0] sm:$0xff] %vm18164_vm1, %v8093_v0  ;;  %v8942_v30 = vrot.slane %v8936_v4, 4  ;;  %v8941_v19 = vrot.slane %v8934_v34, 4  ;;  %vm18175_vm11 = vnez %v18174_v45  ;;  %vm18191_vm1 = vcmask 863232  }
 0x4d2   : > { %8202 = vst.msk [vmem:[#allocation9 + $0x210] sm:$0xf] %vm18166_vm10, %v17542_v43  ;;  %vm18176_vm10 = vcmask 728064  }
 0x4d3   : > { %8114 = vst.msk [vmem:[#allocation9 + $0x1e0] sm:$0xf] %vm18167_vm4, %v17542_v43  ;;  %v8951_v46 = vsel %vm18170_vm14, %v8936_v4, %v8942_v30  ;;  %v8949_v5 = vsel %vm18171_vm15, %v8941_v19, %v8942_v30  ;;  %vm18177_vm4 = vmmov %vm18171_vm15  ;;  %vm18178_vm14 = vcmask 855040   ;;  %v18181_v19 = vld [vmem:[#allocation30_spill] sm:$0xff] }
 0x4d4   : > { %8963 = vst.msk [vmem:[#allocation9 + $0x3e8] sm:$0xf] %vm18172_vm5, %v8951_v46  ;;  %v8950_v38 = vsel %vm18173_vm12, %v8934_v34, %v8949_v5  ;;  %v9016_v42 = vpop.permute.xlu0 %9015  ;;  %v9014_v58 = vpop.permute.xlu1 %9013  ;;  %vm18179_vm15 = vmmov %vm18176_vm10  ;;  %vm18182_vm12 = vnez %v18181_v19  ;;  %vm18183_vm5 = vcmask 146432  }
 0x4d5   : > { %8966 = vst.msk [vmem:[#allocation9 + $0x3e8] sm:$0xff] %vm18175_vm11, %v17542_v43  ;;  %8962 = vst [vmem:[#allocation9 + $0x3e0] sm:$0xff] %v8950_v38  ;;  %v9026_v0 = vrot.slane %v9016_v42, 4  ;;  %v9025_v37 = vrot.slane %v9014_v58, 4  ;;  %v18184_v38 = vld [vmem:[#allocation13_spill] sm:$0xff] }
 0x4d7   : > { %v9033_v50 = vsel %vm18176_vm10, %v9016_v42, %v9026_v0  ;;  %v9031_v55 = vsel %vm18177_vm4, %v9025_v37, %v9026_v0  ;;  %vm18185_vm10 = vnez %v18184_v38  ;;  %vm18186_vm4 = vcmask 142336   ;;  %v12449_v38 = vld [vmem:[%s17044_s5 + $0xc] ss:$20 sps:$4 sm:$0xff]  }
 0x4d8   : > { %9047 = vst.msk [vmem:[#allocation9 + $0x3f8] sm:$0xf] %vm18178_vm14, %v9033_v50  ;;  %v9032_v4 = vsel %vm18179_vm15, %v9014_v58, %v9031_v55  ;;  %v15961_v30 = vpop.permute.xlu0 %7995  ;;  %v8926_v34 = vpop.permute.xlu1 %8925  ;;  %vm18187_vm14 = vcmask 1043456   ;;  %vm18188_vm15 = vcmask 736256   ;;  %10389 = vmatprep.mubr.bf16.mxu0 %v12449_v38 }
 0x4d9   : > { %18180 = vst [vmem:[#allocation21_spill] sm:$0xff] %v15961_v30  ;;  %9052 = vst.msk [vmem:[#allocation9 + $0x3f8] sm:$0xff] %vm18182_vm12, %v17542_v43  ;;  %v17335_v46 = vrot.slane %v15961_v30, 4  ;;  %v8937_v37 = vrot.slane %v8926_v34, 4 }
 0x4da   : > { %9046 = vst [vmem:[#allocation9 + $0x3f0] sm:$0xff] %v9032_v4  ;;  %vm18190_vm12 = vmmov %vm18188_vm15 }
 0x4db   : > { %v8011_v5 = vsel %vm18183_vm5, %v17335_v46, %v15961_v30  ;;  %vm18189_vm5 = vcmask 154624  }
 0x4dc   : > { %8024 = vst.msk [vmem:[#allocation9 + $0x1d0] sm:$0xff] %vm18185_vm10, %v8011_v5  ;;  %v8928_v55 = vpop.permute.xlu0 %8927  ;;  %v15973_v50 = vpop.permute.xlu1 %7917 }
 0x4dd   : > { %8028 = vst.msk [vmem:[#allocation9 + $0x1d0] sm:$0xf] %vm18186_vm4, %v17542_v43  ;;  %v8938_v42 = vrot.slane %v8928_v55, 4  ;;  %v17341_v58 = vrot.slane %v15973_v50, 4  ;;  %vm18195_vm4 = vcmask 150528  }
 0x4df   : > { %v8943_v0 = vsel %vm18187_vm14, %v8937_v37, %v8938_v42  ;;  %v8945_v4 = vsel %vm18188_vm15, %v8928_v55, %v8938_v42  ;;  %v7933_v46 = vsel %vm18189_vm5, %v17341_v58, %v15973_v50  ;;  %vm18199_vm15 = vcmask 867328  }
 0x4e0   : > { %v8944_v5 = vsel %vm18190_vm12, %v8926_v34, %v8943_v0  ;;  %8959 = vst.msk [vmem:[#allocation9 + $0x3c8] sm:$0xf] %vm18191_vm1, %v8945_v4  ;;  %v15988_v59 = vpop.permute.xlu0 %7987  ;;  %v8846_v18 = vpop.permute.xlu1 %8845  ;;  %vm18196_vm1 = vcmask 146432   ;;  %vm18198_vm12 = vcmask 142336  }
 0x4e1   : > { %7946 = vst.msk [vmem:[#allocation9 + $0x1a0] sm:$0xff] %vm18193_vm6, %v7933_v46  ;;  %18194 = vst [vmem:[#allocation20_spill] sm:$0xff] %v15988_v59  ;;  %v17342_v37 = vrot.slane %v15988_v59, 4  ;;  %v8853_v55 = vrot.slane %v8846_v18, 4 }
 0x4e2   : > { %8958 = vst [vmem:[#allocation9 + $0x3c0] sm:$0xff] %v8944_v5  ;;  %8964 = vst.msk [vmem:[#allocation9 + $0x3c8] sm:$0xff] %vm18175_vm11, %v17542_v43 }
 0x4e3   : > { %7950 = vst.msk [vmem:[#allocation9 + $0x1a0] sm:$0xf] %vm18195_vm4, %v17542_v43  ;;  %v8005_v34 = vsel %vm18196_vm1, %v17342_v37, %v15988_v59  ;;  %vm18200_vm4 = vmmov %vm18199_vm15  ;;  %vm18201_vm1 = vcmask 994304   ;;  %v8216_v59 = vld [vmem:[#allocation8 + $0x58] sm:$0xff] }
 0x4e4   : > { %8020 = vst.msk [vmem:[#allocation9 + $0x1b0] sm:$0xff] %vm18185_vm10, %v8005_v34  ;;  %v8848_v46 = vpop.permute.xlu0 %8847  ;;  %v16002_v42 = vpop.permute.xlu1 %7909 }
 0x4e5   : > { %18197 = vst [vmem:[#allocation22_spill] sm:$0xff] %v16002_v42  ;;  %8026 = vst.msk [vmem:[#allocation9 + $0x1b0] sm:$0xf] %vm18198_vm12, %v17542_v43  ;;  %v8854_v0 = vrot.slane %v8848_v46, 4  ;;  %v17346_v4 = vrot.slane %v16002_v42, 4  ;;  %vm18203_vm12 = vnez %v18202_v48 }
 0x4e7   : > { %v8861_v5 = vsel %vm18187_vm14, %v8853_v55, %v8854_v0  ;;  %v8863_v58 = vsel %vm18199_vm15, %v8848_v46, %v8854_v0  ;;  %v7927_v37 = vsel %vm18189_vm5, %v17346_v4, %v16002_v42  ;;  %vm18204_vm14 = vcmask 150528  }
 0x4e8   : > { %v8862_v34 = vsel %vm18200_vm4, %v8846_v18, %v8861_v5  ;;  %8875 = vst.msk [vmem:[#allocation9 + $0x3b8] sm:$0xf] %vm18201_vm1, %v8863_v58  ;;  %v8760_v62 = vpop.permute.xlu0 %8759  ;;  %v8758_v61 = vpop.permute.xlu1 %8757  ;;  %vm18205_vm15 = vcmask 875520   ;;  %vm18206_vm5 = vcmask 1043456   ;;  %vm18207_vm4 = vcmask 1002496  }
 0x4e9   : > { %7942 = vst.msk [vmem:[#allocation9 + $0x180] sm:$0xff] %vm18193_vm6, %v7927_v37  ;;  %8874 = vst [vmem:[#allocation9 + $0x3b0] sm:$0xff] %v8862_v34  ;;  %v8766_v55 = vrot.slane %v8760_v62, 4  ;;  %v8765_v46 = vrot.slane %v8758_v61, 4 }
 0x4ea   : > { %8878 = vst.msk [vmem:[#allocation9 + $0x3b8] sm:$0xff] %vm18203_vm12, %v17542_v43  ;;  %vm18208_vm1 = vmmov %vm18205_vm15 }
 0x4eb   : > { %7948 = vst.msk [vmem:[#allocation9 + $0x180] sm:$0xf] %vm18204_vm14, %v17542_v43  ;;  %v8775_v0 = vsel %vm18205_vm15, %v8760_v62, %v8766_v55  ;;  %v8773_v18 = vsel %vm18206_vm5, %v8765_v46, %v8766_v55  ;;  %vm18209_vm14 = vcmask 867328   ;;  %vm18210_vm11 = vmmov %vm18206_vm5  ;;  %vm18211_vm15 = vcmask 994304  }
 0x4ec   : > { %8787 = vst.msk [vmem:[#allocation9 + $0x388] sm:$0xf] %vm18207_vm4, %v8775_v0  ;;  %v8774_v58 = vsel %vm18208_vm1, %v8758_v61, %v8773_v18  ;;  %v8840_v37 = vpop.permute.xlu0 %8839  ;;  %v8838_v5 = vpop.permute.xlu1 %8837  ;;  %vm18212_vm5 = vmmov %vm18209_vm14  ;;  %vm18214_vm4 = vcmask 162816   ;;  %v18215_v18 = vld [vmem:[#allocation14_spill] sm:$0xff]  ;;  %vm18218_vm1 = vcmask 158720  }
 0x4ed   : > { %8790 = vst.msk [vmem:[#allocation9 + $0x388] sm:$0xff] %vm14503_vm2, %v17542_v43  ;;  %8786 = vst [vmem:[#allocation9 + $0x380] sm:$0xff] %v8774_v58  ;;  %v8850_v34 = vrot.slane %v8840_v37, 4  ;;  %v8849_v4 = vrot.slane %v8838_v5, 4  ;;  %v12374_v58 = vld [vmem:[#allocation9 + $0xe4] ss:$16 sps:$4 sm:$0xff]  }
 0x4ee   : > { %10306 = vmatprep.subr.bf16.mxu1 %v12374_v58 }
 0x4ef   : > { %v8857_v23 = vsel %vm18209_vm14, %v8840_v37, %v8850_v34  ;;  %v8855_v32 = vsel %vm18210_vm11, %v8849_v4, %v8850_v34  ;;  %vm18216_vm11 = vnez %v18215_v18  ;;  %v12372_v34 = vld [vmem:[#allocation9 + $0xe0] ss:$16 sps:$4 sm:$0xff]   ;;  %vm18219_vm14 = vcmask 1043456  }
 0x4f0   : > { %8871 = vst.msk [vmem:[#allocation9 + $0x398] sm:$0xf] %vm18211_vm15, %v8857_v23  ;;  %v8856_v62 = vsel %vm18212_vm5, %v8838_v5, %v8855_v32  ;;  %v16033_v55 = vpop.permute.xlu0 %7839  ;;  %v8750_v61 = vpop.permute.xlu1 %8749  ;;  %vm18220_vm15 = vcmask 875520   ;;  %vm18221_vm5 = vcmask 171008   ;;  %10307 = vmatpush1.bf16.msra.mxu1 %v12372_v34 }
 0x4f1   : > { %18213 = vst [vmem:[#allocation12_spill] sm:$0xff] %v16033_v55  ;;  %8876 = vst.msk [vmem:[#allocation9 + $0x398] sm:$0xff] %vm18203_vm12, %v17542_v43  ;;  %v17350_v46 = vrot.slane %v16033_v55, 4  ;;  %v8761_v4 = vrot.slane %v8750_v61, 4  ;;  %vm18223_vm12 = vcmask 1002496  }
 0x4f2   : > { %8870 = vst [vmem:[#allocation9 + $0x390] sm:$0xff] %v8856_v62 }
 0x4f3   : > { %v7855_v0 = vsel %vm18214_vm4, %v17350_v46, %v16033_v55  ;;  %vm18222_vm4 = vmmov %vm18220_vm15 }
 0x4f4   : > { %7868 = vst.msk [vmem:[#allocation9 + $0x170] sm:$0xff] %vm18216_vm11, %v7855_v0  ;;  %v8752_v32 = vpop.permute.xlu0 %8751  ;;  %v16045_v23 = vpop.permute.xlu1 %7761 }
 0x4f5   : > { %18217 = vst [vmem:[#allocation15_spill] sm:$0xff] %v16045_v23  ;;  %7872 = vst.msk [vmem:[#allocation9 + $0x170] sm:$0xf] %vm18218_vm1, %v17542_v43  ;;  %v8762_v37 = vrot.slane %v8752_v32, 4  ;;  %v17357_v5 = vrot.slane %v16045_v23, 4  ;;  %vm18225_vm1 = vnez %v18224_v7 }
 0x4f7   : > { %v8767_v62 = vsel %vm18219_vm14, %v8761_v4, %v8762_v37  ;;  %v8769_v46 = vsel %vm18220_vm15, %v8752_v32, %v8762_v37  ;;  %v7777_v0 = vsel %vm18221_vm5, %v17357_v5, %v16045_v23  ;;  %vm18227_vm14 = vcmask 166912  }
 0x4f8   : > { %v8768_v21 = vsel %vm18222_vm4, %v8750_v61, %v8767_v62  ;;  %8783 = vst.msk [vmem:[#allocation9 + $0x368] sm:$0xf] %vm18223_vm12, %v8769_v46  ;;  %v16060_v44 = vpop.permute.xlu0 %7831  ;;  %v8670_v58 = vpop.permute.xlu1 %8669  ;;  %vm18228_vm12 = vcmask 162816   ;;  %vm18230_vm15 = vcmask 158720   ;;  %vm18231_vm5 = vcmask 1043456  }
 0x4f9   : > { %7790 = vst.msk [vmem:[#allocation9 + $0x140] sm:$0xff] %vm18225_vm1, %v7777_v0  ;;  %18226 = vst [vmem:[#allocation32_spill] sm:$0xff] %v16060_v44  ;;  %v17355_v4 = vrot.slane %v16060_v44, 4  ;;  %v8677_v46 = vrot.slane %v8670_v58, 4  ;;  %vm18232_vm4 = vcmask 883712  }
 0x4fa   : > { %8782 = vst [vmem:[#allocation9 + $0x360] sm:$0xff] %v8768_v21  ;;  %8788 = vst.msk [vmem:[#allocation9 + $0x368] sm:$0xff] %vm14503_vm2, %v17542_v43  ;;  %vm18235_vm2 = vcmask 1010688  }
 0x4fb   : > { %7794 = vst.msk [vmem:[#allocation9 + $0x140] sm:$0xf] %vm18227_vm14, %v17542_v43  ;;  %v7849_v61 = vsel %vm18228_vm12, %v17355_v4, %v16060_v44  ;;  %vm18233_vm14 = vcmask 171008   ;;  %vm18234_vm12 = vmmov %vm18232_vm4 }
 0x4fc   : > { %7864 = vst.msk [vmem:[#allocation9 + $0x150] sm:$0xff] %vm18216_vm11, %v7849_v61  ;;  %v8672_v32 = vpop.permute.xlu0 %8671  ;;  %v16074_v21 = vpop.permute.xlu1 %7753 }
 0x4fd   : > { %18229 = vst [vmem:[#allocation13_spill] sm:$0xff] %v16074_v21  ;;  %7870 = vst.msk [vmem:[#allocation9 + $0x150] sm:$0xf] %vm18230_vm15, %v17542_v43  ;;  %v8678_v37 = vrot.slane %v8672_v32, 4  ;;  %v17359_v34 = vrot.slane %v16074_v21, 4  ;;  %vm18236_vm15 = vnez %v17907_v2 }
 0x4ff   : > { %v8685_v62 = vsel %vm18231_vm5, %v8677_v46, %v8678_v37  ;;  %v8687_v0 = vsel %vm18232_vm4, %v8672_v32, %v8678_v37  ;;  %v7771_v4 = vsel %vm18233_vm14, %v17359_v34, %v16074_v21  ;;  %vm18237_vm5 = vcmask 166912  }
 0x500   : > { %v8686_v61 = vsel %vm18234_vm12, %v8670_v58, %v8685_v62  ;;  %8699 = vst.msk [vmem:[#allocation9 + $0x358] sm:$0xf] %vm18235_vm2, %v8687_v0  ;;  %v8584_v5 = vpop.permute.xlu0 %8583  ;;  %v8582_v63 = vpop.permute.xlu1 %8581  ;;  %vm18238_vm4 = vcmask 891904   ;;  %vm18239_vm2 = vcmask 1043456   ;;  %vm18240_vm14 = vcmask 1018880  }
 0x501   : > { %7786 = vst.msk [vmem:[#allocation9 + $0x120] sm:$0xff] %vm18225_vm1, %v7771_v4  ;;  %8698 = vst [vmem:[#allocation9 + $0x350] sm:$0xff] %v8686_v61  ;;  %v8590_v46 = vrot.slane %v8584_v5, 4  ;;  %v8589_v32 = vrot.slane %v8582_v63, 4 }
 0x502   : > { %8702 = vst.msk [vmem:[#allocation9 + $0x358] sm:$0xff] %vm18236_vm15, %v17542_v43  ;;  %v16094_v37 = vpop.f32.mrf.mxu1  ;;  %vm18241_vm12 = vmmov %vm18238_vm4 }
 0x503   : > { %7792 = vst.msk [vmem:[#allocation9 + $0x120] sm:$0xf] %vm18237_vm5, %v17542_v43  ;;  %v8599_v58 = vsel %vm18238_vm4, %v8584_v5, %v8590_v46  ;;  %v8597_v62 = vsel %vm18239_vm2, %v8589_v32, %v8590_v46  ;;  %vm18242_vm5 = vcmask 883712   ;;  %vm18243_vm4 = vcmask 1010688  }
 0x504   : > { %v16098_v0 = vpop.f32.mrf.mxu1  ;;  %8611 = vst.msk [vmem:[#allocation9 + $0x328] sm:$0xf] %vm18240_vm14, %v8599_v58  ;;  %v8598_v4 = vsel %vm18241_vm12, %v8582_v63, %v8597_v62  ;;  %v8664_v61 = vpop.permute.xlu0 %8663  ;;  %vm18245_vm14 = vmmov %vm18242_vm5  ;;  %vm18246_vm12 = vcmask 179200  }
 0x505   : > { %8614 = vst.msk [vmem:[#allocation9 + $0x328] sm:$0xff] %vm15077_vm0, %v17542_v43  ;;  %8610 = vst [vmem:[#allocation9 + $0x320] sm:$0xff] %v8598_v4  ;;  %v8674_v34 = vrot.slane %v8664_v61, 4  ;;  %v8662_v44 = vpop.permute.xlu1 %8661 }
 0x506   : > { %v16105_v1 = vpop.f32.mrf.mxu1  ;;  %v8673_v55 = vrot.slane %v8662_v44, 4 }
 0x507   : > { %v8681_v5 = vsel %vm18242_vm5, %v8664_v61, %v8674_v34  ;;  %vm18247_vm5 = vcmask 175104  }
 0x508   : > { %v16108_v46 = vpop.f32.mrf.mxu1  ;;  %8695 = vst.msk [vmem:[#allocation9 + $0x338] sm:$0xf] %vm18243_vm4, %v8681_v5  ;;  %v8679_v32 = vsel %vm18239_vm2, %v8673_v55, %v8674_v34  ;;  %v16112_v63 = vpop.permute.xlu0 %7683  ;;  %vm18248_vm4 = vmmov %vm18239_vm2  ;;  %vm18249_vm2 = vcmask 891904  }
 0x509   : > { %18244 = vst [vmem:[#allocation17_spill] sm:$0xff] %v16112_v63  ;;  %8700 = vst.msk [vmem:[#allocation9 + $0x338] sm:$0xff] %vm18236_vm15, %v17542_v43  ;;  %v8680_v58 = vsel %vm18245_vm14, %v8662_v44, %v8679_v32  ;;  %v17367_v62 = vrot.slane %v16112_v63, 4  ;;  %v8574_v4 = vpop.permute.xlu1 %8573  ;;  %vm18255_vm15 = vcmask 830464  }
 0x50a   : > { %v16119_v29 = vpop.f32.mrf.mxu1  ;;  %8694 = vst [vmem:[#allocation9 + $0x330] sm:$0xff] %v8680_v58  ;;  %v8585_v55 = vrot.slane %v8574_v4, 4  ;;  %v12004_v58 = vpack.c.bf16 %v8216_v59, %v15812_v40  ;;  %vm18250_vm14 = vmmov %vm18249_vm2 }
 0x50b   : > { %v7699_v61 = vsel %vm18246_vm12, %v17367_v62, %v16112_v63  ;;  %vm18251_vm12 = vcmask 1018880   ;;  %v6914_v13 = vadd.f32 %v16119_v29, %v15698_v22  ;;  %v16186_v29 = vld [vmem:[%s17046_s7] sm:$0xf] }
 0x50c   : > { %v16125_v34 = vpop.f32.mrf.mxu1  ;;  %7712 = vst.msk [vmem:[#allocation9 + $0x110] sm:$0xff] %vm17948_vm13, %v7699_v61  ;;  %v8576_v5 = vpop.permute.xlu0 %8575 }
 0x50d   : > { %7716 = vst.msk [vmem:[#allocation9 + $0x110] sm:$0xf] %vm18247_vm5, %v17542_v43  ;;  %v8586_v44 = vrot.slane %v8576_v5, 4  ;;  %v9286_v32 = vpop.permute.xlu1 %9285  ;;  %vm18252_vm5 = vmmov %vm18248_vm4 }
 0x50e   : > { %v6917_v30 = vpop.f32.mrf.mxu1  ;;  %v9293_v63 = vrot.slane %v9286_v32, 4  ;;  %8262 = vst.msk [vmem:[#allocation9 + $0x268] sm:$0xff] %vm14177_vm7, %v12004_v58 }
 0x50f   : > { %v8591_v47 = vsel %vm18248_vm4, %v8585_v55, %v8586_v44  ;;  %v8593_v62 = vsel %vm18249_vm2, %v8576_v5, %v8586_v44  ;;  %vm18253_vm4 = vcmask 703488  }
 0x510   : > { %v6918_v21 = vpop.f32.mrf.mxu1  ;;  %v8592_v61 = vsel %vm18250_vm14, %v8574_v4, %v8591_v47  ;;  %8607 = vst.msk [vmem:[#allocation9 + $0x308] sm:$0xf] %vm18251_vm12, %v8593_v62  ;;  %v9288_v23 = vpop.permute.xlu0 %9287  ;;  %vm18254_vm2 = vmmov %vm18253_vm4  ;;  %v18256_v47 = vrot.slane %v15702_v15, 4  ;;  %v18258_v4 = vld [vmem:[#allocation28_spill] sm:$0xff] }
 0x511   : > { %8606 = vst [vmem:[#allocation9 + $0x300] sm:$0xff] %v8592_v61  ;;  %8612 = vst.msk [vmem:[#allocation9 + $0x308] sm:$0xff] %vm15077_vm0, %v17542_v43  ;;  %v9294_v59 = vrot.slane %v9288_v23, 4  ;;  %v7608_v30 = vpop.permute.xlu1 %7607  ;;  %vm18259_vm12 = vnez %v18258_v4  ;;  %vm18260_vm0 = vcmask 310272  }
 0x512   : > { %v7614_v55 = vrot.slane %v7608_v30, 4  ;;  %vm18257_vm14 = vmmov %vm18252_vm5 }
 0x513   : > { %v9301_v5 = vsel %vm18252_vm5, %v9293_v63, %v9294_v59  ;;  %v9303_v44 = vsel %vm18253_vm4, %v9288_v23, %v9294_v59  ;;  %v18261_v23 = vrot.slane %v15717_v14, 4  ;;  %v8208_v59 = vld [vmem:[#allocation8 + $0x18] sm:$0xff]  ;;  %vm18266_vm4 = vcmask 310272  }
 0x514   : > { %v9302_v58 = vsel %vm18254_vm2, %v9286_v32, %v9301_v5  ;;  %9315 = vst.msk [vmem:[#allocation9 + $0x4a8] sm:$0xf] %vm18255_vm15, %v9303_v44  ;;  %v7622_v21 = vsel %vm18257_vm14, %v18256_v47, %v7614_v55  ;;  %v7678_v62 = vpop.permute.xlu0 %7677  ;;  %vm18262_vm15 = vmmov %vm18252_vm5  ;;  %vm18263_vm5 = vcmask 179200   ;;  %v12000_v5 = vpack.c.bf16 %v8208_v59, %v15812_v40 }
 0x515   : > { %9314 = vst [vmem:[#allocation9 + $0x4a0] sm:$0xff] %v9302_v58  ;;  %9318 = vst.msk [vmem:[#allocation9 + $0x4a8] sm:$0xff] %vm18259_vm12, %v17542_v43  ;;  %v7623_v61 = vsel %vm18260_vm0, %v7622_v21, %v7608_v30  ;;  %v7688_v20 = vrot.slane %v7678_v62, 4  ;;  %v16152_v63 = vpop.permute.xlu1 %9277  ;;  %v18264_v47 = vrot.slane %v15732_v31, 4  ;;  %v6906_v31 = vadd.f32 %v16098_v0, %v15692_v16 }
 0x516   : > { %7635 = vst.msk [vmem:[#allocation9 + $0xe8] sm:$0xff] %vm14177_vm7, %v7623_v61  ;;  %8258 = vst.msk [vmem:[#allocation9 + $0x248] sm:$0xff] %vm14177_vm7, %v12000_v5  ;;  %v6916_v0 = vadd.f32 %v16125_v34, %v15698_v22 }
 0x517   : > { %v7694_v15 = vsel %vm18262_vm15, %v18261_v23, %v7688_v20  ;;  %vm18265_vm0 = vmmov %vm18257_vm14  ;;  %vm18270_vm14 = vcmask 703488  }
 0x518   : > { %v7695_v32 = vsel %vm18263_vm5, %v7694_v15, %v7678_v62  ;;  %vm18269_vm2 = vmmov %vm18265_vm0  ;;  %vm18272_vm5 = vcmask 830464  }
 0x519   : > { %7709 = vst.msk [vmem:[#allocation9 + $0xf8] sm:$0xff] %vm14177_vm7, %v7695_v32  ;;  %v7600_v55 = vpop.permute.xlu1 %7599  ;;  %v6904_v32 = vadd.f32 %v16094_v37, %v15692_v16  ;;  %vm18271_vm15 = vmmov %vm18270_vm14 }
 0x51a   : > { %v7005_v30 = vpop.f32.mrf.mxu1  ;;  %v7610_v44 = vrot.slane %v7600_v55, 4 }
 0x51c   : > { %v7007_v58 = vpop.f32.mrf.mxu1  ;;  %v7616_v14 = vsel %vm18265_vm0, %v18264_v47, %v7610_v44 }
 0x51d   : > { %v7617_v20 = vsel %vm18266_vm4, %v7616_v14, %v7600_v55  ;;  %v6908_v55 = vadd.f32 %v16105_v1, %v15690_v10  ;;  %v6910_v14 = vadd.f32 %v16108_v46, %v15690_v10  ;;  %vm18273_vm4 = vcmask 711680  }
 0x51e   : > { %v7009_v21 = vpop.f32.mrf.mxu1  ;;  %7631 = vst.msk [vmem:[#allocation9 + $0xc8] sm:$0xff] %vm14177_vm7, %v7617_v20 }
 0x520   : > { %v7011_v62 = vpop.f32.mrf.mxu1 }
 0x522   : > { %v7015_v61 = vpop.f32.mrf.mxu1 }
 0x524   : > { %v7017_v23 = vpop.f32.mrf.mxu1 }
 0x526   : > { %v7019_v40 = vpop.f32.mrf.mxu1 }
 0x527   : > { %v6954_v15 = vpop.f32.mrf.mxu0 }
 0x528   : > { %v7020_v59 = vpop.f32.mrf.mxu1  ;;  %v6955_v44 = vadd.f32 %v6954_v15, %v6904_v32 }
 0x529   : > { %v6956_v5 = vpop.f32.mrf.mxu0 }
 0x52a   : > { %v6957_v20 = vadd.f32 %v6956_v5, %v6906_v31  ;;  %v7006_v37 = vadd.f32 %v7005_v30, %v6955_v44 }
 0x52b   : > { %v6958_v47 = vpop.f32.mrf.mxu0 }
 0x52c   : > { %v6959_v41 = vadd.f32 %v6958_v47, %v6908_v55  ;;  %v7008_v19 = vadd.f32 %v7007_v58, %v6957_v20  ;;  %v7175_v48 = vmax.f32 %v7006_v37, 0.0  ;;  %v18267_v47 = vld [vmem:[#allocation23_spill] sm:$0xff]  ;;  %v9280_v37 = vpop.permute.xlu0 %9279 }
 0x52d   : > { %v6960_v40 = vpop.f32.mrf.mxu0 }
 0x52e   : > { %v7010_v59 = vadd.f32 %v7009_v21, %v6959_v41  ;;  %v6961_v2 = vadd.f32 %v6960_v40, %v6910_v14  ;;  %v7176_v30 = vmax.f32 %v7008_v19, 0.0  ;;  %v9289_v19 = vrot.slane %v16152_v63, 4 }
 0x52f   : > { %v6964_v57 = vpop.f32.mrf.mxu0 }
 0x530   : > { %v7179_v1 = vmax.f32 %v7010_v59, 0.0  ;;  %v7012_v15 = vadd.f32 %v7011_v62, %v6961_v2  ;;  %v6965_v32 = vadd.f32 %v6964_v57, %v6914_v13  ;;  %v7204_v57 = vrot.slane %v16186_v29, %v18267_v47 }
 0x531   : > { %v6966_v42 = vpop.f32.mrf.mxu0 }
 0x532   : > { %v7180_v46 = vmax.f32 %v7012_v15, 0.0  ;;  %v6967_v5 = vadd.f32 %v6966_v42, %v6916_v0  ;;  %v7016_v31 = vadd.f32 %v7015_v61, %v6965_v32  ;;  %v7187_v55 = vadd.f32 %v7179_v1, %v7175_v48  ;;  %v18268_v61 = vld [vmem:[#allocation24_spill] sm:$0xff]  ;;  %v9198_v32 = vpop.permute.xlu1 %9197 }
 0x533   : > { %v6968_v41 = vpop.f32.mrf.mxu0  ;;  %v7208_v14 = vrot.slane %v16186_v29, %v18268_v61 }
 0x534   : > { %v7183_v21 = vmax.f32 %v7016_v31, 0.0  ;;  %v7018_v34 = vadd.f32 %v7017_v23, %v6967_v5  ;;  %v7188_v13 = vadd.f32 %v7180_v46, %v7176_v30  ;;  %v9290_v23 = vrot.slane %v9280_v37, 4  ;;  %v9200_v46 = vpop.permute.xlu0 %9199 }
 0x535   : > { %v6969_v44 = vpop.f32.mrf.mxu0  ;;  %v9205_v5 = vrot.slane %v9198_v32, 4  ;;  %v9206_v31 = vrot.slane %v9200_v46, 4 }
 0x536   : > { %v7191_v58 = vadd.f32 %v7187_v55, %v7183_v21  ;;  %v7184_v2 = vmax.f32 %v7018_v34, 0.0  ;;  %v9295_v0 = vsel %vm18269_vm2, %v9289_v19, %v9290_v23  ;;  %v9297_v1 = vsel %vm18270_vm14, %v9280_v37, %v9290_v23  ;;  %vm18274_vm2 = vmmov %vm18273_vm4  ;;  %v18276_v21 = vld [vmem:[#allocation29_spill] sm:$0xff] }
 0x537   : > { %v9296_v15 = vsel %vm18271_vm15, %v16152_v63, %v9295_v0  ;;  %9311 = vst.msk [vmem:[#allocation9 + $0x488] sm:$0xf] %vm18272_vm5, %v9297_v1  ;;  %v9213_v41 = vsel %vm18265_vm0, %v9205_v5, %v9206_v31  ;;  %v9215_v30 = vsel %vm18273_vm4, %v9200_v46, %v9206_v31  ;;  %vm18275_vm14 = vcmask 838656  }
 0x538   : > { %v7195_v62 = vmul.f32 0.33333334, %v7191_v58  ;;  %v7192_v42 = vadd.f32 %v7188_v13, %v7184_v2  ;;  %9310 = vst [vmem:[#allocation9 + $0x480] sm:$0xff] %v9296_v15  ;;  %9316 = vst.msk [vmem:[#allocation9 + $0x488] sm:$0xff] %vm18259_vm12, %v17542_v43  ;;  %v9214_v63 = vsel %vm18274_vm2, %v9198_v32, %v9213_v41  ;;  %vm18277_vm15 = vnez %v18276_v21 }
 0x539   : > { %9227 = vst.msk [vmem:[#allocation9 + $0x478] sm:$0xf] %vm18275_vm14, %v9215_v30  ;;  %9226 = vst [vmem:[#allocation9 + $0x470] sm:$0xff] %v9214_v63  ;;  %vm18280_vm5 = vcmask 130048   ;;  %vm18283_vm4 = vcmask 310272   ;;  %vm18284_vm2 = vcmask 306176  }
 0x53a   : > { %v7221_v20 = vmul.f32 %v7204_v57, %v7195_v62  ;;  %v7196_v40 = vmul.f32 0.33333334, %v7192_v42  ;;  %9230 = vst.msk [vmem:[#allocation9 + $0x478] sm:$0xff] %vm18277_vm15, %v17542_v43  ;;  %vm18282_vm0 = vmmov %vm18280_vm5  ;;  %vm18286_vm14 = vcmask 326656  }
 0x53c   : > { %7245 = vst [vmem:[#allocation8 + $0x20] sm:$0xff] %v7221_v20  ;;  %v7222_v48 = vmul.f32 %v7208_v14, %v7196_v40 }
 0x53e   : > { %7246 = vst [vmem:[#allocation8 + $0x28] sm:$0xff] %v7222_v48  ;;  %v16193_v59 = vpack.c.bf16 %v7222_v48, %v7221_v20 }
 0x540   : > { %8489 = vrot.lane.b32.xlu1 %v16193_v59, %s17815_s16  ;;  %7601 = vrot.lane.b32.xlu0 %v16193_v59, %s17489_s18 }
 0x543   : > { %v8209_v55 = vld [vmem:[#allocation8 + $0x20] sm:$0xff] }
 0x544   : > { %7523 = vrot.lane.b32.xlu1 %v16193_v59, %s17447_s26  ;;  %7445 = vrot.lane.b32.xlu0 %v16193_v59, %s17497_s15 }
 0x545   : > { %v8210_v34 = vld [vmem:[#allocation8 + $0x28] sm:$0xff] }
 0x546   : > { %v16218_v44 = vpack.c.bf16 %v8210_v34, %v8209_v55 }
 0x548   : > { %8401 = vrot.lane.b32.xlu1 %v16193_v59, %s17818_s11  ;;  %7289 = vrot.lane.b32.xlu0 %v16193_v59, %s17505_s21 }
 0x54c   : > { %8313 = vrot.lane.b32.xlu1 %v16193_v59, %s17695_s13  ;;  %8079 = vrot.lane.b32.xlu0 %v16193_v59, %s17816_s23 }
 0x550   : > { %7367 = vrot.lane.b32.xlu1 %v16193_v59, %s17449_s25  ;;  %7913 = vrot.lane.b32.xlu0 %v16193_v59, %s17817_s9 }
 0x554   : > { %8167 = vrot.lane.b32.xlu1 %v16193_v59, %s17696_s19  ;;  %7757 = vrot.lane.b32.xlu0 %v16193_v59, %s17477_s10 }
 0x558   : > { %7991 = vrot.lane.b32.xlu1 %v16193_v59, %s17823_s27 }
 0x55a   : > { %v7056_v58 = vpop.f32.mrf.mxu1 }
 0x55b   : > { %v7057_v48 = vadd.f32 %v7056_v58, %v15692_v16 }
 0x55c   : > { %v7058_v57 = vpop.f32.mrf.mxu1  ;;  %8929 = vrot.lane.b32.xlu1 %v16193_v59, %s17469_s24 }
 0x55d   : > { %v7059_v15 = vadd.f32 %v7058_v57, %v15692_v16 }
 0x55e   : > { %v7060_v2 = vpop.f32.mrf.mxu1 }
 0x55f   : > { %v7061_v23 = vadd.f32 %v7060_v2, %v15690_v10 }
 0x560   : > { %v7062_v13 = vpop.f32.mrf.mxu1  ;;  %8841 = vrot.lane.b32.xlu1 %v16193_v59, %s17820_s0 }
 0x561   : > { %v7063_v32 = vadd.f32 %v7062_v13, %v15690_v10 }
 0x562   : > { %v7066_v62 = vpop.f32.mrf.mxu1 }
 0x563   : > { %v7067_v41 = vadd.f32 %v7066_v62, %v15698_v22 }
 0x564   : > { %v7068_v42 = vpop.f32.mrf.mxu1  ;;  %7835 = vrot.lane.b32.xlu1 %v16193_v59, %s17445_s29 }
 0x566   : > { %v7070_v14 = vpop.f32.mrf.mxu1 }
 0x567   : > { %v7069_v14 = vadd.f32 %v7068_v42, %v15698_v22 }
 0x568   : > { %v7071_v20 = vpop.f32.mrf.mxu1  ;;  %8753 = vrot.lane.b32.xlu1 %v16193_v59, %s17475_s12 }
 0x56c   : > { %8665 = vrot.lane.b32.xlu1 %v16193_v59, %s17821_s1 }
 0x56f   : > { %v7107_v40 = vpop.f32.mrf.mxu0 }
 0x570   : > { %7679 = vrot.lane.b32.xlu1 %v16193_v59, %s17446_s30  ;;  %v7108_v46 = vadd.f32 %v7107_v40, %v7057_v48 }
 0x571   : > { %v7109_v37 = vpop.f32.mrf.mxu0 }
 0x572   : > { %v7158_v19 = vpop.f32.mrf.mxu1  ;;  %v7110_v63 = vadd.f32 %v7109_v37, %v7059_v15  ;;  %v12423_v15 = vld [vmem:[%s17044_s5 + $0x4] ss:$20 sps:$4 sm:$0xff]  }
 0x573   : > { %v7111_v0 = vpop.f32.mrf.mxu0  ;;  %v7159_v55 = vadd.f32 %v7158_v19, %v7108_v46  ;;  %10338 = vmatprep.mubr.bf16.mxu1 %v12423_v15 }
 0x574   : > { %v7160_v1 = vpop.f32.mrf.mxu1  ;;  %8577 = vrot.lane.b32.xlu1 %v16193_v59, %s17822_s2  ;;  %v7112_v5 = vadd.f32 %v7111_v0, %v7061_v23 }
 0x575   : > { %v7113_v31 = vpop.f32.mrf.mxu0  ;;  %v7161_v16 = vadd.f32 %v7160_v1, %v7110_v63  ;;  %v7177_v23 = vmax.f32 %v7159_v55, 0.0  ;;  %v18278_v63 = vld [vmem:[#allocation25_spill] sm:$0xff] }
 0x576   : > { %v7162_v30 = vpop.f32.mrf.mxu1  ;;  %v7114_v34 = vadd.f32 %v7113_v31, %v7063_v32  ;;  %v7212_v55 = vrot.slane %v16186_v29, %v18278_v63 }
 0x577   : > { %v7117_v58 = vpop.f32.mrf.mxu0  ;;  %v7163_v2 = vadd.f32 %v7162_v30, %v7112_v5  ;;  %v7178_v42 = vmax.f32 %v7161_v16, 0.0 }
 0x578   : > { %v7164_v20 = vpop.f32.mrf.mxu1  ;;  %9281 = vrot.lane.b32.xlu1 %v16193_v59, %s17819_s17  ;;  %v7118_v57 = vadd.f32 %v7117_v58, %v7067_v41 }
 0x579   : > { %v7181_v10 = vmax.f32 %v7163_v2, 0.0  ;;  %v7119_v13 = vpop.f32.mrf.mxu0  ;;  %v7165_v40 = vadd.f32 %v7164_v20, %v7114_v34  ;;  %v18279_v20 = vld [vmem:[#allocation26_spill] sm:$0xff] }
 0x57a   : > { %v7168_v48 = vpop.f32.mrf.mxu1  ;;  %v7120_v62 = vadd.f32 %v7119_v13, %v7069_v14 }
 0x57b   : > { %v7182_v0 = vmax.f32 %v7165_v40, 0.0  ;;  %v7121_v37 = vpop.f32.mrf.mxu0  ;;  %v7169_v19 = vadd.f32 %v7168_v48, %v7118_v57  ;;  %v7189_v1 = vadd.f32 %v7181_v10, %v7177_v23  ;;  %v7216_v57 = vrot.slane %v16186_v29, %v18279_v20 }
 0x57c   : > { %v7170_v22 = vpop.f32.mrf.mxu1  ;;  %9193 = vrot.lane.b32.xlu1 %v16193_v59, %s17697_s22 }
 0x57d   : > { %v7185_v32 = vmax.f32 %v7169_v19, 0.0  ;;  %v7122_v46 = vpop.f32.mrf.mxu0  ;;  %v7171_v5 = vadd.f32 %v7170_v22, %v7120_v62  ;;  %v7190_v41 = vadd.f32 %v7182_v0, %v7178_v42 }
 0x57e   : > { %v7172_v31 = vpop.f32.mrf.mxu1 }
 0x57f   : > { %v7193_v30 = vadd.f32 %v7189_v1, %v7185_v32  ;;  %v7186_v34 = vmax.f32 %v7171_v5, 0.0 }
 0x580   : > { %v7173_v58 = vpop.f32.mrf.mxu1 }
 0x581   : > { %v7197_v2 = vmul.f32 0.33333334, %v7193_v30  ;;  %v7194_v14 = vadd.f32 %v7190_v41, %v7186_v34 }
 0x583   : > { %v7223_v13 = vmul.f32 %v7212_v55, %v7197_v2  ;;  %v7198_v16 = vmul.f32 0.33333334, %v7194_v14 }
 0x585   : > { %7247 = vst [vmem:[#allocation8 + $0x30] sm:$0xff] %v7223_v13  ;;  %v7224_v10 = vmul.f32 %v7216_v57, %v7198_v16  ;;  %v16269_v40 = vpack.c.bf16 %v7223_v13, %v7223_v13 }
 0x587   : > { %7228 = vst.msk [vmem:[#allocation7 + $0x18] sm:$0xff] %vm18280_vm5, %v7224_v10  ;;  %7525 = vrot.lane.b32.xlu1 %v16269_v40, %s17447_s26  ;;  %7603 = vrot.lane.b32.xlu0 %v16269_v40, %s17489_s18  ;;  %vm18287_vm5 = vcmask 314368   ;;  %s18309_s18 = sld [smem:[#allocation42_spill]] }
 0x58b   : > { %9109 = vrot.lane.b32.xlu1 %v15841_v17, %s18281_s8 }
 0x58c   : > { %v8211_v23 = vld [vmem:[#allocation8 + $0x30] sm:$0xff] }
 0x58d   : > { %v9480_v38 = vld [vmem:[%s18309_s18 + $0x10] sm:$0xff] }
 0x58e   : > { %v7244_v48 = vld [vmem:[#allocation7 + $0x18] sm:$0xff] }
 0x58f   : > { %7248 = vst.msk [vmem:[#allocation8 + $0x38] sm:$0xff] %vm18282_vm0, %v7244_v48  ;;  %9189 = vrot.lane.b32.xlu1 %v15841_v17, %s17697_s22  ;;  %vm18288_vm0 = vcmask 322560   ;;  %v12383_v48 = vld [vmem:[#allocation9 + $0x84] ss:$16 sps:$4 sm:$0xff]  }
 0x593   : > { %7451 = vrot.lane.b32.xlu1 %v15841_v17, %s17497_s15 }
 0x596   : > { %v8446_v29 = vld [vmem:[#allocation8 + $0x38] sm:$0xff] }
 0x597   : > { %v8212_v62 = vld [vmem:[#allocation8 + $0x38] sm:$0xff]  ;;  %v16283_v0 = vpack.c.bf16 %v8446_v29, %v7223_v13  ;;  %9101 = vrot.lane.b32.xlu1 %v15841_v17, %s18281_s8 }
 0x598   : > { %v12002_v37 = vpack.c.bf16 %v8212_v62, %v8211_v23 }
 0x599   : > { %8491 = vrot.lane.b32.xlu0 %v16283_v0, %s17815_s16 }
 0x59a   : > { %8260 = vst.msk [vmem:[#allocation9 + $0x258] sm:$0xff] %vm14177_vm7, %v12002_v37 }
 0x59b   : > { %9105 = vrot.lane.b32.xlu1 %v16193_v59, %s18281_s8 }
 0x59d   : > { %7529 = vrot.lane.b32.xlu0 %v15841_v17, %s17447_s26 }
 0x59f   : > { %7443 = vrot.lane.b32.xlu1 %v15841_v17, %s17497_s15 }
 0x5a1   : > { %8403 = vrot.lane.b32.xlu0 %v16283_v0, %s17818_s11 }
 0x5a3   : > { %9017 = vrot.lane.b32.xlu1 %v16193_v59, %s17698_s14 }
 0x5a5   : > { %8315 = vrot.lane.b32.xlu0 %v16283_v0, %s17695_s13 }
 0x5a7   : > { %9021 = vrot.lane.b32.xlu1 %v15841_v17, %s17698_s14 }
 0x5a9   : > { %9111 = vrot.lane.b32.xlu0 %v15844_v36, %s18281_s8 }
 0x5ab   : > { %7369 = vrot.lane.b32.xlu1 %v16269_v40, %s17449_s25 }
 0x5ad   : > { %9191 = vrot.lane.b32.xlu0 %v15815_v60, %s17697_s22 }
 0x5af   : > { %7295 = vrot.lane.b32.xlu1 %v15841_v17, %s17505_s21 }
 0x5b1   : > { %7521 = vrot.lane.b32.xlu0 %v15841_v17, %s17447_s26 }
 0x5b2   : > { %v16315_v59 = vpop.permute.xlu1 %8489  ;;  %v16317_v19 = vpop.permute.xlu0 %7601 }
 0x5b3   : > { %7287 = vrot.lane.b32.xlu1 %v15841_v17, %s17505_s21  ;;  %v7611_v15 = vrot.slane %v16317_v19, 4 }
 0x5b5   : > { %9103 = vrot.lane.b32.xlu0 %v15815_v60, %s18281_s8  ;;  %v7618_v22 = vsel %vm18283_vm4, %v7611_v15, %v16317_v19  ;;  %vm18291_vm4 = vcmask 338944  }
 0x5b6   : > { %7632 = vst.msk [vmem:[#allocation9 + $0xd0] sm:$0xff] %vm12951_vm3, %v7618_v22  ;;  %v16330_v42 = vpop.permute.xlu1 %7523  ;;  %v16332_v1 = vpop.permute.xlu0 %7445  ;;  %vm18285_vm3 = vcmask 318464  }
 0x5b7   : > { %8077 = vrot.lane.b32.xlu1 %v15815_v60, %s17816_s23  ;;  %7637 = vst.msk [vmem:[#allocation9 + $0xd0] sm:$0xf] %vm18284_vm2, %v17542_v43  ;;  %v7533_v32 = vrot.slane %v16330_v42, 4  ;;  %v17388_v46 = vrot.slane %v16332_v1, 4  ;;  %vm18292_vm2 = vcmask 15360  }
 0x5b9   : > { %7447 = vrot.lane.b32.xlu0 %v16269_v40, %s17497_s15  ;;  %v7540_v35 = vsel %vm18285_vm3, %v7533_v32, %v16330_v42  ;;  %v7462_v60 = vsel %vm18286_vm14, %v17388_v46, %v16332_v1  ;;  %vm18293_vm3 = vnez %v18163_v51  ;;  %vm18294_vm14 = vcmask 11264   ;;  %v8120_v42 = vld [vmem:[#allocation8 + $0x18] sm:$0xff] }
 0x5ba   : > { %7554 = vst.msk [vmem:[#allocation9 + $0xa0] sm:$0xff] %vm12903_vm9, %v7540_v35  ;;  %v16354_v5 = vpop.permute.xlu1 %8401  ;;  %v16356_v31 = vpop.permute.xlu0 %7289  ;;  %vm18289_vm9 = vcmask 343040  }
 0x5bb   : > { %7476 = vst.msk [vmem:[#allocation9 + $0x70] sm:$0xff] %vm18131_vm8, %v7462_v60  ;;  %7993 = vrot.lane.b32.xlu1 %v16269_v40, %s17823_s27  ;;  %v17383_v41 = vrot.slane %v16356_v31, 4  ;;  %vm18290_vm8 = vnez %v18152_v6 }
 0x5bc   : > { %7559 = vst.msk [vmem:[#allocation9 + $0xa0] sm:$0xf] %vm18287_vm5, %v17542_v43  ;;  %vm18295_vm5 = vcmask 334848  }
 0x5bd   : > { %7481 = vst.msk [vmem:[#allocation9 + $0x70] sm:$0xf] %vm18288_vm0, %v17542_v43  ;;  %8931 = vrot.lane.b32.xlu0 %v16283_v0, %s17469_s24  ;;  %v7306_v33 = vsel %vm18289_vm9, %v17383_v41, %v16356_v31  ;;  %v12377_v34 = vld [vmem:[#allocation9 + $0xc4] ss:$16 sps:$4 sm:$0xff]   ;;  %vm18296_vm0 = vcmask 154624   ;;  %vm18297_vm9 = vnez %v18150_v39 }
 0x5be   : > { %7320 = vst.msk [vmem:[#allocation9 + $0x10] sm:$0xff] %vm18290_vm8, %v7306_v33  ;;  %v16373_v54 = vpop.permute.xlu1 %8313  ;;  %v16375_v30 = vpop.permute.xlu0 %8079  ;;  %v12375_v55 = vld [vmem:[#allocation9 + $0xc0] ss:$16 sps:$4 sm:$0xff]   ;;  %10308 = vmatprep.subr.bf16.mxu1 %v12377_v34  ;;  %vm18298_vm8 = vcmask 330752  }
 0x5bf   : > { %7919 = vrot.lane.b32.xlu1 %v15841_v17, %s17817_s9  ;;  %7325 = vst.msk [vmem:[#allocation9 + $0x10] sm:$0xf] %vm18291_vm4, %v17542_v43  ;;  %v17382_v58 = vrot.slane %v16375_v30, 4  ;;  %10309 = vmatpush1.bf16.msra.mxu1 %v12375_v55  ;;  %vm18299_vm4 = vcmask 150528  }
 0x5c1   : > { %8843 = vrot.lane.b32.xlu0 %v16283_v0, %s17820_s0  ;;  %v8096_v6 = vsel %vm18292_vm2, %v17382_v58, %v16375_v30  ;;  %v12380_v13 = vld [vmem:[#allocation9 + $0xa4] ss:$16 sps:$4 sm:$0xff]   ;;  %vm18301_vm2 = vcmask 171008   ;;  %s18504_s0 = sld [smem:[#allocation11_spill]] }
 0x5c2   : > { %8110 = vst.msk [vmem:[#allocation9 + $0x1f0] sm:$0xff] %vm18293_vm3, %v8096_v6  ;;  %v16390_v2 = vpop.permute.xlu1 %7367  ;;  %v16392_v14 = vpop.permute.xlu0 %7913  ;;  %10310 = vmatprep.subr.bf16.mxu1 %v12380_v13  ;;  %v12386_v22 = vld [vmem:[#allocation9 + $0x64] ss:$16 sps:$4 sm:$0xff]   ;;  %vm18302_vm3 = vnez %v18161_v56 }
 0x5c3   : > { %v12378_v57 = vld [vmem:[#allocation9 + $0xa0] ss:$16 sps:$4 sm:$0xff]   ;;  %7911 = vrot.lane.b32.xlu1 %v15841_v17, %s17817_s9  ;;  %8115 = vst.msk [vmem:[#allocation9 + $0x1f0] sm:$0xf] %vm18294_vm14, %v17542_v43  ;;  %v17389_v16 = vrot.slane %v16390_v2, 4  ;;  %v17381_v10 = vrot.slane %v16392_v14, 4 }
 0x5c4   : > { %10311 = vmatpush1.bf16.msra.mxu1 %v12378_v57  ;;  %vm18303_vm14 = vcmask 3072   ;;  %v12384_v34 = vld [vmem:[#allocation9 + $0x60] ss:$16 sps:$4 sm:$0xff]   ;;  %v12392_v13 = vld [vmem:[#allocation9 + $0x24] ss:$16 sps:$4 sm:$0xff]  }
 0x5c5   : > { %9023 = vrot.lane.b32.xlu0 %v15844_v36, %s17698_s14  ;;  %v7384_v51 = vsel %vm18295_vm5, %v17389_v16, %v16390_v2  ;;  %v7930_v29 = vsel %vm18296_vm0, %v17381_v10, %v16392_v14  ;;  %10312 = vmatprep.subr.bf16.mxu1 %v12383_v48  ;;  %vm18304_vm5 = vcmask 166912   ;;  %vm18306_vm0 = vcmask 142336  }
 0x5c6   : > { %7398 = vst.msk [vmem:[#allocation9 + $0x40] sm:$0xff] %vm18297_vm9, %v7384_v51  ;;  %v16414_v23 = vpop.permute.xlu1 %8167  ;;  %v16416_v62 = vpop.permute.xlu0 %7757  ;;  %v12395_v51 = vld [vmem:[#allocation9 + $0x4] ss:$16 sps:$4 sm:$0xff]   ;;  %vm18308_vm9 = vcmask 158720  }
 0x5c7   : > { %7944 = vst.msk [vmem:[#allocation9 + $0x190] sm:$0xff] %vm18193_vm6, %v7930_v29  ;;  %7837 = vrot.lane.b32.xlu1 %v16269_v40, %s17445_s29  ;;  %v17385_v39 = vrot.slane %v16414_v23, 4  ;;  %v17380_v37 = vrot.slane %v16416_v62, 4  ;;  %vm18300_vm6 = vcmask 7168  }
 0x5c8   : > { %7403 = vst.msk [vmem:[#allocation9 + $0x40] sm:$0xf] %vm18298_vm8, %v17542_v43  ;;  %10313 = vmatpush1.bf16.msra.mxu1 %v12381_v27  ;;  %vm18311_vm8 = vcmask 175104  }
 0x5c9   : > { %7949 = vst.msk [vmem:[#allocation9 + $0x190] sm:$0xf] %vm18299_vm4, %v17542_v43  ;;  %8755 = vrot.lane.b32.xlu0 %v16283_v0, %s17475_s12  ;;  %v8184_v35 = vsel %vm18300_vm6, %v17385_v39, %v16414_v23  ;;  %v7774_v60 = vsel %vm18301_vm2, %v17380_v37, %v16416_v62  ;;  %10314 = vmatprep.subr.bf16.mxu1 %v12386_v22  ;;  %v12393_v22 = vld [vmem:[#allocation9] ss:$16 sps:$4 sm:$0xff]  }
 0x5ca   : > { %8198 = vst.msk [vmem:[#allocation9 + $0x220] sm:$0xff] %vm18302_vm3, %v8184_v35  ;;  %v16440_v33 = vpop.permute.xlu1 %7991  ;;  %v12398_v35 = vld [vmem:[#allocation9 + $0x1e4] ss:$16 sps:$4 sm:$0xff]   ;;  %vm18316_vm3 = vcmask 318464  }
 0x5cb   : > { %7788 = vst.msk [vmem:[#allocation9 + $0x130] sm:$0xff] %vm18225_vm1, %v7774_v60  ;;  %8169 = vrot.lane.b32.xlu1 %v16283_v0, %s17696_s19  ;;  %v17387_v55 = vrot.slane %v16440_v33, 4  ;;  %vm18305_vm1 = vcmask 146432   ;;  %v9325_v37 = vld [vmem:[%s17044_s5 + $0x28] sm:$0xff] }
 0x5cc   : > { %8203 = vst.msk [vmem:[#allocation9 + $0x220] sm:$0xf] %vm18303_vm14, %v17542_v43  ;;  %10315 = vmatpush1.bf16.msra.mxu1 %v12384_v34  ;;  %v16543_v39 = vcombine.high %v9325_v37, %v9325_v37  ;;  %vm18317_vm14 = vcmask 310272   ;;  %v16563_v19 = vcombine.low %v9325_v37, %v9325_v37 }
 0x5cd   : > { %7793 = vst.msk [vmem:[#allocation9 + $0x130] sm:$0xf] %vm18304_vm5, %v17542_v43  ;;  %8667 = vrot.lane.b32.xlu0 %v16283_v0, %s17821_s1  ;;  %v8008_v7 = vsel %vm18305_vm1, %v17387_v55, %v16440_v33  ;;  %v12389_v57 = vld [vmem:[#allocation9 + $0x44] ss:$16 sps:$4 sm:$0xff]   ;;  %vm18320_vm1 = vcmask 326656  }
 0x5ce   : > { %8022 = vst.msk [vmem:[#allocation9 + $0x1c0] sm:$0xff] %vm18185_vm10, %v8008_v7  ;;  %v16457_v56 = vpop.permute.xlu1 %8929  ;;  %10316 = vmatprep.subr.bf16.mxu1 %v12389_v57  ;;  %vm18307_vm10 = vcmask 162816   ;;  %v12396_v7 = vld [vmem:[#allocation9 + $0x1e0] ss:$16 sps:$4 sm:$0xff]  }
 0x5cf   : > { %v12387_v6 = vld [vmem:[#allocation9 + $0x40] ss:$16 sps:$4 sm:$0xff]   ;;  %8085 = vrot.lane.b32.xlu1 %v15844_v36, %s17816_s23  ;;  %8027 = vst.msk [vmem:[#allocation9 + $0x1c0] sm:$0xf] %vm18306_vm0, %v17542_v43 }
 0x5d0   : > { %10317 = vmatpush1.bf16.msra.mxu1 %v12387_v6  ;;  %v12390_v36 = vld [vmem:[#allocation9 + $0x20] ss:$16 sps:$4 sm:$0xff]   ;;  %v9478_v6 = vld [vmem:[%s18309_s18] sm:$0xff] }
 0x5d1   : > { %7373 = vrot.lane.b32.xlu0 %v15841_v17, %s17449_s25  ;;  %10318 = vmatprep.subr.bf16.mxu1 %v12392_v13 }
 0x5d2   : > { %v16468_v48 = vpop.permute.xlu1 %8841 }
 0x5d3   : > { %7763 = vrot.lane.b32.xlu1 %v15841_v17, %s17477_s10 }
 0x5d4   : > { %10319 = vmatpush1.bf16.msra.mxu1 %v12390_v36  ;;  %v12404_v36 = vld [vmem:[#allocation9 + $0x1a4] ss:$16 sps:$4 sm:$0xff]  }
 0x5d5   : > { %8579 = vrot.lane.b32.xlu0 %v16283_v0, %s17822_s2  ;;  %10320 = vmatprep.subr.bf16.mxu1 %v12395_v51  ;;  %v12401_v57 = vld [vmem:[#allocation9 + $0x1c4] ss:$16 sps:$4 sm:$0xff]  }
 0x5d6   : > { %v16474_v29 = vpop.permute.xlu1 %7835  ;;  %v12399_v13 = vld [vmem:[#allocation9 + $0x1c0] ss:$16 sps:$4 sm:$0xff]  }
 0x5d7   : > { %7755 = vrot.lane.b32.xlu1 %v15841_v17, %s17477_s10  ;;  %v17386_v27 = vrot.slane %v16474_v29, 4 }
 0x5d8   : > { %10321 = vmatpush1.bf16.msra.mxu1 %v12393_v22 }
 0x5d9   : > { %9283 = vrot.lane.b32.xlu0 %v16283_v0, %s17819_s17  ;;  %v7852_v60 = vsel %vm18307_vm10, %v17386_v27, %v16474_v29  ;;  %10322 = vmatprep.subr.bf16.mxu1 %v12398_v35  ;;  %v12402_v35 = vld [vmem:[#allocation9 + $0x1a0] ss:$16 sps:$4 sm:$0xff]   ;;  %vm18322_vm10 = vcmask 900096   ;;  %s11651_s17 = sshll.u32 %s18504_s0, 5 }
 0x5da   : > { %7866 = vst.msk [vmem:[#allocation9 + $0x160] sm:$0xff] %vm18216_vm11, %v7852_v60  ;;  %v16487_v34 = vpop.permute.xlu1 %8753  ;;  %v12407_v60 = vld [vmem:[#allocation9 + $0x184] ss:$16 sps:$4 sm:$0xff]   ;;  %vm18310_vm11 = vcmask 179200  }
 0x5db   : > { %7681 = vrot.lane.b32.xlu1 %v16269_v40, %s17446_s30  ;;  %7871 = vst.msk [vmem:[#allocation9 + $0x160] sm:$0xf] %vm18308_vm9, %v17542_v43  ;;  %vm18323_vm9 = vmmov %vm18322_vm10 }
 0x5dc   : > { %10323 = vmatpush2.bf16.msra.mxu1 %v12396_v7 }
 0x5dd   : > { %9195 = vrot.lane.b32.xlu0 %v16283_v0, %s17697_s22  ;;  %10324 = vmatprep.subr.bf16.mxu1 %v12401_v57 }
 0x5de   : > { %v16498_v18 = vpop.permute.xlu1 %8665 }
 0x5df   : > { %9483 = vperm.xlu1 %12116, %v9478_v6  }
 0x5e0   : > { %10325 = vmatpush2.bf16.msra.mxu1 %v12399_v13 }
 0x5e1   : > { %7365 = vrot.lane.b32.xlu0 %v15841_v17, %s17449_s25  ;;  %10326 = vmatprep.subr.bf16.mxu1 %v12404_v36  ;;  %v12405_v17 = vld [vmem:[#allocation9 + $0x180] ss:$16 sps:$4 sm:$0xff]   ;;  %v12410_v6 = vld [vmem:[#allocation9 + $0x164] ss:$16 sps:$4 sm:$0xff]  }
 0x5e2   : > { %v16505_v51 = vpop.permute.xlu1 %7679  ;;  %v12408_v13 = vld [vmem:[#allocation9 + $0x160] ss:$16 sps:$4 sm:$0xff]  }
 0x5e3   : > { %9493 = vperm.xlu1 %12116, %v9480_v38   ;;  %v17384_v22 = vrot.slane %v16505_v51, 4  ;;  %v12413_v38 = vld [vmem:[#allocation9 + $0x144] ss:$16 sps:$4 sm:$0xff]   ;;  %v12411_v36 = vld [vmem:[#allocation9 + $0x140] ss:$16 sps:$4 sm:$0xff]  }
 0x5e4   : > { %10327 = vmatpush2.bf16.msra.mxu1 %v12402_v35  ;;  %v12416_v35 = vld [vmem:[#allocation9 + $0x124] ss:$16 sps:$4 sm:$0xff]  }
 0x5e5   : > { %9107 = vrot.lane.b32.xlu0 %v16283_v0, %s18281_s8  ;;  %v7696_v7 = vsel %vm18310_vm11, %v17384_v22, %v16505_v51  ;;  %10328 = vmatprep.subr.bf16.mxu1 %v12407_v60  ;;  %v16526_v60 = vld [vmem:[#allocation9 + $0x260] sm:$0xff]  ;;  %vm18324_vm11 = vcmask 1027072  }
 0x5e6   : > { %7710 = vst.msk [vmem:[#allocation9 + $0x100] sm:$0xff] %vm17948_vm13, %v7696_v7  ;;  %v16520_v57 = vpop.permute.xlu1 %8577  ;;  %v12414_v7 = vld [vmem:[#allocation9 + $0x120] ss:$16 sps:$4 sm:$0xff]   ;;  %vm18312_vm13 = vcmask 1043456  }
 0x5e7   : > { %7715 = vst.msk [vmem:[#allocation9 + $0x100] sm:$0xf] %vm18311_vm8, %v17542_v43  ;;  %vm18313_vm4 = vmmov %vm18312_vm13  ;;  %vm18325_vm8 = vnez %v17735_v25  ;;  %v8411_v25 = vrot.slane %v16354_v5, 4 }
 0x5e8   : > { %10329 = vmatpush2.bf16.msra.mxu1 %v12405_v17  ;;  %vm18314_vm6 = vmmov %vm18313_vm4 }
 0x5e9   : > { %9019 = vrot.lane.b32.xlu0 %v16283_v0, %s17698_s14  ;;  %10330 = vmatprep.subr.bf16.mxu1 %v12410_v6  ;;  %vm18315_vm2 = vmmov %vm18313_vm4  ;;  %s18505_s14 = sld [smem:[#allocation43_spill]] }
 0x5ea   : > { %v16524_v3 = vpop.permute.xlu1 %9281  ;;  %vm18319_vm5 = vmmov %vm18315_vm2 }
 0x5eb   : > { %vm18321_vm0 = vmmov %vm18315_vm2 }
 0x5ec   : > { %10331 = vmatpush2.bf16.msra.mxu1 %v12408_v13  ;;  %v9476_v13 = vld [vmem:[#allocation9 + $0x4a0] sm:$0xff] }
 0x5ed   : > { %7291 = vrot.lane.b32.xlu0 %v16269_v40, %s17505_s21  ;;  %10332 = vmatprep.subr.bf16.mxu1 %v12413_v38  ;;  %v12419_v17 = vld [vmem:[#allocation9 + $0x104] ss:$16 sps:$4 sm:$0xff]   ;;  %v11639_v10 = vcombine.high %v9476_v13, %v9476_v13 }
 0x5ee   : > { %v16532_v6 = vpop.permute.xlu1 %9193  ;;  %v12417_v38 = vld [vmem:[#allocation9 + $0x100] ss:$16 sps:$4 sm:$0xff]  }
 0x5ef   : > { %s17019_s22 = scalar_lea.vmem %s18505_s14, %s11651_s17 }
 0x5f0   : > { %10333 = vmatpush2.bf16.msra.mxu1 %v12411_v36  ;;  %v12421_v36 = vld [vmem:[%s17044_s5] ss:$20 sps:$4 sm:$0xff]  }
 0x5f1   : > { %7997 = vrot.lane.b32.xlu0 %v16526_v60, %s17823_s27  ;;  %10334 = vmatprep.subr.bf16.mxu1 %v12416_v35  ;;  %v11638_v35 = vcombine.low %v9476_v13, %v9476_v13 }
 0x5f4   : > { %10335 = vmatpush2.bf16.msra.mxu1 %v12414_v7  ;;  %v8128_v7 = vld [vmem:[#allocation8 + $0x58] sm:$0xff] }
 0x5f5   : > { %7989 = vrot.lane.b32.xlu0 %v16526_v60, %s17823_s27  ;;  %10336 = vmatprep.subr.bf16.mxu1 %v12419_v17 }
 0x5f8   : > { %10337 = vmatpush2.bf16.msra.mxu1 %v12417_v38  ;;  %v12576_v38 = vld [vmem:[#allocation8] sm:$0xff] }
 0x5f9   : > { %8081 = vrot.lane.b32.xlu0 %v16283_v0, %s17816_s23  ;;  %v7526_v58 = vpop.permute.xlu1 %7525  ;;  %v7604_v41 = vpop.permute.xlu0 %7603  ;;  %11642 = vmatprep.subr.msk.bf16.mxu1 %vm18312_vm13, %v11639_v10  ;;  %v10295_v0 = vsel %vm18315_vm2, %v11638_v35, 0  ;;  %v11998_v55 = vpack.c.bf16 %v8128_v7, %v12576_v38  ;;  %vm18327_vm13 = vmmov %vm18321_vm0 }
 0x5fa   : > { %v7534_v22 = vrot.slane %v7526_v58, 4  ;;  %v7612_v17 = vrot.slane %v7604_v41, 4  ;;  %vm18331_vm2 = vmmov %vm18320_vm1 }
 0x5fb   : > { %10339 = vmatmul.mubr.bf16.vlgmr.msra.gmra.mxu1 %v12421_v36  ;;  %v8499_v36 = vrot.slane %v16315_v59, 4 }
 0x5fc   : > { %v7541_v27 = vsel %vm18313_vm4, %v7533_v32, %v7534_v22  ;;  %v7619_v13 = vsel %vm18314_vm6, %v7611_v15, %v7612_v17  ;;  %10413 = vmatpush1.bf16.msra.mxu1 %v10295_v0  ;;  %10348 = vmatprep.mubr.bf16.mxu1 %v16543_v39  ;;  %v11994_v32 = vpack.c.bf16 %v8120_v42, %v12576_v38  ;;  %v9422_v38 = vld [vmem:[#allocation9 + $0x2f0] sm:$0xff]  ;;  %vm18328_vm4 = vmmov %vm18316_vm3 }
 0x5fd   : > { %7915 = vrot.lane.b32.xlu0 %v16269_v40, %s17817_s9  ;;  %v7542_v10 = vsel %vm18316_vm3, %v7541_v27, %v7526_v58  ;;  %v7620_v46 = vsel %vm18317_vm14, %v7619_v13, %v7604_v41  ;;  %v16556_v16 = vpop.permute.xlu1 %9109  ;;  %vm18330_vm6 = vmmov %vm18321_vm0  ;;  %vm18333_vm14 = vcmask 1031168  }
 0x5fe   : > { %7555 = vst.msk [vmem:[#allocation9 + $0xa8] sm:$0xff] %vm14177_vm7, %v7542_v10  ;;  %7633 = vst.msk [vmem:[#allocation9 + $0xd8] sm:$0xff] %vm14177_vm7, %v7620_v46  ;;  %v18318_v46 = vrot.slane %v15781_v28, 4 }
 0x5ff   : > { %vm18332_vm3 = vmmov %vm18321_vm0 }
 0x601   : > { %8173 = vrot.lane.b32.xlu0 %v11998_v55, %s17696_s19  ;;  %v16566_v15 = vpop.permute.xlu1 %9189 }
 0x603   : > { %10349 = vmatmul.mubr.bf16.gmra.mxu1 %v16563_v19 }
 0x604   : > { %10440 = vmatprep.mubr.bf16.mxu1 %v17542_v43 }
 0x605   : > { %7841 = vrot.lane.b32.xlu0 %v16526_v60, %s17445_s29  ;;  %v7452_v41 = vpop.permute.xlu1 %7451  ;;  %v12452_v4 = vld [vmem:[#allocation9 + $0xcc] ss:$16 sps:$4 sm:$0xff]  }
 0x606   : > { %v7458_v58 = vrot.slane %v7452_v41, 4 }
 0x608   : > { %v7466_v37 = vsel %vm18319_vm5, %v18318_v46, %v7458_v58  ;;  %v18326_v58 = vrot.slane %v15767_v52, 4  ;;  %vm18334_vm5 = vmmov %vm18333_vm14 }
 0x609   : > { %8165 = vrot.lane.b32.xlu0 %v11994_v32, %s17696_s19  ;;  %v7467_v55 = vsel %vm18320_vm1, %v7466_v37, %v7452_v41  ;;  %v16577_v27 = vpop.permute.xlu1 %9101  ;;  %vm18335_vm1 = vnez %v17747_v24 }
 0x60a   : > { %7479 = vst.msk [vmem:[#allocation9 + $0x88] sm:$0xff] %vm14177_vm7, %v7467_v55 }
 0x60b   : > { %v8492_v22 = vpop.permute.xlu0 %8491 }
 0x60c   : > { %v8500_v35 = vrot.slane %v8492_v22, 4 }
 0x60d   : > { %7833 = vrot.lane.b32.xlu0 %v16526_v60, %s17445_s29  ;;  %v16584_v7 = vpop.permute.xlu1 %9105 }
 0x60e   : > { %v8506_v28 = vsel %vm18321_vm0, %v8499_v36, %v8500_v35  ;;  %v8508_v17 = vsel %vm18322_vm10, %v8492_v22, %v8500_v35  ;;  %v12426_v35 = vld [vmem:[#allocation9 + $0x2c0] ss:$16 sps:$4 sm:$0xff]   ;;  %vm18336_vm0 = vcmask 126064   ;;  %vm18337_vm10 = vmmov %vm18332_vm3 }
 0x60f   : > { %v8507_v13 = vsel %vm18323_vm9, %v16315_v59, %v8506_v28  ;;  %8521 = vst.msk [vmem:[#allocation9 + $0x2e8] sm:$0xf] %vm18324_vm11, %v8508_v17  ;;  %v7530_v0 = vpop.permute.xlu0 %7529  ;;  %v12428_v59 = vld [vmem:[#allocation9 + $0x2c4] ss:$16 sps:$4 sm:$0xff]   ;;  %vm18338_vm9 = vcmask 1039360  }
 0x610   : > { %8525 = vst.msk [vmem:[#allocation9 + $0x2e8] sm:$0xff] %vm18325_vm8, %v17542_v43  ;;  %v7536_v10 = vrot.slane %v7530_v0, 4  ;;  %v11582_v42 = vcombine.low %v8507_v13, %v9422_v38  ;;  %v11583_v32 = vcombine.high %v8507_v13, %v9422_v38  ;;  %v9479_v38 = vld [vmem:[%s18309_s18 + $0x8] sm:$0xff]  ;;  %vm18339_vm11 = vmmov %vm18338_vm9  ;;  %vm18340_vm8 = vnez %v17756_v9 }
 0x611   : > { %7759 = vrot.lane.b32.xlu0 %v16269_v40, %s17477_s10  ;;  %v7444_v41 = vpop.permute.xlu1 %7443  ;;  %v18329_v40 = vrot.slane %v15819_v11, 4 }
 0x612   : > { %v7544_v46 = vsel %vm18327_vm13, %v18326_v58, %v7536_v10  ;;  %10357 = vmatprep.subr.bf16.mxu0 %v11583_v32  ;;  %v7454_v37 = vrot.slane %v7444_v41, 4  ;;  %v8323_v32 = vrot.slane %v16373_v54, 4  ;;  %vm18341_vm13 = vcmask 126072  }
 0x613   : > { %v7545_v55 = vsel %vm18328_vm4, %v7544_v46, %v7530_v0  ;;  %v8404_v22 = vpop.permute.xlu0 %8403  ;;  %10358 = vmatpush1.bf16.msra.mxu0 %v11582_v42  ;;  %v9412_v42 = vld [vmem:[#allocation9 + $0x2a0] sm:$0xff]  ;;  %vm18342_vm4 = vmmov %vm18332_vm3 }
 0x614   : > { %7557 = vst.msk [vmem:[#allocation9 + $0xb8] sm:$0xff] %vm14177_vm7, %v7545_v55  ;;  %v8412_v36 = vrot.slane %v8404_v22, 4  ;;  %10359 = vmatprep.subr.bf16.mxu0 %v12428_v59  ;;  %v7460_v52 = vsel %vm18330_vm6, %v18329_v40, %v7454_v37  ;;  %v9117_v37 = vrot.slane %v16556_v16, 4  ;;  %v9406_v55 = vld [vmem:[#allocation9 + $0x270] sm:$0xff]  ;;  %vm18343_vm6 = vcmask 719872  }
 0x615   : > { %7685 = vrot.lane.b32.xlu0 %v16526_v60, %s17446_s30  ;;  %v7461_v28 = vsel %vm18331_vm2, %v7460_v52, %v7444_v41  ;;  %v16609_v17 = vpop.permute.xlu1 %9017  ;;  %vm18344_vm2 = vmmov %vm18343_vm6 }
 0x616   : > { %v8418_v13 = vsel %vm18332_vm3, %v8411_v25, %v8412_v36  ;;  %v8420_v0 = vsel %vm18333_vm14, %v8404_v22, %v8412_v36  ;;  %7475 = vst.msk [vmem:[#allocation9 + $0x68] sm:$0xff] %vm14177_vm7, %v7461_v28  ;;  %v9410_v36 = vld [vmem:[#allocation9 + $0x290] sm:$0xff]  ;;  %v11567_v28 = vcombine.high %v16526_v60, %v9406_v55  ;;  %vm18345_vm3 = vcmask 846848  }
 0x617   : > { %v8419_v11 = vsel %vm18334_vm5, %v16354_v5, %v8418_v13  ;;  %8433 = vst.msk [vmem:[#allocation9 + $0x2b8] sm:$0xff] %vm18335_vm1, %v8420_v0  ;;  %v8316_v10 = vpop.permute.xlu0 %8315  ;;  %10360 = vmatpush1.bf16.msra.mxu0 %v12426_v35  ;;  %v9201_v0 = vrot.slane %v16566_v15, 4  ;;  %vm18349_vm5 = vmmov %vm18342_vm4  ;;  %vm18350_vm1 = vcmask 334848  }
 0x618   : > { %8437 = vst.msk [vmem:[#allocation9 + $0x2bc] sm:$0xf] %vm18336_vm0, %v17542_v43  ;;  %v8324_v41 = vrot.slane %v8316_v10, 4  ;;  %v11574_v58 = vcombine.low %v9412_v42, %v8419_v11  ;;  %v11575_v46 = vcombine.high %v9412_v42, %v8419_v11  ;;  %v18346_v42 = vld [vmem:[#allocation31_spill] sm:$0xff]  ;;  %vm18351_vm0 = vmmov %vm18342_vm4 }
 0x619   : > { %9488 = vperm.xlu0 %12115, %v9479_v38   ;;  %v16625_v59 = vpop.permute.xlu1 %9021  ;;  %vm18347_vm14 = vnez %v18346_v42 }
 0x61a   : > { %v8330_v5 = vsel %vm18337_vm10, %v8323_v32, %v8324_v41  ;;  %v8332_v24 = vsel %vm18338_vm9, %v8316_v10, %v8324_v41  ;;  %10361 = vmatprep.subr.bf16.mxu0 %v11575_v46  ;;  %v18348_v41 = vrot.slane %v16390_v2, 4  ;;  %v11566_v46 = vcombine.low %v16526_v60, %v9406_v55 }
 0x61b   : > { %v8331_v22 = vsel %vm18339_vm11, %v16373_v54, %v8330_v5  ;;  %8345 = vst.msk [vmem:[#allocation9 + $0x288] sm:$0xff] %vm18340_vm8, %v8332_v24  ;;  %v9112_v25 = vpop.permute.xlu0 %9111  ;;  %10362 = vmatpush1.bf16.msra.mxu0 %v11574_v58  ;;  %vm18352_vm10 = vcmask 711680   ;;  %vm18354_vm11 = vcmask 838656   ;;  %vm18356_vm8 = vmmov %vm18351_vm0 }
 0x61c   : > { %8349 = vst.msk [vmem:[#allocation9 + $0x28c] sm:$0xf] %vm18341_vm13, %v17542_v43  ;;  %v9118_v40 = vrot.slane %v9112_v25, 4  ;;  %v11570_v52 = vcombine.low %v8331_v22, %v9410_v36  ;;  %v11571_v35 = vcombine.high %v8331_v22, %v9410_v36  ;;  %v11563_v22 = vcombine.high %v16526_v60, %v16218_v44  ;;  %vm18353_vm9 = vmmov %vm18352_vm10 }
 0x61d   : > { %v7370_v13 = vpop.permute.xlu1 %7369  ;;  %vm18357_vm13 = vcmask 343040  }
 0x61e   : > { %v9125_v38 = vsel %vm18342_vm4, %v9117_v37, %v9118_v40  ;;  %v9127_v54 = vsel %vm18343_vm6, %v9112_v25, %v9118_v40  ;;  %10363 = vmatprep.subr.bf16.mxu0 %v11571_v35  ;;  %v7378_v9 = vrot.slane %v7370_v13, 4  ;;  %v18355_v40 = vrot.slane %v15861_v8, 4  ;;  %vm18359_vm4 = vmmov %vm18351_vm0 }
 0x61f   : > { %v16642_v11 = vsel %vm18344_vm2, %v16556_v16, %v9125_v38  ;;  %9139 = vst.msk [vmem:[#allocation9 + $0x448] sm:$0xf] %vm18345_vm3, %v9127_v54  ;;  %v9192_v10 = vpop.permute.xlu0 %9191  ;;  %10364 = vmatpush1.bf16.msra.mxu0 %v11570_v52  ;;  %v11562_v35 = vcombine.low %v16526_v60, %v16218_v44  ;;  %v12431_v54 = vld [vmem:[#allocation9 + $0x224] ss:$16 sps:$4 sm:$0xff]   ;;  %vm18360_vm6 = vcmask 318464   ;;  %v18361_v60 = vrot.slane %v15881_v53, 4  ;;  %vm18362_vm2 = vmmov %vm18351_vm0 }
 0x620   : > { %9142 = vst.msk [vmem:[#allocation9 + $0x448] sm:$0xff] %vm18347_vm14, %v17542_v43  ;;  %v9202_v32 = vrot.slane %v9192_v10, 4  ;;  %10365 = vmatprep.subr.bf16.mxu0 %v11567_v28  ;;  %v7385_v58 = vsel %vm18349_vm5, %v18348_v41, %v7378_v9  ;;  %vm18363_vm3 = vmmov %vm18357_vm13 }
 0x621   : > { %v7386_v37 = vsel %vm18350_vm1, %v7385_v58, %v7370_v13  ;;  %v7296_v16 = vpop.permute.xlu1 %7295  ;;  %v9113_v13 = vrot.slane %v16577_v27, 4  ;;  %vm18364_vm5 = vmmov %vm18351_vm0  ;;  %vm18365_vm1 = vcmask 719872  }
 0x622   : > { %v9207_v5 = vsel %vm18351_vm0, %v9201_v0, %v9202_v32  ;;  %v9209_v24 = vsel %vm18352_vm10, %v9192_v10, %v9202_v32  ;;  %7399 = vst.msk [vmem:[#allocation9 + $0x48] sm:$0xff] %vm14177_vm7, %v7386_v37  ;;  %v7302_v25 = vrot.slane %v7296_v16, 4  ;;  %v18358_v0 = vrot.slane %v15800_v49, 4  ;;  %v12429_v32 = vld [vmem:[#allocation9 + $0x220] ss:$16 sps:$4 sm:$0xff]   ;;  %vm18366_vm0 = vmmov %vm18365_vm1 }
 0x623   : > { %v16661_v2 = vsel %vm18353_vm9, %v16566_v15, %v9207_v5  ;;  %9223 = vst.msk [vmem:[#allocation9 + $0x458] sm:$0xf] %vm18354_vm11, %v9209_v24  ;;  %v7522_v55 = vpop.permute.xlu0 %7521  ;;  %10366 = vmatpush1.bf16.msra.mxu0 %v11566_v46  ;;  %vm18367_vm10 = vcmask 846848   ;;  %vm18369_vm9 = vmmov %vm18362_vm2  ;;  %vm18370_vm11 = vcmask 15360  }
 0x624   : > { %9228 = vst.msk [vmem:[#allocation9 + $0x458] sm:$0xff] %vm18277_vm15, %v17542_v43  ;;  %v7532_v36 = vrot.slane %v7522_v55, 4  ;;  %10367 = vmatprep.subr.bf16.mxu0 %v11563_v22  ;;  %v7310_v52 = vsel %vm18356_vm8, %v18355_v40, %v7302_v25  ;;  %v18368_v25 = vrot.slane %v15926_v12, 4  ;;  %vm18372_vm8 = vmmov %vm18362_vm2  ;;  %v8939_v12 = vrot.slane %v16457_v56, 4 }
 0x625   : > { %v7311_v15 = vsel %vm18357_vm13, %v7310_v52, %v7296_v16  ;;  %v7288_v28 = vpop.permute.xlu1 %7287  ;;  %v12434_v16 = vld [vmem:[#allocation9 + $0x204] ss:$16 sps:$4 sm:$0xff]   ;;  %vm18373_vm13 = vcmask 326656  }
 0x626   : > { %v7538_v38 = vsel %vm18359_vm4, %v18358_v0, %v7532_v36  ;;  %7323 = vst.msk [vmem:[#allocation9 + $0x28] sm:$0xff] %vm14177_vm7, %v7311_v15  ;;  %v7298_v9 = vrot.slane %v7288_v28, 4  ;;  %v12432_v36 = vld [vmem:[#allocation9 + $0x200] ss:$16 sps:$4 sm:$0xff]   ;;  %v12437_v15 = vld [vmem:[#allocation9 + $0x3e4] ss:$16 sps:$4 sm:$0xff]   ;;  %vm18375_vm4 = vmmov %vm18362_vm2 }
 0x627   : > { %v7539_v8 = vsel %vm18360_vm6, %v7538_v38, %v7522_v55  ;;  %v9104_v10 = vpop.permute.xlu0 %9103  ;;  %10368 = vmatpush1.bf16.msra.mxu0 %v11562_v35  ;;  %vm18376_vm6 = vcmask 146432  }
 0x628   : > { %7553 = vst.msk [vmem:[#allocation9 + $0x98] sm:$0xff] %vm14177_vm7, %v7539_v8  ;;  %v9114_v44 = vrot.slane %v9104_v10, 4  ;;  %10369 = vmatprep.subr.bf16.mxu0 %v12431_v54  ;;  %v7304_v49 = vsel %vm18362_vm2, %v18361_v60, %v7298_v9  ;;  %v12435_v9 = vld [vmem:[#allocation9 + $0x3e0] ss:$16 sps:$4 sm:$0xff]  }
 0x629   : > { %v7305_v41 = vsel %vm18363_vm3, %v7304_v49, %v7288_v28  ;;  %v8078_v58 = vpop.permute.xlu1 %8077  ;;  %vm18377_vm3 = vcmask 736256  }
 0x62a   : > { %v9119_v46 = vsel %vm18364_vm5, %v9113_v13, %v9114_v44  ;;  %v9121_v37 = vsel %vm18365_vm1, %v9104_v10, %v9114_v44  ;;  %7319 = vst.msk [vmem:[#allocation9 + $0x8] sm:$0xff] %vm14177_vm7, %v7305_v41  ;;  %v8088_v5 = vrot.slane %v8078_v58, 4  ;;  %vm18378_vm5 = vmmov %vm18377_vm3  ;;  %vm18379_vm1 = vcmask 863232  }
 0x62b   : > { %v16692_v24 = vsel %vm18366_vm0, %v16577_v27, %v9119_v46  ;;  %9135 = vst.msk [vmem:[#allocation9 + $0x428] sm:$0xf] %vm18367_vm10, %v9121_v37  ;;  %v7448_v53 = vpop.permute.xlu0 %7447  ;;  %10370 = vmatpush1.bf16.msra.mxu0 %v12429_v32  ;;  %v18371_v27 = vrot.slane %v16332_v1, 4  ;;  %v18374_v1 = vrot.slane %v16440_v33, 4  ;;  %v8851_v32 = vrot.slane %v16468_v48, 4  ;;  %vm18382_vm10 = vmmov %vm18362_vm2 }
 0x62c   : > { %9140 = vst.msk [vmem:[#allocation9 + $0x428] sm:$0xff] %vm18347_vm14, %v17542_v43  ;;  %v7456_v22 = vrot.slane %v7448_v53, 4  ;;  %10371 = vmatprep.subr.bf16.mxu0 %v12434_v16  ;;  %v8094_v55 = vsel %vm18369_vm9, %v18368_v25, %v8088_v5  ;;  %vm18380_vm0 = vnez %v18174_v45  ;;  %v18381_v5 = vrot.slane %v15973_v50, 4 }
 0x62d   : > { %v8095_v40 = vsel %vm18370_vm11, %v8094_v55, %v8078_v58  ;;  %v7994_v52 = vpop.permute.xlu1 %7993  ;;  %v9448_v58 = vld [vmem:[#allocation9 + $0x3c0] sm:$0xff]  ;;  %vm18383_vm9 = vcmask 154624   ;;  %vm18384_vm11 = vmmov %vm18362_vm2 }
 0x62e   : > { %v7463_v35 = vsel %vm18372_vm8, %v18371_v27, %v7456_v22  ;;  %8109 = vst.msk [vmem:[#allocation9 + $0x1e8] sm:$0xff] %vm14177_vm7, %v8095_v40  ;;  %v8002_v28 = vrot.slane %v7994_v52, 4  ;;  %vm18385_vm8 = vcmask 867328   ;;  %v18388_v27 = vld [vmem:[#allocation33_spill] sm:$0xff] }
 0x62f   : > { %v7464_v13 = vsel %vm18373_vm13, %v7463_v35, %v7448_v53  ;;  %v8932_v0 = vpop.permute.xlu0 %8931  ;;  %10372 = vmatpush1.bf16.msra.mxu0 %v12432_v36  ;;  %vm18386_vm13 = vmmov %vm18385_vm8 }
 0x630   : > { %7477 = vst.msk [vmem:[#allocation9 + $0x78] sm:$0xff] %vm14177_vm7, %v7464_v13  ;;  %v8940_v38 = vrot.slane %v8932_v0, 4  ;;  %10373 = vmatprep.subr.bf16.mxu0 %v12437_v15  ;;  %v8009_v54 = vsel %vm18375_vm4, %v18374_v1, %v8002_v28  ;;  %vm18387_vm4 = vcmask 994304   ;;  %v18390_v13 = vld [vmem:[#allocation22_spill] sm:$0xff] }
 0x631   : > { %v8010_v8 = vsel %vm18376_vm6, %v8009_v54, %v7994_v52  ;;  %v7920_v10 = vpop.permute.xlu1 %7919  ;;  %v9446_v52 = vld [vmem:[#allocation9 + $0x3b0] sm:$0xff]  ;;  %vm18389_vm6 = vnez %v18388_v27 }
 0x632   : > { %v8946_v44 = vsel %vm18362_vm2, %v8939_v12, %v8940_v38  ;;  %v8948_v60 = vsel %vm18377_vm3, %v8932_v0, %v8940_v38  ;;  %8023 = vst.msk [vmem:[#allocation9 + $0x1c8] sm:$0xff] %vm14177_vm7, %v8010_v8  ;;  %v7926_v49 = vrot.slane %v7920_v10, 4  ;;  %v18391_v0 = vrot.slane %v18390_v13, 4  ;;  %vm18392_vm3 = vmmov %vm18383_vm9  ;;  %v9434_v13 = vld [vmem:[#allocation9 + $0x350] sm:$0xff] }
 0x633   : > { %v8947_v41 = vsel %vm18378_vm5, %v16457_v56, %v8946_v44  ;;  %8961 = vst.msk [vmem:[#allocation9 + $0x3d8] sm:$0xf] %vm18379_vm1, %v8948_v60  ;;  %v8844_v33 = vpop.permute.xlu0 %8843  ;;  %10374 = vmatpush2.bf16.msra.mxu0 %v12435_v9  ;;  %v9029_v56 = vrot.slane %v16625_v59, 4  ;;  %vm18393_vm5 = vmmov %vm18362_vm2  ;;  %vm18394_vm1 = vcmask 728064   ;;  %v12440_v9 = vld [vmem:[#allocation9 + $0x384] ss:$16 sps:$4 sm:$0xff]  }
 0x634   : > { %8965 = vst.msk [vmem:[#allocation9 + $0x3d8] sm:$0xff] %vm18380_vm0, %v17542_v43  ;;  %v8852_v46 = vrot.slane %v8844_v33, 4  ;;  %v11610_v37 = vcombine.low %v9448_v58, %v8947_v41  ;;  %v11611_v16 = vcombine.high %v9448_v58, %v8947_v41  ;;  %v7934_v53 = vsel %vm18382_vm10, %v18381_v5, %v7926_v49  ;;  %vm18395_vm0 = vmmov %vm18394_vm1  ;;  %v18397_v49 = vld [vmem:[#allocation30_spill] sm:$0xff] }
 0x635   : > { %v7935_v22 = vsel %vm18383_vm9, %v7934_v53, %v7920_v10  ;;  %v7912_v25 = vpop.permute.xlu1 %7911  ;;  %vm18396_vm10 = vcmask 855040   ;;  %v8763_v60 = vrot.slane %v16487_v34, 4  ;;  %vm18398_vm9 = vnez %v18397_v49  ;;  %v12438_v58 = vld [vmem:[#allocation9 + $0x380] ss:$16 sps:$4 sm:$0xff]  }
 0x636   : > { %v8858_v55 = vsel %vm18384_vm11, %v8851_v32, %v8852_v46  ;;  %v8860_v36 = vsel %vm18385_vm8, %v8844_v33, %v8852_v46  ;;  %10375 = vmatprep.subr.bf16.mxu0 %v11611_v16  ;;  %7947 = vst.msk [vmem:[#allocation9 + $0x1a8] sm:$0xff] %vm14177_vm7, %v7935_v22  ;;  %v7922_v45 = vrot.slane %v7912_v25, 4  ;;  %v18399_v41 = vrot.slane %v16474_v29, 4  ;;  %vm18400_vm11 = vmmov %vm18362_vm2 }
 0x637   : > { %v8859_v40 = vsel %vm18386_vm13, %v16468_v48, %v8858_v55  ;;  %8873 = vst.msk [vmem:[#allocation9 + $0x3a8] sm:$0xf] %vm18387_vm4, %v8860_v36  ;;  %v9024_v50 = vpop.permute.xlu0 %9023  ;;  %10376 = vmatpush2.bf16.msra.mxu0 %v11610_v37  ;;  %vm18401_vm8 = vcmask 162816   ;;  %vm18402_vm13 = vmmov %vm18362_vm2  ;;  %vm18403_vm4 = vcmask 875520   ;;  %v8675_v53 = vrot.slane %v16498_v18, 4 }
 0x638   : > { %8877 = vst.msk [vmem:[#allocation9 + $0x3a8] sm:$0xff] %vm18389_vm6, %v17542_v43  ;;  %v9030_v35 = vrot.slane %v9024_v50, 4  ;;  %v11606_v15 = vcombine.low %v8859_v40, %v9446_v52  ;;  %v11607_v28 = vcombine.high %v8859_v40, %v9446_v52  ;;  %v7928_v12 = vsel %vm18362_vm2, %v18391_v0, %v7922_v45  ;;  %vm18404_vm6 = vmmov %vm18403_vm4  ;;  %v18414_v0 = vld [vmem:[#allocation37_spill] sm:$0xff] }
 0x639   : > { %v7929_v38 = vsel %vm18392_vm3, %v7928_v12, %v7912_v25  ;;  %v7838_v1 = vpop.permute.xlu1 %7837  ;;  %vm18405_vm2 = vcmask 1002496   ;;  %v9436_v25 = vld [vmem:[#allocation9 + $0x360] sm:$0xff]  ;;  %v18408_v40 = vrot.slane %v16414_v23, 4 }
 0x63a   : > { %v9037_v48 = vsel %vm18393_vm5, %v9029_v56, %v9030_v35  ;;  %v9039_v54 = vsel %vm18394_vm1, %v9024_v50, %v9030_v35  ;;  %10377 = vmatprep.subr.bf16.mxu0 %v11607_v28  ;;  %7943 = vst.msk [vmem:[#allocation9 + $0x188] sm:$0xff] %vm14177_vm7, %v7929_v38  ;;  %v7846_v8 = vrot.slane %v7838_v1, 4  ;;  %v18406_v56 = vld [vmem:[#allocation34_spill] sm:$0xff]  ;;  %vm18409_vm1 = vcmask 7168  }
 0x63b   : > { %v16751_v10 = vsel %vm18395_vm0, %v16625_v59, %v9037_v48  ;;  %9051 = vst.msk [vmem:[#allocation9 + $0x418] sm:$0xf] %vm18396_vm10, %v9039_v54  ;;  %v8756_v44 = vpop.permute.xlu0 %8755  ;;  %10378 = vmatpush2.bf16.msra.mxu0 %v11606_v15  ;;  %vm18407_vm3 = vnez %v18406_v56  ;;  %vm18410_vm0 = vmmov %vm18393_vm5  ;;  %vm18411_vm10 = vcmask 883712   ;;  %v18416_v48 = vld [vmem:[#allocation36_spill] sm:$0xff] }
 0x63c   : > { %9054 = vst.msk [vmem:[#allocation9 + $0x418] sm:$0xff] %vm18398_vm9, %v17542_v43  ;;  %v8764_v32 = vrot.slane %v8756_v44, 4  ;;  %10379 = vmatprep.subr.bf16.mxu0 %v12440_v9  ;;  %v7853_v33 = vsel %vm18400_vm11, %v18399_v41, %v7846_v8  ;;  %vm18412_vm11 = vmmov %vm18411_vm10  ;;  %v18417_v54 = vrot.slane %v18416_v48, 4  ;;  %v12443_v41 = vld [vmem:[#allocation9 + $0x324] ss:$16 sps:$4 sm:$0xff]  }
 0x63d   : > { %v7854_v59 = vsel %vm18401_vm8, %v7853_v33, %v7838_v1  ;;  %v8170_v46 = vpop.permute.xlu1 %8169  ;;  %vm18413_vm8 = vcmask 1010688   ;;  %v12446_v48 = vld [vmem:[#allocation9 + $0xec] ss:$16 sps:$4 sm:$0xff]  }
 0x63e   : > { %v8770_v37 = vsel %vm18402_vm13, %v8763_v60, %v8764_v32  ;;  %v8772_v16 = vsel %vm18403_vm4, %v8756_v44, %v8764_v32  ;;  %7867 = vst.msk [vmem:[#allocation9 + $0x168] sm:$0xff] %vm14177_vm7, %v7854_v59  ;;  %v8178_v5 = vrot.slane %v8170_v46, 4  ;;  %vm18415_vm13 = vnez %v18414_v0  ;;  %vm18418_vm4 = vmmov %vm18410_vm0 }
 0x63f   : > { %v8771_v22 = vsel %vm18404_vm6, %v16487_v34, %v8770_v37  ;;  %8785 = vst.msk [vmem:[#allocation9 + $0x378] sm:$0xf] %vm18405_vm2, %v8772_v16  ;;  %v8668_v29 = vpop.permute.xlu0 %8667  ;;  %10380 = vmatpush2.bf16.msra.mxu0 %v12438_v58  ;;  %vm18419_vm6 = vcmask 15360   ;;  %vm18422_vm2 = vmmov %vm18410_vm0  ;;  %v18424_v16 = vld [vmem:[#allocation15_spill] sm:$0xff] }
 0x640   : > { %8789 = vst.msk [vmem:[#allocation9 + $0x378] sm:$0xff] %vm18407_vm3, %v17542_v43  ;;  %v8676_v55 = vrot.slane %v8668_v29, 4  ;;  %v11598_v36 = vcombine.low %v9436_v25, %v8771_v22  ;;  %v11599_v45 = vcombine.high %v9436_v25, %v8771_v22  ;;  %v8185_v50 = vsel %vm18393_vm5, %v18408_v40, %v8178_v5  ;;  %vm18426_vm5 = vmmov %vm18410_vm0  ;;  %v12441_v22 = vld [vmem:[#allocation9 + $0x320] ss:$16 sps:$4 sm:$0xff]  }
 0x641   : > { %v8186_v52 = vsel %vm18409_vm1, %v8185_v50, %v8170_v46  ;;  %v8086_v27 = vpop.permute.xlu1 %8085  ;;  %vm18423_vm3 = vcmask 334848   ;;  %v8587_v46 = vrot.slane %v16520_v57, 4  ;;  %v18425_v5 = vrot.slane %v18424_v16, 4 }
 0x642   : > { %v8682_v34 = vsel %vm18410_vm0, %v8675_v53, %v8676_v55  ;;  %v8684_v35 = vsel %vm18411_vm10, %v8668_v29, %v8676_v55  ;;  %10381 = vmatprep.subr.bf16.mxu0 %v11599_v45  ;;  %8199 = vst.msk [vmem:[#allocation9 + $0x228] sm:$0xff] %vm14177_vm7, %v8186_v52  ;;  %v8092_v15 = vrot.slane %v8086_v27, 4  ;;  %vm18427_vm1 = vcmask 171008   ;;  %v9424_v52 = vld [vmem:[#allocation9 + $0x300] sm:$0xff] }
 0x643   : > { %v8683_v28 = vsel %vm18412_vm11, %v16498_v18, %v8682_v34  ;;  %8697 = vst.msk [vmem:[#allocation9 + $0x348] sm:$0xf] %vm18413_vm8, %v8684_v35  ;;  %v7374_v23 = vpop.permute.xlu0 %7373  ;;  %10382 = vmatpush2.bf16.msra.mxu0 %v11598_v36  ;;  %v18420_v18 = vld [vmem:[#allocation16_spill] sm:$0xff]  ;;  %vm18428_vm10 = vcmask 891904   ;;  %v9291_v45 = vrot.slane %v16524_v3, 4  ;;  %vm18430_vm8 = vcmask 1018880  }
 0x644   : > { %8701 = vst.msk [vmem:[#allocation9 + $0x348] sm:$0xff] %vm18415_vm13, %v17542_v43  ;;  %v7380_v12 = vrot.slane %v7374_v23, 4  ;;  %v11594_v38 = vcombine.low %v8683_v28, %v9434_v13  ;;  %v11595_v1 = vcombine.high %v8683_v28, %v9434_v13  ;;  %v8100_v9 = vsel %vm18418_vm4, %v18417_v54, %v8092_v15  ;;  %vm18429_vm11 = vmmov %vm18428_vm10  ;;  %v18433_v28 = vld [vmem:[#allocation13_spill] sm:$0xff]  ;;  %v16829_v54 = vld [vmem:[%s17044_s5 + $0x8] ss:$20 sps:$4 sm:$0xff]  }
 0x645   : > { %v8101_v8 = vsel %vm18419_vm6, %v8100_v9, %v8086_v27  ;;  %v7764_v44 = vpop.permute.xlu1 %7763  ;;  %v18421_v60 = vrot.slane %v18420_v18, 4  ;;  %v18431_v27 = vld [vmem:[#allocation38_spill] sm:$0xff]  ;;  %vm18435_vm4 = vmmov %vm18410_vm0 }
 0x646   : > { %10383 = vmatprep.subr.bf16.mxu0 %v11595_v1  ;;  %8113 = vst.msk [vmem:[#allocation9 + $0x208] sm:$0xff] %vm14177_vm7, %v8101_v8  ;;  %v7770_v33 = vrot.slane %v7764_v44, 4  ;;  %vm18432_vm13 = vnez %v18431_v27  ;;  %vm18436_vm6 = vmmov %vm18427_vm1  ;;  %v9203_v8 = vrot.slane %v16532_v6, 4 }
 0x647   : > { %v7388_v32 = vsel %vm18422_vm2, %v18421_v60, %v7380_v12  ;;  %v8580_v59 = vpop.permute.xlu0 %8579  ;;  %10384 = vmatpush2.bf16.msra.mxu0 %v11594_v38  ;;  %vm18437_vm2 = vmmov %vm18410_vm0  ;;  %v9472_v60 = vld [vmem:[#allocation9 + $0x480] sm:$0xff] }
 0x648   : > { %v7389_v58 = vsel %vm18423_vm3, %v7388_v32, %v7374_v23  ;;  %v8588_v37 = vrot.slane %v8580_v59, 4  ;;  %10385 = vmatprep.subr.bf16.mxu0 %v12443_v41  ;;  %v7778_v53 = vsel %vm18426_vm5, %v18425_v5, %v7770_v33  ;;  %v18434_v23 = vrot.slane %v18433_v28, 4  ;;  %v12453_v28 = vld [vmem:[#allocation9 + $0xa8] ss:$16 sps:$4 sm:$0xff]  }
 0x649   : > { %7401 = vst.msk [vmem:[#allocation9 + $0x58] sm:$0xff] %vm14177_vm7, %v7389_v58  ;;  %v7779_v29 = vsel %vm18427_vm1, %v7778_v53, %v7764_v44  ;;  %v7756_v25 = vpop.permute.xlu1 %7755  ;;  %vm18438_vm3 = vcmask 703488   ;;  %vm18440_vm1 = vcmask 830464  }
 0x64a   : > { %v8594_v56 = vsel %vm18410_vm0, %v8587_v46, %v8588_v37  ;;  %v8596_v55 = vsel %vm18428_vm10, %v8580_v59, %v8588_v37  ;;  %7791 = vst.msk [vmem:[#allocation9 + $0x148] sm:$0xff] %vm14177_vm7, %v7779_v29  ;;  %v7766_v36 = vrot.slane %v7756_v25, 4  ;;  %vm18439_vm5 = vmmov %vm18438_vm3  ;;  %v18441_v59 = vrot.slane %v16505_v51, 4 }
 0x64b   : > { %v8595_v40 = vsel %vm18429_vm11, %v16520_v57, %v8594_v56  ;;  %8609 = vst.msk [vmem:[#allocation9 + $0x318] sm:$0xf] %vm18430_vm8, %v8596_v55  ;;  %v9284_v50 = vpop.permute.xlu0 %9283  ;;  %10386 = vmatpush2.bf16.msra.mxu0 %v12441_v22  ;;  %v9326_v57 = vld [vmem:[%s17044_s5 + $0x30] sm:$0xff]  ;;  %vm18442_vm10 = vcmask 179200   ;;  %vm18443_vm11 = vmmov %vm18410_vm0  ;;  %vm18444_vm8 = vcmask 711680   ;;  %v9470_v22 = vld [vmem:[#allocation9 + $0x470] sm:$0xff] }
 0x64c   : > { %8613 = vst.msk [vmem:[#allocation9 + $0x318] sm:$0xff] %vm18432_vm13, %v17542_v43  ;;  %v9292_v34 = vrot.slane %v9284_v50, 4  ;;  %v11586_v35 = vcombine.low %v9424_v52, %v8595_v40  ;;  %v11587_v15 = vcombine.high %v9424_v52, %v8595_v40  ;;  %v7772_v13 = vsel %vm18435_vm4, %v18434_v23, %v7766_v36  ;;  %v12450_v55 = vld [vmem:[#allocation9 + $0xc8] ss:$16 sps:$4 sm:$0xff]   ;;  %vm18449_vm4 = vmmov %vm18410_vm0 }
 0x64d   : > { %v7773_v0 = vsel %vm18436_vm6, %v7772_v13, %v7756_v25  ;;  %v7682_v12 = vpop.permute.xlu1 %7681  ;;  %v16835_v32 = vcombine.high %v9326_v57, %v9326_v57  ;;  %vm18446_vm13 = vcmask 838656   ;;  %v18447_v36 = vld [vmem:[#allocation35_spill] sm:$0xff]  ;;  %v11627_v40 = vcombine.high %v16642_v11, %v16661_v2 }
 0x64e   : > { %v9298_v38 = vsel %vm18437_vm2, %v9291_v45, %v9292_v34  ;;  %v9300_v1 = vsel %vm18438_vm3, %v9284_v50, %v9292_v34  ;;  %10387 = vmatprep.subr.bf16.mxu0 %v11587_v15  ;;  %7787 = vst.msk [vmem:[#allocation9 + $0x128] sm:$0xff] %vm14177_vm7, %v7773_v0  ;;  %v7690_v9 = vrot.slane %v7682_v12, 4  ;;  %v18448_v45 = vrot.slane %v18447_v36, 4  ;;  %v12455_v50 = vld [vmem:[#allocation9 + $0xac] ss:$16 sps:$4 sm:$0xff]  }
 0x64f   : > { %v9299_v44 = vsel %vm18439_vm5, %v16524_v3, %v9298_v38  ;;  %9313 = vst.msk [vmem:[#allocation9 + $0x498] sm:$0xf] %vm18440_vm1, %v9300_v1  ;;  %v9196_v18 = vpop.permute.xlu0 %9195  ;;  %10388 = vmatpush2.bf16.msra.mxu0 %v11586_v35  ;;  %v12444_v3 = vld [vmem:[#allocation9 + $0xe8] ss:$16 sps:$4 sm:$0xff]   ;;  %v16861_v52 = vcombine.low %v9326_v57, %v9326_v57  ;;  %vm18450_vm6 = vcmask 334848   ;;  %v9115_v34 = vrot.slane %v16584_v7, 4  ;;  %vm18455_vm1 = vmmov %vm18410_vm0 }
 0x650   : > { %9317 = vst.msk [vmem:[#allocation9 + $0x498] sm:$0xff] %vm18259_vm12, %v17542_v43  ;;  %v9204_v41 = vrot.slane %v9196_v18, 4  ;;  %10459 = vmatprep.subr.bf16.mxu0 %v12446_v48  ;;  %v11634_v33 = vcombine.low %v9472_v60, %v9299_v44  ;;  %v11635_v58 = vcombine.high %v9472_v60, %v9299_v44  ;;  %v7697_v46 = vsel %vm18410_vm0, %v18441_v59, %v7690_v9  ;;  %vm18445_vm12 = vmmov %vm18444_vm8  ;;  %v12460_v57 = vld [vmem:[#allocation9 + $0x8c] ss:$16 sps:$4 sm:$0xff]   ;;  %v12458_v48 = vld [vmem:[#allocation9 + $0x88] ss:$16 sps:$4 sm:$0xff]  }
 0x651   : > { %v7698_v37 = vsel %vm18442_vm10, %v7697_v46, %v7682_v12  ;;  %v11626_v15 = vcombine.low %v16642_v11, %v16661_v2  ;;  %vm18452_vm2 = vcmask 719872   ;;  %vm18454_vm5 = vcmask 846848   ;;  %v12463_v44 = vld [vmem:[#allocation9 + $0x6c] ss:$16 sps:$4 sm:$0xff]   ;;  %v12474_v36 = vld [vmem:[#allocation9 + $0x2c8] ss:$16 sps:$4 sm:$0xff]  }
 0x652   : > { %v9210_v16 = vsel %vm18443_vm11, %v9203_v8, %v9204_v41  ;;  %v9212_v5 = vsel %vm18444_vm8, %v9196_v18, %v9204_v41  ;;  %10390 = vmatmul.mubr.bf16.vlgmr.msra.gmra.mxu0 %v16829_v54  ;;  %10414 = vmatprep.subr.bf16.mxu1 %v11635_v58  ;;  %7711 = vst.msk [vmem:[#allocation9 + $0x108] sm:$0xff] %vm14177_vm7, %v7698_v37  ;;  %vm18453_vm3 = vmmov %vm18452_vm2  ;;  %v9027_v38 = vrot.slane %v16609_v17, 4  ;;  %vm18458_vm10 = vcmask 855040   ;;  %v12461_v58 = vld [vmem:[#allocation9 + $0x68] ss:$16 sps:$4 sm:$0xff]  }
 0x653   : > { %v9211_v53 = vsel %vm18445_vm12, %v16532_v6, %v9210_v16  ;;  %9225 = vst.msk [vmem:[#allocation9 + $0x468] sm:$0xf] %vm18446_vm13, %v9212_v5  ;;  %v7366_v51 = vpop.permute.xlu0 %7365  ;;  %10415 = vmatpush1.bf16.msra.mxu1 %v11634_v33  ;;  %10460 = vmatpush1.bf16.msra.mxu0 %v12444_v3  ;;  %v12470_v33 = vld [vmem:[#allocation9 + $0x2ec] ss:$16 sps:$4 sm:$0xff]   ;;  %v18459_v59 = vrot.slane %v16356_v31, 4  ;;  %vm18460_vm11 = vmmov %vm18455_vm1  ;;  %vm18466_vm13 = vcmask 146432  }
 0x654   : > { %9229 = vst.msk [vmem:[#allocation9 + $0x468] sm:$0xff] %vm18277_vm15, %v17542_v43  ;;  %v7376_v29 = vrot.slane %v7366_v51, 4  ;;  %10461 = vmatprep.subr.bf16.mxu0 %v12452_v4  ;;  %v11630_v25 = vcombine.low %v9211_v53, %v9470_v22  ;;  %v11631_v56 = vcombine.high %v9211_v53, %v9470_v22  ;;  %10399 = vmatprep.mubr.bf16.mxu0 %v16835_v32  ;;  %vm18451_vm15 = vmmov %vm18410_vm0  ;;  %vm18456_vm0 = vcmask 728064   ;;  %v12466_v46 = vld [vmem:[#allocation9 + $0x4c] ss:$16 sps:$4 sm:$0xff]  }
 0x655   : > { %v16900_v3 = vld [vmem:[%s17044_s5 + $0x10] ss:$20 sps:$4 sm:$0xff]   ;;  %vm18464_vm8 = vmmov %vm18455_vm1 }
 0x656   : > { %v7382_v6 = vsel %vm18449_vm4, %v18448_v45, %v7376_v29  ;;  %10416 = vmatprep.subr.bf16.mxu1 %v11631_v56  ;;  %v12468_v16 = vld [vmem:[#allocation9 + $0x2e8] ss:$16 sps:$4 sm:$0xff]   ;;  %vm18465_vm12 = vmmov %vm18452_vm2  ;;  %v12476_v22 = vld [vmem:[#allocation9 + $0x2cc] ss:$16 sps:$4 sm:$0xff]  }
 0x657   : > { %v7383_v21 = vsel %vm18450_vm6, %v7382_v6, %v7366_v51  ;;  %v9108_v27 = vpop.permute.xlu0 %9107  ;;  %10417 = vmatpush1.bf16.msra.mxu1 %v11630_v25  ;;  %10462 = vmatpush1.bf16.msra.mxu0 %v12450_v55  ;;  %v12464_v31 = vld [vmem:[#allocation9 + $0x48] ss:$16 sps:$4 sm:$0xff]   ;;  %v18467_v45 = vld [vmem:[#allocation20_spill] sm:$0xff]  ;;  %vm18469_vm4 = vmmov %vm18455_vm1 }
 0x658   : > { %7397 = vst.msk [vmem:[#allocation9 + $0x38] sm:$0xff] %vm14177_vm7, %v7383_v21  ;;  %v9116_v35 = vrot.slane %v9108_v27, 4  ;;  %10418 = vmatprep.subr.bf16.mxu1 %v11627_v40  ;;  %10463 = vmatprep.subr.bf16.mxu0 %v12455_v50  ;;  %v18462_v5 = vld [vmem:[#allocation21_spill] sm:$0xff]  ;;  %v18468_v6 = vrot.slane %v18467_v45, 4  ;;  %v16920_v21 = vld [vmem:[%s17044_s5 + $0x38] ss:$0 sps:$4 sm:$0xff]   ;;  %vm18470_vm6 = vmmov %vm18466_vm13 }
 0x659   : > { %v18463_v4 = vrot.slane %v18462_v5, 4  ;;  %v12482_v50 = vld [vmem:[#allocation9 + $0x2ac] ss:$16 sps:$4 sm:$0xff]  }
 0x65a   : > { %v9122_v23 = vsel %vm18451_vm15, %v9115_v34, %v9116_v35  ;;  %v9124_v13 = vsel %vm18452_vm2, %v9108_v27, %v9116_v35  ;;  %10400 = vmatmul.mubr.bf16.gmra.mxu0 %v16861_v52  ;;  %vm18472_vm15 = vmmov %vm18455_vm1 }
 0x65b   : > { %v9123_v0 = vsel %vm18453_vm3, %v16584_v7, %v9122_v23  ;;  %9137 = vst.msk [vmem:[#allocation9 + $0x438] sm:$0xf] %vm18454_vm5, %v9124_v13  ;;  %v9020_v12 = vpop.permute.xlu0 %9019  ;;  %10419 = vmatpush1.bf16.msra.mxu1 %v11626_v15  ;;  %10464 = vmatpush1.bf16.msra.mxu0 %v12453_v28  ;;  %v12577_v7 = vld [vmem:[%s17044_s5 + $0x4] ss:$20 sps:$4 sm:$0xff]   ;;  %v12480_v23 = vld [vmem:[#allocation9 + $0x2a8] ss:$16 sps:$4 sm:$0xff]   ;;  %vm18475_vm5 = vmmov %vm18455_vm1 }
 0x65c   : > { %9141 = vst.msk [vmem:[#allocation9 + $0x438] sm:$0xff] %vm18347_vm14, %v17542_v43  ;;  %v9028_v11 = vrot.slane %v9020_v12, 4  ;;  %10465 = vmatprep.subr.bf16.mxu0 %v12460_v57  ;;  %v11622_v2 = vcombine.low %v16692_v24, %v9123_v0  ;;  %v11623_v1 = vcombine.high %v16692_v24, %v9123_v0  ;;  %10491 = vmatprep.mubr.bf16.mxu0 %v12577_v7  ;;  %vm18457_vm14 = vmmov %vm18456_vm0  ;;  %v18471_v13 = vrot.slane %v16375_v30, 4  ;;  %v12486_v0 = vld [vmem:[#allocation9 + $0x28c] ss:$16 sps:$4 sm:$0xff]  }
 0x65d   : > { %vm18473_vm3 = vcmask 15360   ;;  %v12578_v30 = vld [vmem:[%s17044_s5 + $0xc] ss:$20 sps:$4 sm:$0xff]  }
 0x65e   : > { %v9034_v9 = vsel %vm18455_vm1, %v9027_v38, %v9028_v11  ;;  %v9036_v8 = vsel %vm18456_vm0, %v9020_v12, %v9028_v11  ;;  %10420 = vmatprep.subr.bf16.mxu1 %v11623_v1  ;;  %v18474_v1 = vrot.slane %v16392_v14, 4  ;;  %vm18476_vm1 = vcmask 154624   ;;  %vm18479_vm0 = vmmov %vm18469_vm4 }
 0x65f   : > { %v9035_v42 = vsel %vm18457_vm14, %v16609_v17, %v9034_v9  ;;  %9049 = vst.msk [vmem:[#allocation9 + $0x408] sm:$0xf] %vm18458_vm10, %v9036_v8  ;;  %v7292_v18 = vpop.permute.xlu0 %7291  ;;  %10421 = vmatpush1.bf16.msra.mxu1 %v11622_v2  ;;  %10466 = vmatpush1.bf16.msra.mxu0 %v12458_v48  ;;  %v12473_v51 = vld [vmem:[#allocation9 + $0x2c] ss:$16 sps:$4 sm:$0xff]   ;;  %v12471_v55 = vld [vmem:[#allocation9 + $0x28] ss:$16 sps:$4 sm:$0xff]   ;;  %vm18483_vm10 = vmmov %vm18479_vm0 }
 0x660   : > { %9053 = vst.msk [vmem:[#allocation9 + $0x408] sm:$0xff] %vm18398_vm9, %v17542_v43  ;;  %v7300_v24 = vrot.slane %v7292_v18, 4  ;;  %10467 = vmatprep.subr.bf16.mxu0 %v12463_v44  ;;  %v11618_v60 = vcombine.low %v9035_v42, %v16751_v10  ;;  %v11619_v41 = vcombine.high %v9035_v42, %v16751_v10  ;;  %vm18461_vm9 = vcmask 343040   ;;  %v12484_v2 = vld [vmem:[#allocation9 + $0x288] ss:$16 sps:$4 sm:$0xff]  }
 0x661   : > { %v12495_v48 = vld [vmem:[#allocation9 + $0x26c] ss:$16 sps:$4 sm:$0xff]   ;;  %v12493_v42 = vld [vmem:[#allocation9 + $0x268] ss:$16 sps:$4 sm:$0xff]   ;;  %vm18480_vm14 = vcmask 7168  }
 0x662   : > { %v7307_v17 = vsel %vm18460_vm11, %v18459_v59, %v7300_v24  ;;  %10422 = vmatprep.subr.bf16.mxu1 %v11619_v41  ;;  %v12501_v41 = vld [vmem:[#allocation9 + $0x24c] ss:$16 sps:$4 sm:$0xff]   ;;  %vm18484_vm11 = vcmask 162816  }
 0x663   : > { %v7308_v49 = vsel %vm18461_vm9, %v7307_v17, %v7292_v18  ;;  %v7998_v37 = vpop.permute.xlu0 %7997  ;;  %10423 = vmatpush1.bf16.msra.mxu1 %v11618_v60  ;;  %10468 = vmatpush1.bf16.msra.mxu0 %v12461_v58  ;;  %v18477_v18 = vld [vmem:[#allocation27_spill] sm:$0xff]  ;;  %vm18487_vm9 = vmmov %vm18479_vm0 }
 0x664   : > { %7321 = vst.msk [vmem:[#allocation9 + $0x18] sm:$0xff] %vm14177_vm7, %v7308_v49  ;;  %v8004_v10 = vrot.slane %v7998_v37, 4  ;;  %10469 = vmatprep.subr.bf16.mxu0 %v12466_v46  ;;  %10510 = vmatprep.subr.bf16.mxu1 %v12470_v33  ;;  %v18478_v24 = vrot.slane %v18477_v18, 4  ;;  %v12499_v49 = vld [vmem:[#allocation9 + $0x248] ss:$16 sps:$4 sm:$0xff]  }
 0x666   : > { %v8012_v53 = vsel %vm18464_vm8, %v18463_v4, %v8004_v10  ;;  %11643 = vmatmul.mubr.msk.bf16.vlgmr.msra.gmra.mxu1 %vm18465_vm12, %v16900_v3  ;;  %vm18488_vm8 = vmmov %vm18480_vm14 }
 0x667   : > { %v8013_v29 = vsel %vm18466_vm13, %v8012_v53, %v7998_v37  ;;  %v7990_v25 = vpop.permute.xlu0 %7989  ;;  %10470 = vmatpush1.bf16.msra.mxu0 %v12464_v31  ;;  %10511 = vmatpush1.bf16.msra.mxu1 %v12468_v16  ;;  %v18481_v37 = vld [vmem:[#allocation12_spill] sm:$0xff]  ;;  %vm18491_vm12 = vmmov %vm18479_vm0 }
 0x668   : > { %8025 = vst.msk [vmem:[#allocation9 + $0x1d8] sm:$0xff] %vm14177_vm7, %v8013_v29  ;;  %v8000_v56 = vrot.slane %v7990_v25, 4  ;;  %10471 = vmatprep.subr.bf16.mxu0 %v12473_v51  ;;  %10512 = vmatprep.subr.bf16.mxu1 %v12476_v22  ;;  %v18482_v16 = vrot.slane %v18481_v37, 4  ;;  %v18485_v22 = vld [vmem:[#allocation18_spill] sm:$0xff]  ;;  %vm18492_vm13 = vmmov %vm18484_vm11 }
 0x669   : > { %10450 = vmatprep.mubr.bf16.mxu1 %v17542_v43  ;;  %v18486_v29 = vrot.slane %v18485_v22, 4  ;;  %v12540_v22 = vld [vmem:[#allocation9 + $0x488] ss:$16 sps:$4 sm:$0xff]  }
 0x66a   : > { %v8006_v40 = vsel %vm18469_vm4, %v18468_v6, %v8000_v56  ;;  %vm18494_vm4 = vmmov %vm18479_vm0 }
 0x66b   : > { %v8007_v27 = vsel %vm18470_vm6, %v8006_v40, %v7990_v25  ;;  %v8082_v34 = vpop.permute.xlu0 %8081  ;;  %10472 = vmatpush1.bf16.msra.mxu0 %v12471_v55  ;;  %10513 = vmatpush1.bf16.msra.mxu1 %v12474_v36  ;;  %v12479_v35 = vld [vmem:[#allocation9 + $0xc] ss:$16 sps:$4 sm:$0xff]   ;;  %v12477_v28 = vld [vmem:[#allocation9 + $0x8] ss:$16 sps:$4 sm:$0xff]   ;;  %vm18495_vm6 = vcmask 171008  }
 0x66c   : > { %8021 = vst.msk [vmem:[#allocation9 + $0x1b8] sm:$0xff] %vm14177_vm7, %v8007_v27  ;;  %v8090_v15 = vrot.slane %v8082_v34, 4  ;;  %10514 = vmatprep.subr.bf16.mxu1 %v12482_v50  ;;  %10473 = vmatprep.subr.bf16.mxu0 %v12479_v35  ;;  %v18489_v27 = vld [vmem:[#allocation32_spill] sm:$0xff] }
 0x66e   : > { %v8097_v57 = vsel %vm18472_vm15, %v18471_v13, %v8090_v15  ;;  %11644 = vmatmul.mubr.msk.bf16.gmra.mxu1 %vm18452_vm2, %v16920_v21  ;;  %vm18498_vm15 = vmmov %vm18479_vm0  ;;  %vm18499_vm2 = vcmask 179200  }
 0x66f   : > { %v8098_v12 = vsel %vm18473_vm3, %v8097_v57, %v8082_v34  ;;  %v7916_v38 = vpop.permute.xlu0 %7915  ;;  %10474 = vmatpush1.bf16.msra.mxu0 %v12477_v28  ;;  %10515 = vmatpush1.bf16.msra.mxu1 %v12480_v23  ;;  %v12492_v46 = vld [vmem:[#allocation9 + $0x1cc] ss:$16 sps:$4 sm:$0xff]   ;;  %v12490_v53 = vld [vmem:[#allocation9 + $0x1c8] ss:$16 sps:$4 sm:$0xff]   ;;  %v18490_v34 = vrot.slane %v18489_v27, 4  ;;  %vm18501_vm3 = vmmov %vm18479_vm0 }
 0x670   : > { %8111 = vst.msk [vmem:[#allocation9 + $0x1f8] sm:$0xff] %vm14177_vm7, %v8098_v12  ;;  %v7924_v11 = vrot.slane %v7916_v38, 4  ;;  %10516 = vmatprep.subr.bf16.mxu1 %v12486_v0  ;;  %10542 = vmatprep.mubr.bf16.mxu1 %v12578_v30  ;;  %v18493_v0 = vrot.slane %v16416_v62, 4  ;;  %v12560_v27 = vld [vmem:[#allocation9 + $0x42c] ss:$16 sps:$4 sm:$0xff]  }
 0x672   : > { %v7931_v7 = vsel %vm18475_vm5, %v18474_v1, %v7924_v11  ;;  %vm18502_vm5 = vcmask 719872  }
 0x673   : > { %v7932_v9 = vsel %vm18476_vm1, %v7931_v7, %v7916_v38  ;;  %v8174_v8 = vpop.permute.xlu0 %8173  ;;  %10517 = vmatpush1.bf16.msra.mxu1 %v12484_v2  ;;  %v12498_v51 = vld [vmem:[#allocation9 + $0x1ac] ss:$16 sps:$4 sm:$0xff]   ;;  %v12496_v40 = vld [vmem:[#allocation9 + $0x1a8] ss:$16 sps:$4 sm:$0xff]   ;;  %vm18503_vm1 = vmmov %vm18502_vm5 }
 0x674   : > { %7945 = vst.msk [vmem:[#allocation9 + $0x198] sm:$0xff] %vm14177_vm7, %v7932_v9  ;;  %v8180_v44 = vrot.slane %v8174_v8, 4  ;;  %10518 = vmatprep.subr.bf16.mxu1 %v12495_v48  ;;  %v12519_v38 = vld [vmem:[#allocation9 + $0x3ec] ss:$16 sps:$4 sm:$0xff]  }
 0x675   : > { %v18496_v9 = vld [vmem:[#allocation17_spill] sm:$0xff] }
 0x676   : > { %v8188_v60 = vsel %vm18479_vm0, %v18478_v24, %v8180_v44  ;;  %v12517_v44 = vld [vmem:[#allocation9 + $0x3e8] ss:$16 sps:$4 sm:$0xff]  }
 0x677   : > { %v8189_v14 = vsel %vm18480_vm14, %v8188_v60, %v8174_v8  ;;  %v7842_v33 = vpop.permute.xlu0 %7841  ;;  %v12487_v58 = vld [vmem:[#allocation9 + $0x1e8] ss:$16 sps:$4 sm:$0xff]   ;;  %v12489_v59 = vld [vmem:[#allocation9 + $0x1ec] ss:$16 sps:$4 sm:$0xff]   ;;  %10519 = vmatpush1.bf16.msra.mxu1 %v12493_v42  ;;  %v18497_v8 = vrot.slane %v18496_v9, 4 }
 0x678   : > { %8201 = vst.msk [vmem:[#allocation9 + $0x238] sm:$0xff] %vm14177_vm7, %v8189_v14  ;;  %v7848_v17 = vrot.slane %v7842_v33, 4  ;;  %10520 = vmatprep.subr.bf16.mxu1 %v12501_v41  ;;  %10475 = vmatprep.subr.bf16.mxu0 %v12489_v59  ;;  %v12525_v42 = vld [vmem:[#allocation9 + $0x3cc] ss:$16 sps:$4 sm:$0xff]   ;;  %v12523_v41 = vld [vmem:[#allocation9 + $0x3c8] ss:$16 sps:$4 sm:$0xff]  }
 0x679   : > { %10476 = vmatpush2.bf16.msra.mxu0 %v12487_v58  ;;  %v12531_v14 = vld [vmem:[#allocation9 + $0x3ac] ss:$16 sps:$4 sm:$0xff]  }
 0x67a   : > { %v7856_v10 = vsel %vm18483_vm10, %v18482_v16, %v7848_v17  ;;  %10477 = vmatprep.subr.bf16.mxu0 %v12492_v46  ;;  %v9477_v59 = vld [vmem:[#allocation9 + $0x4a8] sm:$0xff] }
 0x67b   : > { %v7857_v31 = vsel %vm18484_vm11, %v7856_v10, %v7842_v33  ;;  %v8166_v5 = vpop.permute.xlu0 %8165  ;;  %10521 = vmatpush1.bf16.msra.mxu1 %v12499_v49  ;;  %v12504_v50 = vld [vmem:[#allocation9 + $0x18c] ss:$16 sps:$4 sm:$0xff]   ;;  %v12502_v13 = vld [vmem:[#allocation9 + $0x188] ss:$16 sps:$4 sm:$0xff]   ;;  %v11641_v16 = vcombine.high %v9477_v59, %v9477_v59  ;;  %v11640_v26 = vcombine.low %v9477_v59, %v9477_v59 }
 0x67c   : > { %7869 = vst.msk [vmem:[#allocation9 + $0x178] sm:$0xff] %vm14177_vm7, %v7857_v31  ;;  %v8176_v4 = vrot.slane %v8166_v5, 4  ;;  %v12529_v17 = vld [vmem:[#allocation9 + $0x3a8] ss:$16 sps:$4 sm:$0xff]   ;;  %v12534_v46 = vld [vmem:[#allocation9 + $0x38c] ss:$16 sps:$4 sm:$0xff]  }
 0x67d   : > { %10478 = vmatpush2.bf16.msra.mxu0 %v12490_v53  ;;  %v12532_v10 = vld [vmem:[#allocation9 + $0x388] ss:$16 sps:$4 sm:$0xff]   ;;  %v10301_v31 = vsel %vm18501_vm3, %v11640_v26, 0 }
 0x67e   : > { %v8182_v25 = vsel %vm18487_vm9, %v18486_v29, %v8176_v4  ;;  %10479 = vmatprep.subr.bf16.mxu0 %v12498_v51  ;;  %v12542_v4 = vld [vmem:[#allocation9 + $0x48c] ss:$16 sps:$4 sm:$0xff]   ;;  %v12537_v51 = vld [vmem:[#allocation9 + $0x368] ss:$16 sps:$4 sm:$0xff]  }
 0x67f   : > { %v8183_v56 = vsel %vm18488_vm8, %v8182_v25, %v8166_v5  ;;  %v7834_v55 = vpop.permute.xlu0 %7833  ;;  %v12505_v36 = vld [vmem:[#allocation9 + $0x228] ss:$16 sps:$4 sm:$0xff]   ;;  %v12507_v45 = vld [vmem:[#allocation9 + $0x22c] ss:$16 sps:$4 sm:$0xff]  }
 0x680   : > { %8197 = vst.msk [vmem:[#allocation9 + $0x218] sm:$0xff] %vm14177_vm7, %v8183_v56  ;;  %v7844_v6 = vrot.slane %v7834_v55, 4  ;;  %10522 = vmatprep.subr.bf16.mxu1 %v12507_v45  ;;  %v12539_v5 = vld [vmem:[#allocation9 + $0x36c] ss:$16 sps:$4 sm:$0xff]   ;;  %v12543_v56 = vld [vmem:[#allocation9 + $0x348] ss:$16 sps:$4 sm:$0xff]  }
 0x681   : > { %10480 = vmatpush2.bf16.msra.mxu0 %v12496_v40  ;;  %10523 = vmatpush1.bf16.msra.mxu1 %v12505_v36  ;;  %v12579_v53 = vld [vmem:[%s17044_s5] ss:$20 sps:$4 sm:$0xff]  }
 0x682   : > { %v7850_v35 = vsel %vm18491_vm12, %v18490_v34, %v7844_v6  ;;  %10481 = vmatprep.subr.bf16.mxu0 %v12504_v50  ;;  %v12545_v29 = vld [vmem:[#allocation9 + $0x34c] ss:$16 sps:$4 sm:$0xff]   ;;  %v12549_v6 = vld [vmem:[#allocation9 + $0x328] ss:$16 sps:$4 sm:$0xff]  }
 0x683   : > { %v7851_v15 = vsel %vm18492_vm13, %v7850_v35, %v7834_v55  ;;  %v7760_v28 = vpop.permute.xlu0 %7759  ;;  %v12510_v57 = vld [vmem:[#allocation9 + $0x16c] ss:$16 sps:$4 sm:$0xff]   ;;  %v12508_v48 = vld [vmem:[#allocation9 + $0x168] ss:$16 sps:$4 sm:$0xff]  }
 0x684   : > { %7865 = vst.msk [vmem:[#allocation9 + $0x158] sm:$0xff] %vm14177_vm7, %v7851_v15  ;;  %v7768_v23 = vrot.slane %v7760_v28, 4  ;;  %v12548_v25 = vld [vmem:[#allocation9 + $0x46c] ss:$16 sps:$4 sm:$0xff]   ;;  %v12546_v55 = vld [vmem:[#allocation9 + $0x468] ss:$16 sps:$4 sm:$0xff]  }
 0x685   : > { %10482 = vmatpush2.bf16.msra.mxu0 %v12502_v13  ;;  %v12551_v36 = vld [vmem:[#allocation9 + $0x32c] ss:$16 sps:$4 sm:$0xff]   ;;  %v12552_v40 = vld [vmem:[#allocation9 + $0x448] ss:$16 sps:$4 sm:$0xff]  }
 0x686   : > { %v7775_v12 = vsel %vm18494_vm4, %v18493_v0, %v7768_v23  ;;  %10483 = vmatprep.subr.bf16.mxu0 %v12510_v57  ;;  %v12554_v45 = vld [vmem:[#allocation9 + $0x44c] ss:$16 sps:$4 sm:$0xff]   ;;  %v12558_v34 = vld [vmem:[#allocation9 + $0x428] ss:$16 sps:$4 sm:$0xff]  }
 0x687   : > { %v7776_v11 = vsel %vm18495_vm6, %v7775_v12, %v7760_v28  ;;  %v7686_v30 = vpop.permute.xlu0 %7685  ;;  %v12511_v2 = vld [vmem:[#allocation9 + $0x208] ss:$16 sps:$4 sm:$0xff]   ;;  %v12513_v1 = vld [vmem:[#allocation9 + $0x20c] ss:$16 sps:$4 sm:$0xff]  }
 0x688   : > { %7789 = vst.msk [vmem:[#allocation9 + $0x138] sm:$0xff] %vm14177_vm7, %v7776_v11  ;;  %v7692_v7 = vrot.slane %v7686_v30, 4  ;;  %10524 = vmatprep.subr.bf16.mxu1 %v12513_v1  ;;  %v12557_v50 = vld [vmem:[#allocation9 + $0x30c] ss:$16 sps:$4 sm:$0xff]  }
 0x689   : > { %10484 = vmatpush2.bf16.msra.mxu0 %v12508_v48  ;;  %10525 = vmatpush1.bf16.msra.mxu1 %v12511_v2  ;;  %v12563_v35 = vld [vmem:[#allocation9 + $0x40c] ss:$16 sps:$4 sm:$0xff]  }
 0x68a   : > { %v7700_v62 = vsel %vm18498_vm15, %v18497_v8, %v7692_v7  ;;  %10526 = vmatprep.subr.bf16.mxu1 %v12519_v38 }
 0x68b   : > { %v7701_v18 = vsel %vm18499_vm2, %v7700_v62, %v7686_v30  ;;  %v12514_v24 = vld [vmem:[#allocation9 + $0x148] ss:$16 sps:$4 sm:$0xff]   ;;  %v12516_v60 = vld [vmem:[#allocation9 + $0x14c] ss:$16 sps:$4 sm:$0xff]  }
 0x68c   : > { %7713 = vst.msk [vmem:[#allocation9 + $0x118] sm:$0xff] %vm14177_vm7, %v7701_v18  ;;  %10485 = vmatprep.subr.bf16.mxu0 %v12516_v60  ;;  %vm18500_vm7 = vmmov %vm18479_vm0  ;;  %vm18506_vm0 = vcmask 130048  }
 0x68d   : > { %10486 = vmatpush2.bf16.msra.mxu0 %v12514_v24  ;;  %10527 = vmatpush2.bf16.msra.mxu1 %v12517_v44 }
 0x68e   : > { %10528 = vmatprep.subr.bf16.mxu1 %v12525_v42 }
 0x68f   : > { %v12520_v33 = vld [vmem:[#allocation9 + $0x128] ss:$16 sps:$4 sm:$0xff]   ;;  %v12522_v58 = vld [vmem:[#allocation9 + $0x12c] ss:$16 sps:$4 sm:$0xff]  }
 0x690   : > { %10487 = vmatprep.subr.bf16.mxu0 %v12522_v58 }
 0x691   : > { %10488 = vmatpush2.bf16.msra.mxu0 %v12520_v33  ;;  %10529 = vmatpush2.bf16.msra.mxu1 %v12523_v41 }
 0x692   : > { %10530 = vmatprep.subr.bf16.mxu1 %v12531_v14 }
 0x693   : > { %v12526_v49 = vld [vmem:[#allocation9 + $0x108] ss:$16 sps:$4 sm:$0xff]   ;;  %v12528_v37 = vld [vmem:[#allocation9 + $0x10c] ss:$16 sps:$4 sm:$0xff]  }
 0x694   : > { %10489 = vmatprep.subr.bf16.mxu0 %v12528_v37  ;;  %v16997_v7 = vpop.permute.xlu0 %9488 }
 0x695   : > { %10490 = vmatpush2.bf16.msra.mxu0 %v12526_v49  ;;  %10531 = vmatpush2.bf16.msra.mxu1 %v12529_v17 }
 0x696   : > { %10532 = vmatprep.subr.bf16.mxu1 %v12534_v46  ;;  %11645 = vmatprep.subr.msk.bf16.mxu0 %vm18500_vm7, %v11641_v16 }
 0x698   : > { %10492 = vmatmul.mubr.bf16.vlgmr.msra.gmra.mxu0 %v12579_v53 }
 0x699   : > { %10533 = vmatpush2.bf16.msra.mxu1 %v12532_v10  ;;  %10566 = vmatpush1.bf16.msra.mxu0 %v10301_v31 }
 0x69a   : > { %10534 = vmatprep.subr.bf16.mxu1 %v12539_v5  ;;  %10567 = vmatprep.subr.bf16.mxu0 %v12542_v4 }
 0x69b   : > { %10501 = vmatprep.mubr.bf16.mxu0 %v16543_v39  ;;  %v12555_v39 = vld [vmem:[#allocation9 + $0x308] ss:$16 sps:$4 sm:$0xff]  }
 0x69d   : > { %10535 = vmatpush2.bf16.msra.mxu1 %v12537_v51  ;;  %10568 = vmatpush1.bf16.msra.mxu0 %v12540_v22 }
 0x69e   : > { %10536 = vmatprep.subr.bf16.mxu1 %v12545_v29  ;;  %10569 = vmatprep.subr.bf16.mxu0 %v12548_v25  ;;  %v17009_v29 = vld [vmem:[%s17046_s7] sm:$0xf] }
 0x6a0   : > { %10502 = vmatmul.mubr.bf16.gmra.mxu0 %v16563_v19  ;;  %v12561_v19 = vld [vmem:[#allocation9 + $0x408] ss:$16 sps:$4 sm:$0xff]  }
 0x6a1   : > { %10537 = vmatpush2.bf16.msra.mxu1 %v12543_v56  ;;  %10570 = vmatpush1.bf16.msra.mxu0 %v12546_v55 }
 0x6a2   : > { %10538 = vmatprep.subr.bf16.mxu1 %v12551_v36  ;;  %10571 = vmatprep.subr.bf16.mxu0 %v12554_v45 }
 0x6a3   : > { %10593 = vmatprep.mubr.bf16.mxu0 %v17542_v43 }
 0x6a5   : > { %10539 = vmatpush2.bf16.msra.mxu1 %v12549_v6  ;;  %10572 = vmatpush1.bf16.msra.mxu0 %v12552_v40  ;;  %v10641_v40 = vrot.slane %v17009_v29, %v18267_v47 }
 0x6a6   : > { %10540 = vmatprep.subr.bf16.mxu1 %v12557_v50  ;;  %10573 = vmatprep.subr.bf16.mxu0 %v12560_v27 }
 0x6a9   : > { %10541 = vmatpush2.bf16.msra.mxu1 %v12555_v39  ;;  %10574 = vmatpush1.bf16.msra.mxu0 %v12558_v34 }
 0x6aa   : > { %10575 = vmatprep.subr.bf16.mxu0 %v12563_v35  ;;  %v10645_v35 = vrot.slane %v17009_v29, %v18268_v61 }
 0x6ac   : > { %10543 = vmatmul.mubr.bf16.vlgmr.msra.gmra.mxu1 %v16829_v54 }
 0x6ad   : > { %10576 = vmatpush1.bf16.msra.mxu0 %v12561_v19  ;;  %10552 = vmatprep.mubr.bf16.mxu1 %v16835_v32 }
 0x6b0   : > { %11646 = vmatmul.mubr.msk.bf16.vlgmr.msra.gmra.mxu0 %vm18502_vm5, %v16900_v3 }
 0x6b1   : > { %10603 = vmatprep.mubr.bf16.mxu0 %v17542_v43 }
 0x6b4   : > { %10553 = vmatmul.mubr.bf16.gmra.mxu1 %v16861_v52  ;;  %v16994_v52 = vpop.permute.xlu1 %9483 }
 0x6b8   : > { %11647 = vmatmul.mubr.msk.bf16.gmra.mxu0 %vm18503_vm1, %v16920_v21  ;;  %v17002_v41 = vpop.permute.xlu1 %9493 }
 0x6bb   : > { %v10340_v15 = vpop.f32.mrf.mxu1 }
 0x6bc   : > { %v10341_v21 = vadd.f32 %v10340_v15, %v16994_v52 }
 0x6bd   : > { %v10342_v28 = vpop.f32.mrf.mxu1 }
 0x6be   : > { %v10343_v9 = vadd.f32 %v10342_v28, %v16994_v52 }
 0x6bf   : > { %v10344_v23 = vpop.f32.mrf.mxu1 }
 0x6c0   : > { %v10345_v8 = vadd.f32 %v10344_v23, %v16997_v7 }
 0x6c1   : > { %v10346_v13 = vpop.f32.mrf.mxu1 }
 0x6c2   : > { %v10347_v42 = vadd.f32 %v10346_v13, %v16997_v7 }
 0x6c3   : > { %v10350_v57 = vpop.f32.mrf.mxu1 }
 0x6c4   : > { %v10351_v33 = vadd.f32 %v10350_v57, %v17002_v41 }
 0x6c5   : > { %v10352_v0 = vpop.f32.mrf.mxu1 }
 0x6c6   : > { %v10353_v46 = vadd.f32 %v10352_v0, %v17002_v41 }
 0x6c7   : > { %v10354_v54 = vpop.f32.mrf.mxu1 }
 0x6c9   : > { %v10355_v12 = vpop.f32.mrf.mxu1 }
 0x712   : > { %v10391_v38 = vpop.f32.mrf.mxu0 }
 0x713   : > { %v10392_v62 = vadd.f32 %v10391_v38, %v10341_v21 }
 0x714   : > { %v10393_v32 = vpop.f32.mrf.mxu0 }
 0x715   : > { %v10394_v18 = vadd.f32 %v10393_v32, %v10343_v9 }
 0x716   : > { %v10395_v11 = vpop.f32.mrf.mxu0 }
 0x717   : > { %v10396_v24 = vadd.f32 %v10395_v11, %v10345_v8 }
 0x718   : > { %v10397_v30 = vpop.f32.mrf.mxu0 }
 0x719   : > { %v10398_v58 = vadd.f32 %v10397_v30, %v10347_v42 }
 0x71a   : > { %v10401_v3 = vpop.f32.mrf.mxu0 }
 0x71b   : > { %v10402_v37 = vadd.f32 %v10401_v3, %v10351_v33 }
 0x71c   : > { %v10403_v2 = vpop.f32.mrf.mxu0 }
 0x71d   : > { %v10404_v31 = vadd.f32 %v10403_v2, %v10353_v46 }
 0x71e   : > { %v10405_v43 = vpop.f32.mrf.mxu0 }
 0x720   : > { %v10406_v1 = vpop.f32.mrf.mxu0 }
 0x726   : > { %v10442_v48 = vpop.f32.mrf.mxu1 }
 0x727   : > { %v10443_v60 = vadd.f32 %v10442_v48, %v10392_v62 }
 0x728   : > { %v10444_v44 = vpop.f32.mrf.mxu1 }
 0x729   : > { %v10445_v59 = vadd.f32 %v10444_v44, %v10394_v18  ;;  %v10612_v16 = vmax.f32 %v10443_v60, 0.0 }
 0x72a   : > { %v10446_v14 = vpop.f32.mrf.mxu1 }
 0x72b   : > { %v10447_v17 = vadd.f32 %v10446_v14, %v10396_v24  ;;  %v10613_v4 = vmax.f32 %v10445_v59, 0.0 }
 0x72c   : > { %v10448_v49 = vpop.f32.mrf.mxu1 }
 0x72d   : > { %v10616_v26 = vmax.f32 %v10447_v17, 0.0  ;;  %v10449_v10 = vadd.f32 %v10448_v49, %v10398_v58 }
 0x72e   : > { %v10452_v5 = vpop.f32.mrf.mxu1 }
 0x72f   : > { %v10624_v53 = vadd.f32 %v10616_v26, %v10612_v16  ;;  %v10617_v51 = vmax.f32 %v10449_v10, 0.0  ;;  %v10453_v22 = vadd.f32 %v10452_v5, %v10402_v37 }
 0x730   : > { %v10454_v25 = vpop.f32.mrf.mxu1 }
 0x731   : > { %v10625_v56 = vadd.f32 %v10617_v51, %v10613_v4  ;;  %v10620_v55 = vmax.f32 %v10453_v22, 0.0  ;;  %v10455_v36 = vadd.f32 %v10454_v25, %v10404_v31 }
 0x732   : > { %v10456_v45 = vpop.f32.mrf.mxu1 }
 0x733   : > { %v10628_v6 = vadd.f32 %v10624_v53, %v10620_v55  ;;  %v10621_v50 = vmax.f32 %v10455_v36, 0.0  ;;  %v10649_v36 = vrot.slane %v17009_v29, %v18278_v63 }
 0x734   : > { %v10457_v27 = vpop.f32.mrf.mxu1 }
 0x735   : > { %v10632_v39 = vmul.f32 0.33333334, %v10628_v6  ;;  %v10629_v34 = vadd.f32 %v10625_v56, %v10621_v50  ;;  %v10653_v27 = vrot.slane %v17009_v29, %v18279_v20 }
 0x737   : > { %v10658_v19 = vmul.f32 %v10641_v40, %v10632_v39  ;;  %v10633_v15 = vmul.f32 0.33333334, %v10629_v34 }
 0x739   : > { %10662 = vst [vmem:[%s17019_s22] sm:$0xff] %v10658_v19  ;;  %v10659_v28 = vmul.f32 %v10645_v35, %v10633_v15 }
 0x73b   : > { %10663 = vst [vmem:[%s17019_s22 + $0x8] sm:$0xff] %v10659_v28 }
 0x758   : > { %v10493_v47 = vpop.f32.mrf.mxu0 }
 0x759   : > { %v10494_v3 = vadd.f32 %v10493_v47, %v16994_v52 }
 0x75a   : > { %v10495_v23 = vpop.f32.mrf.mxu0 }
 0x75b   : > { %v10496_v21 = vadd.f32 %v10495_v23, %v16994_v52 }
 0x75c   : > { %v10497_v13 = vpop.f32.mrf.mxu0 }
 0x75d   : > { %v10498_v2 = vadd.f32 %v10497_v13, %v16997_v7 }
 0x75e   : > { %v10499_v57 = vpop.f32.mrf.mxu0 }
 0x75f   : > { %v10500_v48 = vadd.f32 %v10499_v57, %v16997_v7 }
 0x760   : > { %v10503_v0 = vpop.f32.mrf.mxu0 }
 0x761   : > { %v10504_v62 = vadd.f32 %v10503_v0, %v17002_v41 }
 0x762   : > { %v10505_v54 = vpop.f32.mrf.mxu0 }
 0x763   : > { %v10506_v33 = vadd.f32 %v10505_v54, %v17002_v41 }
 0x764   : > { %v10507_v12 = vpop.f32.mrf.mxu0 }
 0x766   : > { %v10508_v61 = vpop.f32.mrf.mxu0 }
 0x76c   : > { %v10544_v38 = vpop.f32.mrf.mxu1 }
 0x76d   : > { %v10545_v9 = vadd.f32 %v10544_v38, %v10494_v3 }
 0x76e   : > { %v10546_v32 = vpop.f32.mrf.mxu1 }
 0x76f   : > { %v10547_v18 = vadd.f32 %v10546_v32, %v10496_v21 }
 0x770   : > { %v10548_v11 = vpop.f32.mrf.mxu1  ;;  %v10595_v30 = vpop.f32.mrf.mxu0 }
 0x771   : > { %v10549_v8 = vadd.f32 %v10548_v11, %v10498_v2  ;;  %v10596_v24 = vadd.f32 %v10595_v30, %v10545_v9 }
 0x772   : > { %v10550_v43 = vpop.f32.mrf.mxu1  ;;  %v10597_v1 = vpop.f32.mrf.mxu0 }
 0x773   : > { %v10551_v60 = vadd.f32 %v10550_v43, %v10500_v48  ;;  %v10598_v17 = vadd.f32 %v10597_v1, %v10547_v18  ;;  %v10614_v16 = vmax.f32 %v10596_v24, 0.0 }
 0x774   : > { %v10554_v44 = vpop.f32.mrf.mxu1  ;;  %v10599_v42 = vpop.f32.mrf.mxu0 }
 0x775   : > { %v10600_v14 = vadd.f32 %v10599_v42, %v10549_v8  ;;  %v10555_v46 = vadd.f32 %v10554_v44, %v10504_v62  ;;  %v10615_v53 = vmax.f32 %v10598_v17, 0.0 }
 0x776   : > { %v10556_v58 = vpop.f32.mrf.mxu1  ;;  %v10601_v59 = vpop.f32.mrf.mxu0 }
 0x777   : > { %v10618_v49 = vmax.f32 %v10600_v14, 0.0  ;;  %v10602_v52 = vadd.f32 %v10601_v59, %v10551_v60  ;;  %v10557_v26 = vadd.f32 %v10556_v58, %v10506_v33 }
 0x778   : > { %v10558_v37 = vpop.f32.mrf.mxu1  ;;  %v10605_v7 = vpop.f32.mrf.mxu0 }
 0x779   : > { %v10619_v10 = vmax.f32 %v10602_v52, 0.0  ;;  %v10606_v31 = vadd.f32 %v10605_v7, %v10555_v46  ;;  %v10626_v51 = vadd.f32 %v10618_v49, %v10614_v16 }
 0x77a   : > { %v10559_v5 = vpop.f32.mrf.mxu1  ;;  %v10607_v4 = vpop.f32.mrf.mxu0 }
 0x77b   : > { %v10622_v22 = vmax.f32 %v10606_v31, 0.0  ;;  %v10608_v41 = vadd.f32 %v10607_v4, %v10557_v26  ;;  %v10627_v56 = vadd.f32 %v10619_v10, %v10615_v53 }
 0x77c   : > { %v10609_v25 = vpop.f32.mrf.mxu0 }
 0x77d   : > { %v10630_v55 = vadd.f32 %v10626_v51, %v10622_v22  ;;  %v10623_v45 = vmax.f32 %v10608_v41, 0.0 }
 0x77e   : > { %v10610_v6 = vpop.f32.mrf.mxu0 }
 0x77f   : > { %v10634_v40 = vmul.f32 0.33333334, %v10630_v55  ;;  %v10631_v50 = vadd.f32 %v10627_v56, %v10623_v45 }
 0x781   : > { %v10660_v39 = vmul.f32 %v10649_v36, %v10634_v40  ;;  %v10635_v34 = vmul.f32 0.33333334, %v10631_v50 }
 0x783   : > { %10664 = vst [vmem:[%s17019_s22 + $0x10] sm:$0xff] %v10660_v39  ;;  %v10661_v35 = vmul.f32 %v10653_v27, %v10635_v34 }
 0x785   : > { %10665 = vst.msk [vmem:[%s17019_s22 + $0x18] sm:$0xff] %vm18506_vm0, %v10661_v35 }
 0x786 PF: > { %s18507_s25 = sld [smem:[#allocation10_spill]] }
 0x78c   : > { %s18_s27 = sadd.s32 1, %s18507_s25  }
 0x78d   : > { %p15_p4 = scmp.ge.s32.totalorder %s18_s27, 4  }
 0x78f   :  { %17 = sbr.rel (!%p15_p4) target bundleno = 6 (0x6), region = 98 }

</bundles_post_ra>
